<compile_context>
chip_gen: v5e
topology: v5e:2x2
jax: 0.10.0
libtpu: 0.0.40
codegen_flags: <defaults>
</compile_context>

<pallas_src>
import functools

import jax
import jax.numpy as jnp
from jax import lax
from jax.experimental import pallas as pl
from jax.experimental.pallas import tpu as pltpu

HIGHEST = jax.lax.Precision.HIGHEST   # only used by the pure-JAX reference


# ----------------------------------------------------------------------------- kernel
def _graph_max(a_pre, b_pre, oht_ref, *, k, npoint, slope, group):
    """One StaticGraph_module (BN folded):  max_j LReLU( a_pre[:, knn[n,j]] + b_pre[:, n] ).

    a_pre, b_pre: (64, npoint) f32.  oht_ref: (npoint, k*npoint) bf16 one-hot gather.
    """
    a_bf = a_pre.astype(jnp.bfloat16)
    out = None
    for g0 in range(0, k, group):
        gn = min(group, k - g0)
        cols = oht_ref[:, g0 * npoint:(g0 + gn) * npoint]            # (npoint, gn*npoint) bf16
        gath = jnp.dot(a_bf, cols, preferred_element_type=jnp.float32)  # (64, gn*npoint) f32
        for j in range(gn):
            y = gath[:, j * npoint:(j + 1) * npoint] + b_pre         # (64, npoint)
            y = jnp.maximum(y, slope * y)                            # LeakyReLU(0.2)
            out = y if out is None else jnp.maximum(out, y)
    return out                                                       # (64, npoint) f32


def initnet_gnn_kernel(x_ref, w1_ref, wab1_ref, bias1_ref, wab2_ref, bg2_ref,
                       oht_ref, wm_ref, bm_ref, out_ref,
                       *, b_tile, k, npoint, slope, gather_group):
    f32 = jnp.float32
    bf16 = jnp.bfloat16
    for b in range(b_tile):                                          # static unroll over batch tile
        x_b = x_ref[b]                                               # (C_in, S) bf16

        # conv1x1 in row layout (bias deferred):  m[n, s] = sum_c w1[n, c] * x[c, s]
        m = jnp.dot(w1_ref[...], x_b, preferred_element_type=f32)    # (npoint, S=64) f32
        m_bf = m.astype(bf16)

        # --- graph module 1: contract m's spatial axis directly (A @ B^T on the MXU).
        # bias1 already contains rowsum(W)*b1[n] (+ folded BN bias on the center half).
        ab1 = lax.dot_general(wab1_ref[...], m_bf,
                              (((1,), (1,)), ((), ())),
                              preferred_element_type=f32)            # (128, npoint)
        ab1 = ab1 + bias1_ref[...]
        x2 = _graph_max(ab1[:64], ab1[64:], oht_ref,
                        k=k, npoint=npoint, slope=slope, group=gather_group)

        # --- graph module 2 (standard orientation, (128,64)@(64,npoint)).
        ab2 = jnp.dot(wab2_ref[...], x2.astype(bf16),
                      preferred_element_type=f32)                    # (128, npoint)
        x3 = _graph_max(ab2[:64], ab2[64:] + bg2_ref[...], oht_ref,
                        k=k, npoint=npoint, slope=slope, group=gather_group)

        # --- final Linear: (num_bits, 64) @ (64, npoint) -> lane-dense output tile.
        res = jnp.dot(wm_ref[...], x3.astype(bf16),
                      preferred_element_type=f32) + bm_ref[...]      # (num_bits, npoint)
        out_ref[b] = res.astype(out_ref.dtype)


# ----------------------------------------------------------------------------- wrapper
def _pick_b_tile(batch, max_tile=4):
    divs = [t for t in range(1, min(batch, max_tile) + 1) if batch % t == 0]
    multi = [t for t in divs if batch // t >= 2]      # keep grid >= 2 (v7x: 2 TensorCores)
    return max(multi) if multi else max(divs)


def initnet_gnn_forward(img_feats, kp, *, graph_k, slope=0.2, b_tile=None, gather_group=4):
    """img_feats: (B, C_in, 8, 8) backbone output.  kp: prepare_kernel_params(...) dict."""
    B, C_in, H, W = img_feats.shape
    S = H * W
    assert S == 64, "InitNet_GNN expects an 8x8 feature map (64-dim graph features)"
    npoint = kp["w1"].shape[0]
    num_bits = kp["wm"].shape[0]

    x = img_feats.reshape(B, C_in, S).astype(jnp.bfloat16)   # halve the kernel's HBM read
    if b_tile is None:
        b_tile = _pick_b_tile(B)
    assert B % b_tile == 0
    grid = (B // b_tile,)
    gg = max(1, min(gather_group, graph_k))

    def const(arr):
        return pl.BlockSpec(arr.shape, lambda g, _n=arr.ndim: (0,) * _n)

    kernel = functools.partial(initnet_gnn_kernel, b_tile=b_tile, k=graph_k,
                               npoint=npoint, slope=slope, gather_group=gg)
    out = pl.pallas_call(
        kernel,
        out_shape=jax.ShapeDtypeStruct((B, num_bits, npoint), jnp.float32),
        grid=grid,
        in_specs=[
            pl.BlockSpec((b_tile, C_in, S), lambda g: (g, 0, 0)),    # backbone feats (bf16)
            const(kp["w1"]),        # (npoint, C_in)   bf16   conv1x1 weight
            const(kp["wab1"]),      # (128, 64)        bf16   graph module 1 [wa; wb]
            const(kp["bias1"]),     # (128, npoint)    f32    b1-fold + BN bias (module 1)
            const(kp["wab2"]),      # (128, 64)        bf16   graph module 2 [wa; wb]
            const(kp["bg2"]),       # (64, npoint)     f32    BN bias (module 2), pre-broadcast
            const(kp["oht"]),       # (npoint, k*npoint) bf16 static one-hot kNN gather
            const(kp["wm"]),        # (num_bits, 64)   bf16   final Linear weight
            const(kp["bm"]),        # (num_bits, npoint) f32  final Linear bias, pre-broadcast
        ],
        out_specs=pl.BlockSpec((b_tile, num_bits, npoint), lambda g: (g, 0, 0)),
        compiler_params=pltpu.CompilerParams(dimension_semantics=("parallel",)),
    )(x, kp["w1"], kp["wab1"], kp["bias1"], kp["wab2"], kp["bg2"],
      kp["oht"], kp["wm"], kp["bm"])
    return out                                                       # (B, num_out_bits, npoint)


# ----------------------------------------------------------------------------- host prep
def prepare_kernel_params(raw, knn_idx, graph_k, eps=None):
    """Fold eval-mode BN + conv1x1 bias, build the static one-hot gather, cast to bf16.

    Done ONCE (outside the forward call) -- everything here is static given the weights
    and p3d_normed.
    """
    eps = raw["eps"] if eps is None else eps
    w1, b1 = raw["w1"], raw["b1"]                    # (npoint, C_in), (npoint, 1)
    npoint = w1.shape[0]
    num_bits = raw["wm"].shape[0]
    b1v = b1.reshape(-1)                             # (npoint,)

    def fold(wg, gamma, beta, rmean, rvar):
        # conv([nbr-ctr, ctr]) + eval BN  ==  wa@nbr + wb@ctr + bg
        scale = gamma / jnp.sqrt(rvar + eps)
        wd, wc = wg[:, :64], wg[:, 64:]
        wa = scale[:, None] * wd                     # neighbor path   (64, 64)
        wb = scale[:, None] * (wc - wd)              # center path     (64, 64)
        bg = beta - scale * rmean                    # (64,)
        return wa, wb, bg

    wa1, wb1, bg1 = fold(*raw["g1"])
    wa2, wb2, bg2 = fold(*raw["g2"])

    # conv1x1 bias b1[n] adds a constant to every feature channel of keypoint n, so it
    # enters graph module 1 as rowsum(W) * b1[n] on each output channel (neighbor path
    # before the gather, center path afterwards).
    bias_a = jnp.sum(wa1, axis=1)[:, None] * b1v[None, :]                    # (64, npoint)
    bias_b = jnp.sum(wb1, axis=1)[:, None] * b1v[None, :] + bg1[:, None]     # (64, npoint)
    bias1 = jnp.concatenate([bias_a, bias_b], axis=0).astype(jnp.float32)    # (128, npoint)

    # Static one-hot gather:  oht[m, j*npoint + n] = 1  iff  knn_idx[n, j] == m
    oh = jax.nn.one_hot(knn_idx.T.reshape(-1), npoint, dtype=jnp.float32)    # (k*npoint, npoint)
    oht = oh.T                                                               # (npoint, k*npoint)

    return dict(
        w1=w1.astype(jnp.bfloat16),
        wab1=jnp.concatenate([wa1, wb1], axis=0).astype(jnp.bfloat16),
        bias1=bias1,
        wab2=jnp.concatenate([wa2, wb2], axis=0).astype(jnp.bfloat16),
        bg2=jnp.broadcast_to(bg2[:, None], (64, npoint)).astype(jnp.float32),
        oht=oht.astype(jnp.bfloat16),
        wm=raw["wm"].astype(jnp.bfloat16),
        bm=jnp.broadcast_to(raw["bm"].reshape(-1)[:, None],
                            (num_bits, npoint)).astype(jnp.float32),
    )


def knn_jax(p3d, k):
    """Mirror of torch `knn` in __init__: p3d (1, 3, npoint) -> idx (npoint, k)."""
    x = p3d[0]                                       # (3, N)
    inner = -2.0 * (x.T @ x)
    xx = jnp.sum(x * x, axis=0, keepdims=True)       # (1, N)
    pd = -xx - inner - xx.T                          # -||xi - xj||^2
    _, idx = jax.lax.top_k(pd, k)
    return idx                                       # (N, k) int32


def fake_backbone(img, w_bb):
    # TODO(synk): pretrained timm resnet34(+decoder) backbone is not reproduced; this is a
    # deterministic pooled-projection stand-in producing the expected (B, 512, 8, 8) map.
    B, C, H, W = img.shape
    ph, pw = H // 8, W // 8
    pooled = img.reshape(B, C, 8, ph, 8, pw).mean(axis=(3, 5))        # (B, C, 8, 8)
    feats = jnp.tanh(jnp.einsum("oc,bchw->bohw", w_bb, pooled))       # (B, 512, 8, 8)
    return feats


def make_raw_params(key, *, c_in, npoint, num_bits, eps=1e-5):
    ks = jax.random.split(key, 8)
    w1 = jax.random.normal(ks[0], (npoint, c_in), jnp.float32) / jnp.sqrt(c_in)
    b1 = 0.01 * jax.random.normal(ks[1], (npoint, 1), jnp.float32)

    def graph_raw(k_w, k_bn):
        wg = jax.random.normal(k_w, (64, 128), jnp.float32) / jnp.sqrt(128.0)
        kb = jax.random.split(k_bn, 4)
        gamma = 1.0 + 0.1 * jax.random.normal(kb[0], (64,), jnp.float32)
        beta = 0.1 * jax.random.normal(kb[1], (64,), jnp.float32)
        rmean = 0.1 * jax.random.normal(kb[2], (64,), jnp.float32)
        rvar = 1.0 + 0.1 * jax.random.uniform(kb[3], (64,), jnp.float32)
        return wg, gamma, beta, rmean, rvar

    g1 = graph_raw(ks[2], ks[3])
    g2 = graph_raw(ks[4], ks[5])
    wm = jax.random.normal(ks[6], (num_bits, 64), jnp.float32) / 8.0
    bm = 0.01 * jax.random.normal(ks[7], (1, num_bits), jnp.float32)
    return dict(w1=w1, b1=b1, g1=g1, g2=g2, wm=wm, bm=bm, eps=eps)


def reference_forward(img_feats, raw, knn_idx, *, slope=0.2):
    """Pure-JAX f32 mirror of the PyTorch forward (post-backbone), eval-mode BN."""
    B, C_in, H, W = img_feats.shape
    x = img_feats.reshape(B, C_in, H * W)
    out = jnp.einsum("nc,bcs->bns", raw["w1"], x, precision=HIGHEST) + raw["b1"][None]
    g = jnp.transpose(out, (0, 2, 1))                      # (B, 64, npoint)
    eps = raw["eps"]
    for (wg, gamma, beta, rmean, rvar) in (raw["g1"], raw["g2"]):
        nbr = g[:, :, knn_idx]                             # (B, 64, N, k)
        ctr = jnp.broadcast_to(g[:, :, :, None], nbr.shape)
        feat = jnp.concatenate([nbr - ctr, ctr], axis=1)   # (B, 128, N, k)
        conv = jnp.einsum("oc,bcnk->bonk", wg, feat, precision=HIGHEST)
        bn = (gamma[None, :, None, None] * (conv - rmean[None, :, None, None])
              / jnp.sqrt(rvar + eps)[None, :, None, None] + beta[None, :, None, None])
        act = jnp.where(bn > 0, bn, slope * bn)
        g = jnp.max(act, axis=-1)                          # (B, 64, N)
    y = jnp.einsum("bcn,oc->bon", g, raw["wm"], precision=HIGHEST) + raw["bm"].reshape(1, -1, 1)
    return y                                               # (B, num_bits, N)


# ----------------------------------------------------------------------------- main
if __name__ == "__main__":
    key = jax.random.PRNGKey(0)
    k_img, k_p3d, k_bb, k_params = jax.random.split(key, 4)

    batch = 8
    npoint = 128
    graph_k = 8
    res_log2 = 3
    num_bits = 1 + 2 * res_log2          # 7
    c_in = 512                           # CONV1X1_IN_CHANS['resnet34']

    img = jax.random.normal(k_img, (batch, 3, 32, 32), jnp.float32)
    p3d_normed = jax.random.normal(k_p3d, (1, 3, npoint), jnp.float32)
    p3d_normed = p3d_normed / jnp.linalg.norm(p3d_normed, axis=1, keepdims=True)

    w_bb = jax.random.normal(k_bb, (c_in, 3), jnp.float32) / jnp.sqrt(3.0)
    img_feats = fake_backbone(img, w_bb)                   # (B, 512, 8, 8)

    knn_idx = knn_jax(p3d_normed, graph_k)                 # (npoint, k), static
    raw = make_raw_params(k_params, c_in=c_in, npoint=npoint, num_bits=num_bits)
    kp = prepare_kernel_params(raw, knn_idx, graph_k)      # built ONCE, outside forward

    out = initnet_gnn_forward(img_feats, kp, graph_k=graph_k)
    out = jax.block_until_ready(out)
    assert out.shape == (batch, num_bits, npoint), out.shape
    assert bool(jnp.all(jnp.isfinite(out)))

    ref = reference_forward(img_feats, raw, knn_idx)
    # bf16 matmul operands (f32 accumulation) -> expect a few e-3 deviation vs the f32
    # HIGHEST reference; 3e-2 keeps comfortable margin while still catching real bugs.
    if not jnp.allclose(out, ref, rtol=3e-2, atol=3e-2):
        raise AssertionError(
            "mismatch vs reference: max abs diff = %g"
            % float(jnp.max(jnp.abs(out - ref))))

    print("KERNEL_OK")
</pallas_src>

<mosaic_0001>
module attributes {stable_mosaic.version = 11 : i64} {
  func.func @initnet_gnn_kernel(%arg0: i32, %arg1: memref<4x512x64xbf16, #tpu.memory_space<vmem>>, %arg2: memref<128x512xbf16, #tpu.memory_space<vmem>>, %arg3: memref<128x64xbf16, #tpu.memory_space<vmem>>, %arg4: memref<128x128xf32, #tpu.memory_space<vmem>>, %arg5: memref<128x64xbf16, #tpu.memory_space<vmem>>, %arg6: memref<64x128xf32, #tpu.memory_space<vmem>>, %arg7: memref<128x1024xbf16, #tpu.memory_space<vmem>>, %arg8: memref<7x64xbf16, #tpu.memory_space<vmem>>, %arg9: memref<7x128xf32, #tpu.memory_space<vmem>>, %arg10: memref<4x7x128xf32, #tpu.memory_space<vmem>>) attributes {dimension_semantics = [#tpu.dimension_semantics<parallel>], iteration_bounds = array<i64: 2>, scalar_prefetch = 0 : i64, scratch_operands = 0 : i64, tpu.core_type = #tpu.core_type<tc>, window_params = [{transform_indices = @transform_0, window_bounds = array<i64: 4, 512, 64>}, {pipeline_mode = #tpu.pipeline_mode<synchronous>, transform_indices = @transform_1, window_bounds = array<i64: 128, 512>}, {pipeline_mode = #tpu.pipeline_mode<synchronous>, transform_indices = @transform_2, window_bounds = array<i64: 128, 64>}, {pipeline_mode = #tpu.pipeline_mode<synchronous>, transform_indices = @transform_3, window_bounds = array<i64: 128, 128>}, {pipeline_mode = #tpu.pipeline_mode<synchronous>, transform_indices = @transform_4, window_bounds = array<i64: 128, 64>}, {pipeline_mode = #tpu.pipeline_mode<synchronous>, transform_indices = @transform_5, window_bounds = array<i64: 64, 128>}, {pipeline_mode = #tpu.pipeline_mode<synchronous>, transform_indices = @transform_6, window_bounds = array<i64: 128, 1024>}, {pipeline_mode = #tpu.pipeline_mode<synchronous>, transform_indices = @transform_7, window_bounds = array<i64: 7, 64>}, {pipeline_mode = #tpu.pipeline_mode<synchronous>, transform_indices = @transform_8, window_bounds = array<i64: 7, 128>}, {transform_indices = @transform_9, window_bounds = array<i64: 4, 7, 128>}]} {
    %c0 = arith.constant 0 : index
    %c0_0 = arith.constant 0 : index
    %c0_1 = arith.constant 0 : index
    %0 = vector.load %arg1[%c0, %c0_0, %c0_1] : memref<4x512x64xbf16, #tpu.memory_space<vmem>>, vector<1x512x64xbf16>
    %1 = vector.shape_cast %0 : vector<1x512x64xbf16> to vector<512x64xbf16>
    %c0_2 = arith.constant 0 : index
    %c0_3 = arith.constant 0 : index
    %2 = vector.load %arg2[%c0_2, %c0_3] : memref<128x512xbf16, #tpu.memory_space<vmem>>, vector<128x512xbf16>
    %cst = arith.constant dense<0.000000e+00> : vector<128x64xf32>
    %3 = tpu.matmul %2, %1, %cst {dimension_numbers = #tpu.dot_dimension_numbers<[1], [0], [0], [1], [0, 0, 1, 1], [], []>} : vector<128x512xbf16>, vector<512x64xbf16>, vector<128x64xf32> -> vector<128x64xf32>
    %4 = arith.truncf %3 : vector<128x64xf32> to vector<128x64xbf16>
    %c0_4 = arith.constant 0 : index
    %c0_5 = arith.constant 0 : index
    %5 = vector.load %arg3[%c0_4, %c0_5] : memref<128x64xbf16, #tpu.memory_space<vmem>>, vector<128x64xbf16>
    %cst_6 = arith.constant dense<0.000000e+00> : vector<128x128xf32>
    %6 = tpu.matmul %5, %4, %cst_6 {dimension_numbers = #tpu.dot_dimension_numbers<[1], [1], [0], [0], [0, 0, 1, 0], [], []>} : vector<128x64xbf16>, vector<128x64xbf16>, vector<128x128xf32> -> vector<128x128xf32>
    %c0_7 = arith.constant 0 : index
    %c0_8 = arith.constant 0 : index
    %7 = vector.load %arg4[%c0_7, %c0_8] : memref<128x128xf32, #tpu.memory_space<vmem>>, vector<128x128xf32>
    %8 = arith.addf %6, %7 : vector<128x128xf32>
    %9 = vector.extract_strided_slice %8 {offsets = [0, 0], sizes = [64, 128], strides = [1, 1]} : vector<128x128xf32> to vector<64x128xf32>
    %10 = vector.extract_strided_slice %8 {offsets = [64, 0], sizes = [64, 128], strides = [1, 1]} : vector<128x128xf32> to vector<64x128xf32>
    %11 = arith.truncf %9 : vector<64x128xf32> to vector<64x128xbf16>
    %c0_9 = arith.constant 0 : index
    %c0_10 = arith.constant 0 : index
    %12 = vector.load %arg7[%c0_9, %c0_10] : memref<128x1024xbf16, #tpu.memory_space<vmem>>, vector<128x512xbf16>
    %cst_11 = arith.constant dense<0.000000e+00> : vector<64x512xf32>
    %13 = tpu.matmul %11, %12, %cst_11 {dimension_numbers = #tpu.dot_dimension_numbers<[1], [0], [0], [1], [0, 0, 1, 1], [], []>} : vector<64x128xbf16>, vector<128x512xbf16>, vector<64x512xf32> -> vector<64x512xf32>
    %14 = vector.extract_strided_slice %13 {offsets = [0, 0], sizes = [64, 128], strides = [1, 1]} : vector<64x512xf32> to vector<64x128xf32>
    %15 = arith.addf %14, %10 : vector<64x128xf32>
    %cst_12 = arith.constant 2.000000e-01 : f32
    %16 = vector.broadcast %cst_12 : f32 to vector<64x128xf32>
    %17 = arith.mulf %16, %15 : vector<64x128xf32>
    %18 = arith.maximumf %15, %17 : vector<64x128xf32>
    %19 = vector.extract_strided_slice %13 {offsets = [0, 128], sizes = [64, 128], strides = [1, 1]} : vector<64x512xf32> to vector<64x128xf32>
    %20 = arith.addf %19, %10 : vector<64x128xf32>
    %cst_13 = arith.constant 2.000000e-01 : f32
    %21 = vector.broadcast %cst_13 : f32 to vector<64x128xf32>
    %22 = arith.mulf %21, %20 : vector<64x128xf32>
    %23 = arith.maximumf %20, %22 : vector<64x128xf32>
    %24 = arith.maximumf %18, %23 : vector<64x128xf32>
    %25 = vector.extract_strided_slice %13 {offsets = [0, 256], sizes = [64, 128], strides = [1, 1]} : vector<64x512xf32> to vector<64x128xf32>
    %26 = arith.addf %25, %10 : vector<64x128xf32>
    %cst_14 = arith.constant 2.000000e-01 : f32
    %27 = vector.broadcast %cst_14 : f32 to vector<64x128xf32>
    %28 = arith.mulf %27, %26 : vector<64x128xf32>
    %29 = arith.maximumf %26, %28 : vector<64x128xf32>
    %30 = arith.maximumf %24, %29 : vector<64x128xf32>
    %31 = vector.extract_strided_slice %13 {offsets = [0, 384], sizes = [64, 128], strides = [1, 1]} : vector<64x512xf32> to vector<64x128xf32>
    %32 = arith.addf %31, %10 : vector<64x128xf32>
    %cst_15 = arith.constant 2.000000e-01 : f32
    %33 = vector.broadcast %cst_15 : f32 to vector<64x128xf32>
    %34 = arith.mulf %33, %32 : vector<64x128xf32>
    %35 = arith.maximumf %32, %34 : vector<64x128xf32>
    %36 = arith.maximumf %30, %35 : vector<64x128xf32>
    %c0_16 = arith.constant 0 : index
    %c512 = arith.constant 512 : index
    %37 = vector.load %arg7[%c0_16, %c512] : memref<128x1024xbf16, #tpu.memory_space<vmem>>, vector<128x512xbf16>
    %cst_17 = arith.constant dense<0.000000e+00> : vector<64x512xf32>
    %38 = tpu.matmul %11, %37, %cst_17 {dimension_numbers = #tpu.dot_dimension_numbers<[1], [0], [0], [1], [0, 0, 1, 1], [], []>} : vector<64x128xbf16>, vector<128x512xbf16>, vector<64x512xf32> -> vector<64x512xf32>
    %39 = vector.extract_strided_slice %38 {offsets = [0, 0], sizes = [64, 128], strides = [1, 1]} : vector<64x512xf32> to vector<64x128xf32>
    %40 = arith.addf %39, %10 : vector<64x128xf32>
    %cst_18 = arith.constant 2.000000e-01 : f32
    %41 = vector.broadcast %cst_18 : f32 to vector<64x128xf32>
    %42 = arith.mulf %41, %40 : vector<64x128xf32>
    %43 = arith.maximumf %40, %42 : vector<64x128xf32>
    %44 = arith.maximumf %36, %43 : vector<64x128xf32>
    %45 = vector.extract_strided_slice %38 {offsets = [0, 128], sizes = [64, 128], strides = [1, 1]} : vector<64x512xf32> to vector<64x128xf32>
    %46 = arith.addf %45, %10 : vector<64x128xf32>
    %cst_19 = arith.constant 2.000000e-01 : f32
    %47 = vector.broadcast %cst_19 : f32 to vector<64x128xf32>
    %48 = arith.mulf %47, %46 : vector<64x128xf32>
    %49 = arith.maximumf %46, %48 : vector<64x128xf32>
    %50 = arith.maximumf %44, %49 : vector<64x128xf32>
    %51 = vector.extract_strided_slice %38 {offsets = [0, 256], sizes = [64, 128], strides = [1, 1]} : vector<64x512xf32> to vector<64x128xf32>
    %52 = arith.addf %51, %10 : vector<64x128xf32>
    %cst_20 = arith.constant 2.000000e-01 : f32
    %53 = vector.broadcast %cst_20 : f32 to vector<64x128xf32>
    %54 = arith.mulf %53, %52 : vector<64x128xf32>
    %55 = arith.maximumf %52, %54 : vector<64x128xf32>
    %56 = arith.maximumf %50, %55 : vector<64x128xf32>
    %57 = vector.extract_strided_slice %38 {offsets = [0, 384], sizes = [64, 128], strides = [1, 1]} : vector<64x512xf32> to vector<64x128xf32>
    %58 = arith.addf %57, %10 : vector<64x128xf32>
    %cst_21 = arith.constant 2.000000e-01 : f32
    %59 = vector.broadcast %cst_21 : f32 to vector<64x128xf32>
    %60 = arith.mulf %59, %58 : vector<64x128xf32>
    %61 = arith.maximumf %58, %60 : vector<64x128xf32>
    %62 = arith.maximumf %56, %61 : vector<64x128xf32>
    %c0_22 = arith.constant 0 : index
    %c0_23 = arith.constant 0 : index
    %63 = vector.load %arg5[%c0_22, %c0_23] : memref<128x64xbf16, #tpu.memory_space<vmem>>, vector<128x64xbf16>
    %64 = arith.truncf %62 : vector<64x128xf32> to vector<64x128xbf16>
    %cst_24 = arith.constant dense<0.000000e+00> : vector<128x128xf32>
    %65 = tpu.matmul %63, %64, %cst_24 {dimension_numbers = #tpu.dot_dimension_numbers<[1], [0], [0], [1], [0, 0, 1, 1], [], []>} : vector<128x64xbf16>, vector<64x128xbf16>, vector<128x128xf32> -> vector<128x128xf32>
    %66 = vector.extract_strided_slice %65 {offsets = [0, 0], sizes = [64, 128], strides = [1, 1]} : vector<128x128xf32> to vector<64x128xf32>
    %67 = vector.extract_strided_slice %65 {offsets = [64, 0], sizes = [64, 128], strides = [1, 1]} : vector<128x128xf32> to vector<64x128xf32>
    %c0_25 = arith.constant 0 : index
    %c0_26 = arith.constant 0 : index
    %68 = vector.load %arg6[%c0_25, %c0_26] : memref<64x128xf32, #tpu.memory_space<vmem>>, vector<64x128xf32>
    %69 = arith.addf %67, %68 : vector<64x128xf32>
    %70 = arith.truncf %66 : vector<64x128xf32> to vector<64x128xbf16>
    %c0_27 = arith.constant 0 : index
    %c0_28 = arith.constant 0 : index
    %71 = vector.load %arg7[%c0_27, %c0_28] : memref<128x1024xbf16, #tpu.memory_space<vmem>>, vector<128x512xbf16>
    %cst_29 = arith.constant dense<0.000000e+00> : vector<64x512xf32>
    %72 = tpu.matmul %70, %71, %cst_29 {dimension_numbers = #tpu.dot_dimension_numbers<[1], [0], [0], [1], [0, 0, 1, 1], [], []>} : vector<64x128xbf16>, vector<128x512xbf16>, vector<64x512xf32> -> vector<64x512xf32>
    %73 = vector.extract_strided_slice %72 {offsets = [0, 0], sizes = [64, 128], strides = [1, 1]} : vector<64x512xf32> to vector<64x128xf32>
    %74 = arith.addf %73, %69 : vector<64x128xf32>
    %cst_30 = arith.constant 2.000000e-01 : f32
    %75 = vector.broadcast %cst_30 : f32 to vector<64x128xf32>
    %76 = arith.mulf %75, %74 : vector<64x128xf32>
    %77 = arith.maximumf %74, %76 : vector<64x128xf32>
    %78 = vector.extract_strided_slice %72 {offsets = [0, 128], sizes = [64, 128], strides = [1, 1]} : vector<64x512xf32> to vector<64x128xf32>
    %79 = arith.addf %78, %69 : vector<64x128xf32>
    %cst_31 = arith.constant 2.000000e-01 : f32
    %80 = vector.broadcast %cst_31 : f32 to vector<64x128xf32>
    %81 = arith.mulf %80, %79 : vector<64x128xf32>
    %82 = arith.maximumf %79, %81 : vector<64x128xf32>
    %83 = arith.maximumf %77, %82 : vector<64x128xf32>
    %84 = vector.extract_strided_slice %72 {offsets = [0, 256], sizes = [64, 128], strides = [1, 1]} : vector<64x512xf32> to vector<64x128xf32>
    %85 = arith.addf %84, %69 : vector<64x128xf32>
    %cst_32 = arith.constant 2.000000e-01 : f32
    %86 = vector.broadcast %cst_32 : f32 to vector<64x128xf32>
    %87 = arith.mulf %86, %85 : vector<64x128xf32>
    %88 = arith.maximumf %85, %87 : vector<64x128xf32>
    %89 = arith.maximumf %83, %88 : vector<64x128xf32>
    %90 = vector.extract_strided_slice %72 {offsets = [0, 384], sizes = [64, 128], strides = [1, 1]} : vector<64x512xf32> to vector<64x128xf32>
    %91 = arith.addf %90, %69 : vector<64x128xf32>
    %cst_33 = arith.constant 2.000000e-01 : f32
    %92 = vector.broadcast %cst_33 : f32 to vector<64x128xf32>
    %93 = arith.mulf %92, %91 : vector<64x128xf32>
    %94 = arith.maximumf %91, %93 : vector<64x128xf32>
    %95 = arith.maximumf %89, %94 : vector<64x128xf32>
    %c0_34 = arith.constant 0 : index
    %c512_35 = arith.constant 512 : index
    %96 = vector.load %arg7[%c0_34, %c512_35] : memref<128x1024xbf16, #tpu.memory_space<vmem>>, vector<128x512xbf16>
    %cst_36 = arith.constant dense<0.000000e+00> : vector<64x512xf32>
    %97 = tpu.matmul %70, %96, %cst_36 {dimension_numbers = #tpu.dot_dimension_numbers<[1], [0], [0], [1], [0, 0, 1, 1], [], []>} : vector<64x128xbf16>, vector<128x512xbf16>, vector<64x512xf32> -> vector<64x512xf32>
    %98 = vector.extract_strided_slice %97 {offsets = [0, 0], sizes = [64, 128], strides = [1, 1]} : vector<64x512xf32> to vector<64x128xf32>
    %99 = arith.addf %98, %69 : vector<64x128xf32>
    %cst_37 = arith.constant 2.000000e-01 : f32
    %100 = vector.broadcast %cst_37 : f32 to vector<64x128xf32>
    %101 = arith.mulf %100, %99 : vector<64x128xf32>
    %102 = arith.maximumf %99, %101 : vector<64x128xf32>
    %103 = arith.maximumf %95, %102 : vector<64x128xf32>
    %104 = vector.extract_strided_slice %97 {offsets = [0, 128], sizes = [64, 128], strides = [1, 1]} : vector<64x512xf32> to vector<64x128xf32>
    %105 = arith.addf %104, %69 : vector<64x128xf32>
    %cst_38 = arith.constant 2.000000e-01 : f32
    %106 = vector.broadcast %cst_38 : f32 to vector<64x128xf32>
    %107 = arith.mulf %106, %105 : vector<64x128xf32>
    %108 = arith.maximumf %105, %107 : vector<64x128xf32>
    %109 = arith.maximumf %103, %108 : vector<64x128xf32>
    %110 = vector.extract_strided_slice %97 {offsets = [0, 256], sizes = [64, 128], strides = [1, 1]} : vector<64x512xf32> to vector<64x128xf32>
    %111 = arith.addf %110, %69 : vector<64x128xf32>
    %cst_39 = arith.constant 2.000000e-01 : f32
    %112 = vector.broadcast %cst_39 : f32 to vector<64x128xf32>
    %113 = arith.mulf %112, %111 : vector<64x128xf32>
    %114 = arith.maximumf %111, %113 : vector<64x128xf32>
    %115 = arith.maximumf %109, %114 : vector<64x128xf32>
    %116 = vector.extract_strided_slice %97 {offsets = [0, 384], sizes = [64, 128], strides = [1, 1]} : vector<64x512xf32> to vector<64x128xf32>
    %117 = arith.addf %116, %69 : vector<64x128xf32>
    %cst_40 = arith.constant 2.000000e-01 : f32
    %118 = vector.broadcast %cst_40 : f32 to vector<64x128xf32>
    %119 = arith.mulf %118, %117 : vector<64x128xf32>
    %120 = arith.maximumf %117, %119 : vector<64x128xf32>
    %121 = arith.maximumf %115, %120 : vector<64x128xf32>
    %c0_41 = arith.constant 0 : index
    %c0_42 = arith.constant 0 : index
    %122 = vector.load %arg8[%c0_41, %c0_42] : memref<7x64xbf16, #tpu.memory_space<vmem>>, vector<7x64xbf16>
    %123 = arith.truncf %121 : vector<64x128xf32> to vector<64x128xbf16>
    %cst_43 = arith.constant dense<0.000000e+00> : vector<7x128xf32>
    %124 = tpu.matmul %122, %123, %cst_43 {dimension_numbers = #tpu.dot_dimension_numbers<[1], [0], [0], [1], [0, 0, 1, 1], [], []>} : vector<7x64xbf16>, vector<64x128xbf16>, vector<7x128xf32> -> vector<7x128xf32>
    %c0_44 = arith.constant 0 : index
    %c0_45 = arith.constant 0 : index
    %125 = vector.load %arg9[%c0_44, %c0_45] : memref<7x128xf32, #tpu.memory_space<vmem>>, vector<7x128xf32>
    %126 = arith.addf %124, %125 : vector<7x128xf32>
    %c0_46 = arith.constant 0 : index
    %c0_47 = arith.constant 0 : index
    %c0_48 = arith.constant 0 : index
    %127 = vector.load %arg10[%c0_46, %c0_47, %c0_48] : memref<4x7x128xf32, #tpu.memory_space<vmem>>, vector<1x7x128xf32>
    %128 = vector.shape_cast %127 : vector<1x7x128xf32> to vector<7x128xf32>
    %129 = vector.shape_cast %126 : vector<7x128xf32> to vector<1x7x128xf32>
    tpu.vector_store %arg10[%c0_46, %c0_47, %c0_48], %129 {strides = array<i32>} : memref<4x7x128xf32, #tpu.memory_space<vmem>>, vector<1x7x128xf32>,
    %c1 = arith.constant 1 : index
    %c0_49 = arith.constant 0 : index
    %c0_50 = arith.constant 0 : index
    %130 = vector.load %arg1[%c1, %c0_49, %c0_50] : memref<4x512x64xbf16, #tpu.memory_space<vmem>>, vector<1x512x64xbf16>
    %131 = vector.shape_cast %130 : vector<1x512x64xbf16> to vector<512x64xbf16>
    %c0_51 = arith.constant 0 : index
    %c0_52 = arith.constant 0 : index
    %132 = vector.load %arg2[%c0_51, %c0_52] : memref<128x512xbf16, #tpu.memory_space<vmem>>, vector<128x512xbf16>
    %cst_53 = arith.constant dense<0.000000e+00> : vector<128x64xf32>
    %133 = tpu.matmul %132, %131, %cst_53 {dimension_numbers = #tpu.dot_dimension_numbers<[1], [0], [0], [1], [0, 0, 1, 1], [], []>} : vector<128x512xbf16>, vector<512x64xbf16>, vector<128x64xf32> -> vector<128x64xf32>
    %134 = arith.truncf %133 : vector<128x64xf32> to vector<128x64xbf16>
    %c0_54 = arith.constant 0 : index
    %c0_55 = arith.constant 0 : index
    %135 = vector.load %arg3[%c0_54, %c0_55] : memref<128x64xbf16, #tpu.memory_space<vmem>>, vector<128x64xbf16>
    %cst_56 = arith.constant dense<0.000000e+00> : vector<128x128xf32>
    %136 = tpu.matmul %135, %134, %cst_56 {dimension_numbers = #tpu.dot_dimension_numbers<[1], [1], [0], [0], [0, 0, 1, 0], [], []>} : vector<128x64xbf16>, vector<128x64xbf16>, vector<128x128xf32> -> vector<128x128xf32>
    %c0_57 = arith.constant 0 : index
    %c0_58 = arith.constant 0 : index
    %137 = vector.load %arg4[%c0_57, %c0_58] : memref<128x128xf32, #tpu.memory_space<vmem>>, vector<128x128xf32>
    %138 = arith.addf %136, %137 : vector<128x128xf32>
    %139 = vector.extract_strided_slice %138 {offsets = [0, 0], sizes = [64, 128], strides = [1, 1]} : vector<128x128xf32> to vector<64x128xf32>
    %140 = vector.extract_strided_slice %138 {offsets = [64, 0], sizes = [64, 128], strides = [1, 1]} : vector<128x128xf32> to vector<64x128xf32>
    %141 = arith.truncf %139 : vector<64x128xf32> to vector<64x128xbf16>
    %c0_59 = arith.constant 0 : index
    %c0_60 = arith.constant 0 : index
    %142 = vector.load %arg7[%c0_59, %c0_60] : memref<128x1024xbf16, #tpu.memory_space<vmem>>, vector<128x512xbf16>
    %cst_61 = arith.constant dense<0.000000e+00> : vector<64x512xf32>
    %143 = tpu.matmul %141, %142, %cst_61 {dimension_numbers = #tpu.dot_dimension_numbers<[1], [0], [0], [1], [0, 0, 1, 1], [], []>} : vector<64x128xbf16>, vector<128x512xbf16>, vector<64x512xf32> -> vector<64x512xf32>
    %144 = vector.extract_strided_slice %143 {offsets = [0, 0], sizes = [64, 128], strides = [1, 1]} : vector<64x512xf32> to vector<64x128xf32>
    %145 = arith.addf %144, %140 : vector<64x128xf32>
    %cst_62 = arith.constant 2.000000e-01 : f32
    %146 = vector.broadcast %cst_62 : f32 to vector<64x128xf32>
    %147 = arith.mulf %146, %145 : vector<64x128xf32>
    %148 = arith.maximumf %145, %147 : vector<64x128xf32>
    %149 = vector.extract_strided_slice %143 {offsets = [0, 128], sizes = [64, 128], strides = [1, 1]} : vector<64x512xf32> to vector<64x128xf32>
    %150 = arith.addf %149, %140 : vector<64x128xf32>
    %cst_63 = arith.constant 2.000000e-01 : f32
    %151 = vector.broadcast %cst_63 : f32 to vector<64x128xf32>
    %152 = arith.mulf %151, %150 : vector<64x128xf32>
    %153 = arith.maximumf %150, %152 : vector<64x128xf32>
    %154 = arith.maximumf %148, %153 : vector<64x128xf32>
    %155 = vector.extract_strided_slice %143 {offsets = [0, 256], sizes = [64, 128], strides = [1, 1]} : vector<64x512xf32> to vector<64x128xf32>
    %156 = arith.addf %155, %140 : vector<64x128xf32>
    %cst_64 = arith.constant 2.000000e-01 : f32
    %157 = vector.broadcast %cst_64 : f32 to vector<64x128xf32>
    %158 = arith.mulf %157, %156 : vector<64x128xf32>
    %159 = arith.maximumf %156, %158 : vector<64x128xf32>
    %160 = arith.maximumf %154, %159 : vector<64x128xf32>
    %161 = vector.extract_strided_slice %143 {offsets = [0, 384], sizes = [64, 128], strides = [1, 1]} : vector<64x512xf32> to vector<64x128xf32>
    %162 = arith.addf %161, %140 : vector<64x128xf32>
    %cst_65 = arith.constant 2.000000e-01 : f32
    %163 = vector.broadcast %cst_65 : f32 to vector<64x128xf32>
    %164 = arith.mulf %163, %162 : vector<64x128xf32>
    %165 = arith.maximumf %162, %164 : vector<64x128xf32>
    %166 = arith.maximumf %160, %165 : vector<64x128xf32>
    %c0_66 = arith.constant 0 : index
    %c512_67 = arith.constant 512 : index
    %167 = vector.load %arg7[%c0_66, %c512_67] : memref<128x1024xbf16, #tpu.memory_space<vmem>>, vector<128x512xbf16>
    %cst_68 = arith.constant dense<0.000000e+00> : vector<64x512xf32>
    %168 = tpu.matmul %141, %167, %cst_68 {dimension_numbers = #tpu.dot_dimension_numbers<[1], [0], [0], [1], [0, 0, 1, 1], [], []>} : vector<64x128xbf16>, vector<128x512xbf16>, vector<64x512xf32> -> vector<64x512xf32>
    %169 = vector.extract_strided_slice %168 {offsets = [0, 0], sizes = [64, 128], strides = [1, 1]} : vector<64x512xf32> to vector<64x128xf32>
    %170 = arith.addf %169, %140 : vector<64x128xf32>
    %cst_69 = arith.constant 2.000000e-01 : f32
    %171 = vector.broadcast %cst_69 : f32 to vector<64x128xf32>
    %172 = arith.mulf %171, %170 : vector<64x128xf32>
    %173 = arith.maximumf %170, %172 : vector<64x128xf32>
    %174 = arith.maximumf %166, %173 : vector<64x128xf32>
    %175 = vector.extract_strided_slice %168 {offsets = [0, 128], sizes = [64, 128], strides = [1, 1]} : vector<64x512xf32> to vector<64x128xf32>
    %176 = arith.addf %175, %140 : vector<64x128xf32>
    %cst_70 = arith.constant 2.000000e-01 : f32
    %177 = vector.broadcast %cst_70 : f32 to vector<64x128xf32>
    %178 = arith.mulf %177, %176 : vector<64x128xf32>
    %179 = arith.maximumf %176, %178 : vector<64x128xf32>
    %180 = arith.maximumf %174, %179 : vector<64x128xf32>
    %181 = vector.extract_strided_slice %168 {offsets = [0, 256], sizes = [64, 128], strides = [1, 1]} : vector<64x512xf32> to vector<64x128xf32>
    %182 = arith.addf %181, %140 : vector<64x128xf32>
    %cst_71 = arith.constant 2.000000e-01 : f32
    %183 = vector.broadcast %cst_71 : f32 to vector<64x128xf32>
    %184 = arith.mulf %183, %182 : vector<64x128xf32>
    %185 = arith.maximumf %182, %184 : vector<64x128xf32>
    %186 = arith.maximumf %180, %185 : vector<64x128xf32>
    %187 = vector.extract_strided_slice %168 {offsets = [0, 384], sizes = [64, 128], strides = [1, 1]} : vector<64x512xf32> to vector<64x128xf32>
    %188 = arith.addf %187, %140 : vector<64x128xf32>
    %cst_72 = arith.constant 2.000000e-01 : f32
    %189 = vector.broadcast %cst_72 : f32 to vector<64x128xf32>
    %190 = arith.mulf %189, %188 : vector<64x128xf32>
    %191 = arith.maximumf %188, %190 : vector<64x128xf32>
    %192 = arith.maximumf %186, %191 : vector<64x128xf32>
    %c0_73 = arith.constant 0 : index
    %c0_74 = arith.constant 0 : index
    %193 = vector.load %arg5[%c0_73, %c0_74] : memref<128x64xbf16, #tpu.memory_space<vmem>>, vector<128x64xbf16>
    %194 = arith.truncf %192 : vector<64x128xf32> to vector<64x128xbf16>
    %cst_75 = arith.constant dense<0.000000e+00> : vector<128x128xf32>
    %195 = tpu.matmul %193, %194, %cst_75 {dimension_numbers = #tpu.dot_dimension_numbers<[1], [0], [0], [1], [0, 0, 1, 1], [], []>} : vector<128x64xbf16>, vector<64x128xbf16>, vector<128x128xf32> -> vector<128x128xf32>
    %196 = vector.extract_strided_slice %195 {offsets = [0, 0], sizes = [64, 128], strides = [1, 1]} : vector<128x128xf32> to vector<64x128xf32>
    %197 = vector.extract_strided_slice %195 {offsets = [64, 0], sizes = [64, 128], strides = [1, 1]} : vector<128x128xf32> to vector<64x128xf32>
    %c0_76 = arith.constant 0 : index
    %c0_77 = arith.constant 0 : index
    %198 = vector.load %arg6[%c0_76, %c0_77] : memref<64x128xf32, #tpu.memory_space<vmem>>, vector<64x128xf32>
    %199 = arith.addf %197, %198 : vector<64x128xf32>
    %200 = arith.truncf %196 : vector<64x128xf32> to vector<64x128xbf16>
    %c0_78 = arith.constant 0 : index
    %c0_79 = arith.constant 0 : index
    %201 = vector.load %arg7[%c0_78, %c0_79] : memref<128x1024xbf16, #tpu.memory_space<vmem>>, vector<128x512xbf16>
    %cst_80 = arith.constant dense<0.000000e+00> : vector<64x512xf32>
    %202 = tpu.matmul %200, %201, %cst_80 {dimension_numbers = #tpu.dot_dimension_numbers<[1], [0], [0], [1], [0, 0, 1, 1], [], []>} : vector<64x128xbf16>, vector<128x512xbf16>, vector<64x512xf32> -> vector<64x512xf32>
    %203 = vector.extract_strided_slice %202 {offsets = [0, 0], sizes = [64, 128], strides = [1, 1]} : vector<64x512xf32> to vector<64x128xf32>
    %204 = arith.addf %203, %199 : vector<64x128xf32>
    %cst_81 = arith.constant 2.000000e-01 : f32
    %205 = vector.broadcast %cst_81 : f32 to vector<64x128xf32>
    %206 = arith.mulf %205, %204 : vector<64x128xf32>
    %207 = arith.maximumf %204, %206 : vector<64x128xf32>
    %208 = vector.extract_strided_slice %202 {offsets = [0, 128], sizes = [64, 128], strides = [1, 1]} : vector<64x512xf32> to vector<64x128xf32>
    %209 = arith.addf %208, %199 : vector<64x128xf32>
    %cst_82 = arith.constant 2.000000e-01 : f32
    %210 = vector.broadcast %cst_82 : f32 to vector<64x128xf32>
    %211 = arith.mulf %210, %209 : vector<64x128xf32>
    %212 = arith.maximumf %209, %211 : vector<64x128xf32>
    %213 = arith.maximumf %207, %212 : vector<64x128xf32>
    %214 = vector.extract_strided_slice %202 {offsets = [0, 256], sizes = [64, 128], strides = [1, 1]} : vector<64x512xf32> to vector<64x128xf32>
    %215 = arith.addf %214, %199 : vector<64x128xf32>
    %cst_83 = arith.constant 2.000000e-01 : f32
    %216 = vector.broadcast %cst_83 : f32 to vector<64x128xf32>
    %217 = arith.mulf %216, %215 : vector<64x128xf32>
    %218 = arith.maximumf %215, %217 : vector<64x128xf32>
    %219 = arith.maximumf %213, %218 : vector<64x128xf32>
    %220 = vector.extract_strided_slice %202 {offsets = [0, 384], sizes = [64, 128], strides = [1, 1]} : vector<64x512xf32> to vector<64x128xf32>
    %221 = arith.addf %220, %199 : vector<64x128xf32>
    %cst_84 = arith.constant 2.000000e-01 : f32
    %222 = vector.broadcast %cst_84 : f32 to vector<64x128xf32>
    %223 = arith.mulf %222, %221 : vector<64x128xf32>
    %224 = arith.maximumf %221, %223 : vector<64x128xf32>
    %225 = arith.maximumf %219, %224 : vector<64x128xf32>
    %c0_85 = arith.constant 0 : index
    %c512_86 = arith.constant 512 : index
    %226 = vector.load %arg7[%c0_85, %c512_86] : memref<128x1024xbf16, #tpu.memory_space<vmem>>, vector<128x512xbf16>
    %cst_87 = arith.constant dense<0.000000e+00> : vector<64x512xf32>
    %227 = tpu.matmul %200, %226, %cst_87 {dimension_numbers = #tpu.dot_dimension_numbers<[1], [0], [0], [1], [0, 0, 1, 1], [], []>} : vector<64x128xbf16>, vector<128x512xbf16>, vector<64x512xf32> -> vector<64x512xf32>
    %228 = vector.extract_strided_slice %227 {offsets = [0, 0], sizes = [64, 128], strides = [1, 1]} : vector<64x512xf32> to vector<64x128xf32>
    %229 = arith.addf %228, %199 : vector<64x128xf32>
    %cst_88 = arith.constant 2.000000e-01 : f32
    %230 = vector.broadcast %cst_88 : f32 to vector<64x128xf32>
    %231 = arith.mulf %230, %229 : vector<64x128xf32>
    %232 = arith.maximumf %229, %231 : vector<64x128xf32>
    %233 = arith.maximumf %225, %232 : vector<64x128xf32>
    %234 = vector.extract_strided_slice %227 {offsets = [0, 128], sizes = [64, 128], strides = [1, 1]} : vector<64x512xf32> to vector<64x128xf32>
    %235 = arith.addf %234, %199 : vector<64x128xf32>
    %cst_89 = arith.constant 2.000000e-01 : f32
    %236 = vector.broadcast %cst_89 : f32 to vector<64x128xf32>
    %237 = arith.mulf %236, %235 : vector<64x128xf32>
    %238 = arith.maximumf %235, %237 : vector<64x128xf32>
    %239 = arith.maximumf %233, %238 : vector<64x128xf32>
    %240 = vector.extract_strided_slice %227 {offsets = [0, 256], sizes = [64, 128], strides = [1, 1]} : vector<64x512xf32> to vector<64x128xf32>
    %241 = arith.addf %240, %199 : vector<64x128xf32>
    %cst_90 = arith.constant 2.000000e-01 : f32
    %242 = vector.broadcast %cst_90 : f32 to vector<64x128xf32>
    %243 = arith.mulf %242, %241 : vector<64x128xf32>
    %244 = arith.maximumf %241, %243 : vector<64x128xf32>
    %245 = arith.maximumf %239, %244 : vector<64x128xf32>
    %246 = vector.extract_strided_slice %227 {offsets = [0, 384], sizes = [64, 128], strides = [1, 1]} : vector<64x512xf32> to vector<64x128xf32>
    %247 = arith.addf %246, %199 : vector<64x128xf32>
    %cst_91 = arith.constant 2.000000e-01 : f32
    %248 = vector.broadcast %cst_91 : f32 to vector<64x128xf32>
    %249 = arith.mulf %248, %247 : vector<64x128xf32>
    %250 = arith.maximumf %247, %249 : vector<64x128xf32>
    %251 = arith.maximumf %245, %250 : vector<64x128xf32>
    %c0_92 = arith.constant 0 : index
    %c0_93 = arith.constant 0 : index
    %252 = vector.load %arg8[%c0_92, %c0_93] : memref<7x64xbf16, #tpu.memory_space<vmem>>, vector<7x64xbf16>
    %253 = arith.truncf %251 : vector<64x128xf32> to vector<64x128xbf16>
    %cst_94 = arith.constant dense<0.000000e+00> : vector<7x128xf32>
    %254 = tpu.matmul %252, %253, %cst_94 {dimension_numbers = #tpu.dot_dimension_numbers<[1], [0], [0], [1], [0, 0, 1, 1], [], []>} : vector<7x64xbf16>, vector<64x128xbf16>, vector<7x128xf32> -> vector<7x128xf32>
    %c0_95 = arith.constant 0 : index
    %c0_96 = arith.constant 0 : index
    %255 = vector.load %arg9[%c0_95, %c0_96] : memref<7x128xf32, #tpu.memory_space<vmem>>, vector<7x128xf32>
    %256 = arith.addf %254, %255 : vector<7x128xf32>
    %c1_97 = arith.constant 1 : index
    %c0_98 = arith.constant 0 : index
    %c0_99 = arith.constant 0 : index
    %257 = vector.load %arg10[%c1_97, %c0_98, %c0_99] : memref<4x7x128xf32, #tpu.memory_space<vmem>>, vector<1x7x128xf32>
    %258 = vector.shape_cast %257 : vector<1x7x128xf32> to vector<7x128xf32>
    %259 = vector.shape_cast %256 : vector<7x128xf32> to vector<1x7x128xf32>
    tpu.vector_store %arg10[%c1_97, %c0_98, %c0_99], %259 {strides = array<i32>} : memref<4x7x128xf32, #tpu.memory_space<vmem>>, vector<1x7x128xf32>,
    %c2 = arith.constant 2 : index
    %c0_100 = arith.constant 0 : index
    %c0_101 = arith.constant 0 : index
    %260 = vector.load %arg1[%c2, %c0_100, %c0_101] : memref<4x512x64xbf16, #tpu.memory_space<vmem>>, vector<1x512x64xbf16>
    %261 = vector.shape_cast %260 : vector<1x512x64xbf16> to vector<512x64xbf16>
    %c0_102 = arith.constant 0 : index
    %c0_103 = arith.constant 0 : index
    %262 = vector.load %arg2[%c0_102, %c0_103] : memref<128x512xbf16, #tpu.memory_space<vmem>>, vector<128x512xbf16>
    %cst_104 = arith.constant dense<0.000000e+00> : vector<128x64xf32>
    %263 = tpu.matmul %262, %261, %cst_104 {dimension_numbers = #tpu.dot_dimension_numbers<[1], [0], [0], [1], [0, 0, 1, 1], [], []>} : vector<128x512xbf16>, vector<512x64xbf16>, vector<128x64xf32> -> vector<128x64xf32>
    %264 = arith.truncf %263 : vector<128x64xf32> to vector<128x64xbf16>
    %c0_105 = arith.constant 0 : index
    %c0_106 = arith.constant 0 : index
    %265 = vector.load %arg3[%c0_105, %c0_106] : memref<128x64xbf16, #tpu.memory_space<vmem>>, vector<128x64xbf16>
    %cst_107 = arith.constant dense<0.000000e+00> : vector<128x128xf32>
    %266 = tpu.matmul %265, %264, %cst_107 {dimension_numbers = #tpu.dot_dimension_numbers<[1], [1], [0], [0], [0, 0, 1, 0], [], []>} : vector<128x64xbf16>, vector<128x64xbf16>, vector<128x128xf32> -> vector<128x128xf32>
    %c0_108 = arith.constant 0 : index
    %c0_109 = arith.constant 0 : index
    %267 = vector.load %arg4[%c0_108, %c0_109] : memref<128x128xf32, #tpu.memory_space<vmem>>, vector<128x128xf32>
    %268 = arith.addf %266, %267 : vector<128x128xf32>
    %269 = vector.extract_strided_slice %268 {offsets = [0, 0], sizes = [64, 128], strides = [1, 1]} : vector<128x128xf32> to vector<64x128xf32>
    %270 = vector.extract_strided_slice %268 {offsets = [64, 0], sizes = [64, 128], strides = [1, 1]} : vector<128x128xf32> to vector<64x128xf32>
    %271 = arith.truncf %269 : vector<64x128xf32> to vector<64x128xbf16>
    %c0_110 = arith.constant 0 : index
    %c0_111 = arith.constant 0 : index
    %272 = vector.load %arg7[%c0_110, %c0_111] : memref<128x1024xbf16, #tpu.memory_space<vmem>>, vector<128x512xbf16>
    %cst_112 = arith.constant dense<0.000000e+00> : vector<64x512xf32>
    %273 = tpu.matmul %271, %272, %cst_112 {dimension_numbers = #tpu.dot_dimension_numbers<[1], [0], [0], [1], [0, 0, 1, 1], [], []>} : vector<64x128xbf16>, vector<128x512xbf16>, vector<64x512xf32> -> vector<64x512xf32>
    %274 = vector.extract_strided_slice %273 {offsets = [0, 0], sizes = [64, 128], strides = [1, 1]} : vector<64x512xf32> to vector<64x128xf32>
    %275 = arith.addf %274, %270 : vector<64x128xf32>
    %cst_113 = arith.constant 2.000000e-01 : f32
    %276 = vector.broadcast %cst_113 : f32 to vector<64x128xf32>
    %277 = arith.mulf %276, %275 : vector<64x128xf32>
    %278 = arith.maximumf %275, %277 : vector<64x128xf32>
    %279 = vector.extract_strided_slice %273 {offsets = [0, 128], sizes = [64, 128], strides = [1, 1]} : vector<64x512xf32> to vector<64x128xf32>
    %280 = arith.addf %279, %270 : vector<64x128xf32>
    %cst_114 = arith.constant 2.000000e-01 : f32
    %281 = vector.broadcast %cst_114 : f32 to vector<64x128xf32>
    %282 = arith.mulf %281, %280 : vector<64x128xf32>
    %283 = arith.maximumf %280, %282 : vector<64x128xf32>
    %284 = arith.maximumf %278, %283 : vector<64x128xf32>
    %285 = vector.extract_strided_slice %273 {offsets = [0, 256], sizes = [64, 128], strides = [1, 1]} : vector<64x512xf32> to vector<64x128xf32>
    %286 = arith.addf %285, %270 : vector<64x128xf32>
    %cst_115 = arith.constant 2.000000e-01 : f32
    %287 = vector.broadcast %cst_115 : f32 to vector<64x128xf32>
    %288 = arith.mulf %287, %286 : vector<64x128xf32>
    %289 = arith.maximumf %286, %288 : vector<64x128xf32>
    %290 = arith.maximumf %284, %289 : vector<64x128xf32>
    %291 = vector.extract_strided_slice %273 {offsets = [0, 384], sizes = [64, 128], strides = [1, 1]} : vector<64x512xf32> to vector<64x128xf32>
    %292 = arith.addf %291, %270 : vector<64x128xf32>
    %cst_116 = arith.constant 2.000000e-01 : f32
    %293 = vector.broadcast %cst_116 : f32 to vector<64x128xf32>
    %294 = arith.mulf %293, %292 : vector<64x128xf32>
    %295 = arith.maximumf %292, %294 : vector<64x128xf32>
    %296 = arith.maximumf %290, %295 : vector<64x128xf32>
    %c0_117 = arith.constant 0 : index
    %c512_118 = arith.constant 512 : index
    %297 = vector.load %arg7[%c0_117, %c512_118] : memref<128x1024xbf16, #tpu.memory_space<vmem>>, vector<128x512xbf16>
    %cst_119 = arith.constant dense<0.000000e+00> : vector<64x512xf32>
    %298 = tpu.matmul %271, %297, %cst_119 {dimension_numbers = #tpu.dot_dimension_numbers<[1], [0], [0], [1], [0, 0, 1, 1], [], []>} : vector<64x128xbf16>, vector<128x512xbf16>, vector<64x512xf32> -> vector<64x512xf32>
    %299 = vector.extract_strided_slice %298 {offsets = [0, 0], sizes = [64, 128], strides = [1, 1]} : vector<64x512xf32> to vector<64x128xf32>
    %300 = arith.addf %299, %270 : vector<64x128xf32>
    %cst_120 = arith.constant 2.000000e-01 : f32
    %301 = vector.broadcast %cst_120 : f32 to vector<64x128xf32>
    %302 = arith.mulf %301, %300 : vector<64x128xf32>
    %303 = arith.maximumf %300, %302 : vector<64x128xf32>
    %304 = arith.maximumf %296, %303 : vector<64x128xf32>
    %305 = vector.extract_strided_slice %298 {offsets = [0, 128], sizes = [64, 128], strides = [1, 1]} : vector<64x512xf32> to vector<64x128xf32>
    %306 = arith.addf %305, %270 : vector<64x128xf32>
    %cst_121 = arith.constant 2.000000e-01 : f32
    %307 = vector.broadcast %cst_121 : f32 to vector<64x128xf32>
    %308 = arith.mulf %307, %306 : vector<64x128xf32>
    %309 = arith.maximumf %306, %308 : vector<64x128xf32>
    %310 = arith.maximumf %304, %309 : vector<64x128xf32>
    %311 = vector.extract_strided_slice %298 {offsets = [0, 256], sizes = [64, 128], strides = [1, 1]} : vector<64x512xf32> to vector<64x128xf32>
    %312 = arith.addf %311, %270 : vector<64x128xf32>
    %cst_122 = arith.constant 2.000000e-01 : f32
    %313 = vector.broadcast %cst_122 : f32 to vector<64x128xf32>
    %314 = arith.mulf %313, %312 : vector<64x128xf32>
    %315 = arith.maximumf %312, %314 : vector<64x128xf32>
    %316 = arith.maximumf %310, %315 : vector<64x128xf32>
    %317 = vector.extract_strided_slice %298 {offsets = [0, 384], sizes = [64, 128], strides = [1, 1]} : vector<64x512xf32> to vector<64x128xf32>
    %318 = arith.addf %317, %270 : vector<64x128xf32>
    %cst_123 = arith.constant 2.000000e-01 : f32
    %319 = vector.broadcast %cst_123 : f32 to vector<64x128xf32>
    %320 = arith.mulf %319, %318 : vector<64x128xf32>
    %321 = arith.maximumf %318, %320 : vector<64x128xf32>
    %322 = arith.maximumf %316, %321 : vector<64x128xf32>
    %c0_124 = arith.constant 0 : index
    %c0_125 = arith.constant 0 : index
    %323 = vector.load %arg5[%c0_124, %c0_125] : memref<128x64xbf16, #tpu.memory_space<vmem>>, vector<128x64xbf16>
    %324 = arith.truncf %322 : vector<64x128xf32> to vector<64x128xbf16>
    %cst_126 = arith.constant dense<0.000000e+00> : vector<128x128xf32>
    %325 = tpu.matmul %323, %324, %cst_126 {dimension_numbers = #tpu.dot_dimension_numbers<[1], [0], [0], [1], [0, 0, 1, 1], [], []>} : vector<128x64xbf16>, vector<64x128xbf16>, vector<128x128xf32> -> vector<128x128xf32>
    %326 = vector.extract_strided_slice %325 {offsets = [0, 0], sizes = [64, 128], strides = [1, 1]} : vector<128x128xf32> to vector<64x128xf32>
    %327 = vector.extract_strided_slice %325 {offsets = [64, 0], sizes = [64, 128], strides = [1, 1]} : vector<128x128xf32> to vector<64x128xf32>
    %c0_127 = arith.constant 0 : index
    %c0_128 = arith.constant 0 : index
    %328 = vector.load %arg6[%c0_127, %c0_128] : memref<64x128xf32, #tpu.memory_space<vmem>>, vector<64x128xf32>
    %329 = arith.addf %327, %328 : vector<64x128xf32>
    %330 = arith.truncf %326 : vector<64x128xf32> to vector<64x128xbf16>
    %c0_129 = arith.constant 0 : index
    %c0_130 = arith.constant 0 : index
    %331 = vector.load %arg7[%c0_129, %c0_130] : memref<128x1024xbf16, #tpu.memory_space<vmem>>, vector<128x512xbf16>
    %cst_131 = arith.constant dense<0.000000e+00> : vector<64x512xf32>
    %332 = tpu.matmul %330, %331, %cst_131 {dimension_numbers = #tpu.dot_dimension_numbers<[1], [0], [0], [1], [0, 0, 1, 1], [], []>} : vector<64x128xbf16>, vector<128x512xbf16>, vector<64x512xf32> -> vector<64x512xf32>
    %333 = vector.extract_strided_slice %332 {offsets = [0, 0], sizes = [64, 128], strides = [1, 1]} : vector<64x512xf32> to vector<64x128xf32>
    %334 = arith.addf %333, %329 : vector<64x128xf32>
    %cst_132 = arith.constant 2.000000e-01 : f32
    %335 = vector.broadcast %cst_132 : f32 to vector<64x128xf32>
    %336 = arith.mulf %335, %334 : vector<64x128xf32>
    %337 = arith.maximumf %334, %336 : vector<64x128xf32>
    %338 = vector.extract_strided_slice %332 {offsets = [0, 128], sizes = [64, 128], strides = [1, 1]} : vector<64x512xf32> to vector<64x128xf32>
    %339 = arith.addf %338, %329 : vector<64x128xf32>
    %cst_133 = arith.constant 2.000000e-01 : f32
    %340 = vector.broadcast %cst_133 : f32 to vector<64x128xf32>
    %341 = arith.mulf %340, %339 : vector<64x128xf32>
    %342 = arith.maximumf %339, %341 : vector<64x128xf32>
    %343 = arith.maximumf %337, %342 : vector<64x128xf32>
    %344 = vector.extract_strided_slice %332 {offsets = [0, 256], sizes = [64, 128], strides = [1, 1]} : vector<64x512xf32> to vector<64x128xf32>
    %345 = arith.addf %344, %329 : vector<64x128xf32>
    %cst_134 = arith.constant 2.000000e-01 : f32
    %346 = vector.broadcast %cst_134 : f32 to vector<64x128xf32>
    %347 = arith.mulf %346, %345 : vector<64x128xf32>
    %348 = arith.maximumf %345, %347 : vector<64x128xf32>
    %349 = arith.maximumf %343, %348 : vector<64x128xf32>
    %350 = vector.extract_strided_slice %332 {offsets = [0, 384], sizes = [64, 128], strides = [1, 1]} : vector<64x512xf32> to vector<64x128xf32>
    %351 = arith.addf %350, %329 : vector<64x128xf32>
    %cst_135 = arith.constant 2.000000e-01 : f32
    %352 = vector.broadcast %cst_135 : f32 to vector<64x128xf32>
    %353 = arith.mulf %352, %351 : vector<64x128xf32>
    %354 = arith.maximumf %351, %353 : vector<64x128xf32>
    %355 = arith.maximumf %349, %354 : vector<64x128xf32>
    %c0_136 = arith.constant 0 : index
    %c512_137 = arith.constant 512 : index
    %356 = vector.load %arg7[%c0_136, %c512_137] : memref<128x1024xbf16, #tpu.memory_space<vmem>>, vector<128x512xbf16>
    %cst_138 = arith.constant dense<0.000000e+00> : vector<64x512xf32>
    %357 = tpu.matmul %330, %356, %cst_138 {dimension_numbers = #tpu.dot_dimension_numbers<[1], [0], [0], [1], [0, 0, 1, 1], [], []>} : vector<64x128xbf16>, vector<128x512xbf16>, vector<64x512xf32> -> vector<64x512xf32>
    %358 = vector.extract_strided_slice %357 {offsets = [0, 0], sizes = [64, 128], strides = [1, 1]} : vector<64x512xf32> to vector<64x128xf32>
    %359 = arith.addf %358, %329 : vector<64x128xf32>
    %cst_139 = arith.constant 2.000000e-01 : f32
    %360 = vector.broadcast %cst_139 : f32 to vector<64x128xf32>
    %361 = arith.mulf %360, %359 : vector<64x128xf32>
    %362 = arith.maximumf %359, %361 : vector<64x128xf32>
    %363 = arith.maximumf %355, %362 : vector<64x128xf32>
    %364 = vector.extract_strided_slice %357 {offsets = [0, 128], sizes = [64, 128], strides = [1, 1]} : vector<64x512xf32> to vector<64x128xf32>
    %365 = arith.addf %364, %329 : vector<64x128xf32>
    %cst_140 = arith.constant 2.000000e-01 : f32
    %366 = vector.broadcast %cst_140 : f32 to vector<64x128xf32>
    %367 = arith.mulf %366, %365 : vector<64x128xf32>
    %368 = arith.maximumf %365, %367 : vector<64x128xf32>
    %369 = arith.maximumf %363, %368 : vector<64x128xf32>
    %370 = vector.extract_strided_slice %357 {offsets = [0, 256], sizes = [64, 128], strides = [1, 1]} : vector<64x512xf32> to vector<64x128xf32>
    %371 = arith.addf %370, %329 : vector<64x128xf32>
    %cst_141 = arith.constant 2.000000e-01 : f32
    %372 = vector.broadcast %cst_141 : f32 to vector<64x128xf32>
    %373 = arith.mulf %372, %371 : vector<64x128xf32>
    %374 = arith.maximumf %371, %373 : vector<64x128xf32>
    %375 = arith.maximumf %369, %374 : vector<64x128xf32>
    %376 = vector.extract_strided_slice %357 {offsets = [0, 384], sizes = [64, 128], strides = [1, 1]} : vector<64x512xf32> to vector<64x128xf32>
    %377 = arith.addf %376, %329 : vector<64x128xf32>
    %cst_142 = arith.constant 2.000000e-01 : f32
    %378 = vector.broadcast %cst_142 : f32 to vector<64x128xf32>
    %379 = arith.mulf %378, %377 : vector<64x128xf32>
    %380 = arith.maximumf %377, %379 : vector<64x128xf32>
    %381 = arith.maximumf %375, %380 : vector<64x128xf32>
    %c0_143 = arith.constant 0 : index
    %c0_144 = arith.constant 0 : index
    %382 = vector.load %arg8[%c0_143, %c0_144] : memref<7x64xbf16, #tpu.memory_space<vmem>>, vector<7x64xbf16>
    %383 = arith.truncf %381 : vector<64x128xf32> to vector<64x128xbf16>
    %cst_145 = arith.constant dense<0.000000e+00> : vector<7x128xf32>
    %384 = tpu.matmul %382, %383, %cst_145 {dimension_numbers = #tpu.dot_dimension_numbers<[1], [0], [0], [1], [0, 0, 1, 1], [], []>} : vector<7x64xbf16>, vector<64x128xbf16>, vector<7x128xf32> -> vector<7x128xf32>
    %c0_146 = arith.constant 0 : index
    %c0_147 = arith.constant 0 : index
    %385 = vector.load %arg9[%c0_146, %c0_147] : memref<7x128xf32, #tpu.memory_space<vmem>>, vector<7x128xf32>
    %386 = arith.addf %384, %385 : vector<7x128xf32>
    %c2_148 = arith.constant 2 : index
    %c0_149 = arith.constant 0 : index
    %c0_150 = arith.constant 0 : index
    %387 = vector.load %arg10[%c2_148, %c0_149, %c0_150] : memref<4x7x128xf32, #tpu.memory_space<vmem>>, vector<1x7x128xf32>
    %388 = vector.shape_cast %387 : vector<1x7x128xf32> to vector<7x128xf32>
    %389 = vector.shape_cast %386 : vector<7x128xf32> to vector<1x7x128xf32>
    tpu.vector_store %arg10[%c2_148, %c0_149, %c0_150], %389 {strides = array<i32>} : memref<4x7x128xf32, #tpu.memory_space<vmem>>, vector<1x7x128xf32>,
    %c3 = arith.constant 3 : index
    %c0_151 = arith.constant 0 : index
    %c0_152 = arith.constant 0 : index
    %390 = vector.load %arg1[%c3, %c0_151, %c0_152] : memref<4x512x64xbf16, #tpu.memory_space<vmem>>, vector<1x512x64xbf16>
    %391 = vector.shape_cast %390 : vector<1x512x64xbf16> to vector<512x64xbf16>
    %c0_153 = arith.constant 0 : index
    %c0_154 = arith.constant 0 : index
    %392 = vector.load %arg2[%c0_153, %c0_154] : memref<128x512xbf16, #tpu.memory_space<vmem>>, vector<128x512xbf16>
    %cst_155 = arith.constant dense<0.000000e+00> : vector<128x64xf32>
    %393 = tpu.matmul %392, %391, %cst_155 {dimension_numbers = #tpu.dot_dimension_numbers<[1], [0], [0], [1], [0, 0, 1, 1], [], []>} : vector<128x512xbf16>, vector<512x64xbf16>, vector<128x64xf32> -> vector<128x64xf32>
    %394 = arith.truncf %393 : vector<128x64xf32> to vector<128x64xbf16>
    %c0_156 = arith.constant 0 : index
    %c0_157 = arith.constant 0 : index
    %395 = vector.load %arg3[%c0_156, %c0_157] : memref<128x64xbf16, #tpu.memory_space<vmem>>, vector<128x64xbf16>
    %cst_158 = arith.constant dense<0.000000e+00> : vector<128x128xf32>
    %396 = tpu.matmul %395, %394, %cst_158 {dimension_numbers = #tpu.dot_dimension_numbers<[1], [1], [0], [0], [0, 0, 1, 0], [], []>} : vector<128x64xbf16>, vector<128x64xbf16>, vector<128x128xf32> -> vector<128x128xf32>
    %c0_159 = arith.constant 0 : index
    %c0_160 = arith.constant 0 : index
    %397 = vector.load %arg4[%c0_159, %c0_160] : memref<128x128xf32, #tpu.memory_space<vmem>>, vector<128x128xf32>
    %398 = arith.addf %396, %397 : vector<128x128xf32>
    %399 = vector.extract_strided_slice %398 {offsets = [0, 0], sizes = [64, 128], strides = [1, 1]} : vector<128x128xf32> to vector<64x128xf32>
    %400 = vector.extract_strided_slice %398 {offsets = [64, 0], sizes = [64, 128], strides = [1, 1]} : vector<128x128xf32> to vector<64x128xf32>
    %401 = arith.truncf %399 : vector<64x128xf32> to vector<64x128xbf16>
    %c0_161 = arith.constant 0 : index
    %c0_162 = arith.constant 0 : index
    %402 = vector.load %arg7[%c0_161, %c0_162] : memref<128x1024xbf16, #tpu.memory_space<vmem>>, vector<128x512xbf16>
    %cst_163 = arith.constant dense<0.000000e+00> : vector<64x512xf32>
    %403 = tpu.matmul %401, %402, %cst_163 {dimension_numbers = #tpu.dot_dimension_numbers<[1], [0], [0], [1], [0, 0, 1, 1], [], []>} : vector<64x128xbf16>, vector<128x512xbf16>, vector<64x512xf32> -> vector<64x512xf32>
    %404 = vector.extract_strided_slice %403 {offsets = [0, 0], sizes = [64, 128], strides = [1, 1]} : vector<64x512xf32> to vector<64x128xf32>
    %405 = arith.addf %404, %400 : vector<64x128xf32>
    %cst_164 = arith.constant 2.000000e-01 : f32
    %406 = vector.broadcast %cst_164 : f32 to vector<64x128xf32>
    %407 = arith.mulf %406, %405 : vector<64x128xf32>
    %408 = arith.maximumf %405, %407 : vector<64x128xf32>
    %409 = vector.extract_strided_slice %403 {offsets = [0, 128], sizes = [64, 128], strides = [1, 1]} : vector<64x512xf32> to vector<64x128xf32>
    %410 = arith.addf %409, %400 : vector<64x128xf32>
    %cst_165 = arith.constant 2.000000e-01 : f32
    %411 = vector.broadcast %cst_165 : f32 to vector<64x128xf32>
    %412 = arith.mulf %411, %410 : vector<64x128xf32>
    %413 = arith.maximumf %410, %412 : vector<64x128xf32>
    %414 = arith.maximumf %408, %413 : vector<64x128xf32>
    %415 = vector.extract_strided_slice %403 {offsets = [0, 256], sizes = [64, 128], strides = [1, 1]} : vector<64x512xf32> to vector<64x128xf32>
    %416 = arith.addf %415, %400 : vector<64x128xf32>
    %cst_166 = arith.constant 2.000000e-01 : f32
    %417 = vector.broadcast %cst_166 : f32 to vector<64x128xf32>
    %418 = arith.mulf %417, %416 : vector<64x128xf32>
    %419 = arith.maximumf %416, %418 : vector<64x128xf32>
    %420 = arith.maximumf %414, %419 : vector<64x128xf32>
    %421 = vector.extract_strided_slice %403 {offsets = [0, 384], sizes = [64, 128], strides = [1, 1]} : vector<64x512xf32> to vector<64x128xf32>
    %422 = arith.addf %421, %400 : vector<64x128xf32>
    %cst_167 = arith.constant 2.000000e-01 : f32
    %423 = vector.broadcast %cst_167 : f32 to vector<64x128xf32>
    %424 = arith.mulf %423, %422 : vector<64x128xf32>
    %425 = arith.maximumf %422, %424 : vector<64x128xf32>
    %426 = arith.maximumf %420, %425 : vector<64x128xf32>
    %c0_168 = arith.constant 0 : index
    %c512_169 = arith.constant 512 : index
    %427 = vector.load %arg7[%c0_168, %c512_169] : memref<128x1024xbf16, #tpu.memory_space<vmem>>, vector<128x512xbf16>
    %cst_170 = arith.constant dense<0.000000e+00> : vector<64x512xf32>
    %428 = tpu.matmul %401, %427, %cst_170 {dimension_numbers = #tpu.dot_dimension_numbers<[1], [0], [0], [1], [0, 0, 1, 1], [], []>} : vector<64x128xbf16>, vector<128x512xbf16>, vector<64x512xf32> -> vector<64x512xf32>
    %429 = vector.extract_strided_slice %428 {offsets = [0, 0], sizes = [64, 128], strides = [1, 1]} : vector<64x512xf32> to vector<64x128xf32>
    %430 = arith.addf %429, %400 : vector<64x128xf32>
    %cst_171 = arith.constant 2.000000e-01 : f32
    %431 = vector.broadcast %cst_171 : f32 to vector<64x128xf32>
    %432 = arith.mulf %431, %430 : vector<64x128xf32>
    %433 = arith.maximumf %430, %432 : vector<64x128xf32>
    %434 = arith.maximumf %426, %433 : vector<64x128xf32>
    %435 = vector.extract_strided_slice %428 {offsets = [0, 128], sizes = [64, 128], strides = [1, 1]} : vector<64x512xf32> to vector<64x128xf32>
    %436 = arith.addf %435, %400 : vector<64x128xf32>
    %cst_172 = arith.constant 2.000000e-01 : f32
    %437 = vector.broadcast %cst_172 : f32 to vector<64x128xf32>
    %438 = arith.mulf %437, %436 : vector<64x128xf32>
    %439 = arith.maximumf %436, %438 : vector<64x128xf32>
    %440 = arith.maximumf %434, %439 : vector<64x128xf32>
    %441 = vector.extract_strided_slice %428 {offsets = [0, 256], sizes = [64, 128], strides = [1, 1]} : vector<64x512xf32> to vector<64x128xf32>
    %442 = arith.addf %441, %400 : vector<64x128xf32>
    %cst_173 = arith.constant 2.000000e-01 : f32
    %443 = vector.broadcast %cst_173 : f32 to vector<64x128xf32>
    %444 = arith.mulf %443, %442 : vector<64x128xf32>
    %445 = arith.maximumf %442, %444 : vector<64x128xf32>
    %446 = arith.maximumf %440, %445 : vector<64x128xf32>
    %447 = vector.extract_strided_slice %428 {offsets = [0, 384], sizes = [64, 128], strides = [1, 1]} : vector<64x512xf32> to vector<64x128xf32>
    %448 = arith.addf %447, %400 : vector<64x128xf32>
    %cst_174 = arith.constant 2.000000e-01 : f32
    %449 = vector.broadcast %cst_174 : f32 to vector<64x128xf32>
    %450 = arith.mulf %449, %448 : vector<64x128xf32>
    %451 = arith.maximumf %448, %450 : vector<64x128xf32>
    %452 = arith.maximumf %446, %451 : vector<64x128xf32>
    %c0_175 = arith.constant 0 : index
    %c0_176 = arith.constant 0 : index
    %453 = vector.load %arg5[%c0_175, %c0_176] : memref<128x64xbf16, #tpu.memory_space<vmem>>, vector<128x64xbf16>
    %454 = arith.truncf %452 : vector<64x128xf32> to vector<64x128xbf16>
    %cst_177 = arith.constant dense<0.000000e+00> : vector<128x128xf32>
    %455 = tpu.matmul %453, %454, %cst_177 {dimension_numbers = #tpu.dot_dimension_numbers<[1], [0], [0], [1], [0, 0, 1, 1], [], []>} : vector<128x64xbf16>, vector<64x128xbf16>, vector<128x128xf32> -> vector<128x128xf32>
    %456 = vector.extract_strided_slice %455 {offsets = [0, 0], sizes = [64, 128], strides = [1, 1]} : vector<128x128xf32> to vector<64x128xf32>
    %457 = vector.extract_strided_slice %455 {offsets = [64, 0], sizes = [64, 128], strides = [1, 1]} : vector<128x128xf32> to vector<64x128xf32>
    %c0_178 = arith.constant 0 : index
    %c0_179 = arith.constant 0 : index
    %458 = vector.load %arg6[%c0_178, %c0_179] : memref<64x128xf32, #tpu.memory_space<vmem>>, vector<64x128xf32>
    %459 = arith.addf %457, %458 : vector<64x128xf32>
    %460 = arith.truncf %456 : vector<64x128xf32> to vector<64x128xbf16>
    %c0_180 = arith.constant 0 : index
    %c0_181 = arith.constant 0 : index
    %461 = vector.load %arg7[%c0_180, %c0_181] : memref<128x1024xbf16, #tpu.memory_space<vmem>>, vector<128x512xbf16>
    %cst_182 = arith.constant dense<0.000000e+00> : vector<64x512xf32>
    %462 = tpu.matmul %460, %461, %cst_182 {dimension_numbers = #tpu.dot_dimension_numbers<[1], [0], [0], [1], [0, 0, 1, 1], [], []>} : vector<64x128xbf16>, vector<128x512xbf16>, vector<64x512xf32> -> vector<64x512xf32>
    %463 = vector.extract_strided_slice %462 {offsets = [0, 0], sizes = [64, 128], strides = [1, 1]} : vector<64x512xf32> to vector<64x128xf32>
    %464 = arith.addf %463, %459 : vector<64x128xf32>
    %cst_183 = arith.constant 2.000000e-01 : f32
    %465 = vector.broadcast %cst_183 : f32 to vector<64x128xf32>
    %466 = arith.mulf %465, %464 : vector<64x128xf32>
    %467 = arith.maximumf %464, %466 : vector<64x128xf32>
    %468 = vector.extract_strided_slice %462 {offsets = [0, 128], sizes = [64, 128], strides = [1, 1]} : vector<64x512xf32> to vector<64x128xf32>
    %469 = arith.addf %468, %459 : vector<64x128xf32>
    %cst_184 = arith.constant 2.000000e-01 : f32
    %470 = vector.broadcast %cst_184 : f32 to vector<64x128xf32>
    %471 = arith.mulf %470, %469 : vector<64x128xf32>
    %472 = arith.maximumf %469, %471 : vector<64x128xf32>
    %473 = arith.maximumf %467, %472 : vector<64x128xf32>
    %474 = vector.extract_strided_slice %462 {offsets = [0, 256], sizes = [64, 128], strides = [1, 1]} : vector<64x512xf32> to vector<64x128xf32>
    %475 = arith.addf %474, %459 : vector<64x128xf32>
    %cst_185 = arith.constant 2.000000e-01 : f32
    %476 = vector.broadcast %cst_185 : f32 to vector<64x128xf32>
    %477 = arith.mulf %476, %475 : vector<64x128xf32>
    %478 = arith.maximumf %475, %477 : vector<64x128xf32>
    %479 = arith.maximumf %473, %478 : vector<64x128xf32>
    %480 = vector.extract_strided_slice %462 {offsets = [0, 384], sizes = [64, 128], strides = [1, 1]} : vector<64x512xf32> to vector<64x128xf32>
    %481 = arith.addf %480, %459 : vector<64x128xf32>
    %cst_186 = arith.constant 2.000000e-01 : f32
    %482 = vector.broadcast %cst_186 : f32 to vector<64x128xf32>
    %483 = arith.mulf %482, %481 : vector<64x128xf32>
    %484 = arith.maximumf %481, %483 : vector<64x128xf32>
    %485 = arith.maximumf %479, %484 : vector<64x128xf32>
    %c0_187 = arith.constant 0 : index
    %c512_188 = arith.constant 512 : index
    %486 = vector.load %arg7[%c0_187, %c512_188] : memref<128x1024xbf16, #tpu.memory_space<vmem>>, vector<128x512xbf16>
    %cst_189 = arith.constant dense<0.000000e+00> : vector<64x512xf32>
    %487 = tpu.matmul %460, %486, %cst_189 {dimension_numbers = #tpu.dot_dimension_numbers<[1], [0], [0], [1], [0, 0, 1, 1], [], []>} : vector<64x128xbf16>, vector<128x512xbf16>, vector<64x512xf32> -> vector<64x512xf32>
    %488 = vector.extract_strided_slice %487 {offsets = [0, 0], sizes = [64, 128], strides = [1, 1]} : vector<64x512xf32> to vector<64x128xf32>
    %489 = arith.addf %488, %459 : vector<64x128xf32>
    %cst_190 = arith.constant 2.000000e-01 : f32
    %490 = vector.broadcast %cst_190 : f32 to vector<64x128xf32>
    %491 = arith.mulf %490, %489 : vector<64x128xf32>
    %492 = arith.maximumf %489, %491 : vector<64x128xf32>
    %493 = arith.maximumf %485, %492 : vector<64x128xf32>
    %494 = vector.extract_strided_slice %487 {offsets = [0, 128], sizes = [64, 128], strides = [1, 1]} : vector<64x512xf32> to vector<64x128xf32>
    %495 = arith.addf %494, %459 : vector<64x128xf32>
    %cst_191 = arith.constant 2.000000e-01 : f32
    %496 = vector.broadcast %cst_191 : f32 to vector<64x128xf32>
    %497 = arith.mulf %496, %495 : vector<64x128xf32>
    %498 = arith.maximumf %495, %497 : vector<64x128xf32>
    %499 = arith.maximumf %493, %498 : vector<64x128xf32>
    %500 = vector.extract_strided_slice %487 {offsets = [0, 256], sizes = [64, 128], strides = [1, 1]} : vector<64x512xf32> to vector<64x128xf32>
    %501 = arith.addf %500, %459 : vector<64x128xf32>
    %cst_192 = arith.constant 2.000000e-01 : f32
    %502 = vector.broadcast %cst_192 : f32 to vector<64x128xf32>
    %503 = arith.mulf %502, %501 : vector<64x128xf32>
    %504 = arith.maximumf %501, %503 : vector<64x128xf32>
    %505 = arith.maximumf %499, %504 : vector<64x128xf32>
    %506 = vector.extract_strided_slice %487 {offsets = [0, 384], sizes = [64, 128], strides = [1, 1]} : vector<64x512xf32> to vector<64x128xf32>
    %507 = arith.addf %506, %459 : vector<64x128xf32>
    %cst_193 = arith.constant 2.000000e-01 : f32
    %508 = vector.broadcast %cst_193 : f32 to vector<64x128xf32>
    %509 = arith.mulf %508, %507 : vector<64x128xf32>
    %510 = arith.maximumf %507, %509 : vector<64x128xf32>
    %511 = arith.maximumf %505, %510 : vector<64x128xf32>
    %c0_194 = arith.constant 0 : index
    %c0_195 = arith.constant 0 : index
    %512 = vector.load %arg8[%c0_194, %c0_195] : memref<7x64xbf16, #tpu.memory_space<vmem>>, vector<7x64xbf16>
    %513 = arith.truncf %511 : vector<64x128xf32> to vector<64x128xbf16>
    %cst_196 = arith.constant dense<0.000000e+00> : vector<7x128xf32>
    %514 = tpu.matmul %512, %513, %cst_196 {dimension_numbers = #tpu.dot_dimension_numbers<[1], [0], [0], [1], [0, 0, 1, 1], [], []>} : vector<7x64xbf16>, vector<64x128xbf16>, vector<7x128xf32> -> vector<7x128xf32>
    %c0_197 = arith.constant 0 : index
    %c0_198 = arith.constant 0 : index
    %515 = vector.load %arg9[%c0_197, %c0_198] : memref<7x128xf32, #tpu.memory_space<vmem>>, vector<7x128xf32>
    %516 = arith.addf %514, %515 : vector<7x128xf32>
    %c3_199 = arith.constant 3 : index
    %c0_200 = arith.constant 0 : index
    %c0_201 = arith.constant 0 : index
    %517 = vector.load %arg10[%c3_199, %c0_200, %c0_201] : memref<4x7x128xf32, #tpu.memory_space<vmem>>, vector<1x7x128xf32>
    %518 = vector.shape_cast %517 : vector<1x7x128xf32> to vector<7x128xf32>
    %519 = vector.shape_cast %516 : vector<7x128xf32> to vector<1x7x128xf32>
    tpu.vector_store %arg10[%c3_199, %c0_200, %c0_201], %519 {strides = array<i32>} : memref<4x7x128xf32, #tpu.memory_space<vmem>>, vector<1x7x128xf32>,
    return
  }
  func.func @transform_0(%arg0: i32) -> (i32, i32, i32) {
    %c0_i32 = arith.constant 0 : i32
    %c0_i32_0 = arith.constant 0 : i32
    %c0_i32_1 = arith.constant 0 : i32
    return %arg0, %c0_i32, %c0_i32_0 : i32, i32, i32
  }
  func.func @transform_1(%arg0: i32) -> (i32, i32) {
    %c0_i32 = arith.constant 0 : i32
    %c0_i32_0 = arith.constant 0 : i32
    %c0_i32_1 = arith.constant 0 : i32
    return %c0_i32, %c0_i32_0 : i32, i32
  }
  func.func @transform_2(%arg0: i32) -> (i32, i32) {
    %c0_i32 = arith.constant 0 : i32
    %c0_i32_0 = arith.constant 0 : i32
    %c0_i32_1 = arith.constant 0 : i32
    return %c0_i32, %c0_i32_0 : i32, i32
  }
  func.func @transform_3(%arg0: i32) -> (i32, i32) {
    %c0_i32 = arith.constant 0 : i32
    %c0_i32_0 = arith.constant 0 : i32
    %c0_i32_1 = arith.constant 0 : i32
    return %c0_i32, %c0_i32_0 : i32, i32
  }
  func.func @transform_4(%arg0: i32) -> (i32, i32) {
    %c0_i32 = arith.constant 0 : i32
    %c0_i32_0 = arith.constant 0 : i32
    %c0_i32_1 = arith.constant 0 : i32
    return %c0_i32, %c0_i32_0 : i32, i32
  }
  func.func @transform_5(%arg0: i32) -> (i32, i32) {
    %c0_i32 = arith.constant 0 : i32
    %c0_i32_0 = arith.constant 0 : i32
    %c0_i32_1 = arith.constant 0 : i32
    return %c0_i32, %c0_i32_0 : i32, i32
  }
  func.func @transform_6(%arg0: i32) -> (i32, i32) {
    %c0_i32 = arith.constant 0 : i32
    %c0_i32_0 = arith.constant 0 : i32
    %c0_i32_1 = arith.constant 0 : i32
    return %c0_i32, %c0_i32_0 : i32, i32
  }
  func.func @transform_7(%arg0: i32) -> (i32, i32) {
    %c0_i32 = arith.constant 0 : i32
    %c0_i32_0 = arith.constant 0 : i32
    %c0_i32_1 = arith.constant 0 : i32
    return %c0_i32, %c0_i32_0 : i32, i32
  }
  func.func @transform_8(%arg0: i32) -> (i32, i32) {
    %c0_i32 = arith.constant 0 : i32
    %c0_i32_0 = arith.constant 0 : i32
    %c0_i32_1 = arith.constant 0 : i32
    return %c0_i32, %c0_i32_0 : i32, i32
  }
  func.func @transform_9(%arg0: i32) -> (i32, i32, i32) {
    %c0_i32 = arith.constant 0 : i32
    %c0_i32_0 = arith.constant 0 : i32
    %c0_i32_1 = arith.constant 0 : i32
    return %arg0, %c0_i32, %c0_i32_0 : i32, i32, i32
  }
}

</mosaic_0001>

<bundles_post_ra>
// kernel: tpu_custom_call.1
= control target key start
LH: loop header
LB: loop body
LE: loop exit
PB: predicated region body
PF: predicated region fallthrough
CT: control target
= control target key end

     0   :  { %s13005_s30 = smov 0   ;;  %s19477_s0 = inlined_call_operand.vmem [shape: bf16[8,512,64], index: 0, kind: input, shape index: {}]   ;;  %s19478_s1 = inlined_call_operand.vmem [shape: bf16[128,512], index: 1, kind: input, shape index: {}]   ;;  %s19479_s2 = inlined_call_operand.vmem [shape: bf16[128,64], index: 2, kind: input, shape index: {}]   ;;  %s19480_s3 = inlined_call_operand.vmem [shape: f32[128,128], index: 3, kind: input, shape index: {}]   ;;  %s19481_s4 = inlined_call_operand.vmem [shape: bf16[128,64], index: 4, kind: input, shape index: {}]   ;;  %s19482_s5 = inlined_call_operand.vmem [shape: f32[64,128], index: 5, kind: input, shape index: {}]   ;;  %s19483_s6 = inlined_call_operand.vmem [shape: bf16[128,1024], index: 6, kind: input, shape index: {}]   ;;  %s19484_s7 = inlined_call_operand.vmem [shape: bf16[7,64], index: 7, kind: input, shape index: {}]   ;;  %s19485_s8 = inlined_call_operand.vmem [shape: f32[7,128], index: 8, kind: input, shape index: {}]   ;;  %s19486_s9 = inlined_call_operand.vmem [shape: f32[8,7,128], index: 9, kind: output, shape index: {}]  }
   0x1 LB: > { %s9783_s10 = sadd.s32 4294967295, %s12953_s30   ;;  %p9787_p0 = scmp.ge.s32.totalorder %s12953_s30, 1  ;;  %s12953_s30 = sphi %s13005_s30, %s19_s30  }
   0x2   : > { %p289_p1 = scmp.lt.s32.totalorder %s12953_s30, 3 }
   0x4   : > { %p290_p2 = pnand %p9787_p0, %p289_p1 }
   0x6   : > { %293 = sbr.rel (%p290_p2) target bundleno = 5381 (0x1505), region = 56 }
   0xb   : > { %s9788_s11 = sshll.u32 %s9783_s10, 2  ;;  %v9795_v28 = vld [vmem:[%s19478_s1] sm:$0xf]  ;;  %v12397_v29 = vld [vmem:[%s19478_s1 + $0xc] sm:$0xf0]  ;;  %vm1064_vm0 = vcmask 523264  }
   0xc   : > { %p327_p3 = scmp.lt.s32.totalorder %s9788_s11, 7  ;;  %v12395_v30 = vld [vmem:[%s19478_s1 + $0x4] sm:$0xf]  ;;  %v9797_v35 = vld [vmem:[%s19478_s1 + $0x10] sm:$0xf0]  ;;  %v9796_v40 = vor.u32 %v12397_v29, %v9795_v28 }
   0xd   : > { %v9803_v36 = vld [vmem:[%s19478_s1 + $0x8] sm:$0xf]  ;;  %v12398_v37 = vld [vmem:[%s19478_s1 + $0x14] sm:$0xf0]  ;;  %v12396_v38 = vld [vmem:[%s19478_s1 + $0xc] sm:$0xf]  ;;  %v9800_v41 = vor.u32 %v12395_v30, %v9797_v35 }
   0xe   : > { %s19629_s11 = smov (!%p327_p3, %s9788_s11), 7  ;;  %v9805_v39 = vld [vmem:[%s19478_s1 + $0x18] sm:$0xf0]  ;;  %v9804_v42 = vor.u32 %v12398_v37, %v9803_v36  ;;  %v9811_v44 = vld [vmem:[%s19478_s1 + $0x20] sm:$0xf] }
   0xf   : > { %s12362_s12 = sshll.u32 %s19629_s11, 8  ;;  %v9808_v43 = vor.u32 %v12396_v38, %v9805_v39  ;;  %v12401_v45 = vld [vmem:[%s19478_s1 + $0x2c] sm:$0xf0]  ;;  %v12399_v46 = vld [vmem:[%s19478_s1 + $0x24] sm:$0xf]  ;;  %s9792_s10 = sshll.u32 %s19629_s11, 3 }
  0x10   : > { %s13019_s15 = scalar_lea.vmem %s19477_s0, %s12362_s12  ;;  %v9813_v47 = vld [vmem:[%s19478_s1 + $0x30] sm:$0xf0]  ;;  %v9819_v48 = vld [vmem:[%s19478_s1 + $0x28] sm:$0xf]  ;;  %v12402_v49 = vld [vmem:[%s19478_s1 + $0x34] sm:$0xf0]  ;;  %v9812_v52 = vor.u32 %v12401_v45, %v9811_v44  ;;  %s14904_s17 = scalar_lea.vmem %s19486_s9, %s9792_s10 }
  0x11   : > { %v12370_v0 = vld [vmem:[%s13019_s15 + $0x38] sm:$0xff]  ;;  %v12369_v4 = vld [vmem:[%s13019_s15 + $0x30] sm:$0xff]  ;;  %v12368_v8 = vld [vmem:[%s13019_s15 + $0x28] sm:$0xff]  ;;  %v9816_v53 = vor.u32 %v12399_v46, %v9813_v47  ;;  %v9820_v54 = vor.u32 %v12402_v49, %v9819_v48 }
  0x12   : > { %v12378_v1 = vld [vmem:[%s13019_s15 + $0x78] sm:$0xff]  ;;  %788 = vmatpush.bf16.msra.mxu0 %v12370_v0  ;;  %v12377_v5 = vld [vmem:[%s13019_s15 + $0x70] sm:$0xff]  ;;  %v12376_v9 = vld [vmem:[%s13019_s15 + $0x68] sm:$0xff] }
  0x13   : > { %v12386_v2 = vld [vmem:[%s13019_s15 + $0xb8] sm:$0xff]  ;;  %837 = vmatpush.bf16.msra.mxu1 %v12378_v1  ;;  %v12385_v6 = vld [vmem:[%s13019_s15 + $0xb0] sm:$0xff]  ;;  %v12384_v10 = vld [vmem:[%s13019_s15 + $0xa8] sm:$0xff] }
  0x14   : > { %v12394_v3 = vld [vmem:[%s13019_s15 + $0xf8] sm:$0xff]  ;;  %886 = vmatpush.bf16.msra.mxu2 %v12386_v2  ;;  %v12393_v7 = vld [vmem:[%s13019_s15 + $0xf0] sm:$0xff]  ;;  %v12392_v11 = vld [vmem:[%s13019_s15 + $0xe8] sm:$0xff] }
  0x15   : > { %935 = vmatpush.bf16.msra.mxu3 %v12394_v3  ;;  %v12367_v12 = vld [vmem:[%s13019_s15 + $0x20] sm:$0xff]  ;;  %v12366_v16 = vld [vmem:[%s13019_s15 + $0x18] sm:$0xff]  ;;  %v12365_v20 = vld [vmem:[%s13019_s15 + $0x10] sm:$0xff] }
  0x16   : > { %789 = vmatpush.bf16.msra.mxu0 %v12369_v4  ;;  %v12375_v13 = vld [vmem:[%s13019_s15 + $0x60] sm:$0xff]  ;;  %v12374_v17 = vld [vmem:[%s13019_s15 + $0x58] sm:$0xff]  ;;  %v12373_v21 = vld [vmem:[%s13019_s15 + $0x50] sm:$0xff] }
  0x17   : > { %838 = vmatpush.bf16.msra.mxu1 %v12377_v5  ;;  %v12383_v14 = vld [vmem:[%s13019_s15 + $0xa0] sm:$0xff]  ;;  %v12382_v18 = vld [vmem:[%s13019_s15 + $0x98] sm:$0xff]  ;;  %v12381_v22 = vld [vmem:[%s13019_s15 + $0x90] sm:$0xff] }
  0x18   : > { %887 = vmatpush.bf16.msra.mxu2 %v12385_v6  ;;  %v12391_v15 = vld [vmem:[%s13019_s15 + $0xe0] sm:$0xff]  ;;  %v12390_v19 = vld [vmem:[%s13019_s15 + $0xd8] sm:$0xff]  ;;  %v12389_v23 = vld [vmem:[%s13019_s15 + $0xd0] sm:$0xff] }
  0x19   : > { %936 = vmatpush.bf16.msra.mxu3 %v12393_v7  ;;  %v12364_v24 = vld [vmem:[%s13019_s15 + $0x8] sm:$0xff]  ;;  %v12363_v31 = vld [vmem:[%s13019_s15] sm:$0xff]  ;;  %v9821_v51 = vld [vmem:[%s19478_s1 + $0x38] sm:$0xf0] }
  0x1a   : > { %790 = vmatpush.bf16.msra.mxu0 %v12368_v8  ;;  %v12372_v25 = vld [vmem:[%s13019_s15 + $0x48] sm:$0xff]  ;;  %v12371_v32 = vld [vmem:[%s13019_s15 + $0x40] sm:$0xff]  ;;  %v12405_v57 = vld [vmem:[%s19478_s1 + $0x4c] sm:$0xf0] }
  0x1b   : > { %839 = vmatpush.bf16.msra.mxu1 %v12376_v9  ;;  %v12380_v26 = vld [vmem:[%s13019_s15 + $0x88] sm:$0xff]  ;;  %v12379_v33 = vld [vmem:[%s13019_s15 + $0x80] sm:$0xff]  ;;  %v9829_v59 = vld [vmem:[%s19478_s1 + $0x50] sm:$0xf0] }
  0x1c   : > { %888 = vmatpush.bf16.msra.mxu2 %v12384_v10  ;;  %v12388_v27 = vld [vmem:[%s13019_s15 + $0xc8] sm:$0xff]  ;;  %v12387_v34 = vld [vmem:[%s13019_s15 + $0xc0] sm:$0xff]  ;;  %v12406_v61 = vld [vmem:[%s19478_s1 + $0x54] sm:$0xf0] }
  0x1d   : > { %937 = vmatpush.bf16.msra.mxu3 %v12392_v11  ;;  %v12400_v50 = vld [vmem:[%s19478_s1 + $0x2c] sm:$0xf]  ;;  %v9827_v56 = vld [vmem:[%s19478_s1 + $0x40] sm:$0xf]  ;;  %v12403_v58 = vld [vmem:[%s19478_s1 + $0x44] sm:$0xf] }
  0x1e   : > { %791 = vmatpush.bf16.msra.mxu0 %v12367_v12  ;;  %v9824_v55 = vor.u32 %v12400_v50, %v9821_v51  ;;  %v9835_v60 = vld [vmem:[%s19478_s1 + $0x48] sm:$0xf]  ;;  %v12404_v62 = vld [vmem:[%s19478_s1 + $0x4c] sm:$0xf]  ;;  %v9837_v63 = vld [vmem:[%s19478_s1 + $0x58] sm:$0xf0]  ;;  %v9828_v0 = vor.u32 %v12405_v57, %v9827_v56  ;;  %v9832_v1 = vor.u32 %v12403_v58, %v9829_v59 }
  0x1f   : > { %840 = vmatpush.bf16.msra.mxu1 %v12375_v13  ;;  %v9836_v2 = vor.u32 %v12406_v61, %v9835_v60  ;;  %v9840_v3 = vor.u32 %v12404_v62, %v9837_v63  ;;  %v9843_v4 = vld [vmem:[%s19478_s1 + $0x60] sm:$0xf]  ;;  %v12409_v5 = vld [vmem:[%s19478_s1 + $0x6c] sm:$0xf0]  ;;  %v12407_v6 = vld [vmem:[%s19478_s1 + $0x64] sm:$0xf] }
  0x20   : > { %889 = vmatpush.bf16.msra.mxu2 %v12383_v14  ;;  %v9845_v7 = vld [vmem:[%s19478_s1 + $0x70] sm:$0xf0]  ;;  %v9851_v8 = vld [vmem:[%s19478_s1 + $0x68] sm:$0xf]  ;;  %v12410_v9 = vld [vmem:[%s19478_s1 + $0x74] sm:$0xf0]  ;;  %v9844_v12 = vor.u32 %v12409_v5, %v9843_v4 }
  0x21   : > { %938 = vmatpush.bf16.msra.mxu3 %v12391_v15  ;;  %v12408_v10 = vld [vmem:[%s19478_s1 + $0x6c] sm:$0xf]  ;;  %v9853_v11 = vld [vmem:[%s19478_s1 + $0x78] sm:$0xf0]  ;;  %v9848_v13 = vor.u32 %v12407_v6, %v9845_v7  ;;  %v9852_v14 = vor.u32 %v12410_v9, %v9851_v8  ;;  %v9875_v28 = vld [vmem:[%s19478_s1 + $0xa0] sm:$0xf] }
  0x22   : > { %792 = vmatpush.bf16.msra.mxu0 %v12366_v16  ;;  %v9856_v15 = vor.u32 %v12408_v10, %v9853_v11  ;;  %v9859_v16 = vld [vmem:[%s19478_s1 + $0x80] sm:$0xf]  ;;  %v12417_v29 = vld [vmem:[%s19478_s1 + $0xac] sm:$0xf0]  ;;  %v12415_v30 = vld [vmem:[%s19478_s1 + $0xa4] sm:$0xf] }
  0x23   : > { %841 = vmatpush.bf16.msra.mxu1 %v12374_v17  ;;  %v12413_v17 = vld [vmem:[%s19478_s1 + $0x8c] sm:$0xf0]  ;;  %v9885_v35 = vld [vmem:[%s19478_s1 + $0xb8] sm:$0xf0]  ;;  %v9876_v36 = vor.u32 %v12417_v29, %v9875_v28  ;;  %v9899_v44 = vld [vmem:[%s19478_s1 + $0xc8] sm:$0xf] }
  0x24   : > { %890 = vmatpush.bf16.msra.mxu2 %v12382_v18  ;;  %v12411_v18 = vld [vmem:[%s19478_s1 + $0x84] sm:$0xf]  ;;  %v12422_v45 = vld [vmem:[%s19478_s1 + $0xd4] sm:$0xf0]  ;;  %v12420_v46 = vld [vmem:[%s19478_s1 + $0xcc] sm:$0xf] }
  0x25   : > { %939 = vmatpush.bf16.msra.mxu3 %v12390_v19  ;;  %v9861_v19 = vld [vmem:[%s19478_s1 + $0x90] sm:$0xf0]  ;;  %v9901_v47 = vld [vmem:[%s19478_s1 + $0xd8] sm:$0xf0]  ;;  %v9900_v50 = vor.u32 %v12422_v45, %v9899_v44  ;;  %v9915_v56 = vld [vmem:[%s19478_s1 + $0xe8] sm:$0xf] }
  0x26   : > { %793 = vmatpush.bf16.msra.mxu0 %v12365_v20  ;;  %v9867_v20 = vld [vmem:[%s19478_s1 + $0x88] sm:$0xf]  ;;  %v9904_v51 = vor.u32 %v12420_v46, %v9901_v47  ;;  %v12426_v57 = vld [vmem:[%s19478_s1 + $0xf4] sm:$0xf0]  ;;  %v12424_v58 = vld [vmem:[%s19478_s1 + $0xec] sm:$0xf] }
  0x27   : > { %842 = vmatpush.bf16.msra.mxu1 %v12373_v21  ;;  %v12414_v21 = vld [vmem:[%s19478_s1 + $0x94] sm:$0xf0]  ;;  %v9917_v59 = vld [vmem:[%s19478_s1 + $0xf8] sm:$0xf0]  ;;  %v9916_v62 = vor.u32 %v12426_v57, %v9915_v56 }
  0x28   : > { %891 = vmatpush.bf16.msra.mxu2 %v12381_v22  ;;  %v12412_v22 = vld [vmem:[%s19478_s1 + $0x8c] sm:$0xf]  ;;  %v9920_v63 = vor.u32 %v12424_v58, %v9917_v59 }
  0x29   : > { %940 = vmatpush.bf16.msra.mxu3 %v12389_v23  ;;  %v9869_v23 = vld [vmem:[%s19478_s1 + $0x98] sm:$0xf0] }
  0x2a   : > { %794 = vmatpush.bf16.msra.mxu0 %v12364_v24  ;;  %v9860_v24 = vor.u32 %v12413_v17, %v9859_v16 }
  0x2b   : > { %843 = vmatpush.bf16.msra.mxu1 %v12372_v25  ;;  %v9864_v25 = vor.u32 %v12411_v18, %v9861_v19 }
  0x2c   : > { %892 = vmatpush.bf16.msra.mxu2 %v12380_v26  ;;  %v9868_v26 = vor.u32 %v12414_v21, %v9867_v20 }
  0x2d   : > { %941 = vmatpush.bf16.msra.mxu3 %v12388_v27  ;;  %v9872_v27 = vor.u32 %v12412_v22, %v9869_v23 }
  0x2e   : > { %795 = vmatpush.bf16.msra.mxu0 %v12363_v31  ;;  %v9877_v31 = vld [vmem:[%s19478_s1 + $0xb0] sm:$0xf0] }
  0x2f   : > { %844 = vmatpush.bf16.msra.mxu1 %v12371_v32  ;;  %v9883_v32 = vld [vmem:[%s19478_s1 + $0xa8] sm:$0xf]  ;;  %v9880_v37 = vor.u32 %v12415_v30, %v9877_v31 }
  0x30   : > { %893 = vmatpush.bf16.msra.mxu2 %v12379_v33  ;;  %v12418_v33 = vld [vmem:[%s19478_s1 + $0xb4] sm:$0xf0] }
  0x31   : > { %942 = vmatpush.bf16.msra.mxu3 %v12387_v34  ;;  %796 = vmatmul.bf16.vlgmr.msra.gmra.mxu0 %v9796_v40  ;;  %v12416_v34 = vld [vmem:[%s19478_s1 + $0xac] sm:$0xf]  ;;  %v9884_v38 = vor.u32 %v12418_v33, %v9883_v32  ;;  %v9891_v40 = vld [vmem:[%s19478_s1 + $0xc0] sm:$0xf] }
  0x32   : > { %845 = vmatmul.bf16.vlgmr.msra.gmra.mxu1 %v9800_v41  ;;  %v9888_v39 = vor.u32 %v12416_v34, %v9885_v35  ;;  %v12421_v41 = vld [vmem:[%s19478_s1 + $0xcc] sm:$0xf0] }
  0x33   : > { %894 = vmatmul.bf16.vlgmr.msra.gmra.mxu2 %v9804_v42  ;;  %v12419_v42 = vld [vmem:[%s19478_s1 + $0xc4] sm:$0xf]  ;;  %v9892_v48 = vor.u32 %v12421_v41, %v9891_v40 }
  0x34   : > { %943 = vmatmul.bf16.vlgmr.msra.gmra.mxu3 %v9808_v43  ;;  %v9893_v43 = vld [vmem:[%s19478_s1 + $0xd0] sm:$0xf0] }
  0x35   : > { %v9896_v49 = vor.u32 %v12419_v42, %v9893_v43 }
  0x41   : > { %801 = vmatmul.bf16.gmra.mxu0 %v9812_v52  ;;  %v9907_v52 = vld [vmem:[%s19478_s1 + $0xe0] sm:$0xf] }
  0x42   : > { %850 = vmatmul.bf16.gmra.mxu1 %v9816_v53  ;;  %v12425_v53 = vld [vmem:[%s19478_s1 + $0xec] sm:$0xf0] }
  0x43   : > { %899 = vmatmul.bf16.gmra.mxu2 %v9820_v54  ;;  %v12423_v54 = vld [vmem:[%s19478_s1 + $0xe4] sm:$0xf]  ;;  %v9908_v60 = vor.u32 %v12425_v53, %v9907_v52 }
  0x44   : > { %948 = vmatmul.bf16.gmra.mxu3 %v9824_v55  ;;  %v9909_v55 = vld [vmem:[%s19478_s1 + $0xf0] sm:$0xf0] }
  0x45   : > { %v9912_v61 = vor.u32 %v12423_v54, %v9909_v55 }
  0x51   : > { %806 = vmatmul.bf16.gmra.mxu0 %v9828_v0 }
  0x52   : > { %855 = vmatmul.bf16.gmra.mxu1 %v9832_v1 }
  0x53   : > { %904 = vmatmul.bf16.gmra.mxu2 %v9836_v2 }
  0x54   : > { %953 = vmatmul.bf16.gmra.mxu3 %v9840_v3 }
  0x61   : > { %811 = vmatmul.bf16.gmra.mxu0 %v9844_v12 }
  0x62   : > { %860 = vmatmul.bf16.gmra.mxu1 %v9848_v13 }
  0x63   : > { %909 = vmatmul.bf16.gmra.mxu2 %v9852_v14 }
  0x64   : > { %958 = vmatmul.bf16.gmra.mxu3 %v9856_v15 }
  0x71   : > { %816 = vmatmul.bf16.gmra.mxu0 %v9860_v24 }
  0x72   : > { %865 = vmatmul.bf16.gmra.mxu1 %v9864_v25 }
  0x73   : > { %914 = vmatmul.bf16.gmra.mxu2 %v9868_v26 }
  0x74   : > { %963 = vmatmul.bf16.gmra.mxu3 %v9872_v27 }
  0x81   : > { %821 = vmatmul.bf16.gmra.mxu0 %v9876_v36 }
  0x82   : > { %870 = vmatmul.bf16.gmra.mxu1 %v9880_v37 }
  0x83   : > { %919 = vmatmul.bf16.gmra.mxu2 %v9884_v38 }
  0x84   : > { %968 = vmatmul.bf16.gmra.mxu3 %v9888_v39 }
  0x91   : > { %826 = vmatmul.bf16.gmra.mxu0 %v9892_v48 }
  0x92   : > { %875 = vmatmul.bf16.gmra.mxu1 %v9896_v49 }
  0x93   : > { %924 = vmatmul.bf16.gmra.mxu2 %v9900_v50 }
  0x94   : > { %973 = vmatmul.bf16.gmra.mxu3 %v9904_v51 }
  0xa1   : > { %831 = vmatmul.bf16.gmra.mxu0 %v9908_v60 }
  0xa2   : > { %880 = vmatmul.bf16.gmra.mxu1 %v9912_v61 }
  0xa3   : > { %929 = vmatmul.bf16.gmra.mxu2 %v9916_v62 }
  0xa4   : > { %978 = vmatmul.bf16.gmra.mxu3 %v9920_v63 }
  0xae   : > { %v797_v0 = vpop.f32.mrf.mxu0 }
  0xaf   : > { %v846_v1 = vpop.f32.mrf.mxu1 }
  0xb0   : > { %v847_v2 = vadd.f32 %v846_v1, %v797_v0 }
  0xb6   : > { %v895_v3 = vpop.f32.mrf.mxu2  ;;  %v13245_v6 = vpop.f32.mrf.mxu0 }
  0xb7   : > { %v944_v4 = vpop.f32.mrf.mxu3  ;;  %v896_v5 = vadd.f32 %v895_v3, %v847_v2  ;;  %v13247_v7 = vpop.f32.mrf.mxu1 }
  0xb9   : > { %v13249_v8 = vadd.f32 %v944_v4, %v896_v5 }
  0xbe   : > { %v13251_v9 = vpop.f32.mrf.mxu2  ;;  %v802_v11 = vpop.f32.mrf.mxu0 }
  0xbf   : > { %v13253_v10 = vpop.f32.mrf.mxu3  ;;  %v851_v12 = vpop.f32.mrf.mxu1 }
  0xc0   : > { %v852_v13 = vadd.f32 %v851_v12, %v802_v11 }
  0xc6   : > { %v900_v14 = vpop.f32.mrf.mxu2  ;;  %v13255_v17 = vpop.f32.mrf.mxu0 }
  0xc7   : > { %v949_v15 = vpop.f32.mrf.mxu3  ;;  %v901_v16 = vadd.f32 %v900_v14, %v852_v13  ;;  %v13257_v18 = vpop.f32.mrf.mxu1 }
  0xc9   : > { %v13259_v19 = vadd.f32 %v949_v15, %v901_v16 }
  0xce   : > { %v13261_v20 = vpop.f32.mrf.mxu2  ;;  %v807_v22 = vpop.f32.mrf.mxu0 }
  0xcf   : > { %v13263_v21 = vpop.f32.mrf.mxu3  ;;  %v856_v23 = vpop.f32.mrf.mxu1 }
  0xd0   : > { %v857_v24 = vadd.f32 %v856_v23, %v807_v22 }
  0xd6   : > { %v905_v25 = vpop.f32.mrf.mxu2  ;;  %v13265_v28 = vpop.f32.mrf.mxu0 }
  0xd7   : > { %v954_v26 = vpop.f32.mrf.mxu3  ;;  %v906_v27 = vadd.f32 %v905_v25, %v857_v24  ;;  %v13267_v29 = vpop.f32.mrf.mxu1 }
  0xd9   : > { %v13269_v30 = vadd.f32 %v954_v26, %v906_v27 }
  0xde   : > { %v13271_v31 = vpop.f32.mrf.mxu2  ;;  %v812_v33 = vpop.f32.mrf.mxu0 }
  0xdf   : > { %v13273_v32 = vpop.f32.mrf.mxu3  ;;  %v861_v34 = vpop.f32.mrf.mxu1 }
  0xe0   : > { %v862_v35 = vadd.f32 %v861_v34, %v812_v33 }
  0xe6   : > { %v910_v36 = vpop.f32.mrf.mxu2  ;;  %v13275_v39 = vpop.f32.mrf.mxu0 }
  0xe7   : > { %v959_v37 = vpop.f32.mrf.mxu3  ;;  %v911_v38 = vadd.f32 %v910_v36, %v862_v35  ;;  %v13277_v40 = vpop.f32.mrf.mxu1 }
  0xe9   : > { %v13279_v41 = vadd.f32 %v959_v37, %v911_v38 }
  0xee   : > { %v13281_v42 = vpop.f32.mrf.mxu2  ;;  %v817_v44 = vpop.f32.mrf.mxu0 }
  0xef   : > { %v13283_v43 = vpop.f32.mrf.mxu3  ;;  %v866_v45 = vpop.f32.mrf.mxu1 }
  0xf0   : > { %v867_v46 = vadd.f32 %v866_v45, %v817_v44 }
  0xf6   : > { %v915_v47 = vpop.f32.mrf.mxu2  ;;  %v819_v50 = vpop.f32.mrf.mxu0 }
  0xf7   : > { %v964_v48 = vpop.f32.mrf.mxu3  ;;  %v916_v49 = vadd.f32 %v915_v47, %v867_v46  ;;  %v868_v51 = vpop.f32.mrf.mxu1 }
  0xf9   : > { %v13285_v52 = vadd.f32 %v964_v48, %v916_v49 }
  0xfe   : > { %v917_v53 = vpop.f32.mrf.mxu2  ;;  %v822_v55 = vpop.f32.mrf.mxu0 }
  0xff   : > { %v966_v54 = vpop.f32.mrf.mxu3  ;;  %v871_v56 = vpop.f32.mrf.mxu1 }
 0x100   : > { %v872_v48 = vadd.f32 %v871_v56, %v822_v55  ;;  %v864_v55 = vadd.f32 %v13277_v40, %v13275_v39  ;;  %v854_v40 = vadd.f32 %v13257_v18, %v13255_v17 }
 0x102   : > { %v913_v56 = vadd.f32 %v13281_v42, %v864_v55  ;;  %v903_v42 = vadd.f32 %v13261_v20, %v854_v40 }
 0x106   : > { %v920_v57 = vpop.f32.mrf.mxu2  ;;  %v824_v59 = vpop.f32.mrf.mxu0 }
 0x107   : > { %v969_v58 = vpop.f32.mrf.mxu3  ;;  %v873_v60 = vpop.f32.mrf.mxu1 }
 0x108   : > { %v874_v49 = vadd.f32 %v873_v60, %v824_v59 }
 0x10e   : > { %v922_v61 = vpop.f32.mrf.mxu2  ;;  %v827_v63 = vpop.f32.mrf.mxu0 }
 0x10f   : > { %v971_v62 = vpop.f32.mrf.mxu3  ;;  %v876_v0 = vpop.f32.mrf.mxu1 }
 0x110   : > { %v877_v27 = vadd.f32 %v876_v0, %v827_v63 }
 0x116   : > { %v925_v1 = vpop.f32.mrf.mxu2  ;;  %v829_v3 = vpop.f32.mrf.mxu0 }
 0x117   : > { %v974_v2 = vpop.f32.mrf.mxu3  ;;  %v878_v4 = vpop.f32.mrf.mxu1  ;;  %v926_v44 = vadd.f32 %v925_v1, %v877_v27 }
 0x118   : > { %v879_v33 = vadd.f32 %v878_v4, %v829_v3  ;;  %v869_v3 = vadd.f32 %v868_v51, %v819_v50  ;;  %v859_v50 = vadd.f32 %v13267_v29, %v13265_v28  ;;  %v849_v29 = vadd.f32 %v13247_v7, %v13245_v6  ;;  %v12428_v6 = vld [vmem:[%s19479_s2 + $0x8] sm:$0xff]  ;;  %v12429_v7 = vld [vmem:[%s19479_s2 + $0x10] sm:$0xff] }
 0x11a   : > { %v908_v51 = vadd.f32 %v13271_v31, %v859_v50  ;;  %v898_v31 = vadd.f32 %v13251_v9, %v849_v29  ;;  %v12431_v9 = vld [vmem:[%s19479_s2 + $0x20] sm:$0xff]  ;;  %v10291_v50 = vld [vmem:[%s19483_s6 + $0x118] sm:$0xf] }
 0x11e   : > { %v927_v5 = vpop.f32.mrf.mxu2  ;;  %v832_v12 = vpop.f32.mrf.mxu0 }
 0x11f   : > { %v976_v11 = vpop.f32.mrf.mxu3  ;;  %v881_v13 = vpop.f32.mrf.mxu1  ;;  %v928_v36 = vadd.f32 %v927_v5, %v879_v33  ;;  %v918_v5 = vadd.f32 %v917_v53, %v869_v3  ;;  %v12461_v33 = vld [vmem:[%s19483_s6 + $0x19c] sm:$0xf0]  ;;  %v10307_v3 = vld [vmem:[%s19483_s6 + $0x158] sm:$0xf] }
 0x120   : > { %v882_v16 = vadd.f32 %v881_v13, %v832_v12  ;;  %v975_v12 = vadd.f32 %v974_v2, %v926_v44  ;;  %v923_v13 = vadd.f32 %v922_v61, %v874_v49  ;;  %v10205_v61 = vld [vmem:[%s19483_s6 + $0x1e0] sm:$0xf0]  ;;  %v12466_v2 = vld [vmem:[%s19483_s6 + $0x1e4] sm:$0xf0]  ;;  %v12457_v49 = vld [vmem:[%s19483_s6 + $0x15c] sm:$0xf0] }
 0x121   : > { %v977_v46 = vadd.f32 %v976_v11, %v928_v36  ;;  %v12462_v44 = vld [vmem:[%s19483_s6 + $0x1a4] sm:$0xf0] }
 0x122   : > { %v972_v63 = vadd.f32 %v971_v62, %v923_v13  ;;  %v10211_v62 = vld [vmem:[%s19483_s6 + $0x1c8] sm:$0xf]  ;;  %v12455_v13 = vld [vmem:[%s19483_s6 + $0x144] sm:$0xf] }
 0x126   : > { %v930_v14 = vpop.f32.mrf.mxu2  ;;  %v834_v22 = vpop.f32.mrf.mxu0 }
 0x127   : > { %v979_v15 = vpop.f32.mrf.mxu3  ;;  %v883_v23 = vpop.f32.mrf.mxu1  ;;  %v931_v24 = vadd.f32 %v930_v14, %v882_v16  ;;  %v990_v14 = vpack.c.bf16 %v977_v46, %v975_v12  ;;  %v921_v16 = vadd.f32 %v920_v57, %v872_v48  ;;  %v962_v57 = vadd.f32 %v13283_v43, %v913_v56  ;;  %v10171_v48 = vld [vmem:[%s19483_s6 + $0x140] sm:$0xf]  ;;  %v12451_v56 = vld [vmem:[%s19483_s6 + $0x104] sm:$0xf] }
 0x128   : > { %v884_v25 = vadd.f32 %v883_v23, %v834_v22  ;;  %v13358_v23 = vor.u32 %v12466_v2, %v10211_v62  ;;  %v12446_v62 = vld [vmem:[%s19483_s6 + $0xa4] sm:$0xf0] }
 0x129   : > { %v980_v37 = vadd.f32 %v979_v15, %v931_v24  ;;  %v1108_v0 = vsel %vm1064_vm0, %v990_v14, 0  ;;  %v970_v4 = vadd.f32 %v969_v58, %v921_v16  ;;  %v967_v15 = vadd.f32 %v966_v54, %v918_v5  ;;  %v10339_v24 = vld [vmem:[%s19483_s6 + $0x1d8] sm:$0xf]  ;;  %v10173_v14 = vld [vmem:[%s19483_s6 + $0x160] sm:$0xf0] }
 0x12a   : > { %v987_v53 = vpack.c.bf16 %v962_v57, %v13279_v41  ;;  %v957_v54 = vadd.f32 %v13273_v32, %v908_v51  ;;  %v947_v41 = vadd.f32 %v13253_v10, %v898_v31  ;;  %v10203_v10 = vld [vmem:[%s19483_s6 + $0x1c0] sm:$0xf]  ;;  %1416 = vmatpush.bf16.msrb.mxu3 %v13358_v23  ;;  %v10179_v16 = vld [vmem:[%s19483_s6 + $0x148] sm:$0xf]  ;;  %v13433_v5 = vor.u32 %v12455_v13, %v10173_v14  ;;  %v12486_v51 = vld [vmem:[%s19483_s6 + $0x134] sm:$0xf0] }
 0x12b   : > { %v989_v1 = vpack.c.bf16 %v972_v63, %v970_v4  ;;  %v988_v59 = vpack.c.bf16 %v967_v15, %v13285_v52  ;;  %v952_v52 = vadd.f32 %v13263_v21, %v903_v42  ;;  %v12427_v21 = vld [vmem:[%s19479_s2] sm:$0xff]  ;;  %v13420_v63 = vor.u32 %v12457_v49, %v10171_v48  ;;  %v12490_v4 = vld [vmem:[%s19483_s6 + $0x174] sm:$0xf0]  ;;  %v10163_v57 = vld [vmem:[%s19483_s6 + $0x108] sm:$0xf] }
 0x12c   : > { %v1099_v39 = vsel %vm1064_vm0, %v987_v53, 0  ;;  %v986_v43 = vpack.c.bf16 %v957_v54, %v13269_v30  ;;  %v984_v18 = vpack.c.bf16 %v947_v41, %v13249_v8  ;;  %v12430_v8 = vld [vmem:[%s19479_s2 + $0x18] sm:$0xff]  ;;  %v12463_v30 = vld [vmem:[%s19483_s6 + $0x1c4] sm:$0xf]  ;;  %v10155_v15 = vld [vmem:[%s19483_s6 + $0x100] sm:$0xf]  ;;  %v13444_v55 = vor.u32 %v12490_v4, %v10307_v3 }
 0x12d   : > { %v1105_v11 = vsel %vm1064_vm0, %v989_v1, 0  ;;  %v1102_v60 = vsel %vm1064_vm0, %v988_v59, 0  ;;  %v985_v32 = vpack.c.bf16 %v952_v52, %v13259_v19  ;;  %v12465_v19 = vld [vmem:[%s19483_s6 + $0x1dc] sm:$0xf0]  ;;  %v13356_v22 = vor.u32 %v12463_v30, %v10205_v61  ;;  %v10157_v59 = vld [vmem:[%s19483_s6 + $0x120] sm:$0xf0] }
 0x12e   : > { %v932_v26 = vpop.f32.mrf.mxu2  ;;  %v1096_v28 = vsel %vm1064_vm0, %v986_v43, 0  ;;  %v1090_v20 = vsel %vm1064_vm0, %v984_v18, 0  ;;  %v13345_v58 = vor.u32 %v12465_v19, %v10203_v10  ;;  %v12432_v54 = vld [vmem:[%s19479_s2 + $0x28] sm:$0xff]  ;;  %v13477_v42 = vor.u32 %v12486_v51, %v10291_v50  ;;  %v10139_v43 = vld [vmem:[%s19483_s6 + $0xc0] sm:$0xf] }
 0x12f   : > { %v933_v34 = vadd.f32 %v932_v26, %v884_v25  ;;  %v981_v35 = vpop.f32.mrf.mxu3  ;;  %v1093_v17 = vsel %vm1064_vm0, %v985_v32, 0  ;;  %v12498_v25 = vld [vmem:[%s19483_s6 + $0x1f4] sm:$0xf0]  ;;  %v10187_v26 = vld [vmem:[%s19483_s6 + $0x180] sm:$0xf]  ;;  %1387 = vmatpush.bf16.msrb.mxu2 %v13356_v22 }
 0x130   : > { %1358 = vmatpush.bf16.msrb.mxu1 %v13345_v58  ;;  %v13370_v27 = vor.u32 %v12498_v25, %v10339_v24  ;;  %v13383_v36 = vor.u32 %v12461_v33, %v10187_v26  ;;  %v12449_v52 = vld [vmem:[%s19483_s6 + $0xdc] sm:$0xf0]  ;;  %v10141_v31 = vld [vmem:[%s19483_s6 + $0xe0] sm:$0xf0]  ;;  %v10147_v32 = vld [vmem:[%s19483_s6 + $0xc8] sm:$0xf] }
 0x131   : > { %v982_v38 = vadd.f32 %v981_v35, %v933_v34  ;;  %v12459_v34 = vld [vmem:[%s19483_s6 + $0x184] sm:$0xf]  ;;  %v13493_v29 = vor.u32 %v12449_v52, %v10139_v43  ;;  %v12450_v41 = vld [vmem:[%s19483_s6 + $0xe4] sm:$0xf0]  ;;  %v10259_v25 = vld [vmem:[%s19483_s6 + $0x98] sm:$0xf] }
 0x132   : > { %v10189_v35 = vld [vmem:[%s19483_s6 + $0x1a0] sm:$0xf0]  ;;  %v13506_v18 = vor.u32 %v12450_v41, %v10147_v32  ;;  %v10131_v61 = vld [vmem:[%s19483_s6 + $0x88] sm:$0xf]  ;;  %v12478_v26 = vld [vmem:[%s19483_s6 + $0xb4] sm:$0xf0] }
 0x133   : > { %v991_v45 = vpack.c.bf16 %v982_v38, %v980_v37  ;;  %v13385_v37 = vor.u32 %v12459_v34, %v10189_v35  ;;  %v10195_v38 = vld [vmem:[%s19483_s6 + $0x188] sm:$0xf]  ;;  %v12443_v10 = vld [vmem:[%s19483_s6 + $0x84] sm:$0xf]  ;;  %v13543_v24 = vor.u32 %v12446_v62, %v10131_v61  ;;  %v10107_v33 = vld [vmem:[%s19483_s6 + $0x40] sm:$0xf]  ;;  %v13555_v34 = vor.u32 %v12478_v26, %v10259_v25 }
 0x134   : > { %v13397_v46 = vor.u32 %v12462_v44, %v10195_v38  ;;  %1359 = vmatpush.bf16.msrb.mxu1 %v13383_v36  ;;  %v10125_v30 = vld [vmem:[%s19483_s6 + $0xa0] sm:$0xf0]  ;;  %v12441_v35 = vld [vmem:[%s19483_s6 + $0x5c] sm:$0xf0]  ;;  %v10115_v48 = vld [vmem:[%s19483_s6 + $0x48] sm:$0xf] }
 0x135   : > { %v1111_v47 = vsel %vm1064_vm0, %v991_v45, 0  ;;  %v10323_v45 = vld [vmem:[%s19483_s6 + $0x198] sm:$0xf]  ;;  %1388 = vmatpush.bf16.msrb.mxu2 %v13385_v37  ;;  %v10128_v2 = vor.u32 %v12443_v10, %v10125_v30  ;;  %19532 = vst [vmem:[#allocation3_spill] sm:$0xff] %v13555_v34  ;;  %v12439_v38 = vld [vmem:[%s19483_s6 + $0x44] sm:$0xf] }
 0x136   : > { %1113 = vmatpush.bf16.xpose.msrb.mxu0 %v1111_v47  ;;  %v12494_v47 = vld [vmem:[%s19483_s6 + $0x1b4] sm:$0xf0]  ;;  %1417 = vmatpush.bf16.msrb.mxu3 %v13397_v46  ;;  %v10109_v44 = vld [vmem:[%s19483_s6 + $0x60] sm:$0xf0]  ;;  %v12442_v49 = vld [vmem:[%s19483_s6 + $0x64] sm:$0xf0] }
 0x137   : > { %v13408_v12 = vor.u32 %v12494_v47, %v10323_v45  ;;  %v13567_v45 = vor.u32 %v12441_v35, %v10107_v33  ;;  %v10112_v47 = vor.u32 %v12439_v38, %v10109_v44  ;;  %v10243_v13 = vld [vmem:[%s19483_s6 + $0x58] sm:$0xf]  ;;  %v13580_v14 = vor.u32 %v12442_v49, %v10115_v48  ;;  %v10091_v3 = vld [vmem:[%s19483_s6] sm:$0xf]  ;;  %v12460_v62 = vld [vmem:[%s19483_s6 + $0x18c] sm:$0xf] }
 0x138   : > { %1360 = vmatpush.bf16.msrb.mxu1 %v13420_v63  ;;  %v12437_v4 = vld [vmem:[%s19483_s6 + $0x1c] sm:$0xf0]  ;;  %v10227_v51 = vld [vmem:[%s19483_s6 + $0x18] sm:$0xf]  ;;  %v10315_v25 = vld [vmem:[%s19483_s6 + $0x190] sm:$0xf] }
 0x139   : > { %1389 = vmatpush.bf16.msrb.mxu2 %v13433_v5  ;;  %v12434_v52 = vld [vmem:[%s19479_s2 + $0x38] sm:$0xff]  ;;  %v12493_v33 = vld [vmem:[%s19483_s6 + $0x1ac] sm:$0xf0]  ;;  %v12491_v35 = vld [vmem:[%s19483_s6 + $0x194] sm:$0xf] }
 0x13a   : > { %v10317_v38 = vld [vmem:[%s19483_s6 + $0x1b0] sm:$0xf0]  ;;  %v10316_v44 = vor.u32 %v12493_v33, %v10315_v25  ;;  %v12456_v48 = vld [vmem:[%s19483_s6 + $0x14c] sm:$0xf] }
 0x13b   : > { %v10181_v49 = vld [vmem:[%s19483_s6 + $0x168] sm:$0xf0]  ;;  %v10269_v25 = vld [vmem:[%s19483_s6 + $0xf0] sm:$0xf0] }
 0x13e   : > { %1114 = vmatpush.bf16.xpose.msrb.mxu0 %v1108_v0  ;;  %v12458_v0 = vld [vmem:[%s19483_s6 + $0x164] sm:$0xf0] }
 0x13f   : > { %v13435_v1 = vor.u32 %v12458_v0, %v10179_v16  ;;  %v12474_v16 = vld [vmem:[%s19483_s6 + $0x74] sm:$0xf0] }
 0x140   : > { %v13585_v0 = vor.u32 %v12474_v16, %v10243_v13  ;;  %v10299_v13 = vld [vmem:[%s19483_s6 + $0x150] sm:$0xf]  ;;  %v13700_v16 = vor.u32 %v12456_v48, %v10181_v49 }
 0x141   : > { %1418 = vmatpush.bf16.msrb.mxu3 %v13435_v1  ;;  %v10251_v48 = vld [vmem:[%s19483_s6 + $0x90] sm:$0xf] }
 0x142   : > { %19533 = vst [vmem:[#allocation4_spill] sm:$0xff] %v13585_v0 }
 0x146   : > { %1115 = vmatpush.bf16.xpose.msrb.mxu0 %v1105_v11  ;;  %v12453_v11 = vld [vmem:[%s19483_s6 + $0x11c] sm:$0xf0] }
 0x147   : > { %v13465_v53 = vor.u32 %v12453_v11, %v10155_v15  ;;  %v12435_v15 = vld [vmem:[%s19483_s6 + $0x4] sm:$0xf]  ;;  %v13599_v11 = vor.u32 %v12437_v4, %v10091_v3  ;;  %v12489_v3 = vld [vmem:[%s19483_s6 + $0x16c] sm:$0xf0]  ;;  %v12487_v4 = vld [vmem:[%s19483_s6 + $0x154] sm:$0xf] }
 0x149   : > { %1361 = vmatpush.bf16.msrb.mxu1 %v13465_v53 }
 0x14d   : > { %1362 = vmatpush.bf16.msrb.mxu1 %v13493_v29 }
 0x14e   : > { %1116 = vmatpush.bf16.xpose.msrb.mxu0 %v1102_v60  ;;  %v12454_v60 = vld [vmem:[%s19483_s6 + $0x124] sm:$0xf0] }
 0x14f   : > { %v13475_v40 = vor.u32 %v12454_v60, %v10163_v57  ;;  %v12438_v57 = vld [vmem:[%s19483_s6 + $0x24] sm:$0xf0] }
 0x151   : > { %1419 = vmatpush.bf16.msrb.mxu3 %v13475_v40 }
 0x155   : > { %1420 = vmatpush.bf16.msrb.mxu3 %v13506_v18 }
 0x156   : > { %1117 = vmatpush.bf16.xpose.msrb.mxu0 %v1099_v39  ;;  %v13472_v39 = vor.u32 %v12451_v56, %v10157_v59  ;;  %v10093_v56 = vld [vmem:[%s19483_s6 + $0x20] sm:$0xf0]  ;;  %v10099_v59 = vld [vmem:[%s19483_s6 + $0x8] sm:$0xf] }
 0x157   : > { %v10096_v60 = vor.u32 %v12435_v15, %v10093_v56  ;;  %v13610_v50 = vor.u32 %v12438_v57, %v10099_v59  ;;  %v10301_v15 = vld [vmem:[%s19483_s6 + $0x170] sm:$0xf0]  ;;  %v10300_v56 = vor.u32 %v12489_v3, %v10299_v13  ;;  %v12477_v13 = vld [vmem:[%s19483_s6 + $0xac] sm:$0xf0] }
 0x158   : > { %1390 = vmatpush.bf16.msrb.mxu2 %v13472_v39  ;;  %v13712_v59 = vor.u32 %v12487_v4, %v10301_v15  ;;  %v1010_v57 = vld [vmem:[%s19480_s3 + $0x10] sm:$0xff] }
 0x159   : > { %1421 = vmatpush.bf16.msrb.mxu3 %v13543_v24  ;;  %v12475_v3 = vld [vmem:[%s19483_s6 + $0x94] sm:$0xf] }
 0x15a   : > { %v10253_v4 = vld [vmem:[%s19483_s6 + $0xb0] sm:$0xf0] }
 0x15d   : > { %1422 = vmatpush.bf16.msrb.mxu3 %v13580_v14 }
 0x15e   : > { %1118 = vmatpush.bf16.xpose.msrb.mxu0 %v1096_v28  ;;  %v12447_v28 = vld [vmem:[%s19483_s6 + $0xc4] sm:$0xf] }
 0x161   : > { %1423 = vmatpush.bf16.msrb.mxu3 %v13610_v50 }
 0x166   : > { %1119 = vmatpush.bf16.xpose.msrb.mxu0 %v1093_v17  ;;  %v13504_v17 = vor.u32 %v12447_v28, %v10141_v31  ;;  %v1009_v31 = vld [vmem:[%s19480_s3 + $0x8] sm:$0xff] }
 0x168   : > { %1391 = vmatpush.bf16.msrb.mxu2 %v13504_v17 }
 0x16c   : > { %1392 = vmatpush.bf16.msrb.mxu2 %v10128_v2 }
 0x16e   : > { %1120 = vmatpush.bf16.xpose.msrb.mxu0 %v1090_v20  ;;  %v10275_v20 = vld [vmem:[%s19483_s6 + $0xd8] sm:$0xf] }
 0x170   : > { %1393 = vmatpush.bf16.msrb.mxu2 %v10112_v47 }
 0x174   : > { %1394 = vmatpush.bf16.msrb.mxu2 %v10096_v60 }
 0x175   : > { %10081 = vmatmul.msk.bf16.vlgmr.msrb.gmra.mxu0 %vm1064_vm0, %v12427_v21  ;;  %v12482_v21 = vld [vmem:[%s19483_s6 + $0xf4] sm:$0xf0] }
 0x176   : > { %1844 = vmatpush.bf16.msra.mxu0 %v13370_v27 }
 0x17a   : > { %1845 = vmatpush.bf16.msra.mxu0 %v13408_v12 }
 0x17e   : > { %1846 = vmatpush.bf16.msra.mxu0 %v13444_v55 }
 0x182   : > { %1847 = vmatpush.bf16.msra.mxu0 %v13477_v42 }
 0x185   : > { %10082 = vmatmul.msk.bf16.gmra.mxu0 %vm1064_vm0, %v12428_v6  ;;  %v13515_v6 = vor.u32 %v12482_v21, %v10275_v20  ;;  %v10331_v20 = vld [vmem:[%s19483_s6 + $0x1d0] sm:$0xf] }
 0x187   : > { %19531 = vst [vmem:[#allocation2_spill] sm:$0xff] %v13515_v6  ;;  %1848 = vmatpush.bf16.msra.mxu0 %v13515_v6 }
 0x18b   : > { %1849 = vmatpush.bf16.msra.mxu0 %v13555_v34 }
 0x18f   : > { %1850 = vmatpush.bf16.msra.mxu0 %v13585_v0 }
 0x195   : > { %10083 = vmatmul.msk.bf16.gmra.mxu0 %vm1064_vm0, %v12429_v7  ;;  %v12433_v7 = vld [vmem:[%s19479_s2 + $0x30] sm:$0xff] }
 0x1a5   : > { %10084 = vmatmul.msk.bf16.gmra.mxu0 %vm1064_vm0, %v12430_v8  ;;  %v10123_v8 = vld [vmem:[%s19483_s6 + $0x80] sm:$0xf] }
 0x1b5   : > { %10085 = vmatmul.msk.bf16.gmra.mxu0 %vm1064_vm0, %v12431_v9  ;;  %v12445_v9 = vld [vmem:[%s19483_s6 + $0x9c] sm:$0xf0] }
 0x1b6   : > { %v13532_v19 = vor.u32 %v12445_v9, %v10123_v8  ;;  %v12495_v8 = vld [vmem:[%s19483_s6 + $0x1d4] sm:$0xf] }
 0x1b7   : > { %v10333_v9 = vld [vmem:[%s19483_s6 + $0x1f0] sm:$0xf0] }
 0x1b8   : > { %1363 = vmatpush.bf16.msrb.mxu1 %v13532_v19  ;;  %v13664_v30 = vor.u32 %v12495_v8, %v10333_v9  ;;  %v12448_v8 = vld [vmem:[%s19483_s6 + $0xcc] sm:$0xf] }
 0x1b9   : > { %v10149_v9 = vld [vmem:[%s19483_s6 + $0xe8] sm:$0xf0] }
 0x1ba   : > { %1815 = vmatpush.bf16.msra.mxu3 %v13664_v30 }
 0x1bc   : > { %1364 = vmatpush.bf16.msrb.mxu1 %v13567_v45 }
 0x1c0   : > { %1365 = vmatpush.bf16.msrb.mxu1 %v13599_v11 }
 0x1c5   : > { %10086 = vmatmul.msk.bf16.gmra.mxu0 %vm1064_vm0, %v12432_v54  ;;  %v12470_v54 = vld [vmem:[%s19483_s6 + $0x34] sm:$0xf0] }
 0x1c6   : > { %v13619_v43 = vor.u32 %v12470_v54, %v10227_v51  ;;  %v12452_v54 = vld [vmem:[%s19483_s6 + $0x10c] sm:$0xf] }
 0x1c8   : > { %19534 = vst [vmem:[#allocation5_spill] sm:$0xff] %v13619_v43  ;;  %1851 = vmatpush.bf16.msra.mxu0 %v13619_v43 }
 0x1cc   : > { %2212 = vmatpush.bf16.msrb.mxu0 %v13356_v22  ;;  %v1008_v22 = vld [vmem:[%s19480_s3] sm:$0xff] }
 0x1d0   : > { %2213 = vmatpush.bf16.msrb.mxu0 %v13385_v37 }
 0x1d4   : > { %2214 = vmatpush.bf16.msrb.mxu0 %v13433_v5 }
 0x1d5   : > { %10087 = vmatmul.msk.bf16.gmra.mxu0 %vm1064_vm0, %v12433_v7  ;;  %v12497_v7 = vld [vmem:[%s19483_s6 + $0x1ec] sm:$0xf0] }
 0x1d6   : > { %v10332_v10 = vor.u32 %v12497_v7, %v10331_v20 }
 0x1d8   : > { %2215 = vmatpush.bf16.msrb.mxu0 %v13472_v39  ;;  %v12464_v39 = vld [vmem:[%s19483_s6 + $0x1cc] sm:$0xf]  ;;  %1786 = vmatpush.bf16.msra.mxu2 %v10332_v10 }
 0x1dc   : > { %2216 = vmatpush.bf16.msrb.mxu0 %v13504_v17  ;;  %v10213_v17 = vld [vmem:[%s19483_s6 + $0x1e8] sm:$0xf0]  ;;  %1787 = vmatpush.bf16.msra.mxu2 %v10316_v44 }
 0x1dd   : > { %v13651_v21 = vor.u32 %v12464_v39, %v10213_v17  ;;  %v10285_v39 = vld [vmem:[%s19483_s6 + $0x130] sm:$0xf0] }
 0x1df   : > { %1445 = vmatpush.bf16.msra.mxu1 %v13651_v21 }
 0x1e0   : > { %2217 = vmatpush.bf16.msrb.mxu0 %v10128_v2  ;;  %v10197_v2 = vld [vmem:[%s19483_s6 + $0x1a8] sm:$0xf0]  ;;  %1788 = vmatpush.bf16.msra.mxu2 %v10300_v56 }
 0x1e1   : > { %v13677_v26 = vor.u32 %v12460_v62, %v10197_v2  ;;  %v12481_v62 = vld [vmem:[%s19483_s6 + $0xec] sm:$0xf0]  ;;  %v12479_v2 = vld [vmem:[%s19483_s6 + $0xd4] sm:$0xf] }
 0x1e3   : > { %1446 = vmatpush.bf16.msra.mxu1 %v13677_v26 }
 0x1e4   : > { %2218 = vmatpush.bf16.msrb.mxu0 %v10112_v47  ;;  %v13688_v47 = vor.u32 %v12491_v35, %v10317_v38  ;;  %v13772_v35 = vor.u32 %v12479_v2, %v10269_v25  ;;  %v12444_v38 = vld [vmem:[%s19483_s6 + $0x8c] sm:$0xf]  ;;  %v1012_v2 = vld [vmem:[%s19480_s3 + $0x20] sm:$0xff] }
 0x1e5   : > { %10088 = vmatmul.msk.bf16.gmra.mxu0 %vm1064_vm0, %v12434_v52  ;;  %v10165_v52 = vld [vmem:[%s19483_s6 + $0x128] sm:$0xf0] }
 0x1e6   : > { %1816 = vmatpush.bf16.msra.mxu3 %v13688_v47  ;;  %v1013_v25 = vld [vmem:[%s19480_s3 + $0x28] sm:$0xff] }
 0x1e7   : > { %1447 = vmatpush.bf16.msra.mxu1 %v13700_v16 }
 0x1e8   : > { %2219 = vmatpush.bf16.msrb.mxu0 %v10096_v60  ;;  %v1011_v60 = vld [vmem:[%s19480_s3 + $0x18] sm:$0xff] }
 0x1ea   : > { %1817 = vmatpush.bf16.msra.mxu3 %v13712_v59 }
 0x1f2   : > { %v1122_v28 = vpop.f32.mrf.mxu0 }
 0x1f3   : > { %v1123_v32 = vadd.f32 %v1122_v28, %v1008_v22  ;;  %v10283_v28 = vld [vmem:[%s19483_s6 + $0x110] sm:$0xf] }
 0x1fa   : > { %v1124_v37 = vpop.f32.mrf.mxu0 }
 0x1fb   : > { %v1125_v41 = vadd.f32 %v1124_v37, %v1009_v31  ;;  %v13731_v37 = vor.u32 %v12452_v54, %v10165_v52  ;;  %v10235_v54 = vld [vmem:[%s19483_s6 + $0x50] sm:$0xf] }
 0x1fc   : > { %v12473_v52 = vld [vmem:[%s19483_s6 + $0x6c] sm:$0xf0] }
 0x1fd   : > { %v13638_v5 = vpack.c.bf16 %v1125_v41, %v1123_v32  ;;  %v12485_v32 = vld [vmem:[%s19483_s6 + $0x12c] sm:$0xf0]  ;;  %v12483_v41 = vld [vmem:[%s19483_s6 + $0x114] sm:$0xf]  ;;  %1448 = vmatpush.bf16.msra.mxu1 %v13731_v37 }
 0x1fe   : > { %v10284_v17 = vor.u32 %v12485_v32, %v10283_v28  ;;  %v13742_v20 = vor.u32 %v12483_v41, %v10285_v39  ;;  %v12471_v28 = vld [vmem:[%s19483_s6 + $0x54] sm:$0xf]  ;;  %v10236_v32 = vor.u32 %v12473_v52, %v10235_v54  ;;  %v12436_v39 = vld [vmem:[%s19483_s6 + $0xc] sm:$0xf] }
 0x1ff   : > { %1366 = vmatmul.bf16.vlgmr.msrb.gmra.mxu1 %v13638_v5  ;;  %1395 = vmatmul.bf16.vlgmr.msrb.gmra.mxu2 %v13638_v5 }
 0x200   : > { %1424 = vmatmul.bf16.vlgmr.msrb.gmra.mxu3 %v13638_v5  ;;  %1852 = vmatmul.bf16.vlgmr.msra.gmra.mxu0 %v13638_v5 }
 0x201   : > { %2419 = vmatpush.bf16.msra.mxu0 %v10332_v10  ;;  %1789 = vmatpush.bf16.msra.mxu2 %v10284_v17  ;;  %v10267_v10 = vld [vmem:[%s19483_s6 + $0xd0] sm:$0xf] }
 0x202   : > { %v1127_v61 = vpop.f32.mrf.mxu0  ;;  %1818 = vmatpush.bf16.msra.mxu3 %v13742_v20  ;;  %v10268_v33 = vor.u32 %v12481_v62, %v10267_v10  ;;  %v12467_v10 = vld [vmem:[%s19483_s6 + $0x14] sm:$0xf] }
 0x203   : > { %v1128_v22 = vadd.f32 %v1127_v61, %v1010_v57  ;;  %v13759_v61 = vor.u32 %v12448_v8, %v10149_v9  ;;  %v13796_v57 = vor.u32 %v12475_v3, %v10253_v4  ;;  %v10219_v8 = vld [vmem:[%s19483_s6 + $0x10] sm:$0xf]  ;;  %v10221_v62 = vld [vmem:[%s19483_s6 + $0x30] sm:$0xf0] }
 0x204   : > { %v12469_v9 = vld [vmem:[%s19483_s6 + $0x2c] sm:$0xf0] }
 0x205   : > { %2420 = vmatpush.bf16.msra.mxu0 %v10316_v44  ;;  %v10133_v44 = vld [vmem:[%s19483_s6 + $0xa8] sm:$0xf0]  ;;  %1449 = vmatpush.bf16.msra.mxu1 %v13759_v61 }
 0x206   : > { %v13784_v49 = vor.u32 %v12444_v38, %v10133_v44  ;;  %1790 = vmatpush.bf16.msra.mxu2 %v10268_v33  ;;  %1819 = vmatpush.bf16.msra.mxu3 %v13772_v35  ;;  %v10220_v44 = vor.u32 %v12469_v9, %v10219_v8  ;;  %v10293_v8 = vld [vmem:[%s19483_s6 + $0x138] sm:$0xf0] }
 0x209   : > { %2421 = vmatpush.bf16.msra.mxu0 %v10300_v56  ;;  %v10252_v56 = vor.u32 %v12477_v13, %v10251_v48  ;;  %1450 = vmatpush.bf16.msra.mxu1 %v13784_v49  ;;  %v13850_v48 = vor.u32 %v12467_v10, %v10221_v62  ;;  %v10277_v62 = vld [vmem:[%s19483_s6 + $0xf8] sm:$0xf0] }
 0x20a   : > { %v1129_v51 = vpop.f32.mrf.mxu0  ;;  %1820 = vmatpush.bf16.msra.mxu3 %v13796_v57 }
 0x20b   : > { %v1130_v31 = vadd.f32 %v1129_v51, %v1011_v60  ;;  %v12440_v60 = vld [vmem:[%s19483_s6 + $0x4c] sm:$0xf]  ;;  %1791 = vmatpush.bf16.msra.mxu2 %v10252_v56 }
 0x20c   : > { %v10117_v51 = vld [vmem:[%s19483_s6 + $0x68] sm:$0xf0] }
 0x20d   : > { %v13744_v7 = vpack.c.bf16 %v1130_v31, %v1128_v22  ;;  %2422 = vmatpush.bf16.msra.mxu0 %v10284_v17  ;;  %v10237_v22 = vld [vmem:[%s19483_s6 + $0x70] sm:$0xf0]  ;;  %v13817_v31 = vor.u32 %v12440_v60, %v10117_v51  ;;  %v10101_v17 = vld [vmem:[%s19483_s6 + $0x28] sm:$0xf0]  ;;  %v1015_v60 = vld [vmem:[%s19480_s3 + $0x38] sm:$0xff] }
 0x20e   : > { %v13820_v41 = vor.u32 %v12471_v28, %v10237_v22 }
 0x20f   : > { %1371 = vmatmul.bf16.gmra.mxu1 %v13744_v7  ;;  %1400 = vmatmul.bf16.gmra.mxu2 %v13744_v7 }
 0x210   : > { %1429 = vmatmul.bf16.gmra.mxu3 %v13744_v7  ;;  %1857 = vmatmul.bf16.gmra.mxu0 %v13744_v7 }
 0x211   : > { %2423 = vmatpush.bf16.msra.mxu0 %v10268_v33  ;;  %1451 = vmatpush.bf16.msra.mxu1 %v13817_v31  ;;  %v13847_v33 = vor.u32 %v12436_v39, %v10101_v17  ;;  %v10309_v39 = vld [vmem:[%s19483_s6 + $0x178] sm:$0xf0] }
 0x212   : > { %v1132_v15 = vpop.f32.mrf.mxu0  ;;  %1792 = vmatpush.bf16.msra.mxu2 %v10236_v32  ;;  %1821 = vmatpush.bf16.msra.mxu3 %v13820_v41 }
 0x213   : > { %v1133_v13 = vadd.f32 %v1132_v15, %v1012_v2 }
 0x215   : > { %2424 = vmatpush.bf16.msra.mxu0 %v10252_v56  ;;  %1452 = vmatpush.bf16.msra.mxu1 %v13847_v33  ;;  %v1014_v56 = vld [vmem:[%s19480_s3 + $0x30] sm:$0xff] }
 0x216   : > { %1793 = vmatpush.bf16.msra.mxu2 %v10220_v44  ;;  %1822 = vmatpush.bf16.msra.mxu3 %v13850_v48 }
 0x219   : > { %2425 = vmatpush.bf16.msra.mxu0 %v10236_v32  ;;  %v12488_v32 = vld [vmem:[%s19483_s6 + $0x15c] sm:$0xf] }
 0x21a   : > { %v1134_v38 = vpop.f32.mrf.mxu0  ;;  %2183 = vmatpush.bf16.msrb.mxu3 %v13345_v58  ;;  %v13914_v17 = vor.u32 %v12488_v32, %v10309_v39 }
 0x21b   : > { %v1135_v3 = vadd.f32 %v1134_v38, %v1013_v25  ;;  %v12472_v38 = vld [vmem:[%s19483_s6 + $0x5c] sm:$0xf] }
 0x21c   : > { %19537 = vst [vmem:[#allocation8_spill] sm:$0xff] %v13914_v17 }
 0x21d   : > { %v13852_v4 = vpack.c.bf16 %v1135_v3, %v1133_v13  ;;  %2426 = vmatpush.bf16.msra.mxu0 %v10220_v44  ;;  %v10245_v44 = vld [vmem:[%s19483_s6 + $0x78] sm:$0xf0] }
 0x21e   : > { %2184 = vmatpush.bf16.msrb.mxu3 %v13383_v36  ;;  %v13961_v3 = vor.u32 %v12472_v38, %v10245_v44 }
 0x21f   : > { %1376 = vmatmul.bf16.gmra.mxu1 %v13852_v4  ;;  %1405 = vmatmul.bf16.gmra.mxu2 %v13852_v4 }
 0x220   : > { %1434 = vmatmul.bf16.gmra.mxu3 %v13852_v4  ;;  %1862 = vmatmul.bf16.gmra.mxu0 %v13852_v4  ;;  %19541 = vst [vmem:[#allocation12_spill] sm:$0xff] %v13961_v3 }
 0x222   : > { %v1137_v15 = vpop.f32.mrf.mxu0  ;;  %2185 = vmatpush.bf16.msrb.mxu3 %v13420_v63  ;;  %v12496_v63 = vld [vmem:[%s19483_s6 + $0x1dc] sm:$0xf] }
 0x223   : > { %v1138_v54 = vadd.f32 %v1137_v15, %v1014_v56  ;;  %v10229_v15 = vld [vmem:[%s19483_s6 + $0x38] sm:$0xf0] }
 0x226   : > { %2186 = vmatpush.bf16.msrb.mxu3 %v13465_v53  ;;  %v10341_v53 = vld [vmem:[%s19483_s6 + $0x1f8] sm:$0xf0] }
 0x22a   : > { %v1139_v51 = vpop.f32.mrf.mxu0  ;;  %2187 = vmatpush.bf16.msrb.mxu3 %v13493_v29  ;;  %v13892_v29 = vor.u32 %v12496_v63, %v10341_v53  ;;  %v1018_v63 = vld [vmem:[%s19480_s3 + $0x50] sm:$0xff] }
 0x22b   : > { %v1140_v52 = vadd.f32 %v1139_v51, %v1015_v60 }
 0x22c   : > { %19535 = vst [vmem:[#allocation6_spill] sm:$0xff] %v13892_v29  ;;  %1873 = vmatpush.bf16.msrb.mxu1 %v13892_v29 }
 0x22d   : > { %v13869_v28 = vpack.c.bf16 %v1140_v52, %v1138_v54 }
 0x22e   : > { %2188 = vmatpush.bf16.msrb.mxu3 %v13532_v19  ;;  %v12492_v19 = vld [vmem:[%s19483_s6 + $0x19c] sm:$0xf] }
 0x22f   : > { %1381 = vmatmul.bf16.gmra.mxu1 %v13869_v28  ;;  %1410 = vmatmul.bf16.gmra.mxu2 %v13869_v28 }
 0x230   : > { %1439 = vmatmul.bf16.gmra.mxu3 %v13869_v28  ;;  %1867 = vmatmul.bf16.gmra.mxu0 %v13869_v28 }
 0x232   : > { %v13877_v58 = vpop.f32.mrf.mxu0  ;;  %2189 = vmatpush.bf16.msrb.mxu3 %v13567_v45  ;;  %v10325_v45 = vld [vmem:[%s19483_s6 + $0x1b8] sm:$0xf0] }
 0x236   : > { %2190 = vmatpush.bf16.msrb.mxu3 %v13599_v11  ;;  %v13902_v11 = vor.u32 %v12492_v19, %v10325_v45 }
 0x238   : > { %19536 = vst [vmem:[#allocation7_spill] sm:$0xff] %v13902_v11  ;;  %1874 = vmatpush.bf16.msrb.mxu1 %v13902_v11 }
 0x23a   : > { %v13881_v36 = vpop.f32.mrf.mxu0 }
 0x23c   : > { %1875 = vmatpush.bf16.msrb.mxu1 %v13914_v17 }
 0x23f   : > { %1453 = vmatmul.bf16.vlgmr.msra.gmra.mxu1 %v13638_v5  ;;  %1794 = vmatmul.bf16.vlgmr.msra.gmra.mxu2 %v13638_v5 }
 0x240   : > { %1823 = vmatmul.bf16.vlgmr.msra.gmra.mxu3 %v13638_v5 }
 0x241   : > { %2270 = vmatpush.bf16.msra.mxu3 %v13651_v21  ;;  %v12484_v21 = vld [vmem:[%s19483_s6 + $0x11c] sm:$0xf] }
 0x242   : > { %v13905_v22 = vpop.f32.mrf.mxu0  ;;  %v13924_v9 = vor.u32 %v12484_v21, %v10293_v8 }
 0x244   : > { %19538 = vst [vmem:[#allocation9_spill] sm:$0xff] %v13924_v9  ;;  %1876 = vmatpush.bf16.msrb.mxu1 %v13924_v9 }
 0x245   : > { %2271 = vmatpush.bf16.msra.mxu3 %v13677_v26  ;;  %v12480_v26 = vld [vmem:[%s19483_s6 + $0xdc] sm:$0xf] }
 0x246   : > { %v13939_v2 = vor.u32 %v12480_v26, %v10277_v62 }
 0x248   : > { %19539 = vst [vmem:[#allocation10_spill] sm:$0xff] %v13939_v2  ;;  %1877 = vmatpush.bf16.msrb.mxu1 %v13939_v2 }
 0x249   : > { %2272 = vmatpush.bf16.msra.mxu3 %v13700_v16  ;;  %v12476_v16 = vld [vmem:[%s19483_s6 + $0x9c] sm:$0xf] }
 0x24a   : > { %v13927_v10 = vpop.f32.mrf.mxu0 }
 0x24d   : > { %2273 = vmatpush.bf16.msra.mxu3 %v13731_v37  ;;  %v10261_v37 = vld [vmem:[%s19483_s6 + $0xb8] sm:$0xf0] }
 0x24e   : > { %v13949_v25 = vor.u32 %v12476_v16, %v10261_v37 }
 0x24f   : > { %1458 = vmatmul.bf16.gmra.mxu1 %v13744_v7  ;;  %1799 = vmatmul.bf16.gmra.mxu2 %v13744_v7 }
 0x250   : > { %1828 = vmatmul.bf16.gmra.mxu3 %v13744_v7  ;;  %19540 = vst [vmem:[#allocation11_spill] sm:$0xff] %v13949_v25  ;;  %1878 = vmatpush.bf16.msrb.mxu1 %v13949_v25 }
 0x251   : > { %2274 = vmatpush.bf16.msra.mxu3 %v13759_v61  ;;  %v12468_v61 = vld [vmem:[%s19483_s6 + $0x1c] sm:$0xf] }
 0x252   : > { %v13958_v13 = vpop.f32.mrf.mxu0  ;;  %v13972_v56 = vor.u32 %v12468_v61, %v10229_v15 }
 0x254   : > { %1879 = vmatpush.bf16.msrb.mxu1 %v13961_v3  ;;  %19542 = vst [vmem:[#allocation13_spill] sm:$0xff] %v13972_v56 }
 0x255   : > { %2275 = vmatpush.bf16.msra.mxu3 %v13784_v49 }
 0x258   : > { %1880 = vmatpush.bf16.msrb.mxu1 %v13972_v56 }
 0x259   : > { %2276 = vmatpush.bf16.msra.mxu3 %v13817_v31 }
 0x25a   : > { %v13979_v49 = vpop.f32.mrf.mxu0 }
 0x25c   : > { %2241 = vmatpush.bf16.msra.mxu1 %v13358_v23 }
 0x25d   : > { %2277 = vmatpush.bf16.msra.mxu3 %v13847_v33 }
 0x25f   : > { %1463 = vmatmul.bf16.gmra.mxu1 %v13852_v4  ;;  %1804 = vmatmul.bf16.gmra.mxu2 %v13852_v4 }
 0x260   : > { %1833 = vmatmul.bf16.gmra.mxu3 %v13852_v4  ;;  %2242 = vmatpush.bf16.msra.mxu1 %v13397_v46  ;;  %v1016_v46 = vld [vmem:[%s19480_s3 + $0x40] sm:$0xff] }
 0x262   : > { %v13984_v31 = vpop.f32.mrf.mxu0 }
 0x264   : > { %2243 = vmatpush.bf16.msra.mxu1 %v13435_v1  ;;  %v13999_v1 = vadd.f32 %v13877_v58, %v1016_v46 }
 0x268   : > { %2244 = vmatpush.bf16.msra.mxu1 %v13475_v40 }
 0x26a   : > { %v13992_v23 = vpop.f32.mrf.mxu0 }
 0x26c   : > { %2245 = vmatpush.bf16.msra.mxu1 %v13506_v18 }
 0x26f   : > { %1468 = vmatmul.bf16.gmra.mxu1 %v13869_v28  ;;  %1809 = vmatmul.bf16.gmra.mxu2 %v13869_v28 }
 0x270   : > { %1838 = vmatmul.bf16.gmra.mxu3 %v13869_v28  ;;  %2246 = vmatpush.bf16.msra.mxu1 %v13543_v24 }
 0x274   : > { %2247 = vmatpush.bf16.msra.mxu1 %v13580_v14 }
 0x278   : > { %2248 = vmatpush.bf16.msra.mxu1 %v13610_v50 }
 0x27c   : > { %v1367_v40 = vpop.f32.mrf.mxu1 }
 0x27d   : > { %v1474_v18 = vadd.f32 %v1367_v40, %v13999_v1  ;;  %v1853_v33 = vpop.f32.mrf.mxu0 }
 0x27e   : > { %v14004_v60 = vadd.f32 %v1853_v33, %v13999_v1 }
 0x27f   : > { %1881 = vmatmul.bf16.vlgmr.msrb.gmra.mxu1 %v13638_v5  ;;  %v1482_v51 = vmul.f32 0.2, %v1474_v18 }
 0x280   : > { %2448 = vmatpush.bf16.msrb.mxu1 %v13664_v30  ;;  %v14018_v30 = vadd.f32 %v13905_v22, %v1018_v63 }
 0x281   : > { %v1490_v5 = vmax.f32 %v1474_v18, %v1482_v51 }
 0x282   : > { %v1396_v24 = vpop.f32.mrf.mxu2 }
 0x283   : > { %v1498_v14 = vadd.f32 %v1396_v24, %v13999_v1  ;;  %v1425_v54 = vpop.f32.mrf.mxu3 }
 0x284   : > { %v1530_v52 = vadd.f32 %v1425_v54, %v13999_v1  ;;  %v14010_v58 = vpop.f32.mrf.mxu1  ;;  %2449 = vmatpush.bf16.msrb.mxu1 %v13688_v47 }
 0x285   : > { %v1506_v50 = vmul.f32 0.2, %v1498_v14 }
 0x286   : > { %v1538_v53 = vmul.f32 0.2, %v1530_v52 }
 0x287   : > { %v1514_v19 = vmax.f32 %v1498_v14, %v1506_v50 }
 0x288   : > { %2450 = vmatpush.bf16.msrb.mxu1 %v13712_v59  ;;  %v1546_v32 = vmax.f32 %v1530_v52, %v1538_v53 }
 0x289   : > { %v1522_v45 = vmax.f32 %v1490_v5, %v1514_v19 }
 0x28a   : > { %v14020_v39 = vpop.f32.mrf.mxu2 }
 0x28b   : > { %v14022_v21 = vmax.f32 %v1522_v45, %v1546_v32  ;;  %v14024_v47 = vpop.f32.mrf.mxu3 }
 0x28c   : > { %v1372_v8 = vpop.f32.mrf.mxu1  ;;  %2451 = vmatpush.bf16.msrb.mxu1 %v13742_v20  ;;  %v1020_v20 = vld [vmem:[%s19480_s3 + $0x60] sm:$0xff] }
 0x28d   : > { %v1476_v26 = vadd.f32 %v1372_v8, %v14018_v30 }
 0x28f   : > { %1886 = vmatmul.bf16.gmra.mxu1 %v13744_v7  ;;  %v1484_v22 = vmul.f32 0.2, %v1476_v26 }
 0x290   : > { %2452 = vmatpush.bf16.msrb.mxu1 %v13772_v35  ;;  %v14040_v35 = vadd.f32 %v13958_v13, %v1020_v20 }
 0x291   : > { %v1492_v7 = vmax.f32 %v1476_v26, %v1484_v22 }
 0x292   : > { %v1401_v59 = vpop.f32.mrf.mxu2 }
 0x293   : > { %v1500_v62 = vadd.f32 %v1401_v59, %v14018_v30  ;;  %v1430_v16 = vpop.f32.mrf.mxu3 }
 0x294   : > { %v1532_v37 = vadd.f32 %v1430_v16, %v14018_v30  ;;  %v14032_v38 = vpop.f32.mrf.mxu1  ;;  %2453 = vmatpush.bf16.msrb.mxu1 %v13796_v57 }
 0x295   : > { %v1508_v44 = vmul.f32 0.2, %v1500_v62 }
 0x296   : > { %v1540_v61 = vmul.f32 0.2, %v1532_v37 }
 0x297   : > { %v1516_v15 = vmax.f32 %v1500_v62, %v1508_v44 }
 0x298   : > { %2454 = vmatpush.bf16.msrb.mxu1 %v13820_v41  ;;  %v1548_v40 = vmax.f32 %v1532_v37, %v1540_v61 }
 0x299   : > { %v1524_v46 = vmax.f32 %v1492_v7, %v1516_v15 }
 0x29a   : > { %v14042_v18 = vpop.f32.mrf.mxu2 }
 0x29b   : > { %v14044_v33 = vmax.f32 %v1524_v46, %v1548_v40  ;;  %v14046_v57 = vpop.f32.mrf.mxu3 }
 0x29c   : > { %v1377_v24 = vpop.f32.mrf.mxu1  ;;  %2455 = vmatpush.bf16.msrb.mxu1 %v13850_v48  ;;  %v1022_v48 = vld [vmem:[%s19480_s3 + $0x70] sm:$0xff] }
 0x29d   : > { %v1478_v51 = vadd.f32 %v1377_v24, %v14040_v35  ;;  %v14061_v8 = vadd.f32 %v13984_v31, %v1022_v48 }
 0x29f   : > { %1891 = vmatmul.bf16.gmra.mxu1 %v13852_v4  ;;  %v1486_v41 = vmul.f32 0.2, %v1478_v51 }
 0x2a1   : > { %v1494_v5 = vmax.f32 %v1478_v51, %v1486_v41 }
 0x2a2   : > { %v1406_v14 = vpop.f32.mrf.mxu2 }
 0x2a3   : > { %v1502_v13 = vadd.f32 %v1406_v14, %v14040_v35  ;;  %v1435_v54 = vpop.f32.mrf.mxu3 }
 0x2a4   : > { %v1534_v52 = vadd.f32 %v1435_v54, %v14040_v35  ;;  %v14053_v50 = vpop.f32.mrf.mxu1 }
 0x2a5   : > { %v1510_v63 = vmul.f32 0.2, %v1502_v13 }
 0x2a6   : > { %v1542_v53 = vmul.f32 0.2, %v1534_v52 }
 0x2a7   : > { %v1518_v19 = vmax.f32 %v1502_v13, %v1510_v63 }
 0x2a8   : > { %v1550_v32 = vmax.f32 %v1534_v52, %v1542_v53  ;;  %v14080_v53 = vpop.f32.mrf.mxu0 }
 0x2a9   : > { %v1526_v45 = vmax.f32 %v1494_v5, %v1518_v19 }
 0x2aa   : > { %v14058_v4 = vpop.f32.mrf.mxu2 }
 0x2ab   : > { %v14063_v26 = vmax.f32 %v1526_v45, %v1550_v32  ;;  %v14065_v59 = vpop.f32.mrf.mxu3 }
 0x2ac   : > { %v1382_v22 = vpop.f32.mrf.mxu1 }
 0x2ad   : > { %v1480_v62 = vadd.f32 %v1382_v22, %v14061_v8 }
 0x2af   : > { %1896 = vmatmul.bf16.gmra.mxu1 %v13869_v28  ;;  %v1488_v37 = vmul.f32 0.2, %v1480_v62 }
 0x2b1   : > { %v1496_v46 = vmax.f32 %v1480_v62, %v1488_v37  ;;  %v1974_v37 = vmul.f32 0.2, %v14004_v60 }
 0x2b2   : > { %v1411_v16 = vpop.f32.mrf.mxu2 }
 0x2b3   : > { %v1504_v44 = vadd.f32 %v1411_v16, %v14061_v8  ;;  %v1440_v20 = vpop.f32.mrf.mxu3 }
 0x2b4   : > { %v1536_v61 = vadd.f32 %v1440_v20, %v14061_v8  ;;  %v14071_v7 = vpop.f32.mrf.mxu1 }
 0x2b5   : > { %v1512_v31 = vmul.f32 0.2, %v1504_v44 }
 0x2b6   : > { %v1544_v15 = vmul.f32 0.2, %v1536_v61 }
 0x2b7   : > { %v1520_v40 = vmax.f32 %v1504_v44, %v1512_v31 }
 0x2b8   : > { %v1552_v51 = vmax.f32 %v1536_v61, %v1544_v15  ;;  %v1982_v15 = vmax.f32 %v14004_v60, %v1974_v37 }
 0x2b9   : > { %v1528_v24 = vmax.f32 %v1496_v46, %v1520_v40  ;;  %v1858_v40 = vpop.f32.mrf.mxu0 }
 0x2ba   : > { %v14073_v14 = vpop.f32.mrf.mxu2 }
 0x2bb   : > { %v14075_v41 = vmax.f32 %v1528_v24, %v1552_v51  ;;  %v14077_v28 = vpop.f32.mrf.mxu3 }
 0x2bc   : > { %v1454_v13 = vpop.f32.mrf.mxu1 }
 0x2bd   : > { %v1562_v54 = vadd.f32 %v1454_v13, %v13999_v1 }
 0x2bf   : > { %v1570_v52 = vmul.f32 0.2, %v1562_v54 }
 0x2c1   : > { %v1578_v63 = vmax.f32 %v1562_v54, %v1570_v52 }
 0x2c2   : > { %v1795_v5 = vpop.f32.mrf.mxu2 }
 0x2c3   : > { %v1586_v19 = vmax.f32 %v14022_v21, %v1578_v63  ;;  %v1902_v48 = vadd.f32 %v1795_v5, %v13999_v1  ;;  %v1824_v45 = vpop.f32.mrf.mxu3  ;;  %v1968_v5 = vadd.f32 %v1858_v40, %v14018_v30 }
 0x2c4   : > { %v1934_v32 = vadd.f32 %v1824_v45, %v13999_v1  ;;  %v14085_v22 = vpop.f32.mrf.mxu1 }
 0x2c5   : > { %v1910_v62 = vmul.f32 0.2, %v1902_v48 }
 0x2c6   : > { %v1942_v16 = vmul.f32 0.2, %v1934_v32 }
 0x2c7   : > { %v1918_v44 = vmax.f32 %v1902_v48, %v1910_v62 }
 0x2c8   : > { %v1950_v61 = vmax.f32 %v1934_v32, %v1942_v16  ;;  %v14100_v16 = vpop.f32.mrf.mxu0 }
 0x2c9   : > { %v1926_v20 = vmax.f32 %v1586_v19, %v1918_v44  ;;  %v1976_v44 = vmul.f32 0.2, %v1968_v5 }
 0x2ca   : > { %v14088_v31 = vpop.f32.mrf.mxu2 }
 0x2cb   : > { %v1958_v46 = vmax.f32 %v1926_v20, %v1950_v61  ;;  %v14091_v21 = vpop.f32.mrf.mxu3  ;;  %v1984_v40 = vmax.f32 %v1968_v5, %v1976_v44 }
 0x2cc   : > { %v1459_v24 = vpop.f32.mrf.mxu1 }
 0x2cd   : > { %v1564_v51 = vadd.f32 %v1459_v24, %v14018_v30  ;;  %v1990_v13 = vmax.f32 %v1958_v46, %v1982_v15 }
 0x2cf   : > { %v1572_v54 = vmul.f32 0.2, %v1564_v51 }
 0x2d1   : > { %v1580_v52 = vmax.f32 %v1564_v51, %v1572_v54 }
 0x2d2   : > { %v1800_v63 = vpop.f32.mrf.mxu2 }
 0x2d3   : > { %v1588_v19 = vmax.f32 %v14044_v33, %v1580_v52  ;;  %v1904_v48 = vadd.f32 %v1800_v63, %v14018_v30  ;;  %v1829_v45 = vpop.f32.mrf.mxu3 }
 0x2d4   : > { %v1936_v60 = vadd.f32 %v1829_v45, %v14018_v30  ;;  %v14098_v32 = vpop.f32.mrf.mxu1  ;;  %v1863_v45 = vpop.f32.mrf.mxu0 }
 0x2d5   : > { %v1912_v62 = vmul.f32 0.2, %v1904_v48  ;;  %v1970_v25 = vadd.f32 %v1863_v45, %v14040_v35 }
 0x2d6   : > { %v1944_v37 = vmul.f32 0.2, %v1936_v60 }
 0x2d7   : > { %v1920_v20 = vmax.f32 %v1904_v48, %v1912_v62 }
 0x2d8   : > { %v1952_v15 = vmax.f32 %v1936_v60, %v1944_v37 }
 0x2d9   : > { %v1928_v61 = vmax.f32 %v1588_v19, %v1920_v20  ;;  %v1978_v20 = vmul.f32 0.2, %v1970_v25 }
 0x2da   : > { %v14102_v46 = vpop.f32.mrf.mxu2 }
 0x2db   : > { %v1960_v24 = vmax.f32 %v1928_v61, %v1952_v15  ;;  %v14104_v33 = vpop.f32.mrf.mxu3 }
 0x2dc   : > { %v1464_v51 = vpop.f32.mrf.mxu1 }
 0x2dd   : > { %v1566_v54 = vadd.f32 %v1464_v51, %v14040_v35  ;;  %v1992_v52 = vmax.f32 %v1960_v24, %v1984_v40  ;;  %v1986_v24 = vmax.f32 %v1970_v25, %v1978_v20 }
 0x2df   : > { %v1574_v63 = vmul.f32 0.2, %v1566_v54 }
 0x2e1   : > { %v1582_v56 = vmax.f32 %v1566_v54, %v1574_v63 }
 0x2e2   : > { %v1805_v3 = vpop.f32.mrf.mxu2 }
 0x2e3   : > { %v1590_v48 = vmax.f32 %v14063_v26, %v1582_v56  ;;  %v1906_v19 = vadd.f32 %v1805_v3, %v14040_v35  ;;  %v1834_v60 = vpop.f32.mrf.mxu3 }
 0x2e4   : > { %v1938_v5 = vadd.f32 %v1834_v60, %v14040_v35  ;;  %v14111_v62 = vpop.f32.mrf.mxu1 }
 0x2e5   : > { %v1914_v37 = vmul.f32 0.2, %v1906_v19 }
 0x2e6   : > { %v1946_v44 = vmul.f32 0.2, %v1938_v5 }
 0x2e7   : > { %v1922_v61 = vmax.f32 %v1906_v19, %v1914_v37 }
 0x2e8   : > { %v1954_v40 = vmax.f32 %v1938_v5, %v1946_v44  ;;  %v1017_v44 = vld [vmem:[%s19480_s3 + $0x48] sm:$0xff] }
 0x2e9   : > { %v1930_v15 = vmax.f32 %v1590_v48, %v1922_v61 }
 0x2eb   : > { %v1962_v51 = vmax.f32 %v1930_v15, %v1954_v40  ;;  %v14133_v15 = vadd.f32 %v13881_v36, %v1017_v44 }
 0x2ec   : > { %v1469_v54 = vpop.f32.mrf.mxu1 }
 0x2ed   : > { %v1568_v63 = vadd.f32 %v1469_v54, %v14061_v8  ;;  %v14114_v45 = vmax.f32 %v1962_v51, %v1986_v24  ;;  %v14147_v24 = vpop.f32.mrf.mxu3 }
 0x2ef   : > { %v1576_v56 = vmul.f32 0.2, %v1568_v63 }
 0x2f1   : > { %v1584_v3 = vmax.f32 %v1568_v63, %v1576_v56  ;;  %v1865_v63 = vpop.f32.mrf.mxu0 }
 0x2f3   : > { %v14117_v26 = vmax.f32 %v14075_v41, %v1584_v3  ;;  %v14130_v41 = vpop.f32.mrf.mxu2 }
 0x2f4   : > { %v14119_v60 = vpop.f32.mrf.mxu1 }
 0x2fb   : > { %v1810_v3 = vpop.f32.mrf.mxu2 }
 0x2fc   : > { %v1882_v2 = vpop.f32.mrf.mxu1 }
 0x2fd   : > { %v1998_v9 = vadd.f32 %v1882_v2, %v13999_v1  ;;  %v1499_v1 = vadd.f32 %v14020_v39, %v14133_v15  ;;  %v1021_v39 = vld [vmem:[%s19480_s3 + $0x68] sm:$0xff] }
 0x2ff   : > { %v2006_v19 = vmul.f32 0.2, %v1998_v9  ;;  %v1507_v51 = vmul.f32 0.2, %v1499_v1 }
 0x301   : > { %v2014_v48 = vmax.f32 %v1998_v9, %v2006_v19  ;;  %v1019_v9 = vld [vmem:[%s19480_s3 + $0x58] sm:$0xff]  ;;  %v14164_v19 = vadd.f32 %v13979_v49, %v1021_v39  ;;  %v1839_v39 = vpop.f32.mrf.mxu3 }
 0x302   : > { %v14143_v40 = vadd.f32 %v13927_v10, %v1019_v9  ;;  %v1531_v10 = vadd.f32 %v14024_v47, %v14133_v15 }
 0x303   : > { %v14122_v5 = vmax.f32 %v1990_v13, %v2014_v48  ;;  %v1503_v9 = vadd.f32 %v14058_v4, %v14164_v19  ;;  %v14181_v4 = vadd.f32 %v1865_v63, %v14164_v19 }
 0x304   : > { %v14124_v25 = vpop.f32.mrf.mxu1  ;;  %v1501_v54 = vadd.f32 %v14042_v18, %v14143_v40  ;;  %v1477_v56 = vadd.f32 %v14032_v38, %v14143_v40  ;;  %v1515_v18 = vmax.f32 %v1499_v1, %v1507_v51  ;;  %v1539_v44 = vmul.f32 0.2, %v1531_v10 }
 0x305   : > { %v1511_v11 = vmul.f32 0.2, %v1503_v9 }
 0x306   : > { %v1509_v48 = vmul.f32 0.2, %v1501_v54  ;;  %v1485_v47 = vmul.f32 0.2, %v1477_v56 }
 0x308   : > { %v1517_v51 = vmax.f32 %v1501_v54, %v1509_v48  ;;  %v1812_v48 = vpop.f32.mrf.mxu2 }
 0x30c   : > { %v1887_v37 = vpop.f32.mrf.mxu1 }
 0x30d   : > { %v2000_v20 = vadd.f32 %v1887_v37, %v14018_v30  ;;  %v1475_v30 = vadd.f32 %v14010_v58, %v14133_v15  ;;  %v1023_v58 = vld [vmem:[%s19480_s3 + $0x78] sm:$0xff] }
 0x30e   : > { %v14167_v37 = vadd.f32 %v13992_v23, %v1023_v58  ;;  %v1479_v23 = vadd.f32 %v14053_v50, %v14164_v19  ;;  %v1535_v50 = vadd.f32 %v14065_v59, %v14164_v19 }
 0x30f   : > { %v2008_v61 = vmul.f32 0.2, %v2000_v20 }
 0x310   : > { %v1505_v38 = vadd.f32 %v14073_v14, %v14167_v37  ;;  %v1481_v58 = vadd.f32 %v14071_v7, %v14167_v37  ;;  %v1868_v14 = vpop.f32.mrf.mxu0  ;;  %v14193_v7 = vadd.f32 %v14100_v16, %v14143_v40  ;;  %v1487_v63 = vmul.f32 0.2, %v1479_v23 }
 0x311   : > { %v2016_v2 = vmax.f32 %v2000_v20, %v2008_v61  ;;  %v1533_v61 = vadd.f32 %v14046_v57, %v14143_v40  ;;  %v1908_v16 = vadd.f32 %v1810_v3, %v14061_v8  ;;  %v1907_v3 = vadd.f32 %v14130_v41, %v14164_v19 }
 0x312   : > { %v1513_v54 = vmul.f32 0.2, %v1505_v38  ;;  %v1563_v41 = vadd.f32 %v14085_v22, %v14133_v15 }
 0x313   : > { %v14140_v13 = vmax.f32 %v1992_v52, %v2016_v2  ;;  %v1483_v52 = vmul.f32 0.2, %v1475_v30  ;;  %v1541_v17 = vmul.f32 0.2, %v1533_v61 }
 0x314   : > { %v14149_v36 = vpop.f32.mrf.mxu1 }
 0x315   : > { %v1491_v20 = vmax.f32 %v1475_v30, %v1483_v52  ;;  %v1547_v30 = vmax.f32 %v1531_v10, %v1539_v44  ;;  %v1493_v52 = vmax.f32 %v1477_v56, %v1485_v47  ;;  %v1489_v44 = vmul.f32 0.2, %v1481_v58 }
 0x316   : > { %v1549_v47 = vmax.f32 %v1533_v61, %v1541_v17  ;;  %v14213_v17 = vadd.f32 %v1868_v14, %v14061_v8 }
 0x317   : > { %v1523_v1 = vmax.f32 %v1491_v20, %v1515_v18  ;;  %v1525_v56 = vmax.f32 %v1493_v52, %v1517_v51  ;;  %v1537_v20 = vadd.f32 %v14077_v28, %v14167_v37  ;;  %v1543_v51 = vmul.f32 0.2, %v1535_v50 }
 0x318   : > { %v1909_v28 = vadd.f32 %v1812_v48, %v14167_v37  ;;  %v1495_v52 = vmax.f32 %v1479_v23, %v1487_v63  ;;  %v1497_v61 = vmax.f32 %v1481_v58, %v1489_v44  ;;  %v1841_v48 = vpop.f32.mrf.mxu3  ;;  %v14222_v58 = vmul.f32 0.2, %v14213_v17  ;;  %v1870_v44 = vpop.f32.mrf.mxu0 }
 0x319   : > { %v14189_v18 = vmax.f32 %v1523_v1, %v1547_v30  ;;  %v1521_v30 = vmax.f32 %v1505_v38, %v1513_v54  ;;  %v1565_v54 = vadd.f32 %v14098_v32, %v14143_v40  ;;  %v1915_v32 = vmul.f32 0.2, %v1907_v3 }
 0x31a   : > { %v1917_v14 = vmul.f32 0.2, %v1909_v28  ;;  %v1973_v0 = vadd.f32 %v1870_v44, %v14167_v37 }
 0x31b   : > { %v1529_v23 = vmax.f32 %v1497_v61, %v1521_v30  ;;  %v1573_v30 = vmul.f32 0.2, %v1565_v54  ;;  %v1939_v61 = vadd.f32 %v14147_v24, %v14164_v19  ;;  %v1937_v24 = vadd.f32 %v14104_v33, %v14143_v40 }
 0x31c   : > { %v1892_v2 = vpop.f32.mrf.mxu1  ;;  %v1925_v6 = vmax.f32 %v1909_v28, %v1917_v14 }
 0x31d   : > { %v2002_v49 = vadd.f32 %v1892_v2, %v14040_v35  ;;  %v14185_v35 = vadd.f32 %v14080_v53, %v14133_v15  ;;  %v1569_v53 = vadd.f32 %v14119_v60, %v14167_v37  ;;  %v14203_v2 = vmul.f32 0.2, %v14181_v4 }
 0x31e   : > { %v14210_v60 = vmul.f32 0.2, %v14193_v7  ;;  %v1945_v33 = vmul.f32 0.2, %v1937_v24 }
 0x31f   : > { %v2010_v57 = vmul.f32 0.2, %v2002_v49 }
 0x321   : > { %v2018_v10 = vmax.f32 %v2002_v49, %v2010_v57  ;;  %v1519_v49 = vmax.f32 %v1503_v9, %v1511_v11  ;;  %v1567_v57 = vadd.f32 %v14111_v62, %v14164_v19  ;;  %v1545_v11 = vmul.f32 0.2, %v1537_v20 }
 0x322   : > { %v1577_v9 = vmul.f32 0.2, %v1569_v53 }
 0x323   : > { %v14200_v59 = vmax.f32 %v14114_v45, %v2018_v10  ;;  %v1557_v45 = vmax.f32 %v1525_v56, %v1549_v47  ;;  %v1527_v62 = vmax.f32 %v1495_v52, %v1519_v49  ;;  %v1916_v10 = vmul.f32 0.2, %v1908_v16 }
 0x324   : > { %v1894_v1 = vpop.f32.mrf.mxu1  ;;  %v1551_v56 = vmax.f32 %v1535_v50, %v1543_v51  ;;  %v1575_v63 = vmul.f32 0.2, %v1567_v57  ;;  %v1905_v47 = vadd.f32 %v14102_v46, %v14143_v40  ;;  %v1940_v49 = vadd.f32 %v1839_v39, %v14061_v8 }
 0x325   : > { %v1553_v52 = vmax.f32 %v1537_v20, %v1545_v11  ;;  %v1585_v38 = vmax.f32 %v1569_v53, %v1577_v9  ;;  %v1941_v50 = vadd.f32 %v1841_v48, %v14167_v37  ;;  %v1924_v29 = vmax.f32 %v1908_v16, %v1916_v10 }
 0x326   : > { %v1559_v51 = vmax.f32 %v1527_v62, %v1551_v56  ;;  %v1583_v34 = vmax.f32 %v1567_v57, %v1575_v63  ;;  %v1571_v46 = vmul.f32 0.2, %v1563_v41  ;;  %v1903_v39 = vadd.f32 %v14088_v31, %v14133_v15 }
 0x327   : > { %v1561_v22 = vmax.f32 %v1529_v23, %v1553_v52  ;;  %v1913_v20 = vmul.f32 0.2, %v1905_v47  ;;  %v1948_v53 = vmul.f32 0.2, %v1940_v49  ;;  %v1923_v11 = vmax.f32 %v1907_v3, %v1915_v32 }
 0x328   : > { %v1949_v62 = vmul.f32 0.2, %v1941_v50  ;;  %v1581_v56 = vmax.f32 %v1565_v54, %v1573_v30  ;;  %v1947_v16 = vmul.f32 0.2, %v1939_v61  ;;  %v1932_v10 = vmax.f32 %v14117_v26, %v1924_v29 }
 0x329   : > { %v1593_v9 = vmax.f32 %v1561_v22, %v1585_v38  ;;  %v1981_v57 = vmul.f32 0.2, %v1973_v0  ;;  %v1591_v28 = vmax.f32 %v1559_v51, %v1583_v34  ;;  %v2003_v63 = vadd.f32 %v1894_v1, %v14164_v19 }
 0x32a   : > { %v1579_v31 = vmax.f32 %v1563_v41, %v1571_v46  ;;  %v1911_v14 = vmul.f32 0.2, %v1903_v39  ;;  %v1935_v3 = vadd.f32 %v14091_v21, %v14133_v15  ;;  %v1956_v38 = vmax.f32 %v1940_v49, %v1948_v53 }
 0x32b   : > { %v1933_v23 = vmax.f32 %v1593_v9, %v1925_v6  ;;  %v1921_v44 = vmax.f32 %v1905_v47, %v1913_v20  ;;  %v1589_v52 = vmax.f32 %v1557_v45, %v1581_v56  ;;  %v1955_v32 = vmax.f32 %v1939_v61, %v1947_v16 }
 0x32c   : > { %v1897_v43 = vpop.f32.mrf.mxu1  ;;  %v1964_v30 = vmax.f32 %v1932_v10, %v1956_v38  ;;  %v2001_v6 = vadd.f32 %v14149_v36, %v14143_v40  ;;  %v2011_v34 = vmul.f32 0.2, %v2003_v63  ;;  %v1988_v21 = vmax.f32 %v14213_v17, %v14222_v58  ;;  %v12506_v38 = vld [vmem:[%s19481_s4 + $0x38] sm:$0xff] }
 0x32d   : > { %v2004_v48 = vadd.f32 %v1897_v43, %v14061_v8  ;;  %v1931_v43 = vmax.f32 %v1591_v28, %v1923_v11  ;;  %v1957_v8 = vmax.f32 %v1941_v50, %v1949_v62  ;;  %v1989_v1 = vmax.f32 %v1973_v0, %v1981_v57 }
 0x32e   : > { %v1587_v41 = vmax.f32 %v14189_v18, %v1579_v31  ;;  %v1919_v47 = vmax.f32 %v1903_v39, %v1911_v14  ;;  %v1929_v49 = vmax.f32 %v1589_v52, %v1921_v44  ;;  %v1943_v61 = vmul.f32 0.2, %v1935_v3  ;;  %v12504_v14 = vld [vmem:[%s19481_s4 + $0x28] sm:$0xff] }
 0x32f   : > { %v2012_v54 = vmul.f32 0.2, %v2004_v48  ;;  %v1965_v26 = vmax.f32 %v1933_v23, %v1957_v8  ;;  %v1963_v45 = vmax.f32 %v1931_v43, %v1955_v32  ;;  %v1953_v22 = vmax.f32 %v1937_v24, %v1945_v33  ;;  %v19549_v33 = vld [vmem:[#allocation7_spill] sm:$0xff]  ;;  %v19550_v32 = vld [vmem:[#allocation8_spill] sm:$0xff] }
 0x330   : > { %v1999_v46 = vadd.f32 %v14124_v25, %v14133_v15  ;;  %v1996_v40 = vmax.f32 %v1964_v30, %v1988_v21  ;;  %v2009_v36 = vmul.f32 0.2, %v2001_v6  ;;  %v2019_v20 = vmax.f32 %v2003_v63, %v2011_v34  ;;  %v19554_v21 = vld [vmem:[#allocation12_spill] sm:$0xff] }
 0x331   : > { %v2020_v50 = vmax.f32 %v2004_v48, %v2012_v54  ;;  %v1927_v11 = vmax.f32 %v1587_v41, %v1919_v47  ;;  %v1961_v17 = vmax.f32 %v1929_v49, %v1953_v22  ;;  %v19543_v0 = vmax.f32 %v14181_v4, %v14203_v2  ;;  %v19548_v54 = vld [vmem:[#allocation6_spill] sm:$0xff]  ;;  %v19555_v47 = vld [vmem:[#allocation13_spill] sm:$0xff] }
 0x332   : > { %v1975_v9 = vmul.f32 0.2, %v14185_v35  ;;  %v1985_v62 = vmax.f32 %v14193_v7, %v14210_v60  ;;  %v1951_v48 = vmax.f32 %v1935_v3, %v1943_v61  ;;  %v2007_v25 = vmul.f32 0.2, %v1999_v46  ;;  %v12499_v60 = vld [vmem:[%s19481_s4] sm:$0xff]  ;;  %v12505_v3 = vld [vmem:[%s19481_s4 + $0x30] sm:$0xff] }
 0x333   : > { %v1995_v18 = vmax.f32 %v1963_v45, %v19543_v0  ;;  %v2028_v58 = vmax.f32 %v1996_v40, %v2020_v50  ;;  %v2017_v15 = vmax.f32 %v2001_v6, %v2009_v36  ;;  %v19552_v6 = vld [vmem:[#allocation10_spill] sm:$0xff] }
 0x334   : > { %v1899_v29 = vpop.f32.mrf.mxu1  ;;  %v1959_v16 = vmax.f32 %v1927_v11, %v1951_v48  ;;  %v1993_v10 = vmax.f32 %v1961_v17, %v1985_v62  ;;  %v1983_v57 = vmax.f32 %v14185_v35, %v1975_v9  ;;  %v2015_v28 = vmax.f32 %v1999_v46, %v2007_v25  ;;  %v19545_v35 = vld [vmem:[#allocation3_spill] sm:$0xff] }
 0x335   : > { %v2005_v19 = vadd.f32 %v1899_v29, %v14167_v37  ;;  %v1997_v37 = vmax.f32 %v1965_v26, %v1989_v1  ;;  %v2027_v56 = vmax.f32 %v1995_v18, %v2019_v20  ;;  %v19551_v26 = vld [vmem:[#allocation9_spill] sm:$0xff] }
 0x336   : > { %v2025_v4 = vmax.f32 %v1993_v10, %v2017_v15  ;;  %v1991_v23 = vmax.f32 %v1959_v16, %v1983_v57  ;;  %v2165_v10 = vld [vmem:[%s19482_s5 + $0x10] sm:$0xff] }
 0x337   : > { %v2013_v51 = vmul.f32 0.2, %v2005_v19  ;;  %v2048_v2 = vpack.c.bf16 %v2027_v56, %v14200_v59  ;;  %v19546_v59 = vld [vmem:[#allocation4_spill] sm:$0xff] }
 0x338   : > { %v2023_v63 = vmax.f32 %v1991_v23, %v2015_v28  ;;  %v2047_v31 = vpack.c.bf16 %v2025_v4, %v14140_v13  ;;  %v12500_v13 = vld [vmem:[%s19481_s4 + $0x8] sm:$0xff] }
 0x339   : > { %v2021_v53 = vmax.f32 %v2005_v19, %v2013_v51  ;;  %v19553_v19 = vld [vmem:[#allocation11_spill] sm:$0xff] }
 0x33a   : > { %v2046_v7 = vpack.c.bf16 %v2023_v63, %v14122_v5  ;;  %v19544_v5 = vld [vmem:[#allocation2_spill] sm:$0xff] }
 0x33b   : > { %v2029_v39 = vmax.f32 %v1997_v37, %v2021_v53  ;;  %v2163_v37 = vld [vmem:[%s19482_s5] sm:$0xff] }
 0x33d   : > { %v2049_v24 = vpack.c.bf16 %v2029_v39, %v2028_v58 }
 0x33f   : > { %2118 = vmatpush.bf16.msrb.mxu2 %v2049_v24 }
 0x343   : > { %2119 = vmatpush.bf16.msrb.mxu2 %v2048_v2 }
 0x347   : > { %2120 = vmatpush.bf16.msrb.mxu2 %v2047_v31 }
 0x34b   : > { %2121 = vmatpush.bf16.msrb.mxu2 %v2046_v7 }
 0x34e   : > { %10377 = vmatmul.msk.bf16.vlgmr.msrb.gmra.mxu2 %vm1064_vm0, %v12499_v60 }
 0x34f   : > { %2477 = vmatpush.bf16.msra.mxu2 %v13370_v27  ;;  %v19547_v27 = vld [vmem:[#allocation5_spill] sm:$0xff] }
 0x353   : > { %2478 = vmatpush.bf16.msra.mxu2 %v13408_v12  ;;  %v12501_v12 = vld [vmem:[%s19481_s4 + $0x10] sm:$0xff] }
 0x357   : > { %2479 = vmatpush.bf16.msra.mxu2 %v13444_v55  ;;  %v12502_v55 = vld [vmem:[%s19481_s4 + $0x18] sm:$0xff] }
 0x35b   : > { %2480 = vmatpush.bf16.msra.mxu2 %v13477_v42  ;;  %v12503_v42 = vld [vmem:[%s19481_s4 + $0x20] sm:$0xff] }
 0x35e   : > { %10378 = vmatmul.msk.bf16.gmra.mxu2 %vm1064_vm0, %v12500_v13 }
 0x35f   : > { %2481 = vmatpush.bf16.msra.mxu2 %v19544_v5 }
 0x363   : > { %2482 = vmatpush.bf16.msra.mxu2 %v19545_v35 }
 0x367   : > { %2483 = vmatpush.bf16.msra.mxu2 %v19546_v59 }
 0x36b   : > { %2484 = vmatpush.bf16.msra.mxu2 %v19547_v27 }
 0x36e   : > { %10379 = vmatmul.msk.bf16.gmra.mxu2 %vm1064_vm0, %v12501_v12 }
 0x37e   : > { %10380 = vmatmul.msk.bf16.gmra.mxu2 %vm1064_vm0, %v12502_v55 }
 0x38e   : > { %10381 = vmatmul.msk.bf16.gmra.mxu2 %vm1064_vm0, %v12503_v42 }
 0x39e   : > { %10382 = vmatmul.msk.bf16.gmra.mxu2 %vm1064_vm0, %v12504_v14 }
 0x3ae   : > { %10383 = vmatmul.msk.bf16.gmra.mxu2 %vm1064_vm0, %v12505_v3  ;;  %v2167_v3 = vld [vmem:[%s19482_s5 + $0x20] sm:$0xff] }
 0x3be   : > { %10384 = vmatmul.msk.bf16.gmra.mxu2 %vm1064_vm0, %v12506_v38 }
 0x3d1   : > { %v2123_v44 = vpop.f32.mrf.mxu2 }
 0x3d9   : > { %v2125_v43 = vpop.f32.mrf.mxu2 }
 0x3da   : > { %v2179_v8 = vpack.c.bf16 %v2125_v43, %v2123_v44 }
 0x3dc   : > { %2191 = vmatmul.bf16.vlgmr.msrb.gmra.mxu3 %v2179_v8  ;;  %2220 = vmatmul.bf16.vlgmr.msrb.gmra.mxu0 %v2179_v8 }
 0x3dd   : > { %2249 = vmatmul.bf16.vlgmr.msra.gmra.mxu1 %v2179_v8  ;;  %2485 = vmatmul.bf16.vlgmr.msra.gmra.mxu2 %v2179_v8 }
 0x3de   : > { %2506 = vmatpush.bf16.msrb.mxu3 %v19548_v54 }
 0x3e1   : > { %v2128_v52 = vpop.f32.mrf.mxu2 }
 0x3e2   : > { %2507 = vmatpush.bf16.msrb.mxu3 %v19549_v33 }
 0x3e6   : > { %2508 = vmatpush.bf16.msrb.mxu3 %v19550_v32 }
 0x3e9   : > { %v2130_v30 = vpop.f32.mrf.mxu2 }
 0x3ea   : > { %v14303_v29 = vpack.c.bf16 %v2130_v30, %v2128_v52  ;;  %2509 = vmatpush.bf16.msrb.mxu3 %v19551_v26 }
 0x3ec   : > { %2196 = vmatmul.bf16.gmra.mxu3 %v14303_v29  ;;  %2225 = vmatmul.bf16.gmra.mxu0 %v14303_v29 }
 0x3ed   : > { %2254 = vmatmul.bf16.gmra.mxu1 %v14303_v29  ;;  %2490 = vmatmul.bf16.gmra.mxu2 %v14303_v29 }
 0x3ee   : > { %2510 = vmatpush.bf16.msrb.mxu3 %v19552_v6 }
 0x3f1   : > { %v2133_v34 = vpop.f32.mrf.mxu2 }
 0x3f2   : > { %2511 = vmatpush.bf16.msrb.mxu3 %v19553_v19 }
 0x3f6   : > { %2512 = vmatpush.bf16.msrb.mxu3 %v19554_v21 }
 0x3f9   : > { %v2135_v1 = vpop.f32.mrf.mxu2 }
 0x3fa   : > { %v14313_v41 = vpack.c.bf16 %v2135_v1, %v2133_v34  ;;  %2513 = vmatpush.bf16.msrb.mxu3 %v19555_v47 }
 0x3fc   : > { %2201 = vmatmul.bf16.gmra.mxu3 %v14313_v41  ;;  %2230 = vmatmul.bf16.gmra.mxu0 %v14313_v41 }
 0x3fd   : > { %2259 = vmatmul.bf16.gmra.mxu1 %v14313_v41  ;;  %2495 = vmatmul.bf16.gmra.mxu2 %v14313_v41 }
 0x401   : > { %v2138_v49 = vpop.f32.mrf.mxu2 }
 0x409   : > { %v2140_v45 = vpop.f32.mrf.mxu2 }
 0x40a   : > { %v14320_v50 = vpack.c.bf16 %v2140_v45, %v2138_v49 }
 0x40c   : > { %2206 = vmatmul.bf16.gmra.mxu3 %v14320_v50  ;;  %2235 = vmatmul.bf16.gmra.mxu0 %v14320_v50 }
 0x40d   : > { %2264 = vmatmul.bf16.gmra.mxu1 %v14320_v50  ;;  %2500 = vmatmul.bf16.gmra.mxu2 %v14320_v50 }
 0x411   : > { %v2143_v51 = vpop.f32.mrf.mxu2 }
 0x412   : > { %v14346_v53 = vadd.f32 %v2163_v37, %v2143_v51 }
 0x419   : > { %v14326_v61 = vpop.f32.mrf.mxu2 }
 0x41c   : > { %2278 = vmatmul.bf16.vlgmr.msra.gmra.mxu3 %v2179_v8  ;;  %2427 = vmatmul.bf16.vlgmr.msra.gmra.mxu0 %v2179_v8 }
 0x41d   : > { %2456 = vmatmul.bf16.vlgmr.msrb.gmra.mxu1 %v2179_v8 }
 0x421   : > { %v2148_v22 = vpop.f32.mrf.mxu2 }
 0x422   : > { %v14363_v4 = vadd.f32 %v2165_v10, %v2148_v22  ;;  %v2169_v22 = vld [vmem:[%s19482_s5 + $0x30] sm:$0xff] }
 0x429   : > { %v14331_v46 = vpop.f32.mrf.mxu2 }
 0x42c   : > { %2283 = vmatmul.bf16.gmra.mxu3 %v14303_v29  ;;  %2432 = vmatmul.bf16.gmra.mxu0 %v14303_v29 }
 0x42d   : > { %2461 = vmatmul.bf16.gmra.mxu1 %v14303_v29 }
 0x431   : > { %v2153_v40 = vpop.f32.mrf.mxu2 }
 0x432   : > { %v14380_v43 = vadd.f32 %v2167_v3, %v2153_v40 }
 0x439   : > { %v14336_v36 = vpop.f32.mrf.mxu2 }
 0x43c   : > { %2288 = vmatmul.bf16.gmra.mxu3 %v14313_v41  ;;  %2437 = vmatmul.bf16.gmra.mxu0 %v14313_v41 }
 0x43d   : > { %2466 = vmatmul.bf16.gmra.mxu1 %v14313_v41 }
 0x441   : > { %v14340_v20 = vpop.f32.mrf.mxu2 }
 0x449   : > { %v14348_v11 = vpop.f32.mrf.mxu2 }
 0x44c   : > { %2293 = vmatmul.bf16.gmra.mxu3 %v14320_v50  ;;  %2442 = vmatmul.bf16.gmra.mxu0 %v14320_v50 }
 0x44d   : > { %2471 = vmatmul.bf16.gmra.mxu1 %v14320_v50 }
 0x459   : > { %v2221_v17 = vpop.f32.mrf.mxu0 }
 0x45a   : > { %v2323_v0 = vadd.f32 %v2221_v17, %v14346_v53  ;;  %v2250_v18 = vpop.f32.mrf.mxu1 }
 0x45b   : > { %v2355_v58 = vadd.f32 %v2250_v18, %v14346_v53 }
 0x45c   : > { %2514 = vmatmul.bf16.vlgmr.msrb.gmra.mxu3 %v2179_v8  ;;  %v2331_v9 = vmul.f32 0.2, %v2323_v0 }
 0x45d   : > { %v2363_v56 = vmul.f32 0.2, %v2355_v58 }
 0x45e   : > { %v2339_v57 = vmax.f32 %v2323_v0, %v2331_v9 }
 0x45f   : > { %v2192_v39 = vpop.f32.mrf.mxu3  ;;  %v2371_v2 = vmax.f32 %v2355_v58, %v2363_v56 }
 0x460   : > { %v2299_v62 = vadd.f32 %v2192_v39, %v14346_v53  ;;  %v2486_v48 = vpop.f32.mrf.mxu2 }
 0x461   : > { %v14354_v25 = vadd.f32 %v2486_v48, %v14346_v53  ;;  %v14356_v15 = vpop.f32.mrf.mxu0 }
 0x462   : > { %v2307_v24 = vmul.f32 0.2, %v2299_v62  ;;  %v14358_v16 = vpop.f32.mrf.mxu1 }
 0x464   : > { %v2315_v28 = vmax.f32 %v2299_v62, %v2307_v24 }
 0x466   : > { %v2347_v23 = vmax.f32 %v2315_v28, %v2339_v57 }
 0x467   : > { %v14365_v63 = vpop.f32.mrf.mxu3 }
 0x468   : > { %v14367_v31 = vmax.f32 %v2347_v23, %v2371_v2 }
 0x469   : > { %v2226_v7 = vpop.f32.mrf.mxu0 }
 0x46a   : > { %v2325_v60 = vadd.f32 %v2226_v7, %v14363_v4  ;;  %v2255_v13 = vpop.f32.mrf.mxu1 }
 0x46b   : > { %v2357_v5 = vadd.f32 %v2255_v13, %v14363_v4 }
 0x46c   : > { %2519 = vmatmul.bf16.gmra.mxu3 %v14303_v29  ;;  %v2333_v59 = vmul.f32 0.2, %v2325_v60 }
 0x46d   : > { %v2365_v55 = vmul.f32 0.2, %v2357_v5 }
 0x46e   : > { %v2341_v38 = vmax.f32 %v2325_v60, %v2333_v59 }
 0x46f   : > { %v2197_v35 = vpop.f32.mrf.mxu3  ;;  %v2373_v8 = vmax.f32 %v2357_v5, %v2365_v55 }
 0x470   : > { %v2301_v27 = vadd.f32 %v2197_v35, %v14363_v4 }
 0x471   : > { %v14373_v12 = vpop.f32.mrf.mxu0 }
 0x472   : > { %v2309_v42 = vmul.f32 0.2, %v2301_v27  ;;  %v14375_v14 = vpop.f32.mrf.mxu1 }
 0x474   : > { %v2317_v44 = vmax.f32 %v2301_v27, %v2309_v42  ;;  %v14419_v42 = vpop.f32.mrf.mxu2 }
 0x476   : > { %v2349_v54 = vmax.f32 %v2317_v44, %v2341_v38 }
 0x477   : > { %v14382_v52 = vpop.f32.mrf.mxu3 }
 0x478   : > { %v14384_v33 = vmax.f32 %v2349_v54, %v2373_v8 }
 0x479   : > { %v2231_v32 = vpop.f32.mrf.mxu0 }
 0x47a   : > { %v2327_v30 = vadd.f32 %v2231_v32, %v14380_v43  ;;  %v2260_v29 = vpop.f32.mrf.mxu1 }
 0x47b   : > { %v2359_v26 = vadd.f32 %v2260_v29, %v14380_v43 }
 0x47c   : > { %2524 = vmatmul.bf16.gmra.mxu3 %v14313_v41  ;;  %v2335_v34 = vmul.f32 0.2, %v2327_v30  ;;  %v14400_v41 = vadd.f32 %v2169_v22, %v14340_v20  ;;  %v2491_v22 = vpop.f32.mrf.mxu2 }
 0x47d   : > { %v2367_v1 = vmul.f32 0.2, %v2359_v26 }
 0x47e   : > { %v2343_v45 = vmax.f32 %v2327_v30, %v2335_v34  ;;  %v2607_v30 = vmul.f32 0.2, %v14354_v25 }
 0x47f   : > { %v2202_v6 = vpop.f32.mrf.mxu3  ;;  %v2375_v40 = vmax.f32 %v2359_v26, %v2367_v1 }
 0x480   : > { %v2303_v19 = vadd.f32 %v2202_v6, %v14380_v43 }
 0x481   : > { %v14390_v21 = vpop.f32.mrf.mxu0 }
 0x482   : > { %v2311_v47 = vmul.f32 0.2, %v2303_v19  ;;  %v14392_v49 = vpop.f32.mrf.mxu1 }
 0x484   : > { %v2319_v51 = vmax.f32 %v2303_v19, %v2311_v47  ;;  %v2615_v47 = vmax.f32 %v14354_v25, %v2607_v30 }
 0x486   : > { %v2351_v37 = vmax.f32 %v2319_v51, %v2343_v45 }
 0x487   : > { %v14397_v17 = vpop.f32.mrf.mxu3 }
 0x488   : > { %v14402_v0 = vmax.f32 %v2351_v37, %v2375_v40 }
 0x489   : > { %v2236_v18 = vpop.f32.mrf.mxu0 }
 0x48a   : > { %v2265_v58 = vpop.f32.mrf.mxu1  ;;  %v2329_v39 = vadd.f32 %v2236_v18, %v14400_v41 }
 0x48b   : > { %v2361_v9 = vadd.f32 %v2265_v58, %v14400_v41 }
 0x48c   : > { %2529 = vmatmul.bf16.gmra.mxu3 %v14320_v50  ;;  %v2337_v48 = vmul.f32 0.2, %v2329_v39 }
 0x48d   : > { %v2369_v10 = vmul.f32 0.2, %v2361_v9 }
 0x48e   : > { %v2345_v28 = vmax.f32 %v2329_v39, %v2337_v48 }
 0x48f   : > { %v2207_v62 = vpop.f32.mrf.mxu3  ;;  %v2377_v23 = vmax.f32 %v2361_v9, %v2369_v10 }
 0x490   : > { %v2305_v56 = vadd.f32 %v2207_v62, %v14400_v41 }
 0x491   : > { %v14408_v24 = vpop.f32.mrf.mxu0 }
 0x492   : > { %v2313_v57 = vmul.f32 0.2, %v2305_v56  ;;  %v14410_v20 = vpop.f32.mrf.mxu1 }
 0x494   : > { %v2321_v2 = vmax.f32 %v2305_v56, %v2313_v57  ;;  %v14438_v57 = vpop.f32.mrf.mxu2 }
 0x496   : > { %v2353_v7 = vmax.f32 %v2321_v2, %v2345_v28 }
 0x497   : > { %v14412_v60 = vpop.f32.mrf.mxu3 }
 0x498   : > { %v14414_v13 = vmax.f32 %v2353_v7, %v2377_v23 }
 0x499   : > { %v2428_v50 = vpop.f32.mrf.mxu0 }
 0x49a   : > { %v2535_v5 = vadd.f32 %v2428_v50, %v14346_v53  ;;  %v2457_v35 = vpop.f32.mrf.mxu1 }
 0x49b   : > { %v2567_v59 = vadd.f32 %v2457_v35, %v14346_v53 }
 0x49c   : > { %v2543_v38 = vmul.f32 0.2, %v2535_v5 }
 0x49d   : > { %v2575_v54 = vmul.f32 0.2, %v2567_v59 }
 0x49e   : > { %v2551_v29 = vmax.f32 %v2535_v5, %v2543_v38 }
 0x49f   : > { %v2279_v27 = vpop.f32.mrf.mxu3  ;;  %v2583_v34 = vmax.f32 %v2567_v59, %v2575_v54  ;;  %v2496_v54 = vpop.f32.mrf.mxu2 }
 0x4a0   : > { %v2387_v55 = vadd.f32 %v2279_v27, %v14346_v53 }
 0x4a1   : > { %v14421_v3 = vpop.f32.mrf.mxu0 }
 0x4a2   : > { %v2395_v44 = vmul.f32 0.2, %v2387_v55  ;;  %v14423_v8 = vpop.f32.mrf.mxu1 }
 0x4a4   : > { %v2403_v32 = vmax.f32 %v2387_v55, %v2395_v44 }
 0x4a6   : > { %v2411_v26 = vmax.f32 %v14367_v31, %v2403_v32  ;;  %v2601_v31 = vadd.f32 %v2491_v22, %v14363_v4 }
 0x4a7   : > { %v14427_v6 = vpop.f32.mrf.mxu3 }
 0x4a8   : > { %v2559_v19 = vmax.f32 %v2411_v26, %v2551_v29  ;;  %v2609_v28 = vmul.f32 0.2, %v2601_v31  ;;  %v2603_v26 = vadd.f32 %v2496_v54, %v14380_v43 }
 0x4a9   : > { %v2433_v1 = vpop.f32.mrf.mxu0 }
 0x4aa   : > { %v2462_v45 = vpop.f32.mrf.mxu1  ;;  %v2591_v51 = vmax.f32 %v2559_v19, %v2583_v34  ;;  %v2537_v37 = vadd.f32 %v2433_v1, %v14363_v4  ;;  %v2617_v35 = vmax.f32 %v2601_v31, %v2609_v28 }
 0x4ab   : > { %v2569_v58 = vadd.f32 %v2462_v45, %v14363_v4 }
 0x4ac   : > { %v2623_v40 = vmax.f32 %v2591_v51, %v2615_v47  ;;  %v2545_v62 = vmul.f32 0.2, %v2537_v37  ;;  %v2611_v47 = vmul.f32 0.2, %v2603_v26 }
 0x4ad   : > { %v2577_v25 = vmul.f32 0.2, %v2569_v58 }
 0x4ae   : > { %v2553_v2 = vmax.f32 %v2537_v37, %v2545_v62 }
 0x4af   : > { %v2284_v18 = vpop.f32.mrf.mxu3  ;;  %v2585_v50 = vmax.f32 %v2569_v58, %v2577_v25  ;;  %v2619_v58 = vmax.f32 %v2603_v26, %v2611_v47 }
 0x4b0   : > { %v2389_v39 = vadd.f32 %v2284_v18, %v14363_v4 }
 0x4b1   : > { %v14433_v9 = vpop.f32.mrf.mxu0 }
 0x4b2   : > { %v2397_v48 = vmul.f32 0.2, %v2389_v39  ;;  %v14436_v56 = vpop.f32.mrf.mxu1 }
 0x4b4   : > { %v2405_v10 = vmax.f32 %v2389_v39, %v2397_v48 }
 0x4b6   : > { %v2413_v23 = vmax.f32 %v14384_v33, %v2405_v10 }
 0x4b7   : > { %v14441_v7 = vpop.f32.mrf.mxu3 }
 0x4b8   : > { %v2561_v5 = vmax.f32 %v2413_v23, %v2553_v2 }
 0x4b9   : > { %v2438_v27 = vpop.f32.mrf.mxu0 }
 0x4ba   : > { %v2593_v59 = vmax.f32 %v2561_v5, %v2585_v50  ;;  %v2467_v38 = vpop.f32.mrf.mxu1  ;;  %v2539_v44 = vadd.f32 %v2438_v27, %v14380_v43 }
 0x4bb   : > { %v2571_v30 = vadd.f32 %v2467_v38, %v14380_v43 }
 0x4bc   : > { %v2625_v55 = vmax.f32 %v2593_v59, %v2617_v35  ;;  %v2547_v33 = vmul.f32 0.2, %v2539_v44 }
 0x4bd   : > { %v2579_v19 = vmul.f32 0.2, %v2571_v30 }
 0x4be   : > { %v2555_v45 = vmax.f32 %v2539_v44, %v2547_v33  ;;  %v2498_v33 = vpop.f32.mrf.mxu2 }
 0x4bf   : > { %v2289_v32 = vpop.f32.mrf.mxu3  ;;  %v2587_v37 = vmax.f32 %v2571_v30, %v2579_v19  ;;  %v2170_v30 = vld [vmem:[%s19482_s5 + $0x38] sm:$0xff] }
 0x4c0   : > { %v2391_v29 = vadd.f32 %v2289_v32, %v14380_v43 }
 0x4c1   : > { %v14464_v44 = vpop.f32.mrf.mxu0 }
 0x4c2   : > { %v2399_v34 = vmul.f32 0.2, %v2391_v29 }
 0x4c4   : > { %v2407_v1 = vmax.f32 %v2391_v29, %v2399_v34 }
 0x4c6   : > { %v2415_v51 = vmax.f32 %v14402_v0, %v2407_v1  ;;  %v14493_v1 = vadd.f32 %v2170_v30, %v14348_v11 }
 0x4c7   : > { %v14448_v22 = vpop.f32.mrf.mxu3 }
 0x4c8   : > { %v2563_v18 = vmax.f32 %v2415_v51, %v2555_v45  ;;  %v14510_v51 = vadd.f32 %v14412_v60, %v14493_v1  ;;  %v12521_v60 = vld [vmem:[%s13019_s15 + $0x170] sm:$0xff] }
 0x4ca   : > { %v2595_v39 = vmax.f32 %v2563_v18, %v2587_v37  ;;  %v12522_v37 = vld [vmem:[%s13019_s15 + $0x178] sm:$0xff] }
 0x4cb   : > { %3184 = vmatpush.bf16.msrb.mxu2 %v12522_v37 }
 0x4cc   : > { %v14450_v31 = vmax.f32 %v2595_v39, %v2619_v58  ;;  %v12530_v58 = vld [vmem:[%s13019_s15 + $0x1b8] sm:$0xff] }
 0x4cd   : > { %3233 = vmatpush.bf16.msra.mxu3 %v12530_v58  ;;  %v12513_v58 = vld [vmem:[%s13019_s15 + $0x130] sm:$0xff] }
 0x4cf   : > { %v2294_v62 = vpop.f32.mrf.mxu3  ;;  %3185 = vmatpush.bf16.msrb.mxu2 %v12521_v60  ;;  %v12528_v60 = vld [vmem:[%s13019_s15 + $0x1a8] sm:$0xff] }
 0x4d0   : > { %v2393_v48 = vadd.f32 %v2294_v62, %v14400_v41 }
 0x4d2   : > { %v2401_v25 = vmul.f32 0.2, %v2393_v48 }
 0x4d4   : > { %v2409_v10 = vmax.f32 %v2393_v48, %v2401_v25 }
 0x4d6   : > { %v14454_v28 = vmax.f32 %v14414_v13, %v2409_v10  ;;  %v2164_v13 = vld [vmem:[%s19482_s5 + $0x8] sm:$0xff] }
 0x4d7   : > { %v14456_v2 = vpop.f32.mrf.mxu3 }
 0x4df   : > { %v2515_v23 = vpop.f32.mrf.mxu3 }
 0x4e0   : > { %v2631_v0 = vadd.f32 %v2515_v23, %v14346_v53  ;;  %v2166_v53 = vld [vmem:[%s19482_s5 + $0x18] sm:$0xff] }
 0x4e1   : > { %v14483_v26 = vadd.f32 %v2166_v53, %v14331_v46  ;;  %v12529_v53 = vld [vmem:[%s13019_s15 + $0x1b0] sm:$0xff] }
 0x4e2   : > { %v2639_v50 = vmul.f32 0.2, %v2631_v0  ;;  %3234 = vmatpush.bf16.msra.mxu3 %v12529_v53 }
 0x4e4   : > { %v2647_v5 = vmax.f32 %v2631_v0, %v2639_v50 }
 0x4e6   : > { %v14459_v35 = vmax.f32 %v2623_v40, %v2647_v5  ;;  %v14473_v40 = vadd.f32 %v2164_v13, %v14326_v61  ;;  %v2168_v61 = vld [vmem:[%s19482_s5 + $0x28] sm:$0xff]  ;;  %v2501_v5 = vpop.f32.mrf.mxu2  ;;  %v12514_v13 = vld [vmem:[%s13019_s15 + $0x138] sm:$0xff]  ;;  %3235 = vmatpush.bf16.msra.mxu3 %v12528_v60 }
 0x4e7   : > { %v14461_v59 = vpop.f32.mrf.mxu3  ;;  %v14500_v47 = vadd.f32 %v2168_v61, %v14336_v36  ;;  %3135 = vmatpush.bf16.msra.mxu1 %v12514_v13  ;;  %v12518_v13 = vld [vmem:[%s13019_s15 + $0x158] sm:$0xff] }
 0x4e8   : > { %v2300_v19 = vadd.f32 %v14365_v63, %v14473_v40  ;;  %v2324_v46 = vadd.f32 %v14356_v15, %v14473_v40  ;;  %v14504_v45 = vadd.f32 %v14358_v16, %v14473_v40  ;;  %v2326_v63 = vadd.f32 %v14373_v12, %v14483_v26 }
 0x4e9   : > { %v14517_v15 = vadd.f32 %v14375_v14, %v14483_v26  ;;  %v14521_v16 = vadd.f32 %v14397_v17, %v14500_v47  ;;  %v2330_v12 = vadd.f32 %v14408_v24, %v14493_v1  ;;  %v2328_v14 = vadd.f32 %v14390_v21, %v14500_v47 }
 0x4ea   : > { %v2308_v11 = vmul.f32 0.2, %v2300_v19  ;;  %v2332_v18 = vmul.f32 0.2, %v2324_v46  ;;  %v2364_v39 = vmul.f32 0.2, %v14504_v45  ;;  %v14546_v61 = vadd.f32 %v2498_v33, %v14500_v47 }
 0x4eb   : > { %v2334_v62 = vmul.f32 0.2, %v2326_v63  ;;  %v2314_v17 = vmul.f32 0.2, %v14510_v51  ;;  %v2366_v23 = vmul.f32 0.2, %v14517_v15  ;;  %v14556_v33 = vadd.f32 %v14419_v42, %v14473_v40  ;;  %3136 = vmatpush.bf16.msra.mxu1 %v12513_v58 }
 0x4ec   : > { %v2316_v25 = vmax.f32 %v2300_v19, %v2308_v11  ;;  %v2312_v50 = vmul.f32 0.2, %v14521_v16  ;;  %v14550_v19 = vadd.f32 %v14456_v2, %v14493_v1 }
 0x4ed   : > { %v2342_v30 = vmax.f32 %v2326_v63, %v2334_v62  ;;  %v2374_v42 = vmax.f32 %v14517_v15, %v2366_v23 }
 0x4ee   : > { %v2320_v2 = vmax.f32 %v14521_v16, %v2312_v50  ;;  %v14572_v16 = vmul.f32 0.2, %v14546_v61 }
 0x4ef   : > { %v2520_v27 = vpop.f32.mrf.mxu3 }
 0x4f0   : > { %v2633_v38 = vadd.f32 %v2520_v27, %v14363_v4  ;;  %v14478_v4 = vpop.f32.mrf.mxu1  ;;  %v2338_v27 = vmul.f32 0.2, %v2330_v12 }
 0x4f2   : > { %v2641_v54 = vmul.f32 0.2, %v2633_v38  ;;  %v2346_v37 = vmax.f32 %v2330_v12, %v2338_v27  ;;  %v2402_v12 = vmul.f32 0.2, %v14550_v19 }
 0x4f4   : > { %v2649_v32 = vmax.f32 %v2633_v38, %v2641_v54  ;;  %v2340_v38 = vmax.f32 %v2324_v46, %v2332_v18  ;;  %v2362_v54 = vadd.f32 %v14410_v20, %v14493_v1  ;;  %v2336_v20 = vmul.f32 0.2, %v2328_v14 }
 0x4f5   : > { %v2322_v46 = vmax.f32 %v14510_v51, %v2314_v17 }
 0x4f6   : > { %v14480_v29 = vmax.f32 %v2625_v55, %v2649_v32  ;;  %v2302_v55 = vadd.f32 %v14382_v52, %v14483_v26  ;;  %v14512_v52 = vpop.f32.mrf.mxu0  ;;  %v12520_v32 = vld [vmem:[%s13019_s15 + $0x168] sm:$0xff] }
 0x4f7   : > { %v14485_v34 = vpop.f32.mrf.mxu3  ;;  %3186 = vmatpush.bf16.msrb.mxu2 %v12520_v32  ;;  %v14600_v32 = vadd.f32 %v2501_v5, %v14400_v41 }
 0x4f8   : > { %v2310_v36 = vmul.f32 0.2, %v2302_v55  ;;  %v14531_v10 = vpop.f32.mrf.mxu1 }
 0x4fa   : > { %v2318_v0 = vmax.f32 %v2302_v55, %v2310_v36  ;;  %v2372_v55 = vmax.f32 %v14504_v45, %v2364_v39  ;;  %v2370_v36 = vmul.f32 0.2, %v2362_v54  ;;  %v14561_v45 = vadd.f32 %v14448_v22, %v14500_v47  ;;  %v12519_v39 = vld [vmem:[%s13019_s15 + $0x160] sm:$0xff] }
 0x4fb   : > { %v14579_v22 = vadd.f32 %v14438_v57, %v14483_v26  ;;  %v14590_v57 = vadd.f32 %v14441_v7, %v14483_v26  ;;  %3187 = vmatpush.bf16.msrb.mxu2 %v12519_v39  ;;  %v12517_v39 = vld [vmem:[%s13019_s15 + $0x150] sm:$0xff] }
 0x4fc   : > { %v2350_v11 = vmax.f32 %v2318_v0, %v2342_v30  ;;  %v2378_v50 = vmax.f32 %v2362_v54, %v2370_v36  ;;  %v2503_v54 = vpop.f32.mrf.mxu2  ;;  %v2410_v30 = vmax.f32 %v14550_v19, %v2402_v12  ;;  %v2573_v19 = vadd.f32 %v14531_v10, %v14400_v41 }
 0x4fd   : > { %v14604_v7 = vmul.f32 0.2, %v14579_v22  ;;  %v14623_v36 = vmul.f32 0.2, %v14600_v32  ;;  %v14627_v10 = vadd.f32 %v14421_v3, %v14473_v40  ;;  %v2572_v12 = vadd.f32 %v14478_v4, %v14500_v47  ;;  %v12510_v3 = vld [vmem:[%s13019_s15 + $0x118] sm:$0xff] }
 0x4fe   : > { %v2445_v18 = vpop.f32.mrf.mxu0  ;;  %v14583_v17 = vmax.f32 %v2350_v11, %v2374_v42  ;;  %v14635_v42 = vadd.f32 %v14436_v56, %v14483_v26  ;;  %v14648_v4 = vadd.f32 %v14423_v8, %v14473_v40 }
 0x4ff   : > { %v2525_v48 = vpop.f32.mrf.mxu3  ;;  %v2542_v23 = vadd.f32 %v2445_v18, %v14493_v1  ;;  %3188 = vmatpush.bf16.msrb.mxu2 %v12518_v13  ;;  %v2538_v18 = vadd.f32 %v14433_v9, %v14483_v26  ;;  %v2581_v9 = vmul.f32 0.2, %v2573_v19  ;;  %v12516_v13 = vld [vmem:[%s13019_s15 + $0x148] sm:$0xff] }
 0x500   : > { %v2635_v24 = vadd.f32 %v2525_v48, %v14380_v43  ;;  %v14543_v43 = vadd.f32 %v14392_v49, %v14500_v47  ;;  %v2348_v49 = vmax.f32 %v2316_v25, %v2340_v38  ;;  %v2354_v25 = vmax.f32 %v2322_v46, %v2346_v37  ;;  %v2474_v27 = vpop.f32.mrf.mxu1  ;;  %v12512_v38 = vld [vmem:[%s13019_s15 + $0x128] sm:$0xff]  ;;  %v12526_v37 = vld [vmem:[%s13019_s15 + $0x198] sm:$0xff] }
 0x501   : > { %3137 = vmatpush.bf16.msra.mxu1 %v12512_v38  ;;  %v2550_v46 = vmul.f32 0.2, %v2542_v23 }
 0x502   : > { %v2643_v21 = vmul.f32 0.2, %v2635_v24  ;;  %v2368_v62 = vmul.f32 0.2, %v14543_v43  ;;  %v14581_v15 = vmax.f32 %v2348_v49, %v2372_v55  ;;  %v14608_v55 = vadd.f32 %v14427_v6, %v14473_v40 }
 0x503   : > { %v14616_v49 = vadd.f32 %v2503_v54, %v14493_v1  ;;  %v2398_v6 = vmul.f32 0.2, %v14590_v57  ;;  %3189 = vmatpush.bf16.msrb.mxu2 %v12517_v39 }
 0x504   : > { %v2651_v63 = vmax.f32 %v2635_v24, %v2643_v21  ;;  %v2541_v24 = vadd.f32 %v14512_v52, %v14400_v41  ;;  %v12527_v21 = vld [vmem:[%s13019_s15 + $0x1a0] sm:$0xff]  ;;  %v2376_v53 = vmax.f32 %v14543_v43, %v2368_v62  ;;  %v2620_v52 = vmax.f32 %v14546_v61, %v14572_v16 }
 0x505   : > { %v2540_v43 = vadd.f32 %v14464_v44, %v14500_v47  ;;  %3236 = vmatpush.bf16.msra.mxu3 %v12527_v21  ;;  %v12511_v44 = vld [vmem:[%s13019_s15 + $0x120] sm:$0xff]  ;;  %v2546_v21 = vmul.f32 0.2, %v2538_v18 }
 0x506   : > { %v14564_v51 = vmax.f32 %v14450_v31, %v2651_v63  ;;  %v2344_v31 = vmax.f32 %v2328_v14, %v2336_v20  ;;  %v2400_v14 = vmul.f32 0.2, %v14561_v45  ;;  %v2386_v20 = vmax.f32 %v2354_v25, %v2378_v50  ;;  %3138 = vmatpush.bf16.msra.mxu1 %v12511_v44 }
 0x507   : > { %v14575_v48 = vpop.f32.mrf.mxu3  ;;  %v2549_v5 = vmul.f32 0.2, %v2541_v24  ;;  %v2574_v63 = vadd.f32 %v2474_v27, %v14493_v1  ;;  %v2548_v62 = vmul.f32 0.2, %v2540_v43  ;;  %v2406_v27 = vmax.f32 %v14590_v57, %v2398_v6  ;;  %3190 = vmatpush.bf16.msrb.mxu2 %v12516_v13 }
 0x508   : > { %v2352_v0 = vmax.f32 %v2320_v2, %v2344_v31  ;;  %v2408_v2 = vmax.f32 %v14561_v45, %v2400_v14  ;;  %v2418_v58 = vmax.f32 %v2386_v20, %v2410_v30  ;;  %v2396_v45 = vmul.f32 0.2, %v14608_v55  ;;  %v12525_v31 = vld [vmem:[%s13019_s15 + $0x190] sm:$0xff]  ;;  %v12524_v20 = vld [vmem:[%s13019_s15 + $0x188] sm:$0xff] }
 0x509   : > { %3237 = vmatpush.bf16.msra.mxu3 %v12526_v37  ;;  %v2557_v25 = vmax.f32 %v2541_v24, %v2549_v5  ;;  %v2582_v50 = vmul.f32 0.2, %v2574_v63  ;;  %v2614_v14 = vmul.f32 0.2, %v14616_v49  ;;  %v2556_v54 = vmax.f32 %v2540_v43, %v2548_v62 }
 0x50a   : > { %v2384_v11 = vmax.f32 %v2352_v0, %v2376_v53  ;;  %v2558_v0 = vmax.f32 %v2542_v23, %v2550_v46  ;;  %v2544_v53 = vmul.f32 0.2, %v14627_v10  ;;  %v2580_v30 = vmul.f32 0.2, %v2572_v12  ;;  %3139 = vmatpush.bf16.msra.mxu1 %v12510_v3 }
 0x50b   : > { %v2565_v24 = vmax.f32 %v14454_v28, %v2557_v25  ;;  %v14655_v57 = vadd.f32 %v14575_v48, %v14500_v47  ;;  %v2404_v8 = vmax.f32 %v14608_v55, %v2396_v45  ;;  %v2578_v5 = vmul.f32 0.2, %v14635_v42  ;;  %v10460_v25 = vld [vmem:[%s19478_s1 + $0x8] sm:$0xf] }
 0x50c   : > { %v2416_v56 = vmax.f32 %v2384_v11, %v2408_v2  ;;  %v2566_v23 = vmax.f32 %v2418_v58, %v2558_v0  ;;  %v2589_v28 = vmax.f32 %v2573_v19, %v2581_v9  ;;  %v2590_v46 = vmax.f32 %v2574_v63, %v2582_v50  ;;  %v12515_v58 = vld [vmem:[%s13019_s15 + $0x140] sm:$0xff]  ;;  %v12542_v9 = vld [vmem:[%s19478_s1 + $0x14] sm:$0xf0] }
 0x50d   : > { %3238 = vmatpush.bf16.msra.mxu3 %v12525_v31  ;;  %v2621_v6 = vmax.f32 %v14600_v32, %v14623_v36  ;;  %v2414_v43 = vmax.f32 %v14583_v17, %v2406_v27  ;;  %v2622_v48 = vmax.f32 %v14616_v49, %v2614_v14  ;;  %v2554_v2 = vmax.f32 %v2538_v18, %v2546_v21  ;;  %v12508_v36 = vld [vmem:[%s13019_s15 + $0x108] sm:$0xff] }
 0x50e   : > { %v2564_v11 = vmax.f32 %v2416_v56, %v2556_v54  ;;  %v2597_v44 = vmax.f32 %v2565_v24, %v2589_v28  ;;  %v2598_v37 = vmax.f32 %v2566_v23, %v2590_v46  ;;  %v2588_v19 = vmax.f32 %v2572_v12, %v2580_v30  ;;  %3191 = vmatpush.bf16.msrb.mxu2 %v12515_v58  ;;  %v12507_v56 = vld [vmem:[%s13019_s15 + $0x100] sm:$0xff]  ;;  %v12537_v58 = vld [vmem:[%s13019_s15 + $0x1f0] sm:$0xff] }
 0x50f   : > { %v2530_v60 = vpop.f32.mrf.mxu3  ;;  %v2634_v63 = vadd.f32 %v14485_v34, %v14483_v26  ;;  %v2644_v32 = vmul.f32 0.2, %v14655_v57  ;;  %v2552_v39 = vmax.f32 %v14627_v10, %v2544_v53  ;;  %v2576_v49 = vmul.f32 0.2, %v14648_v4  ;;  %v10454_v10 = vld [vmem:[%s19478_s1 + $0x10] sm:$0xf0] }
 0x510   : > { %v14644_v38 = vadd.f32 %v2530_v60, %v14400_v41  ;;  %v12509_v41 = vld [vmem:[%s13019_s15 + $0x110] sm:$0xff]  ;;  %v12523_v60 = vld [vmem:[%s13019_s15 + $0x180] sm:$0xff]  ;;  %v2412_v18 = vmax.f32 %v14581_v15, %v2404_v8  ;;  %v2586_v45 = vmax.f32 %v14635_v42, %v2578_v5  ;;  %v2562_v62 = vmax.f32 %v2414_v43, %v2554_v2 }
 0x511   : > { %3140 = vmatpush.bf16.msra.mxu1 %v12509_v41  ;;  %3239 = vmatpush.bf16.msra.mxu3 %v12524_v20  ;;  %v2596_v12 = vmax.f32 %v2564_v11, %v2588_v19  ;;  %v2632_v15 = vadd.f32 %v14461_v59, %v14473_v40  ;;  %v2629_v3 = vmax.f32 %v2597_v44, %v2621_v6  ;;  %v2642_v0 = vmul.f32 0.2, %v2634_v63  ;;  %v10452_v30 = vld [vmem:[%s19478_s1] sm:$0xf]  ;;  %v12543_v43 = vld [vmem:[%s19478_s1 + $0x24] sm:$0xf] }
 0x512   : > { %v2645_v47 = vmul.f32 0.2, %v14644_v38  ;;  %v2630_v42 = vmax.f32 %v2598_v37, %v2622_v48  ;;  %v2652_v50 = vmax.f32 %v14655_v57, %v2644_v32  ;;  %v10461_v27 = vor.u32 %v12542_v9, %v10460_v25  ;;  %v12541_v57 = vld [vmem:[%s19478_s1 + $0xc] sm:$0xf0]  ;;  %v10470_v11 = vld [vmem:[%s19478_s1 + $0x30] sm:$0xf0] }
 0x513   : > { %v2608_v59 = vmul.f32 0.2, %v14556_v33  ;;  %v2560_v40 = vmax.f32 %v2412_v18, %v2552_v39  ;;  %v2628_v21 = vmax.f32 %v2596_v12, %v2620_v52  ;;  %v2618_v13 = vmax.f32 %v14579_v22, %v14604_v7  ;;  %v2663_v44 = vld [vmem:[%s19484_s7] sm:$0xf]  ;;  %v12545_v37 = vld [vmem:[%s19478_s1 + $0x2c] sm:$0xf0] }
 0x514   : > { %v2653_v26 = vmax.f32 %v14644_v38, %v2645_v47  ;;  %v2594_v38 = vmax.f32 %v2562_v62, %v2586_v45  ;;  %v2584_v53 = vmax.f32 %v14648_v4, %v2576_v49  ;;  %v2640_v54 = vmul.f32 0.2, %v2632_v15  ;;  %v12536_v19 = vld [vmem:[%s13019_s15 + $0x1e8] sm:$0xff]  ;;  %v10486_v32 = vld [vmem:[%s19478_s1 + $0x50] sm:$0xf0]  ;;  %v12534_v49 = vld [vmem:[%s13019_s15 + $0x1d8] sm:$0xff] }
 0x515   : > { %3141 = vmatpush.bf16.msra.mxu1 %v12508_v36  ;;  %3240 = vmatpush.bf16.msra.mxu3 %v12523_v60  ;;  %v2650_v41 = vmax.f32 %v2634_v63, %v2642_v0  ;;  %v2660_v61 = vmax.f32 %v2628_v21, %v2652_v50  ;;  %v10453_v52 = vor.u32 %v12541_v57, %v10452_v30  ;;  %v12547_v63 = vld [vmem:[%s19478_s1 + $0x44] sm:$0xf]  ;;  %v10492_v36 = vld [vmem:[%s19478_s1 + $0x48] sm:$0xf]  ;;  %v12550_v60 = vld [vmem:[%s19478_s1 + $0x54] sm:$0xf0] }
 0x516   : > { %v2661_v24 = vmax.f32 %v2629_v3, %v2653_v26  ;;  %v2592_v20 = vmax.f32 %v2560_v40, %v2584_v53  ;;  %v2626_v22 = vmax.f32 %v2594_v38, %v2618_v13  ;;  %v2616_v7 = vmax.f32 %v14556_v33, %v2608_v59  ;;  %v12538_v33 = vld [vmem:[%s13019_s15 + $0x1f8] sm:$0xff]  ;;  %v10484_v45 = vld [vmem:[%s19478_s1 + $0x40] sm:$0xf]  ;;  %v12549_v62 = vld [vmem:[%s19478_s1 + $0x4c] sm:$0xf0] }
 0x517   : > { %v2532_v55 = vpop.f32.mrf.mxu3  ;;  %v2648_v4 = vmax.f32 %v2632_v15, %v2640_v54  ;;  %v2666_v5 = vpack.c.bf16 %v2660_v61, %v14564_v51  ;;  %v10473_v47 = vor.u32 %v12543_v43, %v10470_v11  ;;  %v10476_v51 = vld [vmem:[%s19478_s1 + $0x28] sm:$0xf]  ;;  %v10489_v39 = vor.u32 %v12547_v63, %v10486_v32  ;;  %v12533_v12 = vld [vmem:[%s13019_s15 + $0x1d0] sm:$0xff]  ;;  %v12531_v15 = vld [vmem:[%s13019_s15 + $0x1c0] sm:$0xff] }
 0x518   : > { %v2638_v17 = vadd.f32 %v2532_v55, %v14493_v1  ;;  %v12539_v1 = vld [vmem:[%s19478_s1 + $0x4] sm:$0xf]  ;;  %3241 = vmatmul.bf16.vlgmr.msra.gmra.mxu3 %v10461_v27  ;;  %v2658_v8 = vmax.f32 %v2626_v22, %v2650_v41  ;;  %v2624_v28 = vmax.f32 %v2592_v20, %v2616_v7  ;;  %v10468_v55 = vld [vmem:[%s19478_s1 + $0x20] sm:$0xf]  ;;  %v10493_v18 = vor.u32 %v12550_v60, %v10492_v36  ;;  %v12540_v3 = vld [vmem:[%s19478_s1 + $0xc] sm:$0xf] }
 0x519   : > { %v10457_v31 = vor.u32 %v12539_v1, %v10454_v10  ;;  %3142 = vmatpush.bf16.msra.mxu1 %v12507_v56  ;;  %v10485_v26 = vor.u32 %v12549_v62, %v10484_v45  ;;  %v12551_v1 = vld [vmem:[%s19478_s1 + $0x64] sm:$0xf]  ;;  %v10502_v10 = vld [vmem:[%s19478_s1 + $0x70] sm:$0xf0]  ;;  %v12554_v25 = vld [vmem:[%s19478_s1 + $0x74] sm:$0xf0] }
 0x51a   : > { %v2646_v34 = vmul.f32 0.2, %v2638_v17  ;;  %v2656_v46 = vmax.f32 %v2624_v28, %v2648_v4  ;;  %v2665_v6 = vpack.c.bf16 %v2658_v8, %v14480_v29  ;;  %v12546_v29 = vld [vmem:[%s19478_s1 + $0x34] sm:$0xf0]  ;;  %v10505_v9 = vor.u32 %v12551_v1, %v10502_v10  ;;  %v12553_v27 = vld [vmem:[%s19478_s1 + $0x6c] sm:$0xf0] }
 0x51b   : > { %3192 = vmatmul.bf16.vlgmr.msrb.gmra.mxu2 %v10457_v31  ;;  %v10477_v2 = vor.u32 %v12546_v29, %v10476_v51  ;;  %v10508_v31 = vld [vmem:[%s19478_s1 + $0x68] sm:$0xf]  ;;  %v12555_v59 = vld [vmem:[%s19478_s1 + $0x84] sm:$0xf]  ;;  %v10518_v40 = vld [vmem:[%s19478_s1 + $0x90] sm:$0xf0] }
 0x51c   : > { %v2654_v14 = vmax.f32 %v2638_v17, %v2646_v34  ;;  %3143 = vmatmul.bf16.vlgmr.msra.gmra.mxu1 %v10453_v52  ;;  %v2664_v48 = vpack.c.bf16 %v2656_v46, %v14459_v35  ;;  %v10469_v35 = vor.u32 %v12545_v37, %v10468_v55  ;;  %v12535_v17 = vld [vmem:[%s13019_s15 + $0x1e0] sm:$0xff]  ;;  %v12532_v34 = vld [vmem:[%s13019_s15 + $0x1c8] sm:$0xff]  ;;  %v10509_v50 = vor.u32 %v12554_v25, %v10508_v31  ;;  %v10478_v21 = vld [vmem:[%s19478_s1 + $0x38] sm:$0xf0] }
 0x51d   : > { %v12544_v38 = vld [vmem:[%s19478_s1 + $0x2c] sm:$0xf]  ;;  %v10521_v13 = vor.u32 %v12555_v59, %v10518_v40  ;;  %v10516_v30 = vld [vmem:[%s19478_s1 + $0x80] sm:$0xf]  ;;  %v12557_v57 = vld [vmem:[%s19478_s1 + $0x8c] sm:$0xf0] }
 0x51e   : > { %v2662_v23 = vmax.f32 %v2630_v42, %v2654_v14  ;;  %v10462_v42 = vld [vmem:[%s19478_s1 + $0x18] sm:$0xf0]  ;;  %v10500_v14 = vld [vmem:[%s19478_s1 + $0x60] sm:$0xf]  ;;  %v10481_v53 = vor.u32 %v12544_v38, %v10478_v21  ;;  %v10517_v41 = vor.u32 %v12557_v57, %v10516_v30  ;;  %v12559_v61 = vld [vmem:[%s19478_s1 + $0xa4] sm:$0xf] }
 0x51f   : > { %v10465_v0 = vor.u32 %v12540_v3, %v10462_v42  ;;  %v10501_v56 = vor.u32 %v12553_v27, %v10500_v14  ;;  %v12548_v52 = vld [vmem:[%s19478_s1 + $0x4c] sm:$0xf]  ;;  %v10494_v20 = vld [vmem:[%s19478_s1 + $0x58] sm:$0xf0]  ;;  %v10540_v22 = vld [vmem:[%s19478_s1 + $0xa8] sm:$0xf] }
 0x520   : > { %v2667_v16 = vpack.c.bf16 %v2662_v23, %v2661_v24  ;;  %v10524_v24 = vld [vmem:[%s19478_s1 + $0x88] sm:$0xf]  ;;  %v12558_v23 = vld [vmem:[%s19478_s1 + $0x94] sm:$0xf0]  ;;  %v10497_v8 = vor.u32 %v12548_v52, %v10494_v20  ;;  %v10532_v28 = vld [vmem:[%s19478_s1 + $0xa0] sm:$0xf] }
 0x521   : > { %v10525_v54 = vor.u32 %v12558_v23, %v10524_v24  ;;  %v12562_v7 = vld [vmem:[%s19478_s1 + $0xb4] sm:$0xf0]  ;;  %v12561_v46 = vld [vmem:[%s19478_s1 + $0xac] sm:$0xf0]  ;;  %v12563_v43 = vld [vmem:[%s19478_s1 + $0xc4] sm:$0xf] }
 0x522   : > { %2676 = vmatpush.bf16.msrb.mxu0 %v2667_v16  ;;  %v10534_v16 = vld [vmem:[%s19478_s1 + $0xb0] sm:$0xf0]  ;;  %v10556_v51 = vld [vmem:[%s19478_s1 + $0xc8] sm:$0xf]  ;;  %v12566_v29 = vld [vmem:[%s19478_s1 + $0xd4] sm:$0xf0] }
 0x523   : > { %v10537_v4 = vor.u32 %v12559_v61, %v10534_v16  ;;  %v10550_v11 = vld [vmem:[%s19478_s1 + $0xd0] sm:$0xf0]  ;;  %v10548_v55 = vld [vmem:[%s19478_s1 + $0xc0] sm:$0xf]  ;;  %v12565_v37 = vld [vmem:[%s19478_s1 + $0xcc] sm:$0xf0] }
 0x524   : > { %v12556_v63 = vld [vmem:[%s19478_s1 + $0x8c] sm:$0xf]  ;;  %v10526_v32 = vld [vmem:[%s19478_s1 + $0x98] sm:$0xf0]  ;;  %v12570_v36 = vld [vmem:[%s19478_s1 + $0xf4] sm:$0xf0] }
 0x525   : > { %v12569_v45 = vld [vmem:[%s19478_s1 + $0xec] sm:$0xf0]  ;;  %v12564_v31 = vld [vmem:[%s19478_s1 + $0xcc] sm:$0xf]  ;;  %v10558_v25 = vld [vmem:[%s19478_s1 + $0xd8] sm:$0xf0] }
 0x526   : > { %2677 = vmatpush.bf16.msrb.mxu0 %v2666_v5  ;;  %v10541_v5 = vor.u32 %v12562_v7, %v10540_v22  ;;  %v2668_v27 = vld [vmem:[%s19485_s8] sm:$0x7f] }
 0x528   : > { %3246 = vmatmul.bf16.gmra.mxu3 %v10477_v2 }
 0x52a   : > { %2678 = vmatpush.bf16.msrb.mxu0 %v2665_v6  ;;  %v10533_v6 = vor.u32 %v12561_v46, %v10532_v28 }
 0x52b   : > { %3197 = vmatmul.bf16.gmra.mxu2 %v10473_v47  ;;  %v10510_v47 = vld [vmem:[%s19478_s1 + $0x78] sm:$0xf0] }
 0x52c   : > { %3148 = vmatmul.bf16.gmra.mxu1 %v10469_v35  ;;  %v12567_v35 = vld [vmem:[%s19478_s1 + $0xe4] sm:$0xf] }
 0x52e   : > { %2679 = vmatpush.bf16.msrb.mxu0 %v2664_v48  ;;  %v10553_v48 = vor.u32 %v12563_v43, %v10550_v11 }
 0x531   : > { %10385 = vmatmul.msk.bf16.vlgmr.msrb.gmra.mxu0 %vm1064_vm0, %v2663_v44  ;;  %v10557_v44 = vor.u32 %v12566_v29, %v10556_v51 }
 0x532   : > { %3282 = vmatpush.bf16.msra.mxu0 %v12538_v33  ;;  %v12552_v33 = vld [vmem:[%s19478_s1 + $0x6c] sm:$0xf] }
 0x533   : > { %v10513_v2 = vor.u32 %v12552_v33, %v10510_v47 }
 0x536   : > { %3283 = vmatpush.bf16.msra.mxu0 %v12537_v58  ;;  %v10549_v58 = vor.u32 %v12565_v37, %v10548_v55 }
 0x538   : > { %3251 = vmatmul.bf16.gmra.mxu3 %v10493_v18  ;;  %v10564_v18 = vld [vmem:[%s19478_s1 + $0xe0] sm:$0xf] }
 0x539   : > { %v10565_v62 = vor.u32 %v12569_v45, %v10564_v18 }
 0x53a   : > { %3284 = vmatpush.bf16.msra.mxu0 %v12536_v19  ;;  %v10566_v19 = vld [vmem:[%s19478_s1 + $0xf0] sm:$0xf0] }
 0x53b   : > { %3202 = vmatmul.bf16.gmra.mxu2 %v10489_v39  ;;  %v10569_v60 = vor.u32 %v12567_v35, %v10566_v19  ;;  %v10529_v39 = vor.u32 %v12556_v63, %v10526_v32 }
 0x53c   : > { %3153 = vmatmul.bf16.gmra.mxu1 %v10485_v26  ;;  %v10542_v26 = vld [vmem:[%s19478_s1 + $0xb8] sm:$0xf0] }
 0x53e   : > { %3285 = vmatpush.bf16.msra.mxu0 %v12535_v17  ;;  %v10572_v17 = vld [vmem:[%s19478_s1 + $0xe8] sm:$0xf] }
 0x542   : > { %3286 = vmatpush.bf16.msra.mxu0 %v12534_v49  ;;  %v10573_v49 = vor.u32 %v12570_v36, %v10572_v17 }
 0x546   : > { %3287 = vmatpush.bf16.msra.mxu0 %v12533_v12  ;;  %v12560_v12 = vld [vmem:[%s19478_s1 + $0xac] sm:$0xf] }
 0x548   : > { %3256 = vmatmul.bf16.gmra.mxu3 %v10509_v50  ;;  %v10561_v50 = vor.u32 %v12564_v31, %v10558_v25 }
 0x54a   : > { %3288 = vmatpush.bf16.msra.mxu0 %v12532_v34  ;;  %v10545_v34 = vor.u32 %v12560_v12, %v10542_v26 }
 0x54b   : > { %3207 = vmatmul.bf16.gmra.mxu2 %v10505_v9 }
 0x54c   : > { %3158 = vmatmul.bf16.gmra.mxu1 %v10501_v56 }
 0x54e   : > { %3289 = vmatpush.bf16.msra.mxu0 %v12531_v15 }
 0x551   : > { %3290 = vmatmul.bf16.vlgmr.msra.gmra.mxu0 %v10465_v0 }
 0x558   : > { %3261 = vmatmul.bf16.gmra.mxu3 %v10525_v54  ;;  %v10574_v54 = vld [vmem:[%s19478_s1 + $0xf8] sm:$0xf0] }
 0x55b   : > { %3212 = vmatmul.bf16.gmra.mxu2 %v10521_v13 }
 0x55c   : > { %3163 = vmatmul.bf16.gmra.mxu1 %v10517_v41 }
 0x561   : > { %3295 = vmatmul.bf16.gmra.mxu0 %v10481_v53  ;;  %v12568_v53 = vld [vmem:[%s19478_s1 + $0xec] sm:$0xf] }
 0x562   : > { %v10577_v41 = vor.u32 %v12568_v53, %v10574_v54 }
 0x568   : > { %3266 = vmatmul.bf16.gmra.mxu3 %v10541_v5 }
 0x56b   : > { %3217 = vmatmul.bf16.gmra.mxu2 %v10537_v4 }
 0x56c   : > { %3168 = vmatmul.bf16.gmra.mxu1 %v10533_v6 }
 0x571   : > { %3300 = vmatmul.bf16.gmra.mxu0 %v10497_v8 }
 0x578   : > { %3271 = vmatmul.bf16.gmra.mxu3 %v10557_v44 }
 0x57b   : > { %3222 = vmatmul.bf16.gmra.mxu2 %v10553_v48 }
 0x57c   : > { %3173 = vmatmul.bf16.gmra.mxu1 %v10549_v58 }
 0x581   : > { %3305 = vmatmul.bf16.gmra.mxu0 %v10513_v2 }
 0x588   : > { %3276 = vmatmul.bf16.gmra.mxu3 %v10573_v49 }
 0x58b   : > { %3227 = vmatmul.bf16.gmra.mxu2 %v10569_v60 }
 0x58c   : > { %3178 = vmatmul.bf16.gmra.mxu1 %v10565_v62 }
 0x591   : > { %3310 = vmatmul.bf16.gmra.mxu0 %v10529_v39 }
 0x599   : > { %v3144_v1 = vpop.f32.mrf.mxu1 }
 0x59b   : > { %v3242_v3 = vpop.f32.mrf.mxu3 }
 0x59e   : > { %v3193_v10 = vpop.f32.mrf.mxu2 }
 0x59f   : > { %v3194_v15 = vadd.f32 %v3193_v10, %v3144_v1 }
 0x5a1   : > { %3315 = vmatmul.bf16.gmra.mxu0 %v10545_v34  ;;  %v3243_v42 = vadd.f32 %v3242_v3, %v3194_v15  ;;  %v14891_v9 = vpop.f32.mrf.mxu1 }
 0x5a3   : > { %v14895_v14 = vpop.f32.mrf.mxu3 }
 0x5a6   : > { %v14893_v0 = vpop.f32.mrf.mxu2 }
 0x5a9   : > { %v3149_v40 = vpop.f32.mrf.mxu1 }
 0x5ab   : > { %v3247_v24 = vpop.f32.mrf.mxu3 }
 0x5ae   : > { %v2681_v56 = vpop.f32.mrf.mxu0  ;;  %v3198_v38 = vpop.f32.mrf.mxu2 }
 0x5af   : > { %v2682_v59 = vadd.f32 %v2681_v56, %v2668_v27  ;;  %v3199_v21 = vadd.f32 %v3198_v38, %v3149_v40 }
 0x5b1   : > { %3320 = vmatmul.bf16.gmra.mxu0 %v10561_v50  ;;  %2685 = vst [vmem:[%s14904_s17] sm:$0x7f] %v2682_v59  ;;  %v3248_v23 = vadd.f32 %v3247_v24, %v3199_v21  ;;  %v14913_v30 = vpop.f32.mrf.mxu1 }
 0x5b3   : > { %v14917_v61 = vpop.f32.mrf.mxu3 }
 0x5b6   : > { %v2683_v13 = vpop.f32.mrf.mxu0  ;;  %v14915_v57 = vpop.f32.mrf.mxu2 }
 0x5b9   : > { %v3154_v16 = vpop.f32.mrf.mxu1 }
 0x5bb   : > { %v3252_v22 = vpop.f32.mrf.mxu3 }
 0x5be   : > { %v3203_v52 = vpop.f32.mrf.mxu2 }
 0x5bf   : > { %v3204_v20 = vadd.f32 %v3203_v52, %v3154_v16 }
 0x5c1   : > { %3325 = vmatmul.bf16.gmra.mxu0 %v10577_v41  ;;  %v3253_v7 = vadd.f32 %v3252_v22, %v3204_v20  ;;  %v14919_v4 = vpop.f32.mrf.mxu1 }
 0x5c3   : > { %v14923_v5 = vpop.f32.mrf.mxu3 }
 0x5c6   : > { %v14921_v8 = vpop.f32.mrf.mxu2 }
 0x5c9   : > { %v3159_v6 = vpop.f32.mrf.mxu1 }
 0x5cb   : > { %v3257_v33 = vpop.f32.mrf.mxu3 }
 0x5ce   : > { %v3291_v28 = vpop.f32.mrf.mxu0  ;;  %v3208_v43 = vpop.f32.mrf.mxu2 }
 0x5cf   : > { %v14925_v46 = vadd.f32 %v3291_v28, %v3243_v42  ;;  %v3209_v11 = vadd.f32 %v3208_v43, %v3159_v6 }
 0x5d1   : > { %19556 = vst [vmem:[#allocation2_spill] sm:$0xff] %v14925_v46  ;;  %v3258_v51 = vadd.f32 %v3257_v33, %v3209_v11  ;;  %v14929_v29 = vpop.f32.mrf.mxu1 }
 0x5d3   : > { %v14933_v2 = vpop.f32.mrf.mxu3 }
 0x5d6   : > { %v14927_v47 = vpop.f32.mrf.mxu0  ;;  %v14931_v48 = vpop.f32.mrf.mxu2 }
 0x5d9   : > { %v3164_v37 = vpop.f32.mrf.mxu1 }
 0x5db   : > { %v3262_v19 = vpop.f32.mrf.mxu3 }
 0x5de   : > { %v3296_v44 = vpop.f32.mrf.mxu0  ;;  %v3213_v58 = vpop.f32.mrf.mxu2 }
 0x5df   : > { %v14935_v55 = vadd.f32 %v3296_v44, %v3248_v23  ;;  %v3214_v35 = vadd.f32 %v3213_v58, %v3164_v37 }
 0x5e1   : > { %v3263_v32 = vadd.f32 %v3262_v19, %v3214_v35  ;;  %v3166_v18 = vpop.f32.mrf.mxu1 }
 0x5e3   : > { %v3264_v12 = vpop.f32.mrf.mxu3 }
 0x5e6   : > { %v14937_v63 = vpop.f32.mrf.mxu0  ;;  %v3215_v45 = vpop.f32.mrf.mxu2 }
 0x5e9   : > { %v3169_v26 = vpop.f32.mrf.mxu1 }
 0x5eb   : > { %v3267_v15 = vpop.f32.mrf.mxu3 }
 0x5ee   : > { %v3301_v17 = vpop.f32.mrf.mxu0  ;;  %v3218_v34 = vpop.f32.mrf.mxu2 }
 0x5ef   : > { %v14939_v36 = vadd.f32 %v3301_v17, %v3253_v7 }
 0x5f1   : > { %v3171_v3 = vpop.f32.mrf.mxu1 }
 0x5f3   : > { %v3269_v25 = vpop.f32.mrf.mxu3 }
 0x5f6   : > { %v14941_v60 = vpop.f32.mrf.mxu0  ;;  %v3220_v31 = vpop.f32.mrf.mxu2 }
 0x5f9   : > { %v3174_v27 = vpop.f32.mrf.mxu1 }
 0x5fb   : > { %v3272_v59 = vpop.f32.mrf.mxu3 }
 0x5fe   : > { %v3306_v39 = vpop.f32.mrf.mxu0  ;;  %v3223_v56 = vpop.f32.mrf.mxu2 }
 0x5ff   : > { %v14943_v49 = vadd.f32 %v3306_v39, %v3258_v51  ;;  %v3224_v43 = vadd.f32 %v3223_v56, %v3174_v27  ;;  %v3219_v39 = vadd.f32 %v3218_v34, %v3169_v26  ;;  %v3216_v56 = vadd.f32 %v3215_v45, %v3166_v18 }
 0x600   : > { %v3211_v26 = vadd.f32 %v14931_v48, %v14929_v29  ;;  %v3206_v18 = vadd.f32 %v14921_v8, %v14919_v4  ;;  %v3201_v29 = vadd.f32 %v14915_v57, %v14913_v30  ;;  %v3196_v8 = vadd.f32 %v14893_v0, %v14891_v9  ;;  %v19557_v57 = vld [vmem:[#allocation2_spill] sm:$0xff]  ;;  %v12572_v9 = vld [vmem:[%s19479_s2 + $0x8] sm:$0xff]  ;;  %v12573_v0 = vld [vmem:[%s19479_s2 + $0x10] sm:$0xff] }
 0x601   : > { %v3176_v38 = vpop.f32.mrf.mxu1  ;;  %v3273_v58 = vadd.f32 %v3272_v59, %v3224_v43  ;;  %v3265_v59 = vadd.f32 %v3264_v12, %v3216_v56  ;;  %v10844_v43 = vld [vmem:[%s19483_s6 + $0x180] sm:$0xf]  ;;  %v12602_v56 = vld [vmem:[%s19483_s6 + $0x164] sm:$0xf0] }
 0x602   : > { %v3255_v12 = vadd.f32 %v14923_v5, %v3206_v18  ;;  %v10820_v18 = vld [vmem:[%s19483_s6 + $0x108] sm:$0xf] }
 0x603   : > { %v3274_v24 = vpop.f32.mrf.mxu3 }
 0x606   : > { %v3308_v62 = vpop.f32.mrf.mxu0  ;;  %v3225_v21 = vpop.f32.mrf.mxu2 }
 0x607   : > { %v3226_v11 = vadd.f32 %v3225_v21, %v3176_v38 }
 0x609   : > { %v3179_v13 = vpop.f32.mrf.mxu1  ;;  %v3275_v35 = vadd.f32 %v3274_v24, %v3226_v11  ;;  %v12605_v11 = vld [vmem:[%s19483_s6 + $0x19c] sm:$0xf0] }
 0x60b   : > { %v3277_v41 = vpop.f32.mrf.mxu3 }
 0x60e   : > { %v3311_v1 = vpop.f32.mrf.mxu0  ;;  %v3228_v53 = vpop.f32.mrf.mxu2 }
 0x60f   : > { %v3312_v10 = vadd.f32 %v3311_v1, %v3263_v32  ;;  %v3229_v22 = vadd.f32 %v3228_v53, %v3179_v13  ;;  %v3221_v1 = vadd.f32 %v3220_v31, %v3171_v3  ;;  %v3268_v53 = vadd.f32 %v3267_v15, %v3219_v39  ;;  %v10828_v39 = vld [vmem:[%s19483_s6 + $0x140] sm:$0xf] }
 0x611   : > { %v3181_v16 = vpop.f32.mrf.mxu1  ;;  %v3278_v6 = vadd.f32 %v3277_v41, %v3229_v22  ;;  %v10996_v22 = vld [vmem:[%s19483_s6 + $0x1d8] sm:$0xf] }
 0x613   : > { %v3279_v28 = vpop.f32.mrf.mxu3 }
 0x616   : > { %v3313_v42 = vpop.f32.mrf.mxu0  ;;  %v3230_v52 = vpop.f32.mrf.mxu2 }
 0x617   : > { %v3231_v7 = vadd.f32 %v3230_v52, %v3181_v16  ;;  %v3270_v16 = vadd.f32 %v3269_v25, %v3221_v1  ;;  %v3314_v24 = vadd.f32 %v3313_v42, %v3265_v59  ;;  %v3304_v42 = vadd.f32 %v14941_v60, %v3255_v12  ;;  %v12575_v25 = vld [vmem:[%s19479_s2 + $0x20] sm:$0xff]  ;;  %v12634_v59 = vld [vmem:[%s19483_s6 + $0x174] sm:$0xf0] }
 0x618   : > { %v3245_v60 = vadd.f32 %v14895_v14, %v3196_v8  ;;  %v12574_v14 = vld [vmem:[%s19479_s2 + $0x18] sm:$0xff]  ;;  %v12591_v8 = vld [vmem:[%s19483_s6 + $0xc4] sm:$0xf] }
 0x619   : > { %v3280_v33 = vadd.f32 %v3279_v28, %v3231_v7  ;;  %v3335_v34 = vpack.c.bf16 %v3314_v24, %v3312_v10  ;;  %v3333_v48 = vpack.c.bf16 %v3304_v42, %v14939_v36  ;;  %v12642_v7 = vld [vmem:[%s19483_s6 + $0x1f4] sm:$0xf0]  ;;  %v10812_v24 = vld [vmem:[%s19483_s6 + $0x100] sm:$0xf] }
 0x61a   : > { %v10948_v12 = vld [vmem:[%s19483_s6 + $0x118] sm:$0xf] }
 0x61b   : > { %v3448_v3 = vsel %vm1064_vm0, %v3335_v34, 0  ;;  %v3442_v4 = vsel %vm1064_vm0, %v3333_v48, 0  ;;  %v12630_v42 = vld [vmem:[%s19483_s6 + $0x134] sm:$0xf0] }
 0x61e   : > { %v3316_v50 = vpop.f32.mrf.mxu0 }
 0x61f   : > { %v3317_v38 = vadd.f32 %v3316_v50, %v3268_v53  ;;  %v12607_v50 = vld [vmem:[%s19483_s6 + $0x1c4] sm:$0xf] }
 0x620   : > { %v12599_v53 = vld [vmem:[%s19483_s6 + $0x144] sm:$0xf] }
 0x626   : > { %v3318_v40 = vpop.f32.mrf.mxu0 }
 0x627   : > { %v3319_v41 = vadd.f32 %v3318_v40, %v3270_v16  ;;  %v10862_v40 = vld [vmem:[%s19483_s6 + $0x1e0] sm:$0xf0] }
 0x628   : > { %v15010_v52 = vor.u32 %v12607_v50, %v10862_v40  ;;  %v10830_v16 = vld [vmem:[%s19483_s6 + $0x160] sm:$0xf0]  ;;  %v10788_v40 = vld [vmem:[%s19483_s6 + $0x88] sm:$0xf] }
 0x629   : > { %v3336_v21 = vpack.c.bf16 %v3319_v41, %v3317_v38  ;;  %v10964_v38 = vld [vmem:[%s19483_s6 + $0x158] sm:$0xf]  ;;  %v10782_v50 = vld [vmem:[%s19483_s6 + $0xa0] sm:$0xf0] }
 0x62a   : > { %3733 = vmatpush.bf16.msrb.mxu3 %v15010_v52  ;;  %v15100_v34 = vor.u32 %v12634_v59, %v10964_v38  ;;  %v10748_v38 = vld [vmem:[%s19483_s6] sm:$0xf] }
 0x62b   : > { %v12581_v59 = vld [vmem:[%s19483_s6 + $0x1c] sm:$0xf0] }
 0x62e   : > { %v3321_v23 = vpop.f32.mrf.mxu0 }
 0x62f   : > { %v3322_v46 = vadd.f32 %v3321_v23, %v3273_v58  ;;  %v10868_v23 = vld [vmem:[%s19483_s6 + $0x1c8] sm:$0xf] }
 0x630   : > { %v12606_v58 = vld [vmem:[%s19483_s6 + $0x1a4] sm:$0xf0] }
 0x636   : > { %v3323_v54 = vpop.f32.mrf.mxu0 }
 0x637   : > { %v3324_v32 = vadd.f32 %v3323_v54, %v3275_v35  ;;  %v3451_v54 = vsel %vm1064_vm0, %v3336_v21, 0  ;;  %v15085_v21 = vor.u32 %v12599_v53, %v10830_v16  ;;  %v10900_v53 = vld [vmem:[%s19483_s6 + $0x58] sm:$0xf] }
 0x639   : > { %v3337_v13 = vpack.c.bf16 %v3324_v32, %v3322_v46  ;;  %v3260_v46 = vadd.f32 %v14933_v2, %v3211_v26  ;;  %v3250_v2 = vadd.f32 %v14917_v61, %v3201_v29  ;;  %v10980_v32 = vld [vmem:[%s19483_s6 + $0x198] sm:$0xf]  ;;  %v12576_v29 = vld [vmem:[%s19479_s2 + $0x28] sm:$0xff] }
 0x63b   : > { %v3454_v27 = vsel %vm1064_vm0, %v3337_v13, 0  ;;  %v3309_v15 = vadd.f32 %v3308_v62, %v3260_v46  ;;  %v3299_v62 = vadd.f32 %v14937_v63, %v3250_v2  ;;  %v12571_v63 = vld [vmem:[%s19479_s2] sm:$0xff]  ;;  %v15134_v2 = vor.u32 %v12630_v42, %v10948_v12  ;;  %v10884_v42 = vld [vmem:[%s19483_s6 + $0x18] sm:$0xf] }
 0x63c   : > { %v12601_v13 = vld [vmem:[%s19483_s6 + $0x15c] sm:$0xf0]  ;;  %v12595_v46 = vld [vmem:[%s19483_s6 + $0x104] sm:$0xf] }
 0x63d   : > { %v3334_v45 = vpack.c.bf16 %v3309_v15, %v14943_v49  ;;  %v3332_v5 = vpack.c.bf16 %v3299_v62, %v14935_v55  ;;  %v3294_v49 = vadd.f32 %v14927_v47, %v3245_v60  ;;  %v10860_v47 = vld [vmem:[%s19483_s6 + $0x1c0] sm:$0xf]  ;;  %v15073_v41 = vor.u32 %v12601_v13, %v10828_v39  ;;  %v10814_v15 = vld [vmem:[%s19483_s6 + $0x120] sm:$0xf0]  ;;  %v10772_v39 = vld [vmem:[%s19483_s6 + $0x48] sm:$0xf] }
 0x63e   : > { %v3326_v20 = vpop.f32.mrf.mxu0  ;;  %v12609_v55 = vld [vmem:[%s19483_s6 + $0x1dc] sm:$0xf0]  ;;  %v10798_v60 = vld [vmem:[%s19483_s6 + $0xe0] sm:$0xf0]  ;;  %v12586_v13 = vld [vmem:[%s19483_s6 + $0x64] sm:$0xf0] }
 0x63f   : > { %v3327_v44 = vadd.f32 %v3326_v20, %v3278_v6  ;;  %v3445_v31 = vsel %vm1064_vm0, %v3334_v45, 0  ;;  %v3439_v30 = vsel %vm1064_vm0, %v3332_v5, 0  ;;  %v3331_v36 = vpack.c.bf16 %v3294_v49, %v19557_v57  ;;  %v12610_v20 = vld [vmem:[%s19483_s6 + $0x1e4] sm:$0xf0]  ;;  %v10796_v62 = vld [vmem:[%s19483_s6 + $0xc0] sm:$0xf] }
 0x640   : > { %v14994_v10 = vor.u32 %v12609_v55, %v10860_v47  ;;  %v15021_v28 = vor.u32 %v12610_v20, %v10868_v23  ;;  %v15023_v6 = vor.u32 %v12642_v7, %v10996_v22  ;;  %v12598_v45 = vld [vmem:[%s19483_s6 + $0x124] sm:$0xf0]  ;;  %v15160_v57 = vor.u32 %v12591_v8, %v10798_v60  ;;  %v12589_v47 = vld [vmem:[%s19483_s6 + $0x9c] sm:$0xf0]  ;;  %v12587_v55 = vld [vmem:[%s19483_s6 + $0x84] sm:$0xf] }
 0x641   : > { %v3436_v61 = vsel %vm1064_vm0, %v3331_v36, 0  ;;  %v15131_v48 = vor.u32 %v12598_v45, %v10820_v18  ;;  %v10804_v49 = vld [vmem:[%s19483_s6 + $0xc8] sm:$0xf]  ;;  %v10785_v20 = vor.u32 %v12587_v55, %v10782_v50  ;;  %v10916_v7 = vld [vmem:[%s19483_s6 + $0x98] sm:$0xf]  ;;  %v15236_v16 = vor.u32 %v12586_v13, %v10772_v39 }
 0x642   : > { %3704 = vmatpush.bf16.msra.mxu2 %v14994_v10  ;;  %3762 = vmatpush.bf16.msrb.mxu0 %v15021_v28  ;;  %v12590_v23 = vld [vmem:[%s19483_s6 + $0xa4] sm:$0xf0]  ;;  %v12600_v39 = vld [vmem:[%s19483_s6 + $0x14c] sm:$0xf] }
 0x643   : > { %v15199_v22 = vor.u32 %v12590_v23, %v10788_v40  ;;  %v12582_v18 = vld [vmem:[%s19483_s6 + $0x24] sm:$0xf0]  ;;  %v12604_v23 = vld [vmem:[%s19483_s6 + $0x18c] sm:$0xf] }
 0x644   : > { %v3356_v60 = vld [vmem:[%s19480_s3 + $0x8] sm:$0xff] }
 0x645   : > { %v10838_v13 = vld [vmem:[%s19483_s6 + $0x168] sm:$0xf0] }
 0x646   : > { %v3328_v51 = vpop.f32.mrf.mxu0 }
 0x647   : > { %v3329_v37 = vadd.f32 %v3328_v51, %v3280_v33  ;;  %v12603_v33 = vld [vmem:[%s19483_s6 + $0x184] sm:$0xf]  ;;  %v15035_v51 = vor.u32 %v12605_v11, %v10844_v43  ;;  %v12622_v43 = vld [vmem:[%s19483_s6 + $0xb4] sm:$0xf0]  ;;  %v10764_v11 = vld [vmem:[%s19483_s6 + $0x40] sm:$0xf] }
 0x649   : > { %v3338_v19 = vpack.c.bf16 %v3329_v37, %v3327_v44  ;;  %v10846_v44 = vld [vmem:[%s19483_s6 + $0x1a0] sm:$0xf0]  ;;  %v10852_v37 = vld [vmem:[%s19483_s6 + $0x188] sm:$0xf]  ;;  %3705 = vmatpush.bf16.msra.mxu2 %v15035_v51 }
 0x64a   : > { %v15048_v35 = vor.u32 %v12603_v33, %v10846_v44  ;;  %v15212_v33 = vor.u32 %v12622_v43, %v10916_v7  ;;  %v12585_v44 = vld [vmem:[%s19483_s6 + $0x5c] sm:$0xf0]  ;;  %v10972_v7 = vld [vmem:[%s19483_s6 + $0x190] sm:$0xf] }
 0x64b   : > { %v3457_v17 = vsel %vm1064_vm0, %v3338_v19, 0  ;;  %v15050_v19 = vor.u32 %v12606_v58, %v10852_v37  ;;  %v12583_v37 = vld [vmem:[%s19483_s6 + $0x44] sm:$0xf] }
 0x64c   : > { %3459 = vmatpush.bf16.xpose.msrb.mxu1 %v3457_v17  ;;  %v12638_v17 = vld [vmem:[%s19483_s6 + $0x1b4] sm:$0xf0]  ;;  %3734 = vmatpush.bf16.msrb.mxu3 %v15048_v35  ;;  %19558 = vst [vmem:[#allocation3_spill] sm:$0xff] %v15212_v33  ;;  %v10766_v58 = vld [vmem:[%s19483_s6 + $0x60] sm:$0xf0] }
 0x64d   : > { %v15062_v1 = vor.u32 %v12638_v17, %v10980_v32  ;;  %3763 = vmatpush.bf16.msrb.mxu0 %v15050_v19  ;;  %3706 = vmatpush.bf16.msra.mxu2 %v15073_v41  ;;  %v15224_v32 = vor.u32 %v12585_v44, %v10764_v11  ;;  %v10769_v17 = vor.u32 %v12583_v37, %v10766_v58  ;;  %v12637_v11 = vld [vmem:[%s19483_s6 + $0x1ac] sm:$0xf0]  ;;  %v12635_v44 = vld [vmem:[%s19483_s6 + $0x194] sm:$0xf] }
 0x64e   : > { %v10974_v37 = vld [vmem:[%s19483_s6 + $0x1b0] sm:$0xf0]  ;;  %v10973_v58 = vor.u32 %v12637_v11, %v10972_v7 }
 0x64f   : > { %v10926_v7 = vld [vmem:[%s19483_s6 + $0xf0] sm:$0xf0] }
 0x650   : > { %3735 = vmatpush.bf16.msrb.mxu3 %v15085_v21 }
 0x654   : > { %3460 = vmatpush.bf16.xpose.msrb.mxu1 %v3454_v27  ;;  %v10836_v27 = vld [vmem:[%s19483_s6 + $0x148] sm:$0xf] }
 0x655   : > { %v15098_v26 = vor.u32 %v12602_v56, %v10836_v27  ;;  %v12618_v27 = vld [vmem:[%s19483_s6 + $0x74] sm:$0xf0] }
 0x656   : > { %v15241_v56 = vor.u32 %v12618_v27, %v10900_v53  ;;  %v10956_v53 = vld [vmem:[%s19483_s6 + $0x150] sm:$0xf]  ;;  %v15356_v27 = vor.u32 %v12600_v39, %v10838_v13 }
 0x657   : > { %3764 = vmatpush.bf16.msrb.mxu0 %v15098_v26  ;;  %v10908_v39 = vld [vmem:[%s19483_s6 + $0x90] sm:$0xf] }
 0x658   : > { %19559 = vst [vmem:[#allocation4_spill] sm:$0xff] %v15241_v56 }
 0x65b   : > { %3765 = vmatpush.bf16.msrb.mxu0 %v15131_v48 }
 0x65c   : > { %3461 = vmatpush.bf16.xpose.msrb.mxu1 %v3451_v54  ;;  %v12597_v54 = vld [vmem:[%s19483_s6 + $0x11c] sm:$0xf0] }
 0x664   : > { %3462 = vmatpush.bf16.xpose.msrb.mxu1 %v3448_v3  ;;  %v15109_v3 = vor.u32 %v12597_v54, %v10812_v24  ;;  %v12579_v24 = vld [vmem:[%s19483_s6 + $0x4] sm:$0xf]  ;;  %v15255_v54 = vor.u32 %v12581_v59, %v10748_v38  ;;  %v12633_v38 = vld [vmem:[%s19483_s6 + $0x16c] sm:$0xf0]  ;;  %v12631_v59 = vld [vmem:[%s19483_s6 + $0x154] sm:$0xf] }
 0x666   : > { %3707 = vmatpush.bf16.msra.mxu2 %v15109_v3 }
 0x66c   : > { %3463 = vmatpush.bf16.xpose.msrb.mxu1 %v3445_v31  ;;  %v15124_v31 = vor.u32 %v12595_v46, %v10814_v15  ;;  %v10750_v46 = vld [vmem:[%s19483_s6 + $0x20] sm:$0xf0]  ;;  %v10756_v15 = vld [vmem:[%s19483_s6 + $0x8] sm:$0xf] }
 0x66d   : > { %v10753_v45 = vor.u32 %v12579_v24, %v10750_v46  ;;  %v15266_v12 = vor.u32 %v12582_v18, %v10756_v15  ;;  %v10958_v24 = vld [vmem:[%s19483_s6 + $0x170] sm:$0xf0]  ;;  %v10957_v46 = vor.u32 %v12633_v38, %v10956_v53  ;;  %v12621_v53 = vld [vmem:[%s19483_s6 + $0xac] sm:$0xf0] }
 0x66e   : > { %3736 = vmatpush.bf16.msrb.mxu3 %v15124_v31  ;;  %v15368_v15 = vor.u32 %v12631_v59, %v10958_v24  ;;  %v3357_v18 = vld [vmem:[%s19480_s3 + $0x10] sm:$0xff] }
 0x66f   : > { %v12619_v38 = vld [vmem:[%s19483_s6 + $0x94] sm:$0xf] }
 0x670   : > { %v10910_v59 = vld [vmem:[%s19483_s6 + $0xb0] sm:$0xf0] }
 0x672   : > { %3737 = vmatpush.bf16.msrb.mxu3 %v15160_v57 }
 0x674   : > { %3464 = vmatpush.bf16.xpose.msrb.mxu1 %v3442_v4  ;;  %v12593_v4 = vld [vmem:[%s19483_s6 + $0xdc] sm:$0xf0] }
 0x675   : > { %v15149_v5 = vor.u32 %v12593_v4, %v10796_v62  ;;  %v12578_v4 = vld [vmem:[%s19479_s2 + $0x38] sm:$0xff] }
 0x676   : > { %3738 = vmatpush.bf16.msrb.mxu3 %v10785_v20 }
 0x677   : > { %3708 = vmatpush.bf16.msra.mxu2 %v15149_v5 }
 0x67a   : > { %3739 = vmatpush.bf16.msrb.mxu3 %v10769_v17 }
 0x67c   : > { %3465 = vmatpush.bf16.xpose.msrb.mxu1 %v3439_v30  ;;  %v12594_v30 = vld [vmem:[%s19483_s6 + $0xe4] sm:$0xf0] }
 0x67d   : > { %v15162_v36 = vor.u32 %v12594_v30, %v10804_v49 }
 0x67e   : > { %3740 = vmatpush.bf16.msrb.mxu3 %v10753_v45 }
 0x67f   : > { %3766 = vmatpush.bf16.msrb.mxu0 %v15162_v36 }
 0x683   : > { %3767 = vmatpush.bf16.msrb.mxu0 %v15199_v22 }
 0x684   : > { %3466 = vmatpush.bf16.xpose.msrb.mxu1 %v3436_v61  ;;  %v10932_v61 = vld [vmem:[%s19483_s6 + $0xd8] sm:$0xf] }
 0x687   : > { %3768 = vmatpush.bf16.msrb.mxu0 %v15236_v16 }
 0x68b   : > { %10738 = vmatmul.msk.bf16.vlgmr.msrb.gmra.mxu1 %vm1064_vm0, %v12571_v63  ;;  %v12626_v63 = vld [vmem:[%s19483_s6 + $0xf4] sm:$0xf0]  ;;  %3769 = vmatpush.bf16.msrb.mxu0 %v15266_v12 }
 0x68c   : > { %4190 = vmatpush.bf16.msra.mxu1 %v15023_v6 }
 0x690   : > { %4191 = vmatpush.bf16.msra.mxu1 %v15062_v1 }
 0x694   : > { %4192 = vmatpush.bf16.msra.mxu1 %v15100_v34 }
 0x698   : > { %4193 = vmatpush.bf16.msra.mxu1 %v15134_v2 }
 0x69b   : > { %10739 = vmatmul.msk.bf16.gmra.mxu1 %vm1064_vm0, %v12572_v9  ;;  %v15171_v9 = vor.u32 %v12626_v63, %v10932_v61  ;;  %v10988_v61 = vld [vmem:[%s19483_s6 + $0x1d0] sm:$0xf] }
 0x69d   : > { %4194 = vmatpush.bf16.msra.mxu1 %v15171_v9 }
 0x6a1   : > { %4195 = vmatpush.bf16.msra.mxu1 %v15212_v33 }
 0x6a5   : > { %4196 = vmatpush.bf16.msra.mxu1 %v15241_v56 }
 0x6ab   : > { %10740 = vmatmul.msk.bf16.gmra.mxu1 %vm1064_vm0, %v12573_v0  ;;  %v12577_v0 = vld [vmem:[%s19479_s2 + $0x30] sm:$0xff] }
 0x6bb   : > { %10741 = vmatmul.msk.bf16.gmra.mxu1 %vm1064_vm0, %v12574_v14  ;;  %v10780_v14 = vld [vmem:[%s19483_s6 + $0x80] sm:$0xf] }
 0x6cb   : > { %10742 = vmatmul.msk.bf16.gmra.mxu1 %vm1064_vm0, %v12575_v25  ;;  %v15188_v25 = vor.u32 %v12589_v47, %v10780_v14  ;;  %v12639_v14 = vld [vmem:[%s19483_s6 + $0x1d4] sm:$0xf] }
 0x6cc   : > { %v10990_v47 = vld [vmem:[%s19483_s6 + $0x1f0] sm:$0xf0] }
 0x6cd   : > { %3709 = vmatpush.bf16.msra.mxu2 %v15188_v25  ;;  %v15320_v50 = vor.u32 %v12639_v14, %v10990_v47  ;;  %v12592_v14 = vld [vmem:[%s19483_s6 + $0xcc] sm:$0xf] }
 0x6ce   : > { %v10806_v47 = vld [vmem:[%s19483_s6 + $0xe8] sm:$0xf0] }
 0x6cf   : > { %4161 = vmatpush.bf16.msra.mxu0 %v15320_v50 }
 0x6d1   : > { %3710 = vmatpush.bf16.msra.mxu2 %v15224_v32 }
 0x6d5   : > { %3711 = vmatpush.bf16.msra.mxu2 %v15255_v54 }
 0x6db   : > { %10743 = vmatmul.msk.bf16.gmra.mxu1 %vm1064_vm0, %v12576_v29  ;;  %v12614_v29 = vld [vmem:[%s19483_s6 + $0x34] sm:$0xf0] }
 0x6dc   : > { %v15275_v62 = vor.u32 %v12614_v29, %v10884_v42  ;;  %v12596_v29 = vld [vmem:[%s19483_s6 + $0x10c] sm:$0xf] }
 0x6de   : > { %19560 = vst [vmem:[#allocation5_spill] sm:$0xff] %v15275_v62  ;;  %4197 = vmatpush.bf16.msra.mxu1 %v15275_v62 }
 0x6e2   : > { %4558 = vmatpush.bf16.msrb.mxu1 %v15010_v52  ;;  %v3355_v52 = vld [vmem:[%s19480_s3] sm:$0xff] }
 0x6e6   : > { %4559 = vmatpush.bf16.msrb.mxu1 %v15048_v35 }
 0x6ea   : > { %4560 = vmatpush.bf16.msrb.mxu1 %v15085_v21 }
 0x6eb   : > { %10744 = vmatmul.msk.bf16.gmra.mxu1 %vm1064_vm0, %v12577_v0  ;;  %v12641_v0 = vld [vmem:[%s19483_s6 + $0x1ec] sm:$0xf0] }
 0x6ec   : > { %v10989_v55 = vor.u32 %v12641_v0, %v10988_v61 }
 0x6ee   : > { %4561 = vmatpush.bf16.msrb.mxu1 %v15124_v31  ;;  %v12608_v31 = vld [vmem:[%s19483_s6 + $0x1cc] sm:$0xf]  ;;  %4132 = vmatpush.bf16.msra.mxu3 %v10989_v55 }
 0x6f2   : > { %4562 = vmatpush.bf16.msrb.mxu1 %v15160_v57  ;;  %v10870_v57 = vld [vmem:[%s19483_s6 + $0x1e8] sm:$0xf0]  ;;  %4133 = vmatpush.bf16.msra.mxu3 %v10973_v58 }
 0x6f3   : > { %v15307_v63 = vor.u32 %v12608_v31, %v10870_v57  ;;  %v10942_v31 = vld [vmem:[%s19483_s6 + $0x130] sm:$0xf0] }
 0x6f5   : > { %3791 = vmatpush.bf16.msrb.mxu2 %v15307_v63 }
 0x6f6   : > { %4563 = vmatpush.bf16.msrb.mxu1 %v10785_v20  ;;  %v10854_v20 = vld [vmem:[%s19483_s6 + $0x1a8] sm:$0xf0]  ;;  %4134 = vmatpush.bf16.msra.mxu3 %v10957_v46 }
 0x6f7   : > { %v15333_v43 = vor.u32 %v12604_v23, %v10854_v20  ;;  %v12625_v23 = vld [vmem:[%s19483_s6 + $0xec] sm:$0xf0]  ;;  %v12623_v20 = vld [vmem:[%s19483_s6 + $0xd4] sm:$0xf] }
 0x6f9   : > { %3792 = vmatpush.bf16.msrb.mxu2 %v15333_v43 }
 0x6fa   : > { %4564 = vmatpush.bf16.msrb.mxu1 %v10769_v17  ;;  %v15344_v17 = vor.u32 %v12635_v44, %v10974_v37  ;;  %v15428_v44 = vor.u32 %v12623_v20, %v10926_v7  ;;  %v12588_v37 = vld [vmem:[%s19483_s6 + $0x8c] sm:$0xf]  ;;  %v3359_v20 = vld [vmem:[%s19480_s3 + $0x20] sm:$0xff] }
 0x6fb   : > { %10745 = vmatmul.msk.bf16.gmra.mxu1 %vm1064_vm0, %v12578_v4  ;;  %v10822_v4 = vld [vmem:[%s19483_s6 + $0x128] sm:$0xf0] }
 0x6fc   : > { %4162 = vmatpush.bf16.msra.mxu0 %v15344_v17  ;;  %v3360_v7 = vld [vmem:[%s19480_s3 + $0x28] sm:$0xff] }
 0x6fd   : > { %3793 = vmatpush.bf16.msrb.mxu2 %v15356_v27 }
 0x6fe   : > { %4565 = vmatpush.bf16.msrb.mxu1 %v10753_v45  ;;  %v3358_v45 = vld [vmem:[%s19480_s3 + $0x18] sm:$0xff] }
 0x700   : > { %4163 = vmatpush.bf16.msra.mxu0 %v15368_v15 }
 0x708   : > { %v3468_v8 = vpop.f32.mrf.mxu1 }
 0x709   : > { %v3469_v49 = vadd.f32 %v3468_v8, %v3355_v52  ;;  %v10940_v8 = vld [vmem:[%s19483_s6 + $0x110] sm:$0xf] }
 0x710   : > { %v3470_v35 = vpop.f32.mrf.mxu1 }
 0x711   : > { %v3471_v30 = vadd.f32 %v3470_v35, %v3356_v60  ;;  %v15387_v35 = vor.u32 %v12596_v29, %v10822_v4  ;;  %v10892_v29 = vld [vmem:[%s19483_s6 + $0x50] sm:$0xf] }
 0x712   : > { %v12617_v4 = vld [vmem:[%s19483_s6 + $0x6c] sm:$0xf0] }
 0x713   : > { %v15294_v21 = vpack.c.bf16 %v3471_v30, %v3469_v49  ;;  %v12629_v49 = vld [vmem:[%s19483_s6 + $0x12c] sm:$0xf0]  ;;  %v12627_v30 = vld [vmem:[%s19483_s6 + $0x114] sm:$0xf]  ;;  %3794 = vmatpush.bf16.msrb.mxu2 %v15387_v35 }
 0x714   : > { %v10941_v57 = vor.u32 %v12629_v49, %v10940_v8  ;;  %v15398_v61 = vor.u32 %v12627_v30, %v10942_v31  ;;  %v12615_v8 = vld [vmem:[%s19483_s6 + $0x54] sm:$0xf]  ;;  %v10893_v49 = vor.u32 %v12617_v4, %v10892_v29  ;;  %v12580_v31 = vld [vmem:[%s19483_s6 + $0xc] sm:$0xf] }
 0x715   : > { %3712 = vmatmul.bf16.vlgmr.msra.gmra.mxu2 %v15294_v21  ;;  %3741 = vmatmul.bf16.vlgmr.msrb.gmra.mxu3 %v15294_v21 }
 0x716   : > { %3770 = vmatmul.bf16.vlgmr.msrb.gmra.mxu0 %v15294_v21  ;;  %4198 = vmatmul.bf16.vlgmr.msra.gmra.mxu1 %v15294_v21 }
 0x717   : > { %4765 = vmatpush.bf16.msra.mxu1 %v10989_v55  ;;  %4135 = vmatpush.bf16.msra.mxu3 %v10941_v57  ;;  %v10924_v55 = vld [vmem:[%s19483_s6 + $0xd0] sm:$0xf] }
 0x718   : > { %v3473_v40 = vpop.f32.mrf.mxu1  ;;  %4164 = vmatpush.bf16.msra.mxu0 %v15398_v61  ;;  %v10925_v11 = vor.u32 %v12625_v23, %v10924_v55  ;;  %v12611_v55 = vld [vmem:[%s19483_s6 + $0x14] sm:$0xf] }
 0x719   : > { %v3474_v52 = vadd.f32 %v3473_v40, %v3357_v18  ;;  %v15415_v40 = vor.u32 %v12592_v14, %v10806_v47  ;;  %v15452_v18 = vor.u32 %v12619_v38, %v10910_v59  ;;  %v10876_v14 = vld [vmem:[%s19483_s6 + $0x10] sm:$0xf]  ;;  %v10878_v23 = vld [vmem:[%s19483_s6 + $0x30] sm:$0xf0] }
 0x71a   : > { %v12613_v47 = vld [vmem:[%s19483_s6 + $0x2c] sm:$0xf0] }
 0x71b   : > { %4766 = vmatpush.bf16.msra.mxu1 %v10973_v58  ;;  %v10790_v58 = vld [vmem:[%s19483_s6 + $0xa8] sm:$0xf0]  ;;  %3795 = vmatpush.bf16.msrb.mxu2 %v15415_v40 }
 0x71c   : > { %v15440_v13 = vor.u32 %v12588_v37, %v10790_v58  ;;  %4136 = vmatpush.bf16.msra.mxu3 %v10925_v11  ;;  %4165 = vmatpush.bf16.msra.mxu0 %v15428_v44  ;;  %v10877_v58 = vor.u32 %v12613_v47, %v10876_v14  ;;  %v10950_v14 = vld [vmem:[%s19483_s6 + $0x138] sm:$0xf0] }
 0x71f   : > { %4767 = vmatpush.bf16.msra.mxu1 %v10957_v46  ;;  %v10909_v46 = vor.u32 %v12621_v53, %v10908_v39  ;;  %3796 = vmatpush.bf16.msrb.mxu2 %v15440_v13  ;;  %v15506_v39 = vor.u32 %v12611_v55, %v10878_v23  ;;  %v10934_v23 = vld [vmem:[%s19483_s6 + $0xf8] sm:$0xf0] }
 0x720   : > { %v3475_v42 = vpop.f32.mrf.mxu1  ;;  %4166 = vmatpush.bf16.msra.mxu0 %v15452_v18 }
 0x721   : > { %v3476_v60 = vadd.f32 %v3475_v42, %v3358_v45  ;;  %v12584_v45 = vld [vmem:[%s19483_s6 + $0x4c] sm:$0xf]  ;;  %4137 = vmatpush.bf16.msra.mxu3 %v10909_v46 }
 0x722   : > { %v10774_v42 = vld [vmem:[%s19483_s6 + $0x68] sm:$0xf0] }
 0x723   : > { %v15400_v0 = vpack.c.bf16 %v3476_v60, %v3474_v52  ;;  %4768 = vmatpush.bf16.msra.mxu1 %v10941_v57  ;;  %v10894_v52 = vld [vmem:[%s19483_s6 + $0x70] sm:$0xf0]  ;;  %v15473_v60 = vor.u32 %v12584_v45, %v10774_v42  ;;  %v10758_v57 = vld [vmem:[%s19483_s6 + $0x28] sm:$0xf0]  ;;  %v3362_v45 = vld [vmem:[%s19480_s3 + $0x38] sm:$0xff] }
 0x724   : > { %v15476_v30 = vor.u32 %v12615_v8, %v10894_v52 }
 0x725   : > { %3717 = vmatmul.bf16.gmra.mxu2 %v15400_v0  ;;  %3746 = vmatmul.bf16.gmra.mxu3 %v15400_v0 }
 0x726   : > { %3775 = vmatmul.bf16.gmra.mxu0 %v15400_v0  ;;  %4203 = vmatmul.bf16.gmra.mxu1 %v15400_v0 }
 0x727   : > { %4769 = vmatpush.bf16.msra.mxu1 %v10925_v11  ;;  %3797 = vmatpush.bf16.msrb.mxu2 %v15473_v60  ;;  %v15503_v11 = vor.u32 %v12580_v31, %v10758_v57  ;;  %v10966_v31 = vld [vmem:[%s19483_s6 + $0x178] sm:$0xf0] }
 0x728   : > { %v3478_v24 = vpop.f32.mrf.mxu1  ;;  %4138 = vmatpush.bf16.msra.mxu3 %v10893_v49  ;;  %4167 = vmatpush.bf16.msra.mxu0 %v15476_v30 }
 0x729   : > { %v3479_v53 = vadd.f32 %v3478_v24, %v3359_v20 }
 0x72b   : > { %4770 = vmatpush.bf16.msra.mxu1 %v10909_v46  ;;  %3798 = vmatpush.bf16.msrb.mxu2 %v15503_v11  ;;  %v3361_v46 = vld [vmem:[%s19480_s3 + $0x30] sm:$0xff] }
 0x72c   : > { %4139 = vmatpush.bf16.msra.mxu3 %v10877_v58  ;;  %4168 = vmatpush.bf16.msra.mxu0 %v15506_v39 }
 0x72f   : > { %4771 = vmatpush.bf16.msra.mxu1 %v10893_v49  ;;  %v12632_v49 = vld [vmem:[%s19483_s6 + $0x15c] sm:$0xf] }
 0x730   : > { %v3480_v37 = vpop.f32.mrf.mxu1  ;;  %4529 = vmatpush.bf16.msrb.mxu0 %v14994_v10  ;;  %v15570_v57 = vor.u32 %v12632_v49, %v10966_v31 }
 0x731   : > { %v3481_v38 = vadd.f32 %v3480_v37, %v3360_v7  ;;  %v12616_v37 = vld [vmem:[%s19483_s6 + $0x5c] sm:$0xf] }
 0x732   : > { %19563 = vst [vmem:[#allocation8_spill] sm:$0xff] %v15570_v57 }
 0x733   : > { %v15508_v59 = vpack.c.bf16 %v3481_v38, %v3479_v53  ;;  %4772 = vmatpush.bf16.msra.mxu1 %v10877_v58  ;;  %v10902_v58 = vld [vmem:[%s19483_s6 + $0x78] sm:$0xf0] }
 0x734   : > { %4530 = vmatpush.bf16.msrb.mxu0 %v15035_v51  ;;  %v15617_v38 = vor.u32 %v12616_v37, %v10902_v58 }
 0x735   : > { %3722 = vmatmul.bf16.gmra.mxu2 %v15508_v59  ;;  %3751 = vmatmul.bf16.gmra.mxu3 %v15508_v59 }
 0x736   : > { %3780 = vmatmul.bf16.gmra.mxu0 %v15508_v59  ;;  %4208 = vmatmul.bf16.gmra.mxu1 %v15508_v59  ;;  %19567 = vst [vmem:[#allocation12_spill] sm:$0xff] %v15617_v38 }
 0x738   : > { %v3483_v24 = vpop.f32.mrf.mxu1  ;;  %4531 = vmatpush.bf16.msrb.mxu0 %v15073_v41  ;;  %v12640_v41 = vld [vmem:[%s19483_s6 + $0x1dc] sm:$0xf] }
 0x739   : > { %v3484_v29 = vadd.f32 %v3483_v24, %v3361_v46  ;;  %v10886_v24 = vld [vmem:[%s19483_s6 + $0x38] sm:$0xf0] }
 0x73c   : > { %4532 = vmatpush.bf16.msrb.mxu0 %v15109_v3  ;;  %v10998_v3 = vld [vmem:[%s19483_s6 + $0x1f8] sm:$0xf0] }
 0x740   : > { %v3485_v42 = vpop.f32.mrf.mxu1  ;;  %4533 = vmatpush.bf16.msrb.mxu0 %v15149_v5  ;;  %v15548_v5 = vor.u32 %v12640_v41, %v10998_v3  ;;  %v3365_v3 = vld [vmem:[%s19480_s3 + $0x50] sm:$0xff] }
 0x741   : > { %v3486_v4 = vadd.f32 %v3485_v42, %v3362_v45 }
 0x742   : > { %19561 = vst [vmem:[#allocation6_spill] sm:$0xff] %v15548_v5  ;;  %4219 = vmatpush.bf16.msra.mxu2 %v15548_v5 }
 0x743   : > { %v15525_v8 = vpack.c.bf16 %v3486_v4, %v3484_v29 }
 0x744   : > { %4534 = vmatpush.bf16.msrb.mxu0 %v15188_v25  ;;  %v12636_v25 = vld [vmem:[%s19483_s6 + $0x19c] sm:$0xf] }
 0x745   : > { %3727 = vmatmul.bf16.gmra.mxu2 %v15525_v8  ;;  %3756 = vmatmul.bf16.gmra.mxu3 %v15525_v8 }
 0x746   : > { %3785 = vmatmul.bf16.gmra.mxu0 %v15525_v8  ;;  %4213 = vmatmul.bf16.gmra.mxu1 %v15525_v8 }
 0x748   : > { %v15533_v10 = vpop.f32.mrf.mxu1  ;;  %4535 = vmatpush.bf16.msrb.mxu0 %v15224_v32  ;;  %v10982_v32 = vld [vmem:[%s19483_s6 + $0x1b8] sm:$0xf0] }
 0x74c   : > { %4536 = vmatpush.bf16.msrb.mxu0 %v15255_v54  ;;  %v15558_v54 = vor.u32 %v12636_v25, %v10982_v32 }
 0x74e   : > { %19562 = vst [vmem:[#allocation7_spill] sm:$0xff] %v15558_v54  ;;  %4220 = vmatpush.bf16.msra.mxu2 %v15558_v54 }
 0x750   : > { %v15537_v51 = vpop.f32.mrf.mxu1 }
 0x752   : > { %4221 = vmatpush.bf16.msra.mxu2 %v15570_v57 }
 0x755   : > { %3799 = vmatmul.bf16.vlgmr.msrb.gmra.mxu2 %v15294_v21  ;;  %4140 = vmatmul.bf16.vlgmr.msra.gmra.mxu3 %v15294_v21 }
 0x756   : > { %4169 = vmatmul.bf16.vlgmr.msra.gmra.mxu0 %v15294_v21 }
 0x757   : > { %4616 = vmatpush.bf16.msra.mxu0 %v15307_v63  ;;  %v12628_v63 = vld [vmem:[%s19483_s6 + $0x11c] sm:$0xf] }
 0x758   : > { %v15561_v52 = vpop.f32.mrf.mxu1  ;;  %v15580_v47 = vor.u32 %v12628_v63, %v10950_v14 }
 0x759   : > { %v15674_v49 = vadd.f32 %v15561_v52, %v3365_v3 }
 0x75a   : > { %19564 = vst [vmem:[#allocation9_spill] sm:$0xff] %v15580_v47  ;;  %4222 = vmatpush.bf16.msra.mxu2 %v15580_v47 }
 0x75b   : > { %4617 = vmatpush.bf16.msra.mxu0 %v15333_v43  ;;  %v12624_v43 = vld [vmem:[%s19483_s6 + $0xdc] sm:$0xf] }
 0x75c   : > { %v15595_v20 = vor.u32 %v12624_v43, %v10934_v23 }
 0x75e   : > { %19565 = vst [vmem:[#allocation10_spill] sm:$0xff] %v15595_v20  ;;  %4223 = vmatpush.bf16.msra.mxu2 %v15595_v20 }
 0x75f   : > { %4618 = vmatpush.bf16.msra.mxu0 %v15356_v27  ;;  %v12620_v27 = vld [vmem:[%s19483_s6 + $0x9c] sm:$0xf] }
 0x760   : > { %v15583_v55 = vpop.f32.mrf.mxu1 }
 0x763   : > { %4619 = vmatpush.bf16.msra.mxu0 %v15387_v35  ;;  %v10918_v35 = vld [vmem:[%s19483_s6 + $0xb8] sm:$0xf0] }
 0x764   : > { %v15605_v7 = vor.u32 %v12620_v27, %v10918_v35 }
 0x765   : > { %3804 = vmatmul.bf16.gmra.mxu2 %v15400_v0  ;;  %4145 = vmatmul.bf16.gmra.mxu3 %v15400_v0 }
 0x766   : > { %4174 = vmatmul.bf16.gmra.mxu0 %v15400_v0  ;;  %19566 = vst [vmem:[#allocation11_spill] sm:$0xff] %v15605_v7  ;;  %4224 = vmatpush.bf16.msra.mxu2 %v15605_v7 }
 0x767   : > { %4620 = vmatpush.bf16.msra.mxu0 %v15415_v40  ;;  %v12612_v40 = vld [vmem:[%s19483_s6 + $0x1c] sm:$0xf] }
 0x768   : > { %v15614_v53 = vpop.f32.mrf.mxu1  ;;  %v15628_v46 = vor.u32 %v12612_v40, %v10886_v24 }
 0x76a   : > { %4225 = vmatpush.bf16.msra.mxu2 %v15617_v38  ;;  %19568 = vst [vmem:[#allocation13_spill] sm:$0xff] %v15628_v46 }
 0x76b   : > { %4621 = vmatpush.bf16.msra.mxu0 %v15440_v13 }
 0x76e   : > { %4226 = vmatpush.bf16.msra.mxu2 %v15628_v46 }
 0x76f   : > { %4622 = vmatpush.bf16.msra.mxu0 %v15473_v60 }
 0x770   : > { %v15635_v13 = vpop.f32.mrf.mxu1 }
 0x772   : > { %4587 = vmatpush.bf16.msrb.mxu2 %v15021_v28 }
 0x773   : > { %4623 = vmatpush.bf16.msra.mxu0 %v15503_v11 }
 0x775   : > { %3809 = vmatmul.bf16.gmra.mxu2 %v15508_v59  ;;  %4150 = vmatmul.bf16.gmra.mxu3 %v15508_v59 }
 0x776   : > { %4179 = vmatmul.bf16.gmra.mxu0 %v15508_v59  ;;  %4588 = vmatpush.bf16.msrb.mxu2 %v15050_v19  ;;  %v3363_v19 = vld [vmem:[%s19480_s3 + $0x40] sm:$0xff] }
 0x778   : > { %v15640_v60 = vpop.f32.mrf.mxu1 }
 0x77a   : > { %4589 = vmatpush.bf16.msrb.mxu2 %v15098_v26  ;;  %v15655_v26 = vadd.f32 %v15533_v10, %v3363_v19 }
 0x77e   : > { %4590 = vmatpush.bf16.msrb.mxu2 %v15131_v48 }
 0x780   : > { %v15648_v28 = vpop.f32.mrf.mxu1 }
 0x782   : > { %4591 = vmatpush.bf16.msrb.mxu2 %v15162_v36 }
 0x785   : > { %3814 = vmatmul.bf16.gmra.mxu2 %v15525_v8  ;;  %4155 = vmatmul.bf16.gmra.mxu3 %v15525_v8 }
 0x786   : > { %4184 = vmatmul.bf16.gmra.mxu0 %v15525_v8  ;;  %4592 = vmatpush.bf16.msrb.mxu2 %v15199_v22 }
 0x78a   : > { %4593 = vmatpush.bf16.msrb.mxu2 %v15236_v16 }
 0x78e   : > { %4594 = vmatpush.bf16.msrb.mxu2 %v15266_v12 }
 0x793   : > { %v3771_v48 = vpop.f32.mrf.mxu0  ;;  %v4199_v36 = vpop.f32.mrf.mxu1 }
 0x794   : > { %v3876_v11 = vadd.f32 %v3771_v48, %v15655_v26  ;;  %v15660_v45 = vadd.f32 %v4199_v36, %v15655_v26 }
 0x795   : > { %4227 = vmatmul.bf16.vlgmr.msra.gmra.mxu2 %v15294_v21 }
 0x796   : > { %4794 = vmatpush.bf16.msra.mxu2 %v15320_v50  ;;  %v3884_v12 = vmul.f32 0.2, %v3876_v11 }
 0x798   : > { %v3713_v22 = vpop.f32.mrf.mxu2  ;;  %v3742_v16 = vpop.f32.mrf.mxu3  ;;  %v3892_v50 = vmax.f32 %v3876_v11, %v3884_v12 }
 0x799   : > { %v3820_v42 = vadd.f32 %v3713_v22, %v15655_v26  ;;  %v3844_v29 = vadd.f32 %v3742_v16, %v15655_v26 }
 0x79a   : > { %4795 = vmatpush.bf16.msra.mxu2 %v15344_v17 }
 0x79b   : > { %v3828_v4 = vmul.f32 0.2, %v3820_v42  ;;  %v3852_v10 = vmul.f32 0.2, %v3844_v29  ;;  %v15667_v41 = vpop.f32.mrf.mxu0 }
 0x79d   : > { %v3836_v21 = vmax.f32 %v3820_v42, %v3828_v4  ;;  %v3860_v25 = vmax.f32 %v3844_v29, %v3852_v10 }
 0x79e   : > { %4796 = vmatpush.bf16.msra.mxu2 %v15368_v15 }
 0x79f   : > { %v3868_v32 = vmax.f32 %v3836_v21, %v3860_v25 }
 0x7a0   : > { %v15676_v31 = vpop.f32.mrf.mxu2  ;;  %v15678_v17 = vpop.f32.mrf.mxu3 }
 0x7a1   : > { %v15680_v63 = vmax.f32 %v3868_v32, %v3892_v50  ;;  %v3369_v32 = vld [vmem:[%s19480_s3 + $0x70] sm:$0xff] }
 0x7a2   : > { %4797 = vmatpush.bf16.msra.mxu2 %v15398_v61  ;;  %v3367_v61 = vld [vmem:[%s19480_s3 + $0x60] sm:$0xff] }
 0x7a3   : > { %v3776_v14 = vpop.f32.mrf.mxu0  ;;  %v15696_v48 = vadd.f32 %v15614_v53, %v3367_v61 }
 0x7a4   : > { %v3878_v43 = vadd.f32 %v3776_v14, %v15674_v49 }
 0x7a5   : > { %4232 = vmatmul.bf16.gmra.mxu2 %v15400_v0 }
 0x7a6   : > { %4798 = vmatpush.bf16.msra.mxu2 %v15428_v44  ;;  %v3886_v35 = vmul.f32 0.2, %v3878_v43 }
 0x7a8   : > { %v3718_v15 = vpop.f32.mrf.mxu2  ;;  %v3747_v23 = vpop.f32.mrf.mxu3  ;;  %v3894_v44 = vmax.f32 %v3878_v43, %v3886_v35 }
 0x7a9   : > { %v3822_v52 = vadd.f32 %v3718_v15, %v15674_v49  ;;  %v3846_v27 = vadd.f32 %v3747_v23, %v15674_v49  ;;  %v15721_v15 = vadd.f32 %v15640_v60, %v3369_v32 }
 0x7aa   : > { %4799 = vmatpush.bf16.msra.mxu2 %v15452_v18 }
 0x7ab   : > { %v3830_v37 = vmul.f32 0.2, %v3822_v52  ;;  %v3854_v58 = vmul.f32 0.2, %v3846_v27  ;;  %v15689_v40 = vpop.f32.mrf.mxu0 }
 0x7ad   : > { %v3838_v0 = vmax.f32 %v3822_v52, %v3830_v37  ;;  %v3862_v24 = vmax.f32 %v3846_v27, %v3854_v58 }
 0x7ae   : > { %4800 = vmatpush.bf16.msra.mxu2 %v15476_v30 }
 0x7af   : > { %v3870_v19 = vmax.f32 %v3838_v0, %v3862_v24 }
 0x7b0   : > { %v15698_v36 = vpop.f32.mrf.mxu2  ;;  %v15700_v18 = vpop.f32.mrf.mxu3 }
 0x7b1   : > { %v15702_v11 = vmax.f32 %v3870_v19, %v3894_v44 }
 0x7b2   : > { %4801 = vmatpush.bf16.msra.mxu2 %v15506_v39 }
 0x7b3   : > { %v3781_v22 = vpop.f32.mrf.mxu0 }
 0x7b4   : > { %v3880_v16 = vadd.f32 %v3781_v22, %v15696_v48 }
 0x7b5   : > { %4237 = vmatmul.bf16.gmra.mxu2 %v15508_v59 }
 0x7b6   : > { %v3888_v12 = vmul.f32 0.2, %v3880_v16 }
 0x7b8   : > { %v3723_v42 = vpop.f32.mrf.mxu2  ;;  %v3752_v30 = vpop.f32.mrf.mxu3  ;;  %v3896_v50 = vmax.f32 %v3880_v16, %v3888_v12 }
 0x7b9   : > { %v3824_v29 = vadd.f32 %v3723_v42, %v15696_v48  ;;  %v3848_v53 = vadd.f32 %v3752_v30, %v15696_v48 }
 0x7bb   : > { %v3832_v4 = vmul.f32 0.2, %v3824_v29  ;;  %v3856_v10 = vmul.f32 0.2, %v3848_v53  ;;  %v15709_v3 = vpop.f32.mrf.mxu0 }
 0x7bd   : > { %v3840_v21 = vmax.f32 %v3824_v29, %v3832_v4  ;;  %v3864_v25 = vmax.f32 %v3848_v53, %v3856_v10  ;;  %v15736_v10 = vpop.f32.mrf.mxu1 }
 0x7bf   : > { %v3872_v39 = vmax.f32 %v3840_v21, %v3864_v25 }
 0x7c0   : > { %v15714_v59 = vpop.f32.mrf.mxu2  ;;  %v15716_v14 = vpop.f32.mrf.mxu3 }
 0x7c1   : > { %v15718_v43 = vmax.f32 %v3872_v39, %v3896_v50 }
 0x7c3   : > { %v3786_v23 = vpop.f32.mrf.mxu0 }
 0x7c4   : > { %v3882_v52 = vadd.f32 %v3786_v23, %v15721_v15 }
 0x7c5   : > { %4242 = vmatmul.bf16.gmra.mxu2 %v15525_v8 }
 0x7c6   : > { %v3890_v61 = vmul.f32 0.2, %v3882_v52 }
 0x7c8   : > { %v3728_v27 = vpop.f32.mrf.mxu2  ;;  %v3757_v35 = vpop.f32.mrf.mxu3  ;;  %v3898_v60 = vmax.f32 %v3882_v52, %v3890_v61 }
 0x7c9   : > { %v3826_v37 = vadd.f32 %v3728_v27, %v15721_v15  ;;  %v3850_v58 = vadd.f32 %v3757_v35, %v15721_v15  ;;  %v4320_v27 = vmul.f32 0.2, %v15660_v45 }
 0x7cb   : > { %v3834_v0 = vmul.f32 0.2, %v3826_v37  ;;  %v3858_v24 = vmul.f32 0.2, %v3850_v58  ;;  %v15727_v44 = vpop.f32.mrf.mxu0 }
 0x7cd   : > { %v3842_v19 = vmax.f32 %v3826_v37, %v3834_v0  ;;  %v3866_v22 = vmax.f32 %v3850_v58, %v3858_v24 }
 0x7cf   : > { %v3874_v16 = vmax.f32 %v3842_v19, %v3866_v22  ;;  %v4328_v19 = vmax.f32 %v15660_v45, %v4320_v27  ;;  %v4204_v22 = vpop.f32.mrf.mxu1 }
 0x7d0   : > { %v15729_v42 = vpop.f32.mrf.mxu2  ;;  %v15731_v8 = vpop.f32.mrf.mxu3 }
 0x7d1   : > { %v15733_v30 = vmax.f32 %v3874_v16, %v3898_v60 }
 0x7d3   : > { %v4170_v29 = vpop.f32.mrf.mxu0 }
 0x7d4   : > { %v4280_v53 = vadd.f32 %v4170_v29, %v15655_v26 }
 0x7d6   : > { %v4288_v23 = vmul.f32 0.2, %v4280_v53 }
 0x7d8   : > { %v3800_v12 = vpop.f32.mrf.mxu2  ;;  %v4141_v4 = vpop.f32.mrf.mxu3  ;;  %v4296_v0 = vmax.f32 %v4280_v53, %v4288_v23 }
 0x7d9   : > { %v3908_v21 = vadd.f32 %v3800_v12, %v15655_v26  ;;  %v4248_v25 = vadd.f32 %v4141_v4, %v15655_v26  ;;  %v15755_v23 = vpop.f32.mrf.mxu1 }
 0x7db   : > { %v3916_v50 = vmul.f32 0.2, %v3908_v21  ;;  %v4256_v39 = vmul.f32 0.2, %v4248_v25  ;;  %v15740_v32 = vpop.f32.mrf.mxu0 }
 0x7dd   : > { %v3924_v52 = vmax.f32 %v3908_v21, %v3916_v50  ;;  %v4264_v37 = vmax.f32 %v4248_v25, %v4256_v39  ;;  %v4314_v25 = vadd.f32 %v4204_v22, %v15674_v49 }
 0x7df   : > { %v3932_v35 = vmax.f32 %v15680_v63, %v3924_v52 }
 0x7e0   : > { %v15744_v58 = vpop.f32.mrf.mxu2  ;;  %v15746_v61 = vpop.f32.mrf.mxu3 }
 0x7e1   : > { %v4272_v24 = vmax.f32 %v3932_v35, %v4264_v37  ;;  %v4322_v35 = vmul.f32 0.2, %v4314_v25  ;;  %v4209_v38 = vpop.f32.mrf.mxu1 }
 0x7e3   : > { %v4304_v60 = vmax.f32 %v4272_v24, %v4296_v0  ;;  %v4175_v16 = vpop.f32.mrf.mxu0 }
 0x7e4   : > { %v4282_v21 = vadd.f32 %v4175_v16, %v15674_v49 }
 0x7e5   : > { %v4336_v29 = vmax.f32 %v4304_v60, %v4328_v19 }
 0x7e6   : > { %v4290_v45 = vmul.f32 0.2, %v4282_v21 }
 0x7e8   : > { %v3805_v12 = vpop.f32.mrf.mxu2  ;;  %v4146_v4 = vpop.f32.mrf.mxu3  ;;  %v4298_v60 = vmax.f32 %v4282_v21, %v4290_v45 }
 0x7e9   : > { %v3910_v50 = vadd.f32 %v3805_v12, %v15674_v49  ;;  %v4250_v63 = vadd.f32 %v4146_v4, %v15674_v49  ;;  %v4330_v12 = vmax.f32 %v4314_v25, %v4322_v35 }
 0x7eb   : > { %v3918_v39 = vmul.f32 0.2, %v3910_v50  ;;  %v4258_v52 = vmul.f32 0.2, %v4250_v63  ;;  %v15753_v53 = vpop.f32.mrf.mxu0 }
 0x7ed   : > { %v3926_v27 = vmax.f32 %v3910_v50, %v3918_v39  ;;  %v4266_v0 = vmax.f32 %v4250_v63, %v4258_v52  ;;  %v4316_v63 = vadd.f32 %v4209_v38, %v15696_v48 }
 0x7ef   : > { %v3934_v37 = vmax.f32 %v15702_v11, %v3926_v27  ;;  %v4324_v45 = vmul.f32 0.2, %v4316_v63 }
 0x7f0   : > { %v15758_v24 = vpop.f32.mrf.mxu2  ;;  %v15760_v19 = vpop.f32.mrf.mxu3 }
 0x7f1   : > { %v4274_v16 = vmax.f32 %v3934_v37, %v4266_v0 }
 0x7f3   : > { %v4306_v22 = vmax.f32 %v4274_v16, %v4298_v60  ;;  %v4180_v46 = vpop.f32.mrf.mxu0  ;;  %v4332_v16 = vmax.f32 %v4316_v63, %v4324_v45  ;;  %v3364_v45 = vld [vmem:[%s19480_s3 + $0x48] sm:$0xff] }
 0x7f4   : > { %v4284_v47 = vadd.f32 %v4180_v46, %v15696_v48 }
 0x7f5   : > { %v4338_v4 = vmax.f32 %v4306_v22, %v4330_v12 }
 0x7f6   : > { %v4292_v27 = vmul.f32 0.2, %v4284_v47 }
 0x7f8   : > { %v3810_v7 = vpop.f32.mrf.mxu2  ;;  %v4151_v20 = vpop.f32.mrf.mxu3  ;;  %v4300_v0 = vmax.f32 %v4284_v47, %v4292_v27 }
 0x7f9   : > { %v3912_v50 = vadd.f32 %v3810_v7, %v15696_v48  ;;  %v4252_v11 = vadd.f32 %v4151_v20, %v15696_v48 }
 0x7fb   : > { %v3920_v39 = vmul.f32 0.2, %v3912_v50  ;;  %v4260_v52 = vmul.f32 0.2, %v4252_v11 }
 0x7fd   : > { %v3928_v21 = vmax.f32 %v3912_v50, %v3920_v39  ;;  %v4268_v35 = vmax.f32 %v4252_v11, %v4260_v52 }
 0x7ff   : > { %v3936_v25 = vmax.f32 %v15718_v43, %v3928_v21 }
 0x800   : > { %v15767_v37 = vpop.f32.mrf.mxu2 }
 0x801   : > { %v4276_v60 = vmax.f32 %v3936_v25, %v4268_v35  ;;  %v15784_v25 = vpop.f32.mrf.mxu3  ;;  %v15787_v35 = vadd.f32 %v15537_v51, %v3364_v45  ;;  %v3366_v51 = vld [vmem:[%s19480_s3 + $0x58] sm:$0xff] }
 0x803   : > { %v4308_v46 = vmax.f32 %v4276_v60, %v4300_v0  ;;  %v3845_v0 = vadd.f32 %v15678_v17, %v15787_v35  ;;  %v15793_v60 = vpop.f32.mrf.mxu0 }
 0x805   : > { %v15769_v12 = vmax.f32 %v4308_v46, %v4332_v16  ;;  %v3370_v16 = vld [vmem:[%s19480_s3 + $0x78] sm:$0xff] }
 0x806   : > { %v15809_v17 = vadd.f32 %v15648_v28, %v3370_v16 }
 0x808   : > { %v3815_v7 = vpop.f32.mrf.mxu2 }
 0x809   : > { %v3914_v20 = vadd.f32 %v3815_v7, %v15721_v15  ;;  %v4211_v7 = vpop.f32.mrf.mxu1 }
 0x80b   : > { %v3922_v38 = vmul.f32 0.2, %v3914_v20 }
 0x80d   : > { %v3930_v22 = vmax.f32 %v3914_v20, %v3922_v38  ;;  %v3853_v20 = vmul.f32 0.2, %v3845_v0  ;;  %v15812_v38 = vadd.f32 %v15583_v55, %v3366_v51 }
 0x80f   : > { %v15773_v57 = vmax.f32 %v15733_v30, %v3930_v22  ;;  %v3827_v22 = vadd.f32 %v15729_v42, %v15809_v17  ;;  %v3823_v28 = vadd.f32 %v15698_v36, %v15812_v38  ;;  %v3847_v55 = vadd.f32 %v15700_v18, %v15812_v38 }
 0x810   : > { %v3817_v50 = vpop.f32.mrf.mxu2  ;;  %v3883_v18 = vadd.f32 %v15727_v44, %v15809_v17 }
 0x811   : > { %v3831_v51 = vmul.f32 0.2, %v3823_v28  ;;  %v3855_v36 = vmul.f32 0.2, %v3847_v55 }
 0x812   : > { %v3891_v56 = vmul.f32 0.2, %v3883_v18 }
 0x813   : > { %v3839_v44 = vmax.f32 %v3823_v28, %v3831_v51 }
 0x818   : > { %v4228_v39 = vpop.f32.mrf.mxu2 }
 0x819   : > { %v4344_v43 = vadd.f32 %v4228_v39, %v15655_v26  ;;  %v3851_v39 = vadd.f32 %v15731_v8, %v15809_v17 }
 0x81b   : > { %v4352_v11 = vmul.f32 0.2, %v4344_v43 }
 0x81d   : > { %v4360_v52 = vmax.f32 %v4344_v43, %v4352_v11  ;;  %v4156_v43 = vpop.f32.mrf.mxu3 }
 0x81f   : > { %v15776_v47 = vmax.f32 %v4336_v29, %v4360_v52  ;;  %v3821_v29 = vadd.f32 %v15676_v31, %v15787_v35  ;;  %v3368_v31 = vld [vmem:[%s19480_s3 + $0x68] sm:$0xff]  ;;  %v3877_v52 = vadd.f32 %v15667_v41, %v15787_v35 }
 0x820   : > { %v15778_v63 = vpop.f32.mrf.mxu2  ;;  %v15819_v11 = vadd.f32 %v15635_v13, %v3368_v31  ;;  %v3835_v13 = vmul.f32 0.2, %v3827_v22 }
 0x821   : > { %v3885_v16 = vmul.f32 0.2, %v3877_v52 }
 0x822   : > { %v3825_v42 = vadd.f32 %v15714_v59, %v15819_v11  ;;  %v3849_v8 = vadd.f32 %v15716_v14, %v15819_v11  ;;  %v3879_v59 = vadd.f32 %v15689_v40, %v15812_v38  ;;  %v4214_v14 = vpop.f32.mrf.mxu1  ;;  %v3881_v54 = vadd.f32 %v15709_v3, %v15819_v11 }
 0x823   : > { %v3893_v62 = vmax.f32 %v3877_v52, %v3885_v16  ;;  %v15844_v40 = vadd.f32 %v4211_v7, %v15819_v11 }
 0x824   : > { %v3889_v28 = vmul.f32 0.2, %v3881_v54 }
 0x825   : > { %v4158_v33 = vpop.f32.mrf.mxu3 }
 0x828   : > { %v4233_v27 = vpop.f32.mrf.mxu2 }
 0x829   : > { %v4346_v21 = vadd.f32 %v4233_v27, %v15674_v49 }
 0x82b   : > { %v4354_v30 = vmul.f32 0.2, %v4346_v21 }
 0x82d   : > { %v4362_v26 = vmax.f32 %v4346_v21, %v4354_v30  ;;  %v3861_v21 = vmax.f32 %v3845_v0, %v3853_v20  ;;  %v3859_v30 = vmul.f32 0.2, %v3851_v39  ;;  %v3833_v0 = vmul.f32 0.2, %v3825_v42 }
 0x82e   : > { %v3915_v20 = vadd.f32 %v3817_v50, %v15809_v17  ;;  %v3913_v50 = vadd.f32 %v15767_v37, %v15819_v11 }
 0x82f   : > { %v15795_v49 = vmax.f32 %v4338_v4, %v4362_v26  ;;  %v3829_v4 = vmul.f32 0.2, %v3821_v29  ;;  %v4185_v26 = vpop.f32.mrf.mxu0 }
 0x830   : > { %v15800_v46 = vpop.f32.mrf.mxu2  ;;  %v3921_v16 = vmul.f32 0.2, %v3913_v50 }
 0x831   : > { %v3837_v27 = vmax.f32 %v3821_v29, %v3829_v4  ;;  %v3857_v4 = vmul.f32 0.2, %v3849_v8 }
 0x833   : > { %v3869_v31 = vmax.f32 %v3837_v27, %v3861_v21  ;;  %v15841_v27 = vadd.f32 %v15755_v23, %v15812_v38  ;;  %v3863_v21 = vmax.f32 %v3847_v55, %v3855_v36  ;;  %v3865_v52 = vmax.f32 %v3849_v8, %v3857_v4 }
 0x834   : > { %v15853_v23 = vadd.f32 %v15736_v10, %v15787_v35  ;;  %v3899_v8 = vmax.f32 %v3883_v18, %v3891_v56  ;;  %v3911_v10 = vadd.f32 %v15758_v24, %v15812_v38  ;;  %v4216_v56 = vpop.f32.mrf.mxu1  ;;  %v4286_v18 = vadd.f32 %v4185_v26, %v15721_v15 }
 0x835   : > { %v15855_v55 = vmax.f32 %v3869_v31, %v3893_v62  ;;  %v3871_v37 = vmax.f32 %v3839_v44, %v3863_v21  ;;  %v15868_v31 = vadd.f32 %v4214_v14, %v15721_v15  ;;  %v4319_v26 = vadd.f32 %v4216_v56, %v15809_v17 }
 0x837   : > { %v4187_v51 = vpop.f32.mrf.mxu0  ;;  %v4326_v44 = vmul.f32 0.2, %v15868_v31 }
 0x838   : > { %v4238_v45 = vpop.f32.mrf.mxu2 }
 0x839   : > { %v4348_v41 = vadd.f32 %v4238_v45, %v15696_v48  ;;  %v3843_v48 = vmax.f32 %v3827_v22, %v3835_v13  ;;  %v3867_v45 = vmax.f32 %v3851_v39, %v3859_v30  ;;  %v3887_v22 = vmul.f32 0.2, %v3879_v59 }
 0x83a   : > { %v3841_v39 = vmax.f32 %v3825_v42, %v3833_v0  ;;  %v3923_v13 = vmul.f32 0.2, %v3915_v20  ;;  %v15863_v42 = vmul.f32 0.2, %v15844_v40  ;;  %v3897_v0 = vmax.f32 %v3881_v54, %v3889_v28 }
 0x83b   : > { %v4356_v29 = vmul.f32 0.2, %v4348_v41  ;;  %v3875_v7 = vmax.f32 %v3843_v48, %v3867_v45  ;;  %v3895_v36 = vmax.f32 %v3879_v59, %v3887_v22  ;;  %v4287_v48 = vadd.f32 %v4187_v51, %v15809_v17 }
 0x83c   : > { %v3873_v62 = vmax.f32 %v3841_v39, %v3865_v52  ;;  %v4333_v14 = vmax.f32 %v15844_v40, %v15863_v42  ;;  %v3929_v54 = vmax.f32 %v3913_v50, %v3921_v16  ;;  %v4285_v52 = vadd.f32 %v15793_v60, %v15819_v11 }
 0x83d   : > { %v4364_v5 = vmax.f32 %v4348_v41, %v4356_v29  ;;  %v15858_v41 = vmul.f32 0.2, %v15841_v27  ;;  %v3931_v29 = vmax.f32 %v3915_v20, %v3923_v13  ;;  %v3907_v4 = vmax.f32 %v3875_v7, %v3899_v8 }
 0x83e   : > { %v3903_v45 = vmax.f32 %v3871_v37, %v3895_v36  ;;  %v3919_v20 = vmul.f32 0.2, %v3911_v10  ;;  %v4294_v28 = vmul.f32 0.2, %v4286_v18  ;;  %v4295_v37 = vmul.f32 0.2, %v4287_v48 }
 0x83f   : > { %v15849_v3 = vmax.f32 %v15769_v12, %v4364_v5  ;;  %v4254_v5 = vadd.f32 %v4156_v43, %v15721_v15  ;;  %v4255_v12 = vadd.f32 %v4158_v33, %v15809_v17  ;;  %v3909_v43 = vadd.f32 %v15744_v58, %v15787_v35 }
 0x840   : > { %v4240_v30 = vpop.f32.mrf.mxu2  ;;  %v4253_v33 = vadd.f32 %v15784_v25, %v15819_v11  ;;  %v4251_v58 = vadd.f32 %v15760_v19, %v15812_v38  ;;  %v3905_v25 = vmax.f32 %v3873_v62, %v3897_v0  ;;  %v3939_v21 = vmax.f32 %v3907_v4, %v3931_v29 }
 0x841   : > { %v4262_v24 = vmul.f32 0.2, %v4254_v5  ;;  %v4263_v59 = vmul.f32 0.2, %v4255_v12  ;;  %v3917_v39 = vmul.f32 0.2, %v3909_v43  ;;  %v4249_v50 = vadd.f32 %v15746_v61, %v15787_v35 }
 0x842   : > { %v4261_v13 = vmul.f32 0.2, %v4253_v33  ;;  %v3927_v16 = vmax.f32 %v3911_v10, %v3919_v20  ;;  %v3937_v51 = vmax.f32 %v3905_v25, %v3929_v54  ;;  %v4283_v36 = vadd.f32 %v15753_v53, %v15812_v38 }
 0x843   : > { %v4270_v7 = vmax.f32 %v4254_v5, %v4262_v24  ;;  %v4271_v8 = vmax.f32 %v4255_v12, %v4263_v59  ;;  %v4259_v62 = vmul.f32 0.2, %v4251_v58  ;;  %v4327_v60 = vmul.f32 0.2, %v4319_v26 }
 0x844   : > { %v4293_v4 = vmul.f32 0.2, %v4285_v52  ;;  %v4269_v56 = vmax.f32 %v4253_v33, %v4261_v13  ;;  %v4349_v5 = vadd.f32 %v4240_v30, %v15819_v11  ;;  %v4281_v12 = vadd.f32 %v15740_v32, %v15787_v35 }
 0x845   : > { %v4278_v29 = vmax.f32 %v15773_v57, %v4270_v7  ;;  %v4279_v0 = vmax.f32 %v3939_v21, %v4271_v8  ;;  %v3925_v61 = vmax.f32 %v3909_v43, %v3917_v39  ;;  %v4302_v10 = vmax.f32 %v4286_v18, %v4294_v28 }
 0x846   : > { %v4303_v24 = vmax.f32 %v4287_v48, %v4295_v37  ;;  %v4257_v59 = vmul.f32 0.2, %v4249_v50  ;;  %v4277_v20 = vmax.f32 %v3937_v51, %v4269_v56  ;;  %v4291_v53 = vmul.f32 0.2, %v4283_v36 }
 0x847   : > { %v4267_v25 = vmax.f32 %v4251_v58, %v4259_v62  ;;  %v4301_v7 = vmax.f32 %v4285_v52, %v4293_v4  ;;  %v4347_v33 = vadd.f32 %v15800_v46, %v15812_v38  ;;  %v4357_v11 = vmul.f32 0.2, %v4349_v5 }
 0x848   : > { %v4243_v22 = vpop.f32.mrf.mxu2  ;;  %v4311_v57 = vmax.f32 %v4279_v0, %v4303_v24  ;;  %v4334_v32 = vmax.f32 %v15868_v31, %v4326_v44  ;;  %v4335_v43 = vmax.f32 %v4319_v26, %v4327_v60  ;;  %v4289_v18 = vmul.f32 0.2, %v4281_v12 }
 0x849   : > { %v4350_v19 = vadd.f32 %v4243_v22, %v15721_v15  ;;  %v3935_v15 = vmax.f32 %v3903_v45, %v3927_v16  ;;  %v4310_v22 = vmax.f32 %v4278_v29, %v4302_v10  ;;  %v3933_v48 = vmax.f32 %v15855_v55, %v3925_v61 }
 0x84a   : > { %v4309_v39 = vmax.f32 %v4277_v20, %v4301_v7  ;;  %v4265_v28 = vmax.f32 %v4249_v50, %v4257_v59  ;;  %v4299_v37 = vmax.f32 %v4283_v36, %v4291_v53  ;;  %v4343_v52 = vmax.f32 %v4311_v57, %v4335_v43  ;;  %v19574_v53 = vld [vmem:[#allocation8_spill] sm:$0xff]  ;;  %v19575_v57 = vld [vmem:[#allocation9_spill] sm:$0xff] }
 0x84b   : > { %v4358_v54 = vmul.f32 0.2, %v4350_v19  ;;  %v4275_v45 = vmax.f32 %v3935_v15, %v4267_v25  ;;  %v4342_v8 = vmax.f32 %v4310_v22, %v4334_v32  ;;  %v4345_v46 = vadd.f32 %v15778_v63, %v15787_v35  ;;  %v19572_v15 = vld [vmem:[#allocation6_spill] sm:$0xff]  ;;  %v19579_v43 = vld [vmem:[#allocation13_spill] sm:$0xff] }
 0x84c   : > { %v4355_v38 = vmul.f32 0.2, %v4347_v33  ;;  %v4365_v16 = vmax.f32 %v4349_v5, %v4357_v11  ;;  %v4273_v51 = vmax.f32 %v3933_v48, %v4265_v28  ;;  %v4341_v55 = vmax.f32 %v4309_v39, %v4333_v14  ;;  %v19578_v11 = vld [vmem:[#allocation12_spill] sm:$0xff] }
 0x84d   : > { %v4366_v13 = vmax.f32 %v4350_v19, %v4358_v54  ;;  %v4307_v31 = vmax.f32 %v4275_v45, %v4299_v37  ;;  %v4321_v19 = vmul.f32 0.2, %v15853_v23  ;;  %v4331_v50 = vmax.f32 %v15841_v27, %v15858_v41  ;;  %v12643_v41 = vld [vmem:[%s19481_s4] sm:$0xff]  ;;  %v19573_v54 = vld [vmem:[#allocation7_spill] sm:$0xff] }
 0x84e   : > { %v4297_v36 = vmax.f32 %v4281_v12, %v4289_v18  ;;  %v4353_v62 = vmul.f32 0.2, %v4345_v46  ;;  %v4363_v29 = vmax.f32 %v4347_v33, %v4355_v38  ;;  %v4373_v63 = vmax.f32 %v4341_v55, %v4365_v16  ;;  %v12650_v12 = vld [vmem:[%s19481_s4 + $0x38] sm:$0xff]  ;;  %v19577_v33 = vld [vmem:[#allocation11_spill] sm:$0xff] }
 0x84f   : > { %v4374_v44 = vmax.f32 %v4342_v8, %v4366_v13  ;;  %v4339_v60 = vmax.f32 %v4307_v31, %v4331_v50  ;;  %v4329_v4 = vmax.f32 %v15853_v23, %v4321_v19  ;;  %v12649_v23 = vld [vmem:[%s19481_s4 + $0x30] sm:$0xff] }
 0x850   : > { %v4245_v21 = vpop.f32.mrf.mxu2  ;;  %v4305_v0 = vmax.f32 %v4273_v51, %v4297_v36  ;;  %v4361_v56 = vmax.f32 %v4345_v46, %v4353_v62  ;;  %v4394_v42 = vpack.c.bf16 %v4373_v63, %v15849_v3  ;;  %v19570_v3 = vld [vmem:[#allocation4_spill] sm:$0xff]  ;;  %v4509_v46 = vld [vmem:[%s19482_s5] sm:$0xff] }
 0x851   : > { %v4351_v30 = vadd.f32 %v4245_v21, %v15809_v17  ;;  %v4371_v40 = vmax.f32 %v4339_v60, %v4363_v29  ;;  %v19576_v21 = vld [vmem:[#allocation10_spill] sm:$0xff] }
 0x852   : > { %v4337_v14 = vmax.f32 %v4305_v0, %v4329_v4  ;;  %v4511_v4 = vld [vmem:[%s19482_s5 + $0x10] sm:$0xff] }
 0x853   : > { %v4359_v58 = vmul.f32 0.2, %v4351_v30  ;;  %v4393_v61 = vpack.c.bf16 %v4371_v40, %v15795_v49  ;;  %v12644_v49 = vld [vmem:[%s19481_s4 + $0x8] sm:$0xff] }
 0x854   : > { %v4369_v5 = vmax.f32 %v4337_v14, %v4361_v56 }
 0x855   : > { %v4367_v17 = vmax.f32 %v4351_v30, %v4359_v58 }
 0x856   : > { %v4392_v27 = vpack.c.bf16 %v4369_v5, %v15776_v47  ;;  %v19569_v47 = vld [vmem:[#allocation3_spill] sm:$0xff] }
 0x857   : > { %v4375_v26 = vmax.f32 %v4343_v52, %v4367_v17 }
 0x859   : > { %v4395_v35 = vpack.c.bf16 %v4375_v26, %v4374_v44 }
 0x85b   : > { %4464 = vmatpush.bf16.msrb.mxu3 %v4395_v35 }
 0x85f   : > { %4465 = vmatpush.bf16.msrb.mxu3 %v4394_v42 }
 0x863   : > { %4466 = vmatpush.bf16.msrb.mxu3 %v4393_v61 }
 0x867   : > { %4467 = vmatpush.bf16.msrb.mxu3 %v4392_v27 }
 0x86a   : > { %11034 = vmatmul.msk.bf16.vlgmr.msrb.gmra.mxu3 %vm1064_vm0, %v12643_v41 }
 0x86b   : > { %4823 = vmatpush.bf16.msra.mxu3 %v15023_v6  ;;  %v19571_v6 = vld [vmem:[#allocation5_spill] sm:$0xff] }
 0x86f   : > { %4824 = vmatpush.bf16.msra.mxu3 %v15062_v1  ;;  %v12645_v1 = vld [vmem:[%s19481_s4 + $0x10] sm:$0xff] }
 0x873   : > { %4825 = vmatpush.bf16.msra.mxu3 %v15100_v34  ;;  %v12646_v34 = vld [vmem:[%s19481_s4 + $0x18] sm:$0xff] }
 0x877   : > { %4826 = vmatpush.bf16.msra.mxu3 %v15134_v2  ;;  %v12647_v2 = vld [vmem:[%s19481_s4 + $0x20] sm:$0xff] }
 0x87a   : > { %11035 = vmatmul.msk.bf16.gmra.mxu3 %vm1064_vm0, %v12644_v49 }
 0x87b   : > { %4827 = vmatpush.bf16.msra.mxu3 %v15171_v9  ;;  %v12648_v9 = vld [vmem:[%s19481_s4 + $0x28] sm:$0xff] }
 0x87f   : > { %4828 = vmatpush.bf16.msra.mxu3 %v19569_v47 }
 0x883   : > { %4829 = vmatpush.bf16.msra.mxu3 %v19570_v3 }
 0x887   : > { %4830 = vmatpush.bf16.msra.mxu3 %v19571_v6 }
 0x88a   : > { %11036 = vmatmul.msk.bf16.gmra.mxu3 %vm1064_vm0, %v12645_v1 }
 0x89a   : > { %11037 = vmatmul.msk.bf16.gmra.mxu3 %vm1064_vm0, %v12646_v34 }
 0x8aa   : > { %11038 = vmatmul.msk.bf16.gmra.mxu3 %vm1064_vm0, %v12647_v2 }
 0x8ba   : > { %11039 = vmatmul.msk.bf16.gmra.mxu3 %vm1064_vm0, %v12648_v9 }
 0x8ca   : > { %11040 = vmatmul.msk.bf16.gmra.mxu3 %vm1064_vm0, %v12649_v23 }
 0x8da   : > { %11041 = vmatmul.msk.bf16.gmra.mxu3 %vm1064_vm0, %v12650_v12 }
 0x8ed   : > { %v4469_v10 = vpop.f32.mrf.mxu3 }
 0x8f5   : > { %v4471_v24 = vpop.f32.mrf.mxu3 }
 0x8f6   : > { %v4525_v59 = vpack.c.bf16 %v4471_v24, %v4469_v10  ;;  %v4513_v10 = vld [vmem:[%s19482_s5 + $0x20] sm:$0xff] }
 0x8f8   : > { %4537 = vmatmul.bf16.vlgmr.msrb.gmra.mxu0 %v4525_v59  ;;  %4566 = vmatmul.bf16.vlgmr.msrb.gmra.mxu1 %v4525_v59 }
 0x8f9   : > { %4595 = vmatmul.bf16.vlgmr.msrb.gmra.mxu2 %v4525_v59  ;;  %4831 = vmatmul.bf16.vlgmr.msra.gmra.mxu3 %v4525_v59 }
 0x8fa   : > { %4852 = vmatpush.bf16.msrb.mxu0 %v19572_v15 }
 0x8fd   : > { %v4474_v20 = vpop.f32.mrf.mxu3 }
 0x8fe   : > { %4853 = vmatpush.bf16.msrb.mxu0 %v19573_v54 }
 0x902   : > { %4854 = vmatpush.bf16.msrb.mxu0 %v19574_v53 }
 0x905   : > { %v4476_v25 = vpop.f32.mrf.mxu3 }
 0x906   : > { %v15953_v22 = vpack.c.bf16 %v4476_v25, %v4474_v20  ;;  %4855 = vmatpush.bf16.msrb.mxu0 %v19575_v57 }
 0x908   : > { %4542 = vmatmul.bf16.gmra.mxu0 %v15953_v22  ;;  %4571 = vmatmul.bf16.gmra.mxu1 %v15953_v22 }
 0x909   : > { %4600 = vmatmul.bf16.gmra.mxu2 %v15953_v22  ;;  %4836 = vmatmul.bf16.gmra.mxu3 %v15953_v22 }
 0x90a   : > { %4856 = vmatpush.bf16.msrb.mxu0 %v19576_v21 }
 0x90d   : > { %v4479_v7 = vpop.f32.mrf.mxu3 }
 0x90e   : > { %4857 = vmatpush.bf16.msrb.mxu0 %v19577_v33 }
 0x912   : > { %4858 = vmatpush.bf16.msrb.mxu0 %v19578_v11 }
 0x915   : > { %v4481_v30 = vpop.f32.mrf.mxu3 }
 0x916   : > { %v15963_v32 = vpack.c.bf16 %v4481_v30, %v4479_v7  ;;  %4859 = vmatpush.bf16.msrb.mxu0 %v19579_v43 }
 0x918   : > { %4547 = vmatmul.bf16.gmra.mxu0 %v15963_v32  ;;  %4576 = vmatmul.bf16.gmra.mxu1 %v15963_v32 }
 0x919   : > { %4605 = vmatmul.bf16.gmra.mxu2 %v15963_v32  ;;  %4841 = vmatmul.bf16.gmra.mxu3 %v15963_v32 }
 0x91d   : > { %v4484_v18 = vpop.f32.mrf.mxu3 }
 0x925   : > { %v4486_v48 = vpop.f32.mrf.mxu3 }
 0x926   : > { %v15970_v45 = vpack.c.bf16 %v4486_v48, %v4484_v18 }
 0x928   : > { %4552 = vmatmul.bf16.gmra.mxu0 %v15970_v45  ;;  %4581 = vmatmul.bf16.gmra.mxu1 %v15970_v45 }
 0x929   : > { %4610 = vmatmul.bf16.gmra.mxu2 %v15970_v45  ;;  %4846 = vmatmul.bf16.gmra.mxu3 %v15970_v45 }
 0x92d   : > { %v4489_v39 = vpop.f32.mrf.mxu3 }
 0x92e   : > { %v15996_v38 = vadd.f32 %v4509_v46, %v4489_v39 }
 0x935   : > { %v15976_v13 = vpop.f32.mrf.mxu3 }
 0x938   : > { %4624 = vmatmul.bf16.vlgmr.msra.gmra.mxu0 %v4525_v59  ;;  %4773 = vmatmul.bf16.vlgmr.msra.gmra.mxu1 %v4525_v59 }
 0x939   : > { %4802 = vmatmul.bf16.vlgmr.msra.gmra.mxu2 %v4525_v59 }
 0x93d   : > { %v4494_v58 = vpop.f32.mrf.mxu3 }
 0x93e   : > { %v16013_v42 = vadd.f32 %v4511_v4, %v4494_v58  ;;  %v4515_v58 = vld [vmem:[%s19482_s5 + $0x30] sm:$0xff] }
 0x945   : > { %v15981_v28 = vpop.f32.mrf.mxu3 }
 0x948   : > { %4629 = vmatmul.bf16.gmra.mxu0 %v15953_v22  ;;  %4778 = vmatmul.bf16.gmra.mxu1 %v15953_v22 }
 0x949   : > { %4807 = vmatmul.bf16.gmra.mxu2 %v15953_v22 }
 0x94d   : > { %v4499_v37 = vpop.f32.mrf.mxu3 }
 0x94e   : > { %v16030_v15 = vadd.f32 %v4513_v10, %v4499_v37 }
 0x955   : > { %v15986_v8 = vpop.f32.mrf.mxu3 }
 0x958   : > { %4634 = vmatmul.bf16.gmra.mxu0 %v15963_v32  ;;  %4783 = vmatmul.bf16.gmra.mxu1 %v15963_v32 }
 0x959   : > { %4812 = vmatmul.bf16.gmra.mxu2 %v15963_v32 }
 0x95d   : > { %v15990_v52 = vpop.f32.mrf.mxu3 }
 0x965   : > { %v15998_v16 = vpop.f32.mrf.mxu3 }
 0x968   : > { %4639 = vmatmul.bf16.gmra.mxu0 %v15970_v45  ;;  %4788 = vmatmul.bf16.gmra.mxu1 %v15970_v45 }
 0x969   : > { %4817 = vmatmul.bf16.gmra.mxu2 %v15970_v45 }
 0x975   : > { %v4538_v17 = vpop.f32.mrf.mxu0  ;;  %v4567_v51 = vpop.f32.mrf.mxu1 }
 0x976   : > { %v4645_v31 = vadd.f32 %v4538_v17, %v15996_v38  ;;  %v4669_v55 = vadd.f32 %v4567_v51, %v15996_v38  ;;  %v16048_v17 = vadd.f32 %v4515_v58, %v15990_v52 }
 0x978   : > { %v4653_v44 = vmul.f32 0.2, %v4645_v31  ;;  %v4677_v26 = vmul.f32 0.2, %v4669_v55  ;;  %4860 = vmatmul.bf16.vlgmr.msrb.gmra.mxu0 %v4525_v59 }
 0x97a   : > { %v4661_v19 = vmax.f32 %v4645_v31, %v4653_v44  ;;  %v4685_v50 = vmax.f32 %v4669_v55, %v4677_v26 }
 0x97c   : > { %v4693_v36 = vmax.f32 %v4661_v19, %v4685_v50  ;;  %v4596_v62 = vpop.f32.mrf.mxu2  ;;  %v4832_v29 = vpop.f32.mrf.mxu3 }
 0x97d   : > { %v4701_v63 = vadd.f32 %v4596_v62, %v15996_v38  ;;  %v16004_v35 = vadd.f32 %v4832_v29, %v15996_v38  ;;  %v16006_v0 = vpop.f32.mrf.mxu0  ;;  %v16008_v60 = vpop.f32.mrf.mxu1 }
 0x97f   : > { %v4709_v56 = vmul.f32 0.2, %v4701_v63 }
 0x981   : > { %v4717_v40 = vmax.f32 %v4701_v63, %v4709_v56 }
 0x983   : > { %v16015_v14 = vmax.f32 %v4693_v36, %v4717_v40 }
 0x984   : > { %v16017_v5 = vpop.f32.mrf.mxu2 }
 0x985   : > { %v4543_v61 = vpop.f32.mrf.mxu0  ;;  %v4572_v27 = vpop.f32.mrf.mxu1 }
 0x986   : > { %v4647_v41 = vadd.f32 %v4543_v61, %v16013_v42  ;;  %v4671_v49 = vadd.f32 %v4572_v27, %v16013_v42 }
 0x988   : > { %v4655_v47 = vmul.f32 0.2, %v4647_v41  ;;  %v4679_v3 = vmul.f32 0.2, %v4671_v49  ;;  %4865 = vmatmul.bf16.gmra.mxu0 %v15953_v22 }
 0x98a   : > { %v4663_v6 = vmax.f32 %v4647_v41, %v4655_v47  ;;  %v4687_v1 = vmax.f32 %v4671_v49, %v4679_v3 }
 0x98c   : > { %v4695_v34 = vmax.f32 %v4663_v6, %v4687_v1  ;;  %v4601_v2 = vpop.f32.mrf.mxu2 }
 0x98d   : > { %v4703_v9 = vadd.f32 %v4601_v2, %v16013_v42  ;;  %v16023_v23 = vpop.f32.mrf.mxu0  ;;  %v16025_v12 = vpop.f32.mrf.mxu1 }
 0x98f   : > { %v4711_v24 = vmul.f32 0.2, %v4703_v9 }
 0x991   : > { %v4719_v59 = vmax.f32 %v4703_v9, %v4711_v24 }
 0x993   : > { %v16032_v20 = vmax.f32 %v4695_v34, %v4719_v59  ;;  %v16068_v34 = vpop.f32.mrf.mxu3 }
 0x994   : > { %v16034_v54 = vpop.f32.mrf.mxu2 }
 0x995   : > { %v4548_v53 = vpop.f32.mrf.mxu0  ;;  %v4577_v25 = vpop.f32.mrf.mxu1 }
 0x996   : > { %v4649_v22 = vadd.f32 %v4548_v53, %v16030_v15  ;;  %v4673_v57 = vadd.f32 %v4577_v25, %v16030_v15 }
 0x998   : > { %v4657_v21 = vmul.f32 0.2, %v4649_v22  ;;  %v4681_v7 = vmul.f32 0.2, %v4673_v57  ;;  %4870 = vmatmul.bf16.gmra.mxu0 %v15963_v32 }
 0x99a   : > { %v4665_v33 = vmax.f32 %v4649_v22, %v4657_v21  ;;  %v4689_v11 = vmax.f32 %v4673_v57, %v4681_v7  ;;  %v4953_v57 = vmul.f32 0.2, %v16004_v35 }
 0x99c   : > { %v4697_v30 = vmax.f32 %v4665_v33, %v4689_v11  ;;  %v4606_v43 = vpop.f32.mrf.mxu2  ;;  %v4961_v33 = vmax.f32 %v16004_v35, %v4953_v57 }
 0x99d   : > { %v4705_v18 = vadd.f32 %v4606_v43, %v16030_v15  ;;  %v16040_v48 = vpop.f32.mrf.mxu0  ;;  %v16042_v39 = vpop.f32.mrf.mxu1 }
 0x99f   : > { %v4713_v37 = vmul.f32 0.2, %v4705_v18 }
 0x9a1   : > { %v4721_v46 = vmax.f32 %v4705_v18, %v4713_v37 }
 0x9a3   : > { %v16050_v32 = vmax.f32 %v4697_v30, %v4721_v46  ;;  %v4837_v30 = vpop.f32.mrf.mxu3 }
 0x9a4   : > { %v16052_v51 = vpop.f32.mrf.mxu2 }
 0x9a5   : > { %v4553_v31 = vpop.f32.mrf.mxu0  ;;  %v4582_v55 = vpop.f32.mrf.mxu1 }
 0x9a6   : > { %v4651_v44 = vadd.f32 %v4553_v31, %v16048_v17  ;;  %v4675_v26 = vadd.f32 %v4582_v55, %v16048_v17 }
 0x9a8   : > { %v4659_v19 = vmul.f32 0.2, %v4651_v44  ;;  %v4683_v50 = vmul.f32 0.2, %v4675_v26  ;;  %4875 = vmatmul.bf16.gmra.mxu0 %v15970_v45 }
 0x9aa   : > { %v4667_v36 = vmax.f32 %v4651_v44, %v4659_v19  ;;  %v4691_v62 = vmax.f32 %v4675_v26, %v4683_v50  ;;  %v4947_v26 = vadd.f32 %v4837_v30, %v16013_v42 }
 0x9ac   : > { %v4699_v29 = vmax.f32 %v4667_v36, %v4691_v62  ;;  %v4611_v63 = vpop.f32.mrf.mxu2 }
 0x9ad   : > { %v4707_v52 = vadd.f32 %v4611_v63, %v16048_v17  ;;  %v16058_v4 = vpop.f32.mrf.mxu0  ;;  %v16060_v56 = vpop.f32.mrf.mxu1 }
 0x9ae   : > { %v16089_v63 = vpop.f32.mrf.mxu3 }
 0x9af   : > { %v4715_v40 = vmul.f32 0.2, %v4707_v52 }
 0x9b1   : > { %v4723_v61 = vmax.f32 %v4707_v52, %v4715_v40  ;;  %v4955_v40 = vmul.f32 0.2, %v4947_v26 }
 0x9b3   : > { %v16062_v27 = vmax.f32 %v4699_v29, %v4723_v61 }
 0x9b4   : > { %v16064_v41 = vpop.f32.mrf.mxu2 }
 0x9b5   : > { %v4625_v49 = vpop.f32.mrf.mxu0  ;;  %v4774_v47 = vpop.f32.mrf.mxu1 }
 0x9b6   : > { %v4733_v45 = vadd.f32 %v4625_v49, %v15996_v38  ;;  %v4881_v3 = vadd.f32 %v4774_v47, %v15996_v38  ;;  %v4963_v47 = vmax.f32 %v4947_v26, %v4955_v40 }
 0x9b8   : > { %v4741_v6 = vmul.f32 0.2, %v4733_v45  ;;  %v4889_v1 = vmul.f32 0.2, %v4881_v3 }
 0x9ba   : > { %v4749_v2 = vmax.f32 %v4733_v45, %v4741_v6  ;;  %v4897_v10 = vmax.f32 %v4881_v3, %v4889_v1 }
 0x9bc   : > { %v4757_v9 = vmax.f32 %v16015_v14, %v4749_v2  ;;  %v4803_v24 = vpop.f32.mrf.mxu2 }
 0x9bd   : > { %v4913_v59 = vadd.f32 %v4803_v24, %v15996_v38  ;;  %v16072_v53 = vpop.f32.mrf.mxu0  ;;  %v16074_v25 = vpop.f32.mrf.mxu1 }
 0x9be   : > { %v4905_v22 = vmax.f32 %v4757_v9, %v4897_v10  ;;  %v4842_v10 = vpop.f32.mrf.mxu3 }
 0x9bf   : > { %v4921_v21 = vmul.f32 0.2, %v4913_v59  ;;  %v4949_v57 = vadd.f32 %v4842_v10, %v16030_v15 }
 0x9c1   : > { %v4929_v7 = vmax.f32 %v4913_v59, %v4921_v21 }
 0x9c3   : > { %v4937_v11 = vmax.f32 %v4905_v22, %v4929_v7 }
 0x9c4   : > { %v16078_v43 = vpop.f32.mrf.mxu2 }
 0x9c5   : > { %v4630_v14 = vpop.f32.mrf.mxu0  ;;  %v4779_v18 = vpop.f32.mrf.mxu1  ;;  %v4969_v58 = vmax.f32 %v4937_v11, %v4961_v33 }
 0x9c6   : > { %v4735_v37 = vadd.f32 %v4630_v14, %v16013_v42  ;;  %v4883_v46 = vadd.f32 %v4779_v18, %v16013_v42  ;;  %v4957_v18 = vmul.f32 0.2, %v4949_v57 }
 0x9c8   : > { %v4743_v31 = vmul.f32 0.2, %v4735_v37  ;;  %v4891_v55 = vmul.f32 0.2, %v4883_v46 }
 0x9ca   : > { %v4751_v44 = vmax.f32 %v4735_v37, %v4743_v31  ;;  %v4899_v50 = vmax.f32 %v4883_v46, %v4891_v55  ;;  %v4965_v31 = vmax.f32 %v4949_v57, %v4957_v18 }
 0x9cc   : > { %v4759_v19 = vmax.f32 %v16032_v20, %v4751_v44  ;;  %v4808_v35 = vpop.f32.mrf.mxu2 }
 0x9cd   : > { %v4915_v36 = vadd.f32 %v4808_v35, %v16013_v42  ;;  %v16085_v62 = vpop.f32.mrf.mxu0  ;;  %v16087_v29 = vpop.f32.mrf.mxu1 }
 0x9ce   : > { %v4907_v52 = vmax.f32 %v4759_v19, %v4899_v50 }
 0x9cf   : > { %v4923_v61 = vmul.f32 0.2, %v4915_v36 }
 0x9d1   : > { %v4931_v49 = vmax.f32 %v4915_v36, %v4923_v61 }
 0x9d3   : > { %v4939_v45 = vmax.f32 %v4907_v52, %v4931_v49 }
 0x9d4   : > { %v16091_v3 = vpop.f32.mrf.mxu2 }
 0x9d5   : > { %v4635_v6 = vpop.f32.mrf.mxu0  ;;  %v4784_v20 = vpop.f32.mrf.mxu1  ;;  %v4971_v1 = vmax.f32 %v4939_v45, %v4963_v47 }
 0x9d6   : > { %v4737_v2 = vadd.f32 %v4635_v6, %v16030_v15  ;;  %v4885_v9 = vadd.f32 %v4784_v20, %v16030_v15  ;;  %v4510_v6 = vld [vmem:[%s19482_s5 + $0x8] sm:$0xff] }
 0x9d8   : > { %v4745_v24 = vmul.f32 0.2, %v4737_v2  ;;  %v4893_v59 = vmul.f32 0.2, %v4885_v9 }
 0x9da   : > { %v4753_v22 = vmax.f32 %v4737_v2, %v4745_v24  ;;  %v4901_v7 = vmax.f32 %v4885_v9, %v4893_v59  ;;  %v4844_v59 = vpop.f32.mrf.mxu3 }
 0x9dc   : > { %v4761_v21 = vmax.f32 %v16050_v32, %v4753_v22  ;;  %v4813_v33 = vpop.f32.mrf.mxu2 }
 0x9dd   : > { %v4917_v11 = vadd.f32 %v4813_v33, %v16030_v15  ;;  %v16098_v30 = vpop.f32.mrf.mxu0  ;;  %v16120_v10 = vpop.f32.mrf.mxu1 }
 0x9de   : > { %v4909_v14 = vmax.f32 %v4761_v21, %v4901_v7 }
 0x9df   : > { %v4925_v37 = vmul.f32 0.2, %v4917_v11 }
 0x9e1   : > { %v4933_v46 = vmax.f32 %v4917_v11, %v4925_v37  ;;  %v4516_v11 = vld [vmem:[%s19482_s5 + $0x38] sm:$0xff] }
 0x9e2   : > { %v12666_v37 = vld [vmem:[%s13019_s15 + $0x278] sm:$0xff] }
 0x9e3   : > { %v4941_v55 = vmax.f32 %v4909_v14, %v4933_v46  ;;  %5531 = vmatpush.bf16.msrb.mxu3 %v12666_v37  ;;  %v12655_v37 = vld [vmem:[%s13019_s15 + $0x220] sm:$0xff] }
 0x9e5   : > { %v4640_v44 = vpop.f32.mrf.mxu0  ;;  %v16100_v26 = vmax.f32 %v4941_v55, %v4965_v31 }
 0x9e6   : > { %v4739_v19 = vadd.f32 %v4640_v44, %v16048_v17 }
 0x9e8   : > { %v4747_v50 = vmul.f32 0.2, %v4739_v19 }
 0x9ea   : > { %v4755_v35 = vmax.f32 %v4739_v19, %v4747_v50 }
 0x9ec   : > { %v16104_v32 = vmax.f32 %v16062_v27, %v4755_v35  ;;  %v16118_v27 = vadd.f32 %v4510_v6, %v15976_v13 }
 0x9ed   : > { %v16106_v36 = vpop.f32.mrf.mxu0 }
 0x9ee   : > { %v4646_v13 = vadd.f32 %v16006_v0, %v16118_v27  ;;  %v4670_v22 = vadd.f32 %v16008_v60, %v16118_v27  ;;  %v4702_v0 = vadd.f32 %v16017_v5, %v16118_v27  ;;  %v16166_v5 = vpop.f32.mrf.mxu1 }
 0x9f0   : > { %v4654_v14 = vmul.f32 0.2, %v4646_v13  ;;  %v4678_v18 = vmul.f32 0.2, %v4670_v22  ;;  %v4710_v44 = vmul.f32 0.2, %v4702_v0 }
 0x9f2   : > { %v4662_v55 = vmax.f32 %v4646_v13, %v4654_v14 }
 0x9f5   : > { %v4861_v52 = vpop.f32.mrf.mxu0 }
 0x9f6   : > { %v4977_v40 = vadd.f32 %v4861_v52, %v15996_v38  ;;  %v4512_v38 = vld [vmem:[%s19482_s5 + $0x18] sm:$0xff] }
 0x9f7   : > { %v16137_v21 = vadd.f32 %v4512_v38, %v15981_v28 }
 0x9f8   : > { %v4985_v61 = vmul.f32 0.2, %v4977_v40 }
 0x9f9   : > { %v4648_v28 = vadd.f32 %v16023_v23, %v16137_v21  ;;  %v4672_v60 = vadd.f32 %v16025_v12, %v16137_v21  ;;  %v4686_v23 = vmax.f32 %v4670_v22, %v4678_v18  ;;  %v12665_v12 = vld [vmem:[%s13019_s15 + $0x270] sm:$0xff] }
 0x9fa   : > { %v4993_v49 = vmax.f32 %v4977_v40, %v4985_v61  ;;  %5532 = vmatpush.bf16.msrb.mxu3 %v12665_v12 }
 0x9fb   : > { %v4656_v50 = vmul.f32 0.2, %v4648_v28  ;;  %v4680_v35 = vmul.f32 0.2, %v4672_v60 }
 0x9fc   : > { %v16109_v47 = vmax.f32 %v4969_v58, %v4993_v49  ;;  %v16125_v58 = vpop.f32.mrf.mxu2  ;;  %v16183_v49 = vadd.f32 %v16034_v54, %v16137_v21 }
 0x9fd   : > { %v16111_v45 = vpop.f32.mrf.mxu0  ;;  %v4688_v13 = vmax.f32 %v4672_v60, %v4680_v35 }
 0xa04   : > { %v16168_v19 = vpop.f32.mrf.mxu2 }
 0xa05   : > { %v4866_v20 = vpop.f32.mrf.mxu0 }
 0xa06   : > { %v4979_v2 = vadd.f32 %v4866_v20, %v16013_v42  ;;  %v4514_v42 = vld [vmem:[%s19482_s5 + $0x28] sm:$0xff] }
 0xa07   : > { %v16142_v33 = vadd.f32 %v4514_v42, %v15986_v8  ;;  %v16154_v8 = vadd.f32 %v4516_v11, %v15998_v16  ;;  %v12657_v16 = vld [vmem:[%s13019_s15 + $0x230] sm:$0xff]  ;;  %v4664_v42 = vmax.f32 %v4648_v28, %v4656_v50 }
 0xa08   : > { %v4987_v9 = vmul.f32 0.2, %v4979_v2 }
 0xa09   : > { %v16160_v46 = vadd.f32 %v16040_v48, %v16142_v33  ;;  %v16164_v31 = vadd.f32 %v16042_v39, %v16142_v33  ;;  %v4847_v48 = vpop.f32.mrf.mxu3  ;;  %v16174_v39 = vadd.f32 %v16058_v4, %v16154_v8  ;;  %v16178_v40 = vadd.f32 %v16060_v56, %v16154_v8  ;;  %v12656_v56 = vld [vmem:[%s13019_s15 + $0x228] sm:$0xff] }
 0xa0a   : > { %v4995_v24 = vmax.f32 %v4979_v2, %v4987_v9  ;;  %v4694_v2 = vmax.f32 %v4662_v55, %v4686_v23  ;;  %v4718_v9 = vmax.f32 %v4702_v0, %v4710_v44  ;;  %v16189_v4 = vadd.f32 %v16068_v34, %v16118_v27  ;;  %v12663_v55 = vld [vmem:[%s13019_s15 + $0x260] sm:$0xff]  ;;  %v12673_v23 = vld [vmem:[%s13019_s15 + $0x2b0] sm:$0xff] }
 0xa0b   : > { %v4658_v6 = vmul.f32 0.2, %v16160_v46  ;;  %v4682_v20 = vmul.f32 0.2, %v16164_v31  ;;  %v16196_v54 = vadd.f32 %v16052_v51, %v16142_v33  ;;  %v16200_v22 = vadd.f32 %v16064_v41, %v16154_v8 }
 0xa0c   : > { %v16134_v57 = vmax.f32 %v4971_v1, %v4995_v24  ;;  %v12658_v1 = vld [vmem:[%s13019_s15 + $0x238] sm:$0xff]  ;;  %v12664_v24 = vld [vmem:[%s13019_s15 + $0x268] sm:$0xff]  ;;  %v16204_v34 = vadd.f32 %v16089_v63, %v16137_v21  ;;  %v4660_v11 = vmul.f32 0.2, %v16174_v39  ;;  %v4684_v14 = vmul.f32 0.2, %v16178_v40 }
 0xa0d   : > { %v16139_v7 = vpop.f32.mrf.mxu0  ;;  %5482 = vmatpush.bf16.msrb.mxu2 %v12658_v1  ;;  %v4712_v51 = vmul.f32 0.2, %v16183_v49  ;;  %v4666_v0 = vmax.f32 %v16160_v46, %v4658_v6  ;;  %v4690_v28 = vmax.f32 %v16164_v31, %v4682_v20  ;;  %v16213_v41 = vadd.f32 %v16106_v36, %v16154_v8  ;;  %5533 = vmatpush.bf16.msrb.mxu3 %v12664_v24 }
 0xa0e   : > { %v16215_v60 = vmax.f32 %v4694_v2, %v4718_v9  ;;  %v16218_v63 = vadd.f32 %v4844_v59, %v16142_v33  ;;  %v4696_v46 = vmax.f32 %v4664_v42, %v4688_v13  ;;  %v4714_v31 = vmul.f32 0.2, %v16196_v54  ;;  %v12662_v9 = vld [vmem:[%s13019_s15 + $0x258] sm:$0xff] }
 0xa0f   : > { %v16228_v44 = vadd.f32 %v4847_v48, %v16048_v17  ;;  %v4716_v36 = vmul.f32 0.2, %v16200_v22  ;;  %v16234_v59 = vmul.f32 0.2, %v16204_v34  ;;  %v4692_v50 = vmax.f32 %v16178_v40, %v4684_v14  ;;  %v4820_v48 = vpop.f32.mrf.mxu2 }
 0xa10   : > { %v16240_v35 = vadd.f32 %v16098_v30, %v16142_v33  ;;  %v16245_v20 = vadd.f32 %v16085_v62, %v16137_v21  ;;  %v16249_v40 = vmul.f32 0.2, %v16218_v63  ;;  %v16253_v30 = vadd.f32 %v16166_v5, %v16048_v17  ;;  %v12654_v62 = vld [vmem:[%s13019_s15 + $0x218] sm:$0xff] }
 0xa11   : > { %5483 = vmatpush.bf16.msrb.mxu2 %v12657_v16  ;;  %v4791_v16 = vpop.f32.mrf.mxu1  ;;  %v4849_v6 = vpop.f32.mrf.mxu3  ;;  %v16257_v2 = vadd.f32 %v16168_v19, %v16048_v17  ;;  %5534 = vmatpush.bf16.msrb.mxu3 %v12663_v55  ;;  %v16267_v24 = vmul.f32 0.2, %v16228_v44  ;;  %v4724_v5 = vmax.f32 %v16200_v22, %v4716_v36  ;;  %v16278_v13 = vadd.f32 %v16072_v53, %v16118_v27 }
 0xa12   : > { %v16274_v42 = vadd.f32 %v4849_v6, %v16154_v8  ;;  %v16284_v22 = vadd.f32 %v16087_v29, %v16137_v21  ;;  %v4886_v14 = vadd.f32 %v16120_v10, %v16142_v33  ;;  %v16291_v53 = vadd.f32 %v16125_v58, %v16142_v33  ;;  %v12671_v58 = vld [vmem:[%s13019_s15 + $0x2a0] sm:$0xff] }
 0xa15   : > { %v4871_v52 = vpop.f32.mrf.mxu0  ;;  %5484 = vmatpush.bf16.msrb.mxu2 %v12656_v56  ;;  %v4722_v56 = vmax.f32 %v16196_v54, %v4714_v31  ;;  %v4744_v54 = vmul.f32 0.2, %v16245_v20  ;;  %5535 = vmatpush.bf16.msrb.mxu3 %v12662_v9  ;;  %v12661_v31 = vld [vmem:[%s13019_s15 + $0x250] sm:$0xff] }
 0xa16   : > { %v4981_v61 = vadd.f32 %v4871_v52, %v16030_v15  ;;  %v12674_v15 = vld [vmem:[%s13019_s15 + $0x2b8] sm:$0xff]  ;;  %v4720_v52 = vmax.f32 %v16183_v49, %v4712_v51  ;;  %v16260_v49 = vadd.f32 %v4791_v16, %v16154_v8  ;;  %v4895_v51 = vmul.f32 0.2, %v16253_v30 }
 0xa17   : > { %5580 = vmatpush.bf16.msra.mxu0 %v12674_v15  ;;  %v16271_v15 = vadd.f32 %v4820_v48, %v16154_v8  ;;  %v4967_v16 = vmax.f32 %v16228_v44, %v16267_v24  ;;  %v4752_v48 = vmax.f32 %v16245_v20, %v4744_v54  ;;  %v4894_v44 = vmul.f32 0.2, %v4886_v14  ;;  %v12660_v24 = vld [vmem:[%s13019_s15 + $0x248] sm:$0xff] }
 0xa18   : > { %v4989_v38 = vmul.f32 0.2, %v4981_v61  ;;  %v4728_v29 = vmax.f32 %v4696_v46, %v4720_v52  ;;  %v4960_v46 = vmul.f32 0.2, %v16274_v42  ;;  %v4892_v52 = vmul.f32 0.2, %v16284_v22 }
 0xa19   : > { %5485 = vmatpush.bf16.msrb.mxu2 %v12655_v37  ;;  %v4966_v37 = vmax.f32 %v16218_v63, %v16249_v40  ;;  %v4928_v10 = vmul.f32 0.2, %v16271_v15  ;;  %5536 = vmatpush.bf16.msrb.mxu3 %v12661_v31  ;;  %v11118_v63 = vld [vmem:[%s19478_s1 + $0x8] sm:$0xf]  ;;  %v12686_v40 = vld [vmem:[%s19478_s1 + $0x14] sm:$0xf0] }
 0xa1a   : > { %v4997_v18 = vmax.f32 %v4981_v61, %v4989_v38  ;;  %v4698_v61 = vmax.f32 %v4666_v0, %v4690_v28  ;;  %v12672_v38 = vld [vmem:[%s13019_s15 + $0x2a8] sm:$0xff]  ;;  %v4927_v0 = vmul.f32 0.2, %v16257_v2  ;;  %v4896_v28 = vmul.f32 0.2, %v16260_v49 }
 0xa1b   : > { %5581 = vmatpush.bf16.msra.mxu0 %v12673_v23  ;;  %v12653_v23 = vld [vmem:[%s13019_s15 + $0x210] sm:$0xff] }
 0xa1c   : > { %v16221_v1 = vmax.f32 %v16100_v26, %v4997_v18  ;;  %v4668_v26 = vmax.f32 %v16174_v39, %v4660_v11  ;;  %v4748_v39 = vmul.f32 0.2, %v16213_v41  ;;  %v4746_v11 = vmul.f32 0.2, %v16240_v35 }
 0xa1d   : > { %v16231_v12 = vpop.f32.mrf.mxu0  ;;  %5486 = vmatpush.bf16.msrb.mxu2 %v12654_v62  ;;  %v4730_v36 = vmax.f32 %v4698_v61, %v4722_v56  ;;  %v16311_v61 = vadd.f32 %v16091_v3, %v16137_v21  ;;  %v4903_v62 = vmax.f32 %v16253_v30, %v4895_v51  ;;  %v4935_v20 = vmax.f32 %v16257_v2, %v4927_v0  ;;  %v12652_v56 = vld [vmem:[%s13019_s15 + $0x208] sm:$0xff]  ;;  %v12670_v3 = vld [vmem:[%s13019_s15 + $0x298] sm:$0xff] }
 0xa1e   : > { %v4700_v19 = vmax.f32 %v4668_v26, %v4692_v50  ;;  %v4756_v18 = vmax.f32 %v16213_v41, %v4748_v39  ;;  %v4742_v26 = vmul.f32 0.2, %v16278_v13  ;;  %v4754_v50 = vmax.f32 %v16240_v35, %v4746_v11  ;;  %5537 = vmatpush.bf16.msrb.mxu3 %v12660_v24 }
 0xa1f   : > { %5582 = vmatpush.bf16.msra.mxu0 %v12672_v38  ;;  %v4926_v39 = vmul.f32 0.2, %v16291_v53  ;;  %v4904_v9 = vmax.f32 %v16260_v49, %v4896_v28  ;;  %v4936_v38 = vmax.f32 %v16271_v15, %v4928_v10  ;;  %v16329_v11 = vadd.f32 %v16231_v12, %v16142_v33  ;;  %v12659_v28 = vld [vmem:[%s13019_s15 + $0x240] sm:$0xff] }
 0xa20   : > { %v4732_v55 = vmax.f32 %v4700_v19, %v4724_v5  ;;  %v4750_v5 = vmax.f32 %v16278_v13, %v4742_v26  ;;  %v4882_v19 = vadd.f32 %v16074_v25, %v16118_v27  ;;  %v16333_v30 = vadd.f32 %v16078_v43, %v16118_v27 }
 0xa21   : > { %5487 = vmatpush.bf16.msrb.mxu2 %v12653_v23  ;;  %v4760_v2 = vmax.f32 %v4728_v29, %v4752_v48  ;;  %v4911_v49 = vmax.f32 %v16104_v32, %v4903_v62  ;;  %v4924_v13 = vmul.f32 0.2, %v16311_v61  ;;  %v4902_v25 = vmax.f32 %v4886_v14, %v4894_v44  ;;  %v12651_v32 = vld [vmem:[%s13019_s15 + $0x200] sm:$0xff]  ;;  %v12669_v29 = vld [vmem:[%s13019_s15 + $0x290] sm:$0xff] }
 0xa22   : > { %v4764_v6 = vmax.f32 %v4732_v55, %v4756_v18  ;;  %v4934_v54 = vmax.f32 %v16291_v53, %v4926_v39  ;;  %v4968_v43 = vmax.f32 %v16274_v42, %v4960_v46  ;;  %v4900_v12 = vmax.f32 %v16284_v22, %v4892_v52  ;;  %5538 = vmatpush.bf16.msrb.mxu3 %v12659_v28  ;;  %v12683_v48 = vld [vmem:[%s19478_s1 + $0x4] sm:$0xf]  ;;  %v11112_v52 = vld [vmem:[%s19478_s1 + $0x10] sm:$0xf0]  ;;  %v12690_v28 = vld [vmem:[%s19478_s1 + $0x34] sm:$0xf0] }
 0xa23   : > { %5583 = vmatpush.bf16.msra.mxu0 %v12671_v58  ;;  %v4943_v18 = vmax.f32 %v4911_v49, %v4935_v20  ;;  %v4980_v14 = vadd.f32 %v16139_v7, %v16137_v21  ;;  %v4990_v53 = vmul.f32 0.2, %v16329_v11  ;;  %v4890_v23 = vmul.f32 0.2, %v4882_v19  ;;  %v11110_v21 = vld [vmem:[%s19478_s1] sm:$0xf] }
 0xa24   : > { %v4912_v15 = vmax.f32 %v4764_v6, %v4904_v9  ;;  %v4922_v42 = vmul.f32 0.2, %v16333_v30  ;;  %v4908_v22 = vmax.f32 %v4760_v2, %v4900_v12  ;;  %v4932_v31 = vmax.f32 %v16311_v61, %v4924_v13  ;;  %v12685_v7 = vld [vmem:[%s19478_s1 + $0xc] sm:$0xf0]  ;;  %v12668_v6 = vld [vmem:[%s13019_s15 + $0x288] sm:$0xff] }
 0xa25   : > { %v4876_v41 = vpop.f32.mrf.mxu0  ;;  %5488 = vmatpush.bf16.msrb.mxu2 %v12652_v56  ;;  %v11111_v46 = vor.u32 %v12685_v7, %v11110_v21  ;;  %v4988_v61 = vmul.f32 0.2, %v4980_v14  ;;  %v4998_v44 = vmax.f32 %v16329_v11, %v4990_v53  ;;  %v4898_v62 = vmax.f32 %v4882_v19, %v4890_v23  ;;  %v12693_v53 = vld [vmem:[%s19478_s1 + $0x4c] sm:$0xf0]  ;;  %v11144_v23 = vld [vmem:[%s19478_s1 + $0x50] sm:$0xf0] }
 0xa26   : > { %v16315_v35 = vadd.f32 %v4876_v41, %v16048_v17  ;;  %v4762_v17 = vmax.f32 %v4730_v36, %v4754_v50  ;;  %v4944_v51 = vmax.f32 %v4912_v15, %v4936_v38  ;;  %v4758_v41 = vmax.f32 %v16215_v60, %v4750_v5  ;;  %v12676_v7 = vld [vmem:[%s13019_s15 + $0x2c8] sm:$0xff] }
 0xa27   : > { %5584 = vmatpush.bf16.msra.mxu0 %v12670_v3  ;;  %v4975_v60 = vmax.f32 %v4943_v18, %v4967_v16  ;;  %v4954_v38 = vmul.f32 0.2, %v16189_v4  ;;  %v4964_v56 = vmax.f32 %v16204_v34, %v16234_v59  ;;  %v12667_v3 = vld [vmem:[%s13019_s15 + $0x280] sm:$0xff]  ;;  %v4996_v19 = vmax.f32 %v4980_v14, %v4988_v61 }
 0xa28   : > { %v4991_v33 = vmul.f32 0.2, %v16315_v35  ;;  %v4910_v55 = vmax.f32 %v4762_v17, %v4902_v25  ;;  %v4976_v50 = vmax.f32 %v4944_v51, %v4968_v43  ;;  %v4906_v24 = vmax.f32 %v4758_v41, %v4898_v62  ;;  %v12682_v43 = vld [vmem:[%s13019_s15 + $0x2f8] sm:$0xff]  ;;  %v11142_v14 = vld [vmem:[%s19478_s1 + $0x40] sm:$0xf] }
 0xa29   : > { %5489 = vmatpush.bf16.msrb.mxu2 %v12651_v32  ;;  %v11119_v34 = vor.u32 %v12686_v40, %v11118_v63  ;;  %v4962_v59 = vmax.f32 %v16189_v4, %v4954_v38  ;;  %v12689_v4 = vld [vmem:[%s19478_s1 + $0x2c] sm:$0xf0]  ;;  %v11134_v32 = vld [vmem:[%s19478_s1 + $0x28] sm:$0xf]  ;;  %v12691_v41 = vld [vmem:[%s19478_s1 + $0x44] sm:$0xf] }
 0xa2a   : > { %v4942_v58 = vmax.f32 %v4910_v55, %v4934_v54  ;;  %v4999_v36 = vmax.f32 %v16315_v35, %v4991_v33  ;;  %v11115_v35 = vor.u32 %v12683_v48, %v11112_v52  ;;  %v11126_v33 = vld [vmem:[%s19478_s1 + $0x20] sm:$0xf]  ;;  %v12680_v55 = vld [vmem:[%s13019_s15 + $0x2e8] sm:$0xff]  ;;  %v11120_v48 = vld [vmem:[%s19478_s1 + $0x18] sm:$0xf0] }
 0xa2b   : > { %5585 = vmatpush.bf16.msra.mxu0 %v12669_v29  ;;  %v11127_v12 = vor.u32 %v12689_v4, %v11126_v33  ;;  %v11135_v29 = vor.u32 %v12690_v28, %v11134_v32  ;;  %v12695_v52 = vld [vmem:[%s19478_s1 + $0x64] sm:$0xf]  ;;  %v12698_v62 = vld [vmem:[%s19478_s1 + $0x74] sm:$0xf0]  ;;  %v12705_v63 = vld [vmem:[%s19478_s1 + $0xac] sm:$0xf0] }
 0xa2c   : > { %5490 = vmatmul.bf16.vlgmr.msrb.gmra.mxu2 %v11111_v46  ;;  %v4974_v16 = vmax.f32 %v4942_v58, %v4966_v37  ;;  %v5007_v20 = vmax.f32 %v4975_v60, %v4999_v36  ;;  %5539 = vmatmul.bf16.vlgmr.msrb.gmra.mxu3 %v11115_v35  ;;  %v11150_v58 = vld [vmem:[%s19478_s1 + $0x48] sm:$0xf]  ;;  %v12694_v36 = vld [vmem:[%s19478_s1 + $0x54] sm:$0xf0]  ;;  %v12684_v60 = vld [vmem:[%s19478_s1 + $0xc] sm:$0xf] }
 0xa2d   : > { %v4878_v0 = vpop.f32.mrf.mxu0  ;;  %v11151_v21 = vor.u32 %v12694_v36, %v11150_v58  ;;  %v12697_v46 = vld [vmem:[%s19478_s1 + $0x6c] sm:$0xf0]  ;;  %v11166_v35 = vld [vmem:[%s19478_s1 + $0x68] sm:$0xf]  ;;  %v12699_v38 = vld [vmem:[%s19478_s1 + $0x84] sm:$0xf] }
 0xa2e   : > { %v4984_v10 = vadd.f32 %v4878_v0, %v16154_v8  ;;  %v4978_v8 = vadd.f32 %v16111_v45, %v16118_v27  ;;  %v4930_v45 = vmax.f32 %v16333_v30, %v4922_v42  ;;  %v4940_v27 = vmax.f32 %v4908_v22, %v4932_v31  ;;  %v5009_v0 = vld [vmem:[%s19484_s7] sm:$0xf]  ;;  %v12678_v31 = vld [vmem:[%s13019_s15 + $0x2d8] sm:$0xff]  ;;  %v12696_v33 = vld [vmem:[%s19478_s1 + $0x6c] sm:$0xf] }
 0xa2f   : > { %5586 = vmatpush.bf16.msra.mxu0 %v12668_v6  ;;  %v5006_v17 = vmax.f32 %v4974_v16, %v4998_v44  ;;  %v11143_v42 = vor.u32 %v12693_v53, %v11142_v14  ;;  %v11147_v22 = vor.u32 %v12691_v41, %v11144_v23  ;;  %v11160_v6 = vld [vmem:[%s19478_s1 + $0x70] sm:$0xf0]  ;;  %v11123_v44 = vor.u32 %v12684_v60, %v11120_v48  ;;  %v11174_v16 = vld [vmem:[%s19478_s1 + $0x80] sm:$0xf]  ;;  %v11152_v40 = vld [vmem:[%s19478_s1 + $0x58] sm:$0xf0] }
 0xa30   : > { %v4992_v26 = vmul.f32 0.2, %v4984_v10  ;;  %v4986_v5 = vmul.f32 0.2, %v4978_v8  ;;  %v4938_v30 = vmax.f32 %v4906_v24, %v4930_v45  ;;  %v4972_v2 = vmax.f32 %v4940_v27, %v4964_v56  ;;  %v12688_v27 = vld [vmem:[%s19478_s1 + $0x2c] sm:$0xf] }
 0xa31   : > { %v5012_v15 = vpack.c.bf16 %v5006_v17, %v16221_v1  ;;  %v12687_v1 = vld [vmem:[%s19478_s1 + $0x24] sm:$0xf]  ;;  %v11167_v45 = vor.u32 %v12698_v62, %v11166_v35  ;;  %v11176_v56 = vld [vmem:[%s19478_s1 + $0x90] sm:$0xf0]  ;;  %v12702_v17 = vld [vmem:[%s19478_s1 + $0x94] sm:$0xf0] }
 0xa32   : > { %v5000_v39 = vmax.f32 %v4984_v10, %v4992_v26  ;;  %v4994_v37 = vmax.f32 %v4978_v8, %v4986_v5  ;;  %v5004_v49 = vmax.f32 %v4972_v2, %v4996_v19  ;;  %v4970_v13 = vmax.f32 %v4938_v30, %v4962_v59  ;;  %v12679_v10 = vld [vmem:[%s13019_s15 + $0x2e0] sm:$0xff]  ;;  %v12677_v26 = vld [vmem:[%s13019_s15 + $0x2d0] sm:$0xff]  ;;  %v11182_v19 = vld [vmem:[%s19478_s1 + $0x88] sm:$0xf] }
 0xa33   : > { %5587 = vmatpush.bf16.msra.mxu0 %v12667_v3  ;;  %v12675_v8 = vld [vmem:[%s13019_s15 + $0x2c0] sm:$0xff]  ;;  %v11179_v5 = vor.u32 %v12699_v38, %v11176_v56  ;;  %v12692_v30 = vld [vmem:[%s19478_s1 + $0x4c] sm:$0xf]  ;;  %v11192_v59 = vld [vmem:[%s19478_s1 + $0xb0] sm:$0xf0] }
 0xa34   : > { %v5008_v9 = vmax.f32 %v4976_v50, %v5000_v39  ;;  %v5002_v25 = vmax.f32 %v4970_v13, %v4994_v37  ;;  %v5011_v54 = vpack.c.bf16 %v5004_v49, %v16134_v57  ;;  %v11128_v57 = vld [vmem:[%s19478_s1 + $0x30] sm:$0xf0]  ;;  %v11158_v50 = vld [vmem:[%s19478_s1 + $0x60] sm:$0xf]  ;;  %v11163_v39 = vor.u32 %v12695_v52, %v11160_v6  ;;  %v11198_v13 = vld [vmem:[%s19478_s1 + $0xa8] sm:$0xf] }
 0xa35   : > { %v11131_v51 = vor.u32 %v12687_v1, %v11128_v57  ;;  %v11159_v61 = vor.u32 %v12697_v46, %v11158_v50  ;;  %v11190_v2 = vld [vmem:[%s19478_s1 + $0xa0] sm:$0xf]  ;;  %v11155_v49 = vor.u32 %v12692_v30, %v11152_v40  ;;  %v12709_v1 = vld [vmem:[%s19478_s1 + $0xcc] sm:$0xf0]  ;;  %v11208_v57 = vld [vmem:[%s19478_s1 + $0xd0] sm:$0xf0] }
 0xa36   : > { %v5013_v11 = vpack.c.bf16 %v5008_v9, %v5007_v20  ;;  %5588 = vmatmul.bf16.vlgmr.msra.gmra.mxu0 %v11119_v34  ;;  %v5010_v18 = vpack.c.bf16 %v5002_v25, %v16109_v47  ;;  %v12681_v47 = vld [vmem:[%s13019_s15 + $0x2f0] sm:$0xff]  ;;  %v11136_v9 = vld [vmem:[%s19478_s1 + $0x38] sm:$0xf0]  ;;  %v12703_v34 = vld [vmem:[%s19478_s1 + $0xa4] sm:$0xf]  ;;  %v11191_v37 = vor.u32 %v12705_v63, %v11190_v2 }
 0xa37   : > { %v12701_v20 = vld [vmem:[%s19478_s1 + $0x8c] sm:$0xf0]  ;;  %v11139_v3 = vor.u32 %v12688_v27, %v11136_v9  ;;  %v12706_v25 = vld [vmem:[%s19478_s1 + $0xb4] sm:$0xf0]  ;;  %v11206_v4 = vld [vmem:[%s19478_s1 + $0xc0] sm:$0xf] }
 0xa38   : > { %5022 = vmatpush.bf16.msrb.mxu1 %v5013_v11  ;;  %v11175_v24 = vor.u32 %v12701_v20, %v11174_v16  ;;  %v11183_v11 = vor.u32 %v12702_v17, %v11182_v19  ;;  %v11214_v32 = vld [vmem:[%s19478_s1 + $0xc8] sm:$0xf]  ;;  %v12710_v28 = vld [vmem:[%s19478_s1 + $0xd4] sm:$0xf0]  ;;  %v12713_v14 = vld [vmem:[%s19478_s1 + $0xec] sm:$0xf0] }
 0xa39   : > { %v11184_v53 = vld [vmem:[%s19478_s1 + $0x98] sm:$0xf0]  ;;  %v11224_v41 = vld [vmem:[%s19478_s1 + $0xf0] sm:$0xf0]  ;;  %v12714_v58 = vld [vmem:[%s19478_s1 + $0xf4] sm:$0xf0] }
 0xa3a   : > { %v12708_v52 = vld [vmem:[%s19478_s1 + $0xcc] sm:$0xf]  ;;  %v11216_v6 = vld [vmem:[%s19478_s1 + $0xd8] sm:$0xf0]  ;;  %v5014_v62 = vld [vmem:[%s19485_s8] sm:$0x7f] }
 0xa3c   : > { %5023 = vmatpush.bf16.msrb.mxu1 %v5012_v15  ;;  %5495 = vmatmul.bf16.gmra.mxu2 %v11127_v12  ;;  %v11195_v15 = vor.u32 %v12703_v34, %v11192_v59  ;;  %v12707_v12 = vld [vmem:[%s19478_s1 + $0xc4] sm:$0xf] }
 0xa3d   : > { %5544 = vmatmul.bf16.gmra.mxu3 %v11131_v51 }
 0xa40   : > { %5024 = vmatpush.bf16.msrb.mxu1 %v5011_v54  ;;  %v11199_v54 = vor.u32 %v12706_v25, %v11198_v13 }
 0xa44   : > { %5025 = vmatpush.bf16.msrb.mxu1 %v5010_v18  ;;  %v11207_v18 = vor.u32 %v12709_v1, %v11206_v4 }
 0xa46   : > { %5593 = vmatmul.bf16.gmra.mxu0 %v11135_v29  ;;  %v12700_v29 = vld [vmem:[%s19478_s1 + $0x8c] sm:$0xf] }
 0xa47   : > { %11042 = vmatmul.msk.bf16.vlgmr.msrb.gmra.mxu1 %vm1064_vm0, %v5009_v0  ;;  %v11211_v0 = vor.u32 %v12707_v12, %v11208_v57 }
 0xa48   : > { %5629 = vmatpush.bf16.msra.mxu1 %v12682_v43  ;;  %v11168_v43 = vld [vmem:[%s19478_s1 + $0x78] sm:$0xf0] }
 0xa49   : > { %v11171_v51 = vor.u32 %v12696_v33, %v11168_v43 }
 0xa4c   : > { %5630 = vmatpush.bf16.msra.mxu1 %v12681_v47  ;;  %5500 = vmatmul.bf16.gmra.mxu2 %v11143_v42  ;;  %v11215_v47 = vor.u32 %v12710_v28, %v11214_v32  ;;  %v11187_v42 = vor.u32 %v12700_v29, %v11184_v53 }
 0xa4d   : > { %5549 = vmatmul.bf16.gmra.mxu3 %v11147_v22 }
 0xa50   : > { %5631 = vmatpush.bf16.msra.mxu1 %v12680_v55  ;;  %v11222_v55 = vld [vmem:[%s19478_s1 + $0xe0] sm:$0xf] }
 0xa51   : > { %v11223_v23 = vor.u32 %v12713_v14, %v11222_v55 }
 0xa54   : > { %5632 = vmatpush.bf16.msra.mxu1 %v12679_v10  ;;  %v12711_v10 = vld [vmem:[%s19478_s1 + $0xe4] sm:$0xf] }
 0xa55   : > { %v11227_v22 = vor.u32 %v12711_v10, %v11224_v41 }
 0xa56   : > { %5598 = vmatmul.bf16.gmra.mxu0 %v11151_v21  ;;  %v11200_v21 = vld [vmem:[%s19478_s1 + $0xb8] sm:$0xf0] }
 0xa58   : > { %5633 = vmatpush.bf16.msra.mxu1 %v12678_v31  ;;  %v11230_v31 = vld [vmem:[%s19478_s1 + $0xe8] sm:$0xf] }
 0xa59   : > { %v11231_v36 = vor.u32 %v12714_v58, %v11230_v31 }
 0xa5c   : > { %5634 = vmatpush.bf16.msra.mxu1 %v12677_v26  ;;  %5505 = vmatmul.bf16.gmra.mxu2 %v11159_v61  ;;  %v12704_v26 = vld [vmem:[%s19478_s1 + $0xac] sm:$0xf] }
 0xa5d   : > { %5554 = vmatmul.bf16.gmra.mxu3 %v11163_v39  ;;  %v11219_v39 = vor.u32 %v12708_v52, %v11216_v6 }
 0xa60   : > { %5635 = vmatpush.bf16.msra.mxu1 %v12676_v7  ;;  %v11203_v7 = vor.u32 %v12704_v26, %v11200_v21 }
 0xa64   : > { %5636 = vmatpush.bf16.msra.mxu1 %v12675_v8 }
 0xa66   : > { %5603 = vmatmul.bf16.gmra.mxu0 %v11167_v45 }
 0xa67   : > { %5637 = vmatmul.bf16.vlgmr.msra.gmra.mxu1 %v11123_v44 }
 0xa6c   : > { %5510 = vmatmul.bf16.gmra.mxu2 %v11175_v24 }
 0xa6d   : > { %5559 = vmatmul.bf16.gmra.mxu3 %v11179_v5  ;;  %v11232_v5 = vld [vmem:[%s19478_s1 + $0xf8] sm:$0xf0] }
 0xa76   : > { %5608 = vmatmul.bf16.gmra.mxu0 %v11183_v11 }
 0xa77   : > { %5642 = vmatmul.bf16.gmra.mxu1 %v11139_v3  ;;  %v12712_v3 = vld [vmem:[%s19478_s1 + $0xec] sm:$0xf] }
 0xa78   : > { %v11235_v11 = vor.u32 %v12712_v3, %v11232_v5 }
 0xa7c   : > { %5515 = vmatmul.bf16.gmra.mxu2 %v11191_v37 }
 0xa7d   : > { %5564 = vmatmul.bf16.gmra.mxu3 %v11195_v15 }
 0xa86   : > { %5613 = vmatmul.bf16.gmra.mxu0 %v11199_v54 }
 0xa87   : > { %5647 = vmatmul.bf16.gmra.mxu1 %v11155_v49 }
 0xa8c   : > { %5520 = vmatmul.bf16.gmra.mxu2 %v11207_v18 }
 0xa8d   : > { %5569 = vmatmul.bf16.gmra.mxu3 %v11211_v0 }
 0xa96   : > { %5618 = vmatmul.bf16.gmra.mxu0 %v11215_v47 }
 0xa97   : > { %5652 = vmatmul.bf16.gmra.mxu1 %v11171_v51 }
 0xa9c   : > { %5525 = vmatmul.bf16.gmra.mxu2 %v11223_v23 }
 0xa9d   : > { %5574 = vmatmul.bf16.gmra.mxu3 %v11227_v22 }
 0xaa6   : > { %5623 = vmatmul.bf16.gmra.mxu0 %v11231_v36 }
 0xaa7   : > { %5657 = vmatmul.bf16.gmra.mxu1 %v11187_v42 }
 0xaaf   : > { %v5491_v8 = vpop.f32.mrf.mxu2  ;;  %v5540_v60 = vpop.f32.mrf.mxu3 }
 0xab0   : > { %v5541_v50 = vadd.f32 %v5540_v60, %v5491_v8 }
 0xab3   : > { %v5589_v46 = vpop.f32.mrf.mxu0 }
 0xab4   : > { %v5590_v48 = vadd.f32 %v5589_v46, %v5541_v50 }
 0xab7   : > { %5662 = vmatmul.bf16.gmra.mxu1 %v11203_v7  ;;  %v16566_v61 = vpop.f32.mrf.mxu2  ;;  %v16568_v44 = vpop.f32.mrf.mxu3 }
 0xabb   : > { %v16570_v35 = vpop.f32.mrf.mxu0 }
 0xabf   : > { %v5496_v16 = vpop.f32.mrf.mxu2 }
 0xac0   : > { %v5545_v20 = vpop.f32.mrf.mxu3 }
 0xac1   : > { %v5546_v9 = vadd.f32 %v5545_v20, %v5496_v16 }
 0xac3   : > { %v5594_v38 = vpop.f32.mrf.mxu0 }
 0xac4   : > { %v5027_v45 = vpop.f32.mrf.mxu1  ;;  %v5595_v56 = vadd.f32 %v5594_v38, %v5546_v9 }
 0xac5   : > { %v5028_v27 = vadd.f32 %v5027_v45, %v5014_v62 }
 0xac7   : > { %5667 = vmatmul.bf16.gmra.mxu1 %v11219_v39  ;;  %11043 = vst [vmem:[%s14904_s17 + $0x8] sm:$0x7f] %v5028_v27  ;;  %v16582_v19 = vpop.f32.mrf.mxu2 }
 0xac8   : > { %v16584_v17 = vpop.f32.mrf.mxu3 }
 0xacb   : > { %v16586_v30 = vpop.f32.mrf.mxu0 }
 0xacc   : > { %v5029_v24 = vpop.f32.mrf.mxu1 }
 0xacf   : > { %v5501_v2 = vpop.f32.mrf.mxu2 }
 0xad0   : > { %v5550_v63 = vpop.f32.mrf.mxu3 }
 0xad1   : > { %v5551_v40 = vadd.f32 %v5550_v63, %v5501_v2 }
 0xad3   : > { %v5599_v34 = vpop.f32.mrf.mxu0 }
 0xad4   : > { %v5600_v59 = vadd.f32 %v5599_v34, %v5551_v40 }
 0xad7   : > { %5672 = vmatmul.bf16.gmra.mxu1 %v11235_v11  ;;  %v16588_v37 = vpop.f32.mrf.mxu2 }
 0xad8   : > { %v16590_v49 = vpop.f32.mrf.mxu3 }
 0xadb   : > { %v16592_v15 = vpop.f32.mrf.mxu0 }
 0xadf   : > { %v5506_v54 = vpop.f32.mrf.mxu2 }
 0xae0   : > { %v5555_v33 = vpop.f32.mrf.mxu3 }
 0xae1   : > { %v5556_v4 = vadd.f32 %v5555_v33, %v5506_v54 }
 0xae3   : > { %v5604_v1 = vpop.f32.mrf.mxu0 }
 0xae4   : > { %v5638_v13 = vpop.f32.mrf.mxu1  ;;  %v5605_v12 = vadd.f32 %v5604_v1, %v5556_v4 }
 0xae5   : > { %v16594_v25 = vadd.f32 %v5638_v13, %v5590_v48 }
 0xae7   : > { %19580 = vst [vmem:[#allocation2_spill] sm:$0xff] %v16594_v25  ;;  %v16598_v57 = vpop.f32.mrf.mxu2 }
 0xae8   : > { %v16600_v18 = vpop.f32.mrf.mxu3 }
 0xaeb   : > { %v16602_v51 = vpop.f32.mrf.mxu0 }
 0xaec   : > { %v16596_v43 = vpop.f32.mrf.mxu1 }
 0xaef   : > { %v5511_v28 = vpop.f32.mrf.mxu2 }
 0xaf0   : > { %v5560_v47 = vpop.f32.mrf.mxu3 }
 0xaf1   : > { %v5561_v29 = vadd.f32 %v5560_v47, %v5511_v28 }
 0xaf3   : > { %v5609_v14 = vpop.f32.mrf.mxu0 }
 0xaf4   : > { %v5643_v0 = vpop.f32.mrf.mxu1  ;;  %v5610_v53 = vadd.f32 %v5609_v14, %v5561_v29 }
 0xaf5   : > { %v16604_v32 = vadd.f32 %v5643_v0, %v5595_v56 }
 0xaf7   : > { %v5513_v31 = vpop.f32.mrf.mxu2 }
 0xaf8   : > { %v5562_v58 = vpop.f32.mrf.mxu3 }
 0xafb   : > { %v5611_v26 = vpop.f32.mrf.mxu0 }
 0xafc   : > { %v16606_v55 = vpop.f32.mrf.mxu1 }
 0xaff   : > { %v5516_v21 = vpop.f32.mrf.mxu2 }
 0xb00   : > { %v5565_v7 = vpop.f32.mrf.mxu3 }
 0xb03   : > { %v5614_v50 = vpop.f32.mrf.mxu0 }
 0xb04   : > { %v5648_v10 = vpop.f32.mrf.mxu1 }
 0xb05   : > { %v16608_v41 = vadd.f32 %v5648_v10, %v5600_v59 }
 0xb07   : > { %v5518_v46 = vpop.f32.mrf.mxu2 }
 0xb08   : > { %v5567_v52 = vpop.f32.mrf.mxu3 }
 0xb0b   : > { %v5616_v6 = vpop.f32.mrf.mxu0 }
 0xb0c   : > { %v16610_v23 = vpop.f32.mrf.mxu1 }
 0xb0f   : > { %v5521_v62 = vpop.f32.mrf.mxu2 }
 0xb10   : > { %v5570_v45 = vpop.f32.mrf.mxu3 }
 0xb11   : > { %v5571_v33 = vadd.f32 %v5570_v45, %v5521_v62  ;;  %v5563_v45 = vadd.f32 %v5562_v58, %v5513_v31  ;;  %v5553_v31 = vadd.f32 %v16590_v49, %v16588_v37  ;;  %v5543_v49 = vadd.f32 %v16568_v44, %v16566_v61  ;;  %v12716_v61 = vld [vmem:[%s19479_s2 + $0x8] sm:$0xff]  ;;  %v12717_v44 = vld [vmem:[%s19479_s2 + $0x10] sm:$0xff] }
 0xb13   : > { %v5619_v27 = vpop.f32.mrf.mxu0 }
 0xb14   : > { %v5653_v42 = vpop.f32.mrf.mxu1  ;;  %v5620_v47 = vadd.f32 %v5619_v27, %v5571_v33  ;;  %v5612_v27 = vadd.f32 %v5611_v26, %v5563_v45  ;;  %v5602_v26 = vadd.f32 %v16592_v15, %v5553_v31  ;;  %v12786_v33 = vld [vmem:[%s19483_s6 + $0x1f4] sm:$0xf0]  ;;  %v12746_v45 = vld [vmem:[%s19483_s6 + $0x164] sm:$0xf0] }
 0xb15   : > { %v16612_v22 = vadd.f32 %v5653_v42, %v5605_v12  ;;  %v5566_v42 = vadd.f32 %v5565_v7, %v5516_v21  ;;  %v5558_v21 = vadd.f32 %v16600_v18, %v16598_v57  ;;  %v5548_v57 = vadd.f32 %v16584_v17, %v16582_v19  ;;  %v19581_v17 = vld [vmem:[#allocation2_spill] sm:$0xff]  ;;  %v11478_v31 = vld [vmem:[%s19483_s6 + $0x108] sm:$0xf] }
 0xb17   : > { %v5523_v20 = vpop.f32.mrf.mxu2 }
 0xb18   : > { %v5572_v9 = vpop.f32.mrf.mxu3 }
 0xb19   : > { %v5573_v4 = vadd.f32 %v5572_v9, %v5523_v20 }
 0xb1b   : > { %v5621_v38 = vpop.f32.mrf.mxu0 }
 0xb1c   : > { %v5655_v36 = vpop.f32.mrf.mxu1  ;;  %v5622_v29 = vadd.f32 %v5621_v38, %v5573_v4 }
 0xb1f   : > { %v5526_v24 = vpop.f32.mrf.mxu2 }
 0xb20   : > { %v5575_v3 = vpop.f32.mrf.mxu3 }
 0xb21   : > { %v5576_v34 = vadd.f32 %v5575_v3, %v5526_v24  ;;  %v5615_v3 = vadd.f32 %v5614_v50, %v5566_v42 }
 0xb23   : > { %v5624_v11 = vpop.f32.mrf.mxu0 }
 0xb24   : > { %v5658_v8 = vpop.f32.mrf.mxu1  ;;  %v5625_v54 = vadd.f32 %v5624_v11, %v5576_v34  ;;  %v11526_v34 = vld [vmem:[%s19483_s6 + $0x1c8] sm:$0xf] }
 0xb25   : > { %v5659_v60 = vadd.f32 %v5658_v8, %v5610_v53  ;;  %v5568_v8 = vadd.f32 %v5567_v52, %v5518_v46 }
 0xb27   : > { %v5528_v2 = vpop.f32.mrf.mxu2 }
 0xb28   : > { %v5577_v63 = vpop.f32.mrf.mxu3 }
 0xb29   : > { %v5578_v59 = vadd.f32 %v5577_v63, %v5528_v2  ;;  %v5617_v2 = vadd.f32 %v5616_v6, %v5568_v8  ;;  %v11502_v6 = vld [vmem:[%s19483_s6 + $0x180] sm:$0xf]  ;;  %v12751_v63 = vld [vmem:[%s19483_s6 + $0x1c4] sm:$0xf] }
 0xb2a   : > { %v11486_v8 = vld [vmem:[%s19483_s6 + $0x140] sm:$0xf] }
 0xb2b   : > { %v5626_v13 = vpop.f32.mrf.mxu0 }
 0xb2c   : > { %v5660_v48 = vpop.f32.mrf.mxu1  ;;  %v5627_v1 = vadd.f32 %v5626_v13, %v5578_v59  ;;  %v12754_v13 = vld [vmem:[%s19483_s6 + $0x1e4] sm:$0xf0] }
 0xb2d   : > { %v5661_v38 = vadd.f32 %v5660_v48, %v5612_v27  ;;  %v5651_v48 = vadd.f32 %v16610_v23, %v5602_v26  ;;  %v5592_v23 = vadd.f32 %v16570_v35, %v5543_v49  ;;  %v11518_v35 = vld [vmem:[%s19483_s6 + $0x1c0] sm:$0xf]  ;;  %v16699_v4 = vor.u32 %v12754_v13, %v11526_v34  ;;  %v11606_v26 = vld [vmem:[%s19483_s6 + $0x118] sm:$0xf]  ;;  %v12735_v49 = vld [vmem:[%s19483_s6 + $0xc4] sm:$0xf] }
 0xb2e   : > { %v11470_v27 = vld [vmem:[%s19483_s6 + $0x100] sm:$0xf]  ;;  %v11574_v13 = vld [vmem:[%s19483_s6 + $0x98] sm:$0xf] }
 0xb2f   : > { %v5682_v7 = vpack.c.bf16 %v5661_v38, %v5659_v60  ;;  %v5680_v18 = vpack.c.bf16 %v5651_v48, %v16608_v41  ;;  %v12718_v60 = vld [vmem:[%s19479_s2 + $0x18] sm:$0xff]  ;;  %6109 = vmatpush.bf16.msrb.mxu1 %v16699_v4 }
 0xb30   : > { %v12774_v48 = vld [vmem:[%s19483_s6 + $0x134] sm:$0xf0] }
 0xb31   : > { %v5795_v46 = vsel %vm1064_vm0, %v5682_v7, 0  ;;  %v5789_v37 = vsel %vm1064_vm0, %v5680_v18, 0 }
 0xb34   : > { %v5663_v39 = vpop.f32.mrf.mxu1 }
 0xb35   : > { %v5664_v20 = vadd.f32 %v5663_v39, %v5615_v3  ;;  %v12749_v39 = vld [vmem:[%s19483_s6 + $0x19c] sm:$0xf0]  ;;  %v12743_v3 = vld [vmem:[%s19483_s6 + $0x144] sm:$0xf] }
 0xb3c   : > { %v5665_v16 = vpop.f32.mrf.mxu1 }
 0xb3d   : > { %v5666_v11 = vadd.f32 %v5665_v16, %v5617_v2  ;;  %v16672_v16 = vor.u32 %v12749_v39, %v11502_v6  ;;  %v11440_v39 = vld [vmem:[%s19483_s6 + $0xa0] sm:$0xf0] }
 0xb3f   : > { %v5683_v9 = vpack.c.bf16 %v5666_v11, %v5664_v20  ;;  %v11488_v11 = vld [vmem:[%s19483_s6 + $0x160] sm:$0xf0]  ;;  %v11622_v20 = vld [vmem:[%s19483_s6 + $0x158] sm:$0xf] }
 0xb40   : > { %v16761_v38 = vor.u32 %v12743_v3, %v11488_v11  ;;  %v11558_v3 = vld [vmem:[%s19483_s6 + $0x58] sm:$0xf] }
 0xb44   : > { %v5668_v56 = vpop.f32.mrf.mxu1 }
 0xb45   : > { %v5669_v25 = vadd.f32 %v5668_v56, %v5620_v47  ;;  %v12719_v56 = vld [vmem:[%s19479_s2 + $0x20] sm:$0xff] }
 0xb4c   : > { %v5670_v5 = vpop.f32.mrf.mxu1 }
 0xb4d   : > { %v5671_v53 = vadd.f32 %v5670_v5, %v5622_v29  ;;  %v5798_v5 = vsel %vm1064_vm0, %v5683_v9, 0  ;;  %v12750_v29 = vld [vmem:[%s19483_s6 + $0x1a4] sm:$0xf0]  ;;  %v12778_v9 = vld [vmem:[%s19483_s6 + $0x174] sm:$0xf0] }
 0xb4e   : > { %v16770_v7 = vor.u32 %v12778_v9, %v11622_v20  ;;  %v12722_v20 = vld [vmem:[%s19479_s2 + $0x38] sm:$0xff]  ;;  %v11406_v9 = vld [vmem:[%s19483_s6] sm:$0xf] }
 0xb4f   : > { %v5684_v24 = vpack.c.bf16 %v5671_v53, %v5669_v25  ;;  %v5607_v25 = vadd.f32 %v16602_v51, %v5558_v21  ;;  %v5597_v51 = vadd.f32 %v16586_v30, %v5548_v57  ;;  %v12782_v53 = vld [vmem:[%s19483_s6 + $0x1b4] sm:$0xf0]  ;;  %v12720_v57 = vld [vmem:[%s19479_s2 + $0x28] sm:$0xff] }
 0xb51   : > { %v5801_v62 = vsel %vm1064_vm0, %v5684_v24, 0  ;;  %v5656_v50 = vadd.f32 %v5655_v36, %v5607_v25  ;;  %v5646_v36 = vadd.f32 %v16606_v55, %v5597_v51  ;;  %v12715_v55 = vld [vmem:[%s19479_s2] sm:$0xff]  ;;  %v16803_v51 = vor.u32 %v12774_v48, %v11606_v26 }
 0xb52   : > { %v12745_v24 = vld [vmem:[%s19483_s6 + $0x15c] sm:$0xf0] }
 0xb53   : > { %v5681_v58 = vpack.c.bf16 %v5656_v50, %v16612_v22  ;;  %v5679_v15 = vpack.c.bf16 %v5646_v36, %v16604_v32  ;;  %v5641_v22 = vadd.f32 %v16596_v43, %v5592_v23  ;;  %v12753_v43 = vld [vmem:[%s19483_s6 + $0x1dc] sm:$0xf0]  ;;  %v16739_v2 = vor.u32 %v12745_v24, %v11486_v8  ;;  %v12739_v50 = vld [vmem:[%s19483_s6 + $0x104] sm:$0xf]  ;;  %v11430_v8 = vld [vmem:[%s19483_s6 + $0x48] sm:$0xf] }
 0xb54   : > { %v5673_v40 = vpop.f32.mrf.mxu1  ;;  %v16659_v32 = vor.u32 %v12753_v43, %v11518_v35  ;;  %v11454_v36 = vld [vmem:[%s19483_s6 + $0xc0] sm:$0xf]  ;;  %v11456_v23 = vld [vmem:[%s19483_s6 + $0xe0] sm:$0xf0]  ;;  %v12730_v24 = vld [vmem:[%s19483_s6 + $0x64] sm:$0xf0] }
 0xb55   : > { %v5674_v0 = vadd.f32 %v5673_v40, %v5625_v54  ;;  %v5792_v52 = vsel %vm1064_vm0, %v5681_v58, 0  ;;  %v5786_v19 = vsel %vm1064_vm0, %v5679_v15, 0  ;;  %v5678_v41 = vpack.c.bf16 %v5641_v22, %v19581_v17  ;;  %v11520_v40 = vld [vmem:[%s19483_s6 + $0x1e0] sm:$0xf0]  ;;  %v11654_v54 = vld [vmem:[%s19483_s6 + $0x1d8] sm:$0xf] }
 0xb56   : > { %6051 = vmatpush.bf16.msra.mxu3 %v16659_v32  ;;  %v16688_v59 = vor.u32 %v12751_v63, %v11520_v40  ;;  %v12742_v58 = vld [vmem:[%s19483_s6 + $0x124] sm:$0xf0]  ;;  %v16829_v17 = vor.u32 %v12735_v49, %v11456_v23  ;;  %v11438_v35 = vld [vmem:[%s19483_s6 + $0x80] sm:$0xf]  ;;  %v16905_v11 = vor.u32 %v12730_v24, %v11430_v8  ;;  %v12744_v8 = vld [vmem:[%s19483_s6 + $0x14c] sm:$0xf] }
 0xb57   : > { %v5783_v30 = vsel %vm1064_vm0, %v5678_v41, 0  ;;  %v16801_v18 = vor.u32 %v12742_v58, %v11478_v31  ;;  %v11462_v22 = vld [vmem:[%s19483_s6 + $0xc8] sm:$0xf]  ;;  %v12733_v43 = vld [vmem:[%s19483_s6 + $0x9c] sm:$0xf0] }
 0xb58   : > { %6080 = vmatpush.bf16.msrb.mxu0 %v16688_v59  ;;  %v16858_v6 = vor.u32 %v12733_v43, %v11438_v35  ;;  %v12734_v63 = vld [vmem:[%s19483_s6 + $0xa4] sm:$0xf0]  ;;  %v5702_v23 = vld [vmem:[%s19480_s3] sm:$0xff]  ;;  %v12783_v35 = vld [vmem:[%s19483_s6 + $0x1d4] sm:$0xf] }
 0xb59   : > { %v11414_v31 = vld [vmem:[%s19483_s6 + $0x8] sm:$0xf]  ;;  %v11648_v43 = vld [vmem:[%s19483_s6 + $0x1f0] sm:$0xf0]  ;;  %v11496_v24 = vld [vmem:[%s19483_s6 + $0x168] sm:$0xf0] }
 0xb5a   : > { %6052 = vmatpush.bf16.msra.mxu3 %v16672_v16  ;;  %v12726_v58 = vld [vmem:[%s19483_s6 + $0x24] sm:$0xf0] }
 0xb5b   : > { %v16938_v48 = vor.u32 %v12726_v58, %v11414_v31  ;;  %v5704_v31 = vld [vmem:[%s19480_s3 + $0x10] sm:$0xff]  ;;  %v5705_v58 = vld [vmem:[%s19480_s3 + $0x18] sm:$0xff] }
 0xb5c   : > { %v5675_v12 = vpop.f32.mrf.mxu1 }
 0xb5d   : > { %v5676_v28 = vadd.f32 %v5675_v12, %v5627_v1  ;;  %v16701_v1 = vor.u32 %v12786_v33, %v11654_v54  ;;  %v12747_v12 = vld [vmem:[%s19483_s6 + $0x184] sm:$0xf]  ;;  %v12766_v54 = vld [vmem:[%s19483_s6 + $0xb4] sm:$0xf0]  ;;  %v11422_v33 = vld [vmem:[%s19483_s6 + $0x40] sm:$0xf] }
 0xb5e   : > { %6053 = vmatpush.bf16.msra.mxu3 %v16739_v2 }
 0xb5f   : > { %v5685_v14 = vpack.c.bf16 %v5676_v28, %v5674_v0  ;;  %v11504_v0 = vld [vmem:[%s19483_s6 + $0x1a0] sm:$0xf0]  ;;  %v11510_v28 = vld [vmem:[%s19483_s6 + $0x188] sm:$0xf] }
 0xb60   : > { %v16713_v47 = vor.u32 %v12747_v12, %v11504_v0  ;;  %v16881_v12 = vor.u32 %v12766_v54, %v11574_v13  ;;  %v12729_v0 = vld [vmem:[%s19483_s6 + $0x5c] sm:$0xf0]  ;;  %v11630_v13 = vld [vmem:[%s19483_s6 + $0x190] sm:$0xf] }
 0xb61   : > { %v5804_v10 = vsel %vm1064_vm0, %v5685_v14, 0  ;;  %v11638_v14 = vld [vmem:[%s19483_s6 + $0x198] sm:$0xf] }
 0xb62   : > { %5806 = vmatpush.bf16.xpose.msra.mxu2 %v5804_v10  ;;  %v16726_v10 = vor.u32 %v12750_v29, %v11510_v28  ;;  %v16728_v42 = vor.u32 %v12782_v53, %v11638_v14  ;;  %6081 = vmatpush.bf16.msrb.mxu0 %v16713_v47  ;;  %v12727_v28 = vld [vmem:[%s19483_s6 + $0x44] sm:$0xf]  ;;  %v16893_v14 = vor.u32 %v12729_v0, %v11422_v33  ;;  %v12781_v33 = vld [vmem:[%s19483_s6 + $0x1ac] sm:$0xf0]  ;;  %v12779_v0 = vld [vmem:[%s19483_s6 + $0x194] sm:$0xf] }
 0xb63   : > { %v11424_v29 = vld [vmem:[%s19483_s6 + $0x60] sm:$0xf0] }
 0xb64   : > { %6110 = vmatpush.bf16.msrb.mxu1 %v16726_v10  ;;  %v11427_v53 = vor.u32 %v12727_v28, %v11424_v29  ;;  %v11632_v28 = vld [vmem:[%s19483_s6 + $0x1b0] sm:$0xf0]  ;;  %v11631_v29 = vor.u32 %v12781_v33, %v11630_v13 }
 0xb65   : > { %v11584_v13 = vld [vmem:[%s19483_s6 + $0xf0] sm:$0xf0] }
 0xb66   : > { %6082 = vmatpush.bf16.msrb.mxu0 %v16761_v38 }
 0xb6a   : > { %5807 = vmatpush.bf16.xpose.msra.mxu2 %v5801_v62  ;;  %v11494_v62 = vld [vmem:[%s19483_s6 + $0x148] sm:$0xf] }
 0xb6b   : > { %v16768_v21 = vor.u32 %v12746_v45, %v11494_v62  ;;  %v12762_v62 = vld [vmem:[%s19483_s6 + $0x74] sm:$0xf0] }
 0xb6c   : > { %v16910_v45 = vor.u32 %v12762_v62, %v11558_v3  ;;  %v11614_v3 = vld [vmem:[%s19483_s6 + $0x150] sm:$0xf]  ;;  %v17025_v62 = vor.u32 %v12744_v8, %v11496_v24 }
 0xb6d   : > { %6111 = vmatpush.bf16.msrb.mxu1 %v16768_v21  ;;  %v11566_v8 = vld [vmem:[%s19483_s6 + $0x90] sm:$0xf] }
 0xb6e   : > { %19582 = vst [vmem:[#allocation3_spill] sm:$0xff] %v16910_v45 }
 0xb71   : > { %6112 = vmatpush.bf16.msrb.mxu1 %v16801_v18 }
 0xb72   : > { %5808 = vmatpush.bf16.xpose.msra.mxu2 %v5798_v5  ;;  %v12741_v5 = vld [vmem:[%s19483_s6 + $0x11c] sm:$0xf0] }
 0xb73   : > { %v16772_v25 = vor.u32 %v12741_v5, %v11470_v27  ;;  %v12725_v27 = vld [vmem:[%s19483_s6 + $0x1c] sm:$0xf0]  ;;  %v12723_v5 = vld [vmem:[%s19483_s6 + $0x4] sm:$0xf] }
 0xb75   : > { %6054 = vmatpush.bf16.msra.mxu3 %v16772_v25 }
 0xb7a   : > { %5809 = vmatpush.bf16.xpose.msra.mxu2 %v5795_v46  ;;  %v11472_v46 = vld [vmem:[%s19483_s6 + $0x120] sm:$0xf0] }
 0xb82   : > { %5810 = vmatpush.bf16.xpose.msra.mxu2 %v5792_v52  ;;  %v16794_v52 = vor.u32 %v12739_v50, %v11472_v46  ;;  %v16927_v50 = vor.u32 %v12725_v27, %v11406_v9  ;;  %v11408_v46 = vld [vmem:[%s19483_s6 + $0x20] sm:$0xf0]  ;;  %v12775_v9 = vld [vmem:[%s19483_s6 + $0x154] sm:$0xf] }
 0xb83   : > { %v11411_v26 = vor.u32 %v12723_v5, %v11408_v46  ;;  %v11616_v27 = vld [vmem:[%s19483_s6 + $0x170] sm:$0xf0] }
 0xb84   : > { %6083 = vmatpush.bf16.msrb.mxu0 %v16794_v52  ;;  %v17037_v46 = vor.u32 %v12775_v9, %v11616_v27  ;;  %v11568_v9 = vld [vmem:[%s19483_s6 + $0xb0] sm:$0xf0] }
 0xb88   : > { %6084 = vmatpush.bf16.msrb.mxu0 %v16829_v17 }
 0xb8a   : > { %5811 = vmatpush.bf16.xpose.msra.mxu2 %v5789_v37  ;;  %v12737_v37 = vld [vmem:[%s19483_s6 + $0xdc] sm:$0xf0] }
 0xb8b   : > { %v16818_v15 = vor.u32 %v12737_v37, %v11454_v36  ;;  %v12758_v36 = vld [vmem:[%s19483_s6 + $0x34] sm:$0xf0] }
 0xb8d   : > { %6055 = vmatpush.bf16.msra.mxu3 %v16818_v15 }
 0xb91   : > { %6056 = vmatpush.bf16.msra.mxu3 %v16858_v6 }
 0xb92   : > { %5812 = vmatpush.bf16.xpose.msra.mxu2 %v5786_v19  ;;  %v12738_v19 = vld [vmem:[%s19483_s6 + $0xe4] sm:$0xf0] }
 0xb93   : > { %v16831_v41 = vor.u32 %v12738_v19, %v11462_v22  ;;  %v5703_v22 = vld [vmem:[%s19480_s3 + $0x8] sm:$0xff] }
 0xb95   : > { %6113 = vmatpush.bf16.msrb.mxu1 %v16831_v41  ;;  %6057 = vmatpush.bf16.msra.mxu3 %v16893_v14 }
 0xb99   : > { %6058 = vmatpush.bf16.msra.mxu3 %v16927_v50 }
 0xb9a   : > { %5813 = vmatpush.bf16.xpose.msra.mxu2 %v5783_v30  ;;  %v11590_v30 = vld [vmem:[%s19483_s6 + $0xd8] sm:$0xf] }
 0xba1   : > { %11396 = vmatmul.msk.bf16.vlgmr.msra.gmra.mxu2 %vm1064_vm0, %v12715_v55  ;;  %v12770_v55 = vld [vmem:[%s19483_s6 + $0xf4] sm:$0xf0] }
 0xba2   : > { %6537 = vmatpush.bf16.msrb.mxu2 %v16701_v1 }
 0xba6   : > { %6538 = vmatpush.bf16.msrb.mxu2 %v16728_v42 }
 0xbaa   : > { %6539 = vmatpush.bf16.msrb.mxu2 %v16770_v7 }
 0xbae   : > { %6540 = vmatpush.bf16.msrb.mxu2 %v16803_v51 }
 0xbb1   : > { %11397 = vmatmul.msk.bf16.gmra.mxu2 %vm1064_vm0, %v12716_v61  ;;  %v16840_v61 = vor.u32 %v12770_v55, %v11590_v30 }
 0xbb3   : > { %6541 = vmatpush.bf16.msrb.mxu2 %v16840_v61 }
 0xbb7   : > { %6542 = vmatpush.bf16.msrb.mxu2 %v16881_v12 }
 0xbbb   : > { %6543 = vmatpush.bf16.msrb.mxu2 %v16910_v45 }
 0xbc1   : > { %11398 = vmatmul.msk.bf16.gmra.mxu2 %vm1064_vm0, %v12717_v44  ;;  %v12721_v44 = vld [vmem:[%s19479_s2 + $0x30] sm:$0xff] }
 0xbd1   : > { %11399 = vmatmul.msk.bf16.gmra.mxu2 %vm1064_vm0, %v12718_v60  ;;  %v12731_v60 = vld [vmem:[%s19483_s6 + $0x84] sm:$0xf] }
 0xbd2   : > { %v11443_v40 = vor.u32 %v12731_v60, %v11440_v39  ;;  %v16989_v39 = vor.u32 %v12783_v35, %v11648_v43  ;;  %v12736_v35 = vld [vmem:[%s19483_s6 + $0xcc] sm:$0xf] }
 0xbd3   : > { %v11464_v43 = vld [vmem:[%s19483_s6 + $0xe8] sm:$0xf0] }
 0xbd4   : > { %6085 = vmatpush.bf16.msrb.mxu0 %v11443_v40 }
 0xbd8   : > { %6086 = vmatpush.bf16.msrb.mxu0 %v11427_v53 }
 0xbdc   : > { %6087 = vmatpush.bf16.msrb.mxu0 %v11411_v26 }
 0xbe1   : > { %11400 = vmatmul.msk.bf16.gmra.mxu2 %vm1064_vm0, %v12719_v56  ;;  %v11446_v56 = vld [vmem:[%s19483_s6 + $0x88] sm:$0xf] }
 0xbe2   : > { %v16869_v34 = vor.u32 %v12734_v63, %v11446_v56  ;;  %v12748_v63 = vld [vmem:[%s19483_s6 + $0x18c] sm:$0xf] }
 0xbe4   : > { %6114 = vmatpush.bf16.msrb.mxu1 %v16869_v34 }
 0xbe8   : > { %6115 = vmatpush.bf16.msrb.mxu1 %v16905_v11 }
 0xbec   : > { %6116 = vmatpush.bf16.msrb.mxu1 %v16938_v48 }
 0xbf0   : > { %6508 = vmatpush.bf16.msra.mxu1 %v16989_v39 }
 0xbf1   : > { %11401 = vmatmul.msk.bf16.gmra.mxu2 %vm1064_vm0, %v12720_v57  ;;  %v11542_v57 = vld [vmem:[%s19483_s6 + $0x18] sm:$0xf] }
 0xbf2   : > { %v16947_v37 = vor.u32 %v12758_v36, %v11542_v57  ;;  %v12740_v57 = vld [vmem:[%s19483_s6 + $0x10c] sm:$0xf] }
 0xbf3   : > { %v11480_v36 = vld [vmem:[%s19483_s6 + $0x128] sm:$0xf0] }
 0xbf4   : > { %19583 = vst [vmem:[#allocation4_spill] sm:$0xff] %v16947_v37  ;;  %6544 = vmatpush.bf16.msrb.mxu2 %v16947_v37 }
 0xbf8   : > { %6905 = vmatpush.bf16.msra.mxu2 %v16688_v59 }
 0xbfc   : > { %6906 = vmatpush.bf16.msra.mxu2 %v16713_v47 }
 0xc00   : > { %6907 = vmatpush.bf16.msra.mxu2 %v16761_v38  ;;  %v12752_v38 = vld [vmem:[%s19483_s6 + $0x1cc] sm:$0xf] }
 0xc01   : > { %11402 = vmatmul.msk.bf16.gmra.mxu2 %vm1064_vm0, %v12721_v44  ;;  %v12785_v44 = vld [vmem:[%s19483_s6 + $0x1ec] sm:$0xf0] }
 0xc04   : > { %6908 = vmatpush.bf16.msra.mxu2 %v16794_v52  ;;  %v11528_v52 = vld [vmem:[%s19483_s6 + $0x1e8] sm:$0xf0] }
 0xc05   : > { %v16976_v55 = vor.u32 %v12752_v38, %v11528_v52  ;;  %v11600_v38 = vld [vmem:[%s19483_s6 + $0x130] sm:$0xf0] }
 0xc07   : > { %6138 = vmatpush.bf16.msrb.mxu3 %v16976_v55 }
 0xc08   : > { %6909 = vmatpush.bf16.msra.mxu2 %v16829_v17  ;;  %v11646_v17 = vld [vmem:[%s19483_s6 + $0x1d0] sm:$0xf] }
 0xc09   : > { %v11647_v60 = vor.u32 %v12785_v44, %v11646_v17 }
 0xc0b   : > { %6479 = vmatpush.bf16.msra.mxu0 %v11647_v60 }
 0xc0c   : > { %6910 = vmatpush.bf16.msra.mxu2 %v11443_v40  ;;  %v11512_v40 = vld [vmem:[%s19483_s6 + $0x1a8] sm:$0xf0] }
 0xc0d   : > { %v17002_v54 = vor.u32 %v12748_v63, %v11512_v40  ;;  %v12769_v63 = vld [vmem:[%s19483_s6 + $0xec] sm:$0xf0]  ;;  %v12767_v40 = vld [vmem:[%s19483_s6 + $0xd4] sm:$0xf] }
 0xc0f   : > { %6139 = vmatpush.bf16.msrb.mxu3 %v17002_v54  ;;  %6480 = vmatpush.bf16.msra.mxu0 %v11631_v29 }
 0xc10   : > { %6911 = vmatpush.bf16.msra.mxu2 %v11427_v53  ;;  %v17013_v53 = vor.u32 %v12779_v0, %v11632_v28  ;;  %v17097_v0 = vor.u32 %v12767_v40, %v11584_v13  ;;  %v12732_v28 = vld [vmem:[%s19483_s6 + $0x8c] sm:$0xf]  ;;  %v5706_v40 = vld [vmem:[%s19480_s3 + $0x20] sm:$0xff] }
 0xc11   : > { %11403 = vmatmul.msk.bf16.gmra.mxu2 %vm1064_vm0, %v12722_v20  ;;  %v12777_v20 = vld [vmem:[%s19483_s6 + $0x16c] sm:$0xf0]  ;;  %v5707_v13 = vld [vmem:[%s19480_s3 + $0x28] sm:$0xff] }
 0xc12   : > { %6509 = vmatpush.bf16.msra.mxu1 %v17013_v53  ;;  %v11615_v5 = vor.u32 %v12777_v20, %v11614_v3  ;;  %v12765_v3 = vld [vmem:[%s19483_s6 + $0xac] sm:$0xf0]  ;;  %v12763_v20 = vld [vmem:[%s19483_s6 + $0x94] sm:$0xf] }
 0xc13   : > { %6140 = vmatpush.bf16.msrb.mxu3 %v17025_v62 }
 0xc14   : > { %6912 = vmatpush.bf16.msra.mxu2 %v11411_v26  ;;  %6481 = vmatpush.bf16.msra.mxu0 %v11615_v5 }
 0xc16   : > { %6510 = vmatpush.bf16.msra.mxu1 %v17037_v46 }
 0xc24   : > { %v5815_v49 = vpop.f32.mrf.mxu2 }
 0xc25   : > { %v5816_v19 = vadd.f32 %v5815_v49, %v5702_v23  ;;  %v11598_v49 = vld [vmem:[%s19483_s6 + $0x110] sm:$0xf] }
 0xc2c   : > { %v5817_v59 = vpop.f32.mrf.mxu2 }
 0xc2d   : > { %v5818_v47 = vadd.f32 %v5817_v59, %v5703_v22  ;;  %v17056_v59 = vor.u32 %v12740_v57, %v11480_v36  ;;  %v11550_v57 = vld [vmem:[%s19483_s6 + $0x50] sm:$0xf] }
 0xc2e   : > { %v12761_v36 = vld [vmem:[%s19483_s6 + $0x6c] sm:$0xf0] }
 0xc2f   : > { %v16963_v30 = vpack.c.bf16 %v5818_v47, %v5816_v19  ;;  %v12773_v19 = vld [vmem:[%s19483_s6 + $0x12c] sm:$0xf0]  ;;  %v12771_v47 = vld [vmem:[%s19483_s6 + $0x114] sm:$0xf]  ;;  %6141 = vmatpush.bf16.msrb.mxu3 %v17056_v59 }
 0xc30   : > { %v11599_v52 = vor.u32 %v12773_v19, %v11598_v49  ;;  %v17067_v17 = vor.u32 %v12771_v47, %v11600_v38  ;;  %v12759_v49 = vld [vmem:[%s19483_s6 + $0x54] sm:$0xf]  ;;  %v11551_v19 = vor.u32 %v12761_v36, %v11550_v57  ;;  %v12724_v38 = vld [vmem:[%s19483_s6 + $0xc] sm:$0xf] }
 0xc31   : > { %6059 = vmatmul.bf16.vlgmr.msra.gmra.mxu3 %v16963_v30  ;;  %6088 = vmatmul.bf16.vlgmr.msrb.gmra.mxu0 %v16963_v30 }
 0xc32   : > { %6117 = vmatmul.bf16.vlgmr.msrb.gmra.mxu1 %v16963_v30  ;;  %6545 = vmatmul.bf16.vlgmr.msrb.gmra.mxu2 %v16963_v30 }
 0xc33   : > { %7112 = vmatpush.bf16.msrb.mxu2 %v11647_v60  ;;  %6482 = vmatpush.bf16.msra.mxu0 %v11599_v52  ;;  %v11582_v60 = vld [vmem:[%s19483_s6 + $0xd0] sm:$0xf] }
 0xc34   : > { %v5820_v56 = vpop.f32.mrf.mxu2  ;;  %6511 = vmatpush.bf16.msra.mxu1 %v17067_v17  ;;  %v11583_v33 = vor.u32 %v12769_v63, %v11582_v60  ;;  %v12755_v60 = vld [vmem:[%s19483_s6 + $0x14] sm:$0xf] }
 0xc35   : > { %v5821_v23 = vadd.f32 %v5820_v56, %v5704_v31  ;;  %v17084_v56 = vor.u32 %v12736_v35, %v11464_v43  ;;  %v17121_v31 = vor.u32 %v12763_v20, %v11568_v9  ;;  %v11534_v35 = vld [vmem:[%s19483_s6 + $0x10] sm:$0xf]  ;;  %v11536_v63 = vld [vmem:[%s19483_s6 + $0x30] sm:$0xf0] }
 0xc36   : > { %v12757_v43 = vld [vmem:[%s19483_s6 + $0x2c] sm:$0xf0] }
 0xc37   : > { %7113 = vmatpush.bf16.msrb.mxu2 %v11631_v29  ;;  %v11448_v29 = vld [vmem:[%s19483_s6 + $0xa8] sm:$0xf0]  ;;  %6142 = vmatpush.bf16.msrb.mxu3 %v17084_v56 }
 0xc38   : > { %v17109_v24 = vor.u32 %v12732_v28, %v11448_v29  ;;  %6483 = vmatpush.bf16.msra.mxu0 %v11583_v33  ;;  %6512 = vmatpush.bf16.msra.mxu1 %v17097_v0  ;;  %v11535_v29 = vor.u32 %v12757_v43, %v11534_v35 }
 0xc3b   : > { %7114 = vmatpush.bf16.msrb.mxu2 %v11615_v5  ;;  %v11567_v5 = vor.u32 %v12765_v3, %v11566_v8  ;;  %6143 = vmatpush.bf16.msrb.mxu3 %v17109_v24  ;;  %v17175_v8 = vor.u32 %v12755_v60, %v11536_v63  ;;  %v11592_v60 = vld [vmem:[%s19483_s6 + $0xf8] sm:$0xf0] }
 0xc3c   : > { %v5822_v26 = vpop.f32.mrf.mxu2  ;;  %6513 = vmatpush.bf16.msra.mxu1 %v17121_v31 }
 0xc3d   : > { %v5823_v22 = vadd.f32 %v5822_v26, %v5705_v58  ;;  %v12728_v58 = vld [vmem:[%s19483_s6 + $0x4c] sm:$0xf]  ;;  %6484 = vmatpush.bf16.msra.mxu0 %v11567_v5 }
 0xc3e   : > { %v11432_v26 = vld [vmem:[%s19483_s6 + $0x68] sm:$0xf0] }
 0xc3f   : > { %v17069_v44 = vpack.c.bf16 %v5823_v22, %v5821_v23  ;;  %7115 = vmatpush.bf16.msrb.mxu2 %v11599_v52  ;;  %v11552_v23 = vld [vmem:[%s19483_s6 + $0x70] sm:$0xf0]  ;;  %v17142_v22 = vor.u32 %v12728_v58, %v11432_v26  ;;  %v11416_v52 = vld [vmem:[%s19483_s6 + $0x28] sm:$0xf0]  ;;  %v5709_v58 = vld [vmem:[%s19480_s3 + $0x38] sm:$0xff] }
 0xc40   : > { %v17145_v47 = vor.u32 %v12759_v49, %v11552_v23  ;;  %v12776_v23 = vld [vmem:[%s19483_s6 + $0x15c] sm:$0xf] }
 0xc41   : > { %6064 = vmatmul.bf16.gmra.mxu3 %v17069_v44  ;;  %6093 = vmatmul.bf16.gmra.mxu0 %v17069_v44 }
 0xc42   : > { %6122 = vmatmul.bf16.gmra.mxu1 %v17069_v44  ;;  %6550 = vmatmul.bf16.gmra.mxu2 %v17069_v44 }
 0xc43   : > { %7116 = vmatpush.bf16.msrb.mxu2 %v11583_v33  ;;  %6144 = vmatpush.bf16.msrb.mxu3 %v17142_v22  ;;  %v17172_v33 = vor.u32 %v12724_v38, %v11416_v52  ;;  %v12772_v52 = vld [vmem:[%s19483_s6 + $0x11c] sm:$0xf] }
 0xc44   : > { %v5825_v27 = vpop.f32.mrf.mxu2  ;;  %6485 = vmatpush.bf16.msra.mxu0 %v11551_v19  ;;  %6514 = vmatpush.bf16.msra.mxu1 %v17145_v47 }
 0xc45   : > { %v5826_v3 = vadd.f32 %v5825_v27, %v5706_v40 }
 0xc47   : > { %7117 = vmatpush.bf16.msrb.mxu2 %v11567_v5  ;;  %6145 = vmatpush.bf16.msrb.mxu3 %v17172_v33  ;;  %v5708_v5 = vld [vmem:[%s19480_s3 + $0x30] sm:$0xff] }
 0xc48   : > { %6486 = vmatpush.bf16.msra.mxu0 %v11535_v29  ;;  %6515 = vmatpush.bf16.msra.mxu1 %v17175_v8 }
 0xc4b   : > { %7118 = vmatpush.bf16.msrb.mxu2 %v11551_v19  ;;  %v11624_v19 = vld [vmem:[%s19483_s6 + $0x178] sm:$0xf0] }
 0xc4c   : > { %v5827_v28 = vpop.f32.mrf.mxu2  ;;  %6876 = vmatpush.bf16.msrb.mxu1 %v16659_v32  ;;  %v17237_v38 = vor.u32 %v12776_v23, %v11624_v19 }
 0xc4d   : > { %v5828_v20 = vadd.f32 %v5827_v28, %v5707_v13  ;;  %v12760_v28 = vld [vmem:[%s19483_s6 + $0x5c] sm:$0xf] }
 0xc4e   : > { %19586 = vst [vmem:[#allocation7_spill] sm:$0xff] %v17237_v38 }
 0xc4f   : > { %v17177_v9 = vpack.c.bf16 %v5828_v20, %v5826_v3  ;;  %7119 = vmatpush.bf16.msrb.mxu2 %v11535_v29  ;;  %v11560_v29 = vld [vmem:[%s19483_s6 + $0x78] sm:$0xf0] }
 0xc50   : > { %6877 = vmatpush.bf16.msrb.mxu1 %v16672_v16  ;;  %v17284_v3 = vor.u32 %v12760_v28, %v11560_v29  ;;  %v11544_v20 = vld [vmem:[%s19483_s6 + $0x38] sm:$0xf0] }
 0xc51   : > { %6069 = vmatmul.bf16.gmra.mxu3 %v17177_v9  ;;  %6098 = vmatmul.bf16.gmra.mxu0 %v17177_v9 }
 0xc52   : > { %6127 = vmatmul.bf16.gmra.mxu1 %v17177_v9  ;;  %6555 = vmatmul.bf16.gmra.mxu2 %v17177_v9  ;;  %19590 = vst [vmem:[#allocation11_spill] sm:$0xff] %v17284_v3 }
 0xc54   : > { %v5830_v27 = vpop.f32.mrf.mxu2  ;;  %6878 = vmatpush.bf16.msrb.mxu1 %v16739_v2  ;;  %v12784_v2 = vld [vmem:[%s19483_s6 + $0x1dc] sm:$0xf] }
 0xc55   : > { %v5831_v57 = vadd.f32 %v5830_v27, %v5708_v5 }
 0xc58   : > { %6879 = vmatpush.bf16.msrb.mxu1 %v16772_v25  ;;  %v11656_v25 = vld [vmem:[%s19483_s6 + $0x1f8] sm:$0xf0] }
 0xc5c   : > { %v5832_v26 = vpop.f32.mrf.mxu2  ;;  %6880 = vmatpush.bf16.msrb.mxu1 %v16818_v15  ;;  %v17217_v15 = vor.u32 %v12784_v2, %v11656_v25 }
 0xc5d   : > { %v5833_v36 = vadd.f32 %v5832_v26, %v5709_v58 }
 0xc5e   : > { %19584 = vst [vmem:[#allocation5_spill] sm:$0xff] %v17217_v15  ;;  %6566 = vmatpush.bf16.msra.mxu3 %v17217_v15 }
 0xc5f   : > { %v17194_v49 = vpack.c.bf16 %v5833_v36, %v5831_v57 }
 0xc60   : > { %6881 = vmatpush.bf16.msrb.mxu1 %v16858_v6  ;;  %v12780_v6 = vld [vmem:[%s19483_s6 + $0x19c] sm:$0xf] }
 0xc61   : > { %6074 = vmatmul.bf16.gmra.mxu3 %v17194_v49  ;;  %6103 = vmatmul.bf16.gmra.mxu0 %v17194_v49 }
 0xc62   : > { %6132 = vmatmul.bf16.gmra.mxu1 %v17194_v49  ;;  %6560 = vmatmul.bf16.gmra.mxu2 %v17194_v49 }
 0xc64   : > { %v17202_v32 = vpop.f32.mrf.mxu2  ;;  %6882 = vmatpush.bf16.msrb.mxu1 %v16893_v14  ;;  %v11640_v14 = vld [vmem:[%s19483_s6 + $0x1b8] sm:$0xf0] }
 0xc68   : > { %6883 = vmatpush.bf16.msrb.mxu1 %v16927_v50  ;;  %v17227_v50 = vor.u32 %v12780_v6, %v11640_v14 }
 0xc6a   : > { %19585 = vst [vmem:[#allocation6_spill] sm:$0xff] %v17227_v50  ;;  %6567 = vmatpush.bf16.msra.mxu3 %v17227_v50 }
 0xc6c   : > { %v17206_v16 = vpop.f32.mrf.mxu2 }
 0xc6e   : > { %6568 = vmatpush.bf16.msra.mxu3 %v17237_v38 }
 0xc71   : > { %6146 = vmatmul.bf16.vlgmr.msrb.gmra.mxu3 %v16963_v30  ;;  %6487 = vmatmul.bf16.vlgmr.msra.gmra.mxu0 %v16963_v30 }
 0xc72   : > { %6516 = vmatmul.bf16.vlgmr.msra.gmra.mxu1 %v16963_v30 }
 0xc73   : > { %6963 = vmatpush.bf16.msra.mxu1 %v16976_v55  ;;  %v11608_v55 = vld [vmem:[%s19483_s6 + $0x138] sm:$0xf0] }
 0xc74   : > { %v17246_v35 = vpop.f32.mrf.mxu2  ;;  %v17249_v43 = vor.u32 %v12772_v52, %v11608_v55 }
 0xc76   : > { %19587 = vst [vmem:[#allocation8_spill] sm:$0xff] %v17249_v43  ;;  %6569 = vmatpush.bf16.msra.mxu3 %v17249_v43 }
 0xc77   : > { %6964 = vmatpush.bf16.msra.mxu1 %v17002_v54  ;;  %v12768_v54 = vld [vmem:[%s19483_s6 + $0xdc] sm:$0xf] }
 0xc78   : > { %v17262_v63 = vor.u32 %v12768_v54, %v11592_v60 }
 0xc7a   : > { %19588 = vst [vmem:[#allocation9_spill] sm:$0xff] %v17262_v63  ;;  %6570 = vmatpush.bf16.msra.mxu3 %v17262_v63 }
 0xc7b   : > { %6965 = vmatpush.bf16.msra.mxu1 %v17025_v62  ;;  %v12764_v62 = vld [vmem:[%s19483_s6 + $0x9c] sm:$0xf] }
 0xc7c   : > { %v17271_v40 = vpop.f32.mrf.mxu2 }
 0xc7f   : > { %6966 = vmatpush.bf16.msra.mxu1 %v17056_v59  ;;  %v11576_v59 = vld [vmem:[%s19483_s6 + $0xb8] sm:$0xf0] }
 0xc80   : > { %v17274_v13 = vor.u32 %v12764_v62, %v11576_v59 }
 0xc81   : > { %6151 = vmatmul.bf16.gmra.mxu3 %v17069_v44  ;;  %6492 = vmatmul.bf16.gmra.mxu0 %v17069_v44 }
 0xc82   : > { %6521 = vmatmul.bf16.gmra.mxu1 %v17069_v44  ;;  %19589 = vst [vmem:[#allocation10_spill] sm:$0xff] %v17274_v13  ;;  %6571 = vmatpush.bf16.msra.mxu3 %v17274_v13 }
 0xc83   : > { %6967 = vmatpush.bf16.msra.mxu1 %v17084_v56  ;;  %v12756_v56 = vld [vmem:[%s19483_s6 + $0x1c] sm:$0xf] }
 0xc84   : > { %v17295_v27 = vpop.f32.mrf.mxu2  ;;  %v17297_v5 = vor.u32 %v12756_v56, %v11544_v20  ;;  %v5714_v20 = vld [vmem:[%s19480_s3 + $0x60] sm:$0xff] }
 0xc86   : > { %6572 = vmatpush.bf16.msra.mxu3 %v17284_v3  ;;  %19591 = vst [vmem:[#allocation12_spill] sm:$0xff] %v17297_v5 }
 0xc87   : > { %6968 = vmatpush.bf16.msra.mxu1 %v17109_v24 }
 0xc8a   : > { %6573 = vmatpush.bf16.msra.mxu3 %v17297_v5 }
 0xc8b   : > { %6969 = vmatpush.bf16.msra.mxu1 %v17142_v22 }
 0xc8c   : > { %v17306_v24 = vpop.f32.mrf.mxu2 }
 0xc8e   : > { %6934 = vmatpush.bf16.msrb.mxu3 %v16699_v4 }
 0xc8f   : > { %6970 = vmatpush.bf16.msra.mxu1 %v17172_v33 }
 0xc91   : > { %6156 = vmatmul.bf16.gmra.mxu3 %v17177_v9  ;;  %6497 = vmatmul.bf16.gmra.mxu0 %v17177_v9 }
 0xc92   : > { %6526 = vmatmul.bf16.gmra.mxu1 %v17177_v9  ;;  %6935 = vmatpush.bf16.msrb.mxu3 %v16726_v10  ;;  %v5710_v10 = vld [vmem:[%s19480_s3 + $0x40] sm:$0xff] }
 0xc94   : > { %v17313_v4 = vpop.f32.mrf.mxu2 }
 0xc96   : > { %6936 = vmatpush.bf16.msrb.mxu3 %v16768_v21  ;;  %v17322_v21 = vadd.f32 %v17202_v32, %v5710_v10 }
 0xc9a   : > { %6937 = vmatpush.bf16.msrb.mxu3 %v16801_v18 }
 0xc9c   : > { %v17324_v18 = vpop.f32.mrf.mxu2 }
 0xc9e   : > { %6938 = vmatpush.bf16.msrb.mxu3 %v16831_v41 }
 0xca1   : > { %6161 = vmatmul.bf16.gmra.mxu3 %v17194_v49  ;;  %6502 = vmatmul.bf16.gmra.mxu0 %v17194_v49 }
 0xca2   : > { %6531 = vmatmul.bf16.gmra.mxu1 %v17194_v49  ;;  %6939 = vmatpush.bf16.msrb.mxu3 %v16869_v34 }
 0xca6   : > { %6940 = vmatpush.bf16.msrb.mxu3 %v16905_v11 }
 0xcaa   : > { %6941 = vmatpush.bf16.msrb.mxu3 %v16938_v48 }
 0xcae   : > { %v6089_v41 = vpop.f32.mrf.mxu0 }
 0xcaf   : > { %v6191_v22 = vadd.f32 %v6089_v41, %v17322_v21  ;;  %v6118_v33 = vpop.f32.mrf.mxu1 }
 0xcb0   : > { %v6223_v58 = vadd.f32 %v6118_v33, %v17322_v21 }
 0xcb1   : > { %6574 = vmatmul.bf16.vlgmr.msra.gmra.mxu3 %v16963_v30  ;;  %v6199_v26 = vmul.f32 0.2, %v6191_v22  ;;  %v5712_v30 = vld [vmem:[%s19480_s3 + $0x50] sm:$0xff] }
 0xcb2   : > { %7141 = vmatpush.bf16.msra.mxu3 %v16989_v39  ;;  %v6231_v48 = vmul.f32 0.2, %v6223_v58  ;;  %v17345_v14 = vadd.f32 %v17246_v35, %v5712_v30 }
 0xcb3   : > { %v6207_v39 = vmax.f32 %v6191_v22, %v6199_v26 }
 0xcb4   : > { %v6060_v34 = vpop.f32.mrf.mxu3  ;;  %v6239_v23 = vmax.f32 %v6223_v58, %v6231_v48 }
 0xcb5   : > { %v6167_v11 = vadd.f32 %v6060_v34, %v17322_v21  ;;  %v6546_v57 = vpop.f32.mrf.mxu2 }
 0xcb6   : > { %v17333_v36 = vadd.f32 %v6546_v57, %v17322_v21  ;;  %v17335_v32 = vpop.f32.mrf.mxu0  ;;  %7142 = vmatpush.bf16.msra.mxu3 %v17013_v53 }
 0xcb7   : > { %v6175_v2 = vmul.f32 0.2, %v6167_v11  ;;  %v17338_v25 = vpop.f32.mrf.mxu1 }
 0xcb9   : > { %v6183_v6 = vmax.f32 %v6167_v11, %v6175_v2 }
 0xcba   : > { %7143 = vmatpush.bf16.msra.mxu3 %v17037_v46 }
 0xcbb   : > { %v6215_v19 = vmax.f32 %v6183_v6, %v6207_v39 }
 0xcbc   : > { %v17347_v52 = vpop.f32.mrf.mxu3 }
 0xcbd   : > { %v17349_v53 = vmax.f32 %v6215_v19, %v6239_v23 }
 0xcbe   : > { %v6094_v55 = vpop.f32.mrf.mxu0  ;;  %7144 = vmatpush.bf16.msra.mxu3 %v17067_v17 }
 0xcbf   : > { %v6193_v54 = vadd.f32 %v6094_v55, %v17345_v14  ;;  %v6123_v60 = vpop.f32.mrf.mxu1 }
 0xcc0   : > { %v6225_v62 = vadd.f32 %v6123_v60, %v17345_v14 }
 0xcc1   : > { %6579 = vmatmul.bf16.gmra.mxu3 %v17069_v44  ;;  %v6201_v35 = vmul.f32 0.2, %v6193_v54 }
 0xcc2   : > { %7145 = vmatpush.bf16.msra.mxu3 %v17097_v0  ;;  %v6233_v29 = vmul.f32 0.2, %v6225_v62  ;;  %v17367_v0 = vadd.f32 %v17295_v27, %v5714_v20 }
 0xcc3   : > { %v6209_v10 = vmax.f32 %v6193_v54, %v6201_v35 }
 0xcc4   : > { %v6065_v46 = vpop.f32.mrf.mxu3  ;;  %v6241_v41 = vmax.f32 %v6225_v62, %v6233_v29 }
 0xcc5   : > { %v6169_v59 = vadd.f32 %v6065_v46, %v17345_v14 }
 0xcc6   : > { %v17357_v28 = vpop.f32.mrf.mxu0  ;;  %7146 = vmatpush.bf16.msra.mxu3 %v17121_v31 }
 0xcc7   : > { %v6177_v56 = vmul.f32 0.2, %v6169_v59  ;;  %v17360_v17 = vpop.f32.mrf.mxu1 }
 0xcc9   : > { %v6185_v44 = vmax.f32 %v6169_v59, %v6177_v56 }
 0xcca   : > { %7147 = vmatpush.bf16.msra.mxu3 %v17145_v47 }
 0xccb   : > { %v6217_v22 = vmax.f32 %v6185_v44, %v6209_v10 }
 0xccc   : > { %v17369_v33 = vpop.f32.mrf.mxu3 }
 0xccd   : > { %v17371_v31 = vmax.f32 %v6217_v22, %v6241_v41 }
 0xcce   : > { %v6099_v58 = vpop.f32.mrf.mxu0  ;;  %7148 = vmatpush.bf16.msra.mxu3 %v17175_v8  ;;  %v5716_v8 = vld [vmem:[%s19480_s3 + $0x70] sm:$0xff] }
 0xccf   : > { %v6195_v34 = vadd.f32 %v6099_v58, %v17367_v0  ;;  %v6128_v26 = vpop.f32.mrf.mxu1 }
 0xcd0   : > { %v6227_v11 = vadd.f32 %v6128_v26, %v17367_v0 }
 0xcd1   : > { %6584 = vmatmul.bf16.gmra.mxu3 %v17177_v9  ;;  %v6203_v57 = vmul.f32 0.2, %v6195_v34  ;;  %v17388_v9 = vadd.f32 %v17313_v4, %v5716_v8 }
 0xcd2   : > { %v6235_v2 = vmul.f32 0.2, %v6227_v11 }
 0xcd3   : > { %v6211_v6 = vmax.f32 %v6195_v34, %v6203_v57 }
 0xcd4   : > { %v6070_v47 = vpop.f32.mrf.mxu3  ;;  %v6243_v19 = vmax.f32 %v6227_v11, %v6235_v2 }
 0xcd5   : > { %v6171_v27 = vadd.f32 %v6070_v47, %v17367_v0 }
 0xcd6   : > { %v17378_v48 = vpop.f32.mrf.mxu0 }
 0xcd7   : > { %v6179_v30 = vmul.f32 0.2, %v6171_v27  ;;  %v17380_v39 = vpop.f32.mrf.mxu1 }
 0xcd9   : > { %v6187_v23 = vmax.f32 %v6171_v27, %v6179_v30 }
 0xcdb   : > { %v6219_v55 = vmax.f32 %v6187_v23, %v6211_v6  ;;  %v17407_v23 = vpop.f32.mrf.mxu2 }
 0xcdc   : > { %v17385_v54 = vpop.f32.mrf.mxu3 }
 0xcdd   : > { %v17390_v60 = vmax.f32 %v6219_v55, %v6243_v19 }
 0xcde   : > { %v6104_v62 = vpop.f32.mrf.mxu0 }
 0xcdf   : > { %v6133_v46 = vpop.f32.mrf.mxu1  ;;  %v6197_v35 = vadd.f32 %v6104_v62, %v17388_v9 }
 0xce0   : > { %v6229_v59 = vadd.f32 %v6133_v46, %v17388_v9 }
 0xce1   : > { %6589 = vmatmul.bf16.gmra.mxu3 %v17194_v49  ;;  %v6205_v56 = vmul.f32 0.2, %v6197_v35 }
 0xce2   : > { %v6237_v44 = vmul.f32 0.2, %v6229_v59 }
 0xce3   : > { %v6213_v22 = vmax.f32 %v6197_v35, %v6205_v56 }
 0xce4   : > { %v6075_v29 = vpop.f32.mrf.mxu3  ;;  %v6245_v34 = vmax.f32 %v6229_v59, %v6237_v44  ;;  %v6667_v59 = vmul.f32 0.2, %v17333_v36 }
 0xce5   : > { %v6173_v20 = vadd.f32 %v6075_v29, %v17388_v9 }
 0xce6   : > { %v17396_v10 = vpop.f32.mrf.mxu0 }
 0xce7   : > { %v6181_v41 = vmul.f32 0.2, %v6173_v20  ;;  %v17398_v4 = vpop.f32.mrf.mxu1 }
 0xce9   : > { %v6189_v58 = vmax.f32 %v6173_v20, %v6181_v41 }
 0xceb   : > { %v6221_v26 = vmax.f32 %v6189_v58, %v6213_v22  ;;  %v6675_v58 = vmax.f32 %v17333_v36, %v6667_v59 }
 0xcec   : > { %v17400_v11 = vpop.f32.mrf.mxu3 }
 0xced   : > { %v17402_v47 = vmax.f32 %v6221_v26, %v6245_v34 }
 0xcee   : > { %v6488_v49 = vpop.f32.mrf.mxu0 }
 0xcef   : > { %v6595_v57 = vadd.f32 %v6488_v49, %v17322_v21  ;;  %v6517_v27 = vpop.f32.mrf.mxu1  ;;  %v6551_v49 = vpop.f32.mrf.mxu2 }
 0xcf0   : > { %v6627_v2 = vadd.f32 %v6517_v27, %v17322_v21 }
 0xcf1   : > { %v6603_v19 = vmul.f32 0.2, %v6595_v57 }
 0xcf2   : > { %v6635_v46 = vmul.f32 0.2, %v6627_v2 }
 0xcf3   : > { %v6611_v29 = vmax.f32 %v6595_v57, %v6603_v19 }
 0xcf4   : > { %v6147_v30 = vpop.f32.mrf.mxu3  ;;  %v6643_v44 = vmax.f32 %v6627_v2, %v6635_v46 }
 0xcf5   : > { %v6255_v6 = vadd.f32 %v6147_v30, %v17322_v21 }
 0xcf6   : > { %v17409_v8 = vpop.f32.mrf.mxu0 }
 0xcf7   : > { %v6263_v55 = vmul.f32 0.2, %v6255_v6  ;;  %v17411_v62 = vpop.f32.mrf.mxu1  ;;  %v17426_v59 = vpop.f32.mrf.mxu2 }
 0xcf9   : > { %v6271_v35 = vmax.f32 %v6255_v6, %v6263_v55 }
 0xcfb   : > { %v6279_v56 = vmax.f32 %v17349_v53, %v6271_v35  ;;  %v6661_v53 = vadd.f32 %v6551_v49, %v17345_v14 }
 0xcfc   : > { %v17415_v20 = vpop.f32.mrf.mxu3 }
 0xcfd   : > { %v6619_v41 = vmax.f32 %v6279_v56, %v6611_v29  ;;  %v6669_v29 = vmul.f32 0.2, %v6661_v53 }
 0xcfe   : > { %v6493_v22 = vpop.f32.mrf.mxu0 }
 0xcff   : > { %v6522_v34 = vpop.f32.mrf.mxu1  ;;  %v6651_v26 = vmax.f32 %v6619_v41, %v6643_v44  ;;  %v6597_v30 = vadd.f32 %v6493_v22, %v17345_v14  ;;  %v6556_v63 = vpop.f32.mrf.mxu2 }
 0xd00   : > { %v6629_v6 = vadd.f32 %v6522_v34, %v17345_v14 }
 0xd01   : > { %v6683_v27 = vmax.f32 %v6651_v26, %v6675_v58  ;;  %v6605_v2 = vmul.f32 0.2, %v6597_v30  ;;  %v6677_v58 = vmax.f32 %v6661_v53, %v6669_v29 }
 0xd02   : > { %v6637_v36 = vmul.f32 0.2, %v6629_v6 }
 0xd03   : > { %v6613_v56 = vmax.f32 %v6597_v30, %v6605_v2  ;;  %v6663_v30 = vadd.f32 %v6556_v63, %v17367_v0 }
 0xd04   : > { %v6152_v5 = vpop.f32.mrf.mxu3  ;;  %v6645_v22 = vmax.f32 %v6629_v6, %v6637_v36 }
 0xd05   : > { %v6257_v57 = vadd.f32 %v6152_v5, %v17345_v14  ;;  %v6671_v36 = vmul.f32 0.2, %v6663_v30 }
 0xd06   : > { %v17421_v19 = vpop.f32.mrf.mxu0 }
 0xd07   : > { %v6265_v55 = vmul.f32 0.2, %v6257_v57  ;;  %v17424_v46 = vpop.f32.mrf.mxu1 }
 0xd09   : > { %v6273_v35 = vmax.f32 %v6257_v57, %v6265_v55 }
 0xd0b   : > { %v6281_v44 = vmax.f32 %v17371_v31, %v6273_v35 }
 0xd0c   : > { %v17429_v41 = vpop.f32.mrf.mxu3 }
 0xd0d   : > { %v6621_v5 = vmax.f32 %v6281_v44, %v6613_v56 }
 0xd0e   : > { %v6498_v26 = vpop.f32.mrf.mxu0 }
 0xd0f   : > { %v6653_v34 = vmax.f32 %v6621_v5, %v6645_v22  ;;  %v6527_v3 = vpop.f32.mrf.mxu1  ;;  %v6599_v13 = vadd.f32 %v6498_v26, %v17367_v0  ;;  %v6679_v5 = vmax.f32 %v6663_v30, %v6671_v36  ;;  %v5711_v36 = vld [vmem:[%s19480_s3 + $0x48] sm:$0xff] }
 0xd10   : > { %v6631_v57 = vadd.f32 %v6527_v3, %v17367_v0 }
 0xd11   : > { %v6685_v49 = vmax.f32 %v6653_v34, %v6677_v58  ;;  %v6607_v31 = vmul.f32 0.2, %v6599_v13 }
 0xd12   : > { %v6639_v35 = vmul.f32 0.2, %v6631_v57 }
 0xd13   : > { %v6615_v53 = vmax.f32 %v6599_v13, %v6607_v31 }
 0xd14   : > { %v6157_v43 = vpop.f32.mrf.mxu3  ;;  %v6647_v44 = vmax.f32 %v6631_v57, %v6639_v35 }
 0xd15   : > { %v6259_v55 = vadd.f32 %v6157_v43, %v17367_v0 }
 0xd17   : > { %v6267_v2 = vmul.f32 0.2, %v6259_v55 }
 0xd19   : > { %v6275_v6 = vmax.f32 %v6259_v55, %v6267_v2 }
 0xd1b   : > { %v6283_v29 = vmax.f32 %v17390_v60, %v6275_v6 }
 0xd1c   : > { %v17436_v56 = vpop.f32.mrf.mxu3 }
 0xd1d   : > { %v6623_v22 = vmax.f32 %v6283_v29, %v6615_v53  ;;  %v17453_v53 = vpop.f32.mrf.mxu0 }
 0xd1f   : > { %v6655_v58 = vmax.f32 %v6623_v22, %v6647_v44  ;;  %v17456_v44 = vadd.f32 %v17206_v16, %v5711_v36  ;;  %v5717_v22 = vld [vmem:[%s19480_s3 + $0x78] sm:$0xff] }
 0xd21   : > { %v17438_v34 = vmax.f32 %v6655_v58, %v6679_v5  ;;  %v5713_v58 = vld [vmem:[%s19480_s3 + $0x58] sm:$0xff]  ;;  %v6192_v16 = vadd.f32 %v17335_v32, %v17456_v44 }
 0xd24   : > { %v6162_v3 = vpop.f32.mrf.mxu3 }
 0xd25   : > { %v6261_v43 = vadd.f32 %v6162_v3, %v17388_v9  ;;  %v6558_v3 = vpop.f32.mrf.mxu2 }
 0xd27   : > { %v6269_v63 = vmul.f32 0.2, %v6261_v43 }
 0xd29   : > { %v6277_v26 = vmax.f32 %v6261_v43, %v6269_v63  ;;  %v17478_v43 = vadd.f32 %v17324_v18, %v5717_v22  ;;  %v17483_v63 = vadd.f32 %v17271_v40, %v5713_v58 }
 0xd2b   : > { %v17442_v38 = vmax.f32 %v17402_v47, %v6277_v26  ;;  %v6194_v40 = vadd.f32 %v17357_v28, %v17483_v63  ;;  %v6230_v28 = vadd.f32 %v17398_v4, %v17478_v43 }
 0xd2c   : > { %v6164_v55 = vpop.f32.mrf.mxu3 }
 0xd2d   : > { %v6561_v15 = vpop.f32.mrf.mxu2 }
 0xd34   : > { %v6575_v13 = vpop.f32.mrf.mxu3 }
 0xd35   : > { %v6691_v60 = vadd.f32 %v6575_v13, %v17322_v21  ;;  %v17458_v21 = vpop.f32.mrf.mxu1  ;;  %v6174_v13 = vadd.f32 %v17400_v11, %v17478_v43 }
 0xd37   : > { %v6699_v31 = vmul.f32 0.2, %v6691_v60  ;;  %v6182_v36 = vmul.f32 0.2, %v6174_v13 }
 0xd39   : > { %v6707_v2 = vmax.f32 %v6691_v60, %v6699_v31  ;;  %v6503_v60 = vpop.f32.mrf.mxu0  ;;  %v6200_v31 = vmul.f32 0.2, %v6192_v16 }
 0xd3b   : > { %v17445_v57 = vmax.f32 %v6683_v27, %v6707_v2  ;;  %v6170_v2 = vadd.f32 %v17369_v33, %v17483_v63  ;;  %v6208_v33 = vmax.f32 %v6192_v16, %v6200_v31  ;;  %v6190_v16 = vmax.f32 %v6174_v13, %v6182_v36 }
 0xd3c   : > { %v17447_v30 = vpop.f32.mrf.mxu3  ;;  %v17522_v13 = vadd.f32 %v17426_v59, %v17483_v63 }
 0xd3d   : > { %v6178_v22 = vmul.f32 0.2, %v6170_v2 }
 0xd44   : > { %v6580_v35 = vpop.f32.mrf.mxu3 }
 0xd45   : > { %v6693_v6 = vadd.f32 %v6580_v35, %v17345_v14  ;;  %v6168_v14 = vadd.f32 %v17347_v52, %v17456_v44  ;;  %v6224_v52 = vadd.f32 %v17338_v25, %v17456_v44  ;;  %v6198_v35 = vadd.f32 %v17396_v10, %v17478_v43 }
 0xd47   : > { %v6701_v47 = vmul.f32 0.2, %v6693_v6  ;;  %v6176_v26 = vmul.f32 0.2, %v6168_v14  ;;  %v6232_v18 = vmul.f32 0.2, %v6224_v52 }
 0xd48   : > { %v6206_v58 = vmul.f32 0.2, %v6198_v35 }
 0xd49   : > { %v6709_v29 = vmax.f32 %v6693_v6, %v6701_v47  ;;  %v6184_v25 = vmax.f32 %v6168_v14, %v6176_v26  ;;  %v6532_v47 = vpop.f32.mrf.mxu1  ;;  %v6240_v14 = vmax.f32 %v6224_v52, %v6232_v18  ;;  %v6202_v26 = vmul.f32 0.2, %v6194_v40 }
 0xd4a   : > { %v6186_v52 = vmax.f32 %v6170_v2, %v6178_v22 }
 0xd4b   : > { %v17460_v27 = vmax.f32 %v6685_v49, %v6709_v29  ;;  %v5715_v49 = vld [vmem:[%s19480_s3 + $0x68] sm:$0xff] }
 0xd4c   : > { %v17467_v5 = vpop.f32.mrf.mxu3  ;;  %v17488_v32 = vadd.f32 %v17306_v24, %v5715_v49  ;;  %v6226_v24 = vadd.f32 %v17360_v17, %v17483_v63  ;;  %v6262_v17 = vadd.f32 %v6164_v55, %v17478_v43 }
 0xd4e   : > { %v6172_v6 = vadd.f32 %v17385_v54, %v17488_v32  ;;  %v6196_v10 = vadd.f32 %v17378_v48, %v17488_v32  ;;  %v6216_v54 = vmax.f32 %v6184_v25, %v6208_v33  ;;  %v6234_v37 = vmul.f32 0.2, %v6226_v24  ;;  %v6505_v33 = vpop.f32.mrf.mxu0 }
 0xd4f   : > { %v17510_v48 = vadd.f32 %v17407_v23, %v17456_v44  ;;  %v17513_v4 = vadd.f32 %v6558_v3, %v17488_v32  ;;  %v6214_v25 = vmax.f32 %v6198_v35, %v6206_v58  ;;  %v6260_v55 = vadd.f32 %v17436_v56, %v17488_v32 }
 0xd50   : > { %v6180_v50 = vmul.f32 0.2, %v6172_v6  ;;  %v6204_v18 = vmul.f32 0.2, %v6196_v10  ;;  %v6270_v2 = vmul.f32 0.2, %v6262_v17  ;;  %v17524_v35 = vmax.f32 %v6216_v54, %v6240_v14 }
 0xd51   : > { %v6222_v22 = vmax.f32 %v6190_v16, %v6214_v25  ;;  %v6601_v56 = vadd.f32 %v6503_v60, %v17388_v9  ;;  %v6268_v59 = vmul.f32 0.2, %v6260_v55  ;;  %v17537_v14 = vadd.f32 %v6561_v15, %v17388_v9 }
 0xd52   : > { %v6188_v23 = vmax.f32 %v6172_v6, %v6180_v50  ;;  %v6258_v50 = vadd.f32 %v17429_v41, %v17483_v63  ;;  %v6534_v6 = vpop.f32.mrf.mxu1  ;;  %v6256_v54 = vadd.f32 %v17415_v20, %v17456_v44  ;;  %v6598_v20 = vadd.f32 %v17421_v19, %v17483_v63 }
 0xd53   : > { %v6609_v41 = vmul.f32 0.2, %v6601_v56  ;;  %v6634_v25 = vadd.f32 %v6534_v6, %v17478_v43 }
 0xd54   : > { %v6585_v11 = vpop.f32.mrf.mxu3 }
 0xd55   : > { %v6695_v29 = vadd.f32 %v6585_v11, %v17367_v0  ;;  %v6228_v0 = vadd.f32 %v17380_v39, %v17488_v32  ;;  %v6238_v11 = vmul.f32 0.2, %v6230_v28  ;;  %v6210_v39 = vmax.f32 %v6194_v40, %v6202_v26 }
 0xd56   : > { %v17529_v40 = vmul.f32 0.2, %v17513_v4 }
 0xd57   : > { %v6703_v49 = vmul.f32 0.2, %v6695_v29  ;;  %v6236_v3 = vmul.f32 0.2, %v6228_v0  ;;  %v6218_v58 = vmax.f32 %v6186_v52, %v6210_v39  ;;  %v6246_v26 = vmax.f32 %v6230_v28, %v6238_v11 }
 0xd58   : > { %v6600_v28 = vadd.f32 %v17453_v53, %v17488_v32  ;;  %v6633_v52 = vadd.f32 %v6532_v47, %v17388_v9  ;;  %v6264_v47 = vmul.f32 0.2, %v6256_v54 }
 0xd59   : > { %v6711_v31 = vmax.f32 %v6695_v29, %v6703_v49  ;;  %v6242_v29 = vmax.f32 %v6226_v24, %v6234_v37  ;;  %v6212_v49 = vmax.f32 %v6196_v10, %v6204_v18  ;;  %v17534_v37 = vmul.f32 0.2, %v17522_v13 }
 0xd5a   : > { %v6278_v10 = vmax.f32 %v6262_v17, %v6270_v2  ;;  %v6244_v60 = vmax.f32 %v6228_v0, %v6236_v3  ;;  %v6254_v16 = vmax.f32 %v6222_v22, %v6246_v26  ;;  %v6266_v17 = vmul.f32 0.2, %v6258_v50 }
 0xd5b   : > { %v17518_v45 = vmax.f32 %v17438_v34, %v6711_v31  ;;  %v6602_v34 = vadd.f32 %v6505_v33, %v17478_v43  ;;  %v6220_v24 = vmax.f32 %v6188_v23, %v6212_v49  ;;  %v6563_v31 = vpop.f32.mrf.mxu2  ;;  %v6250_v11 = vmax.f32 %v6218_v58, %v6242_v29 }
 0xd5c   : > { %v6587_v36 = vpop.f32.mrf.mxu3  ;;  %v6276_v0 = vmax.f32 %v6260_v55, %v6268_v59  ;;  %v6673_v33 = vmul.f32 0.2, %v17537_v14  ;;  %v6286_v39 = vmax.f32 %v6254_v16, %v6278_v10  ;;  %v6666_v2 = vadd.f32 %v6563_v31, %v17478_v43 }
 0xd5d   : > { %v6610_v18 = vmul.f32 0.2, %v6602_v34  ;;  %v6252_v53 = vmax.f32 %v6220_v24, %v6244_v60  ;;  %v6608_v3 = vmul.f32 0.2, %v6600_v28  ;;  %v6632_v22 = vadd.f32 %v17458_v21, %v17488_v32 }
 0xd5e   : > { %v6617_v49 = vmax.f32 %v6601_v56, %v6609_v41  ;;  %v6641_v26 = vmul.f32 0.2, %v6633_v52  ;;  %v6642_v58 = vmul.f32 0.2, %v6634_v25  ;;  %v6596_v55 = vadd.f32 %v17409_v8, %v17456_v44 }
 0xd5f   : > { %v6618_v29 = vmax.f32 %v6602_v34, %v6610_v18  ;;  %v6274_v59 = vmax.f32 %v6258_v50, %v6266_v17  ;;  %v6284_v6 = vmax.f32 %v6252_v53, %v6276_v0  ;;  %v6606_v24 = vmul.f32 0.2, %v6598_v20 }
 0xd60   : > { %v6630_v10 = vadd.f32 %v17424_v46, %v17483_v63  ;;  %v6625_v60 = vmax.f32 %v17442_v38, %v6617_v49  ;;  %v6674_v31 = vmul.f32 0.2, %v6666_v2  ;;  %v6616_v21 = vmax.f32 %v6600_v28, %v6608_v3 }
 0xd61   : > { %v6626_v16 = vmax.f32 %v6286_v39, %v6618_v29  ;;  %v6640_v56 = vmul.f32 0.2, %v6632_v22  ;;  %v6696_v34 = vadd.f32 %v6587_v36, %v17488_v32  ;;  %v6628_v41 = vadd.f32 %v17411_v62, %v17456_v44 }
 0xd62   : > { %v6272_v8 = vmax.f32 %v6256_v54, %v6264_v47  ;;  %v6649_v50 = vmax.f32 %v6633_v52, %v6641_v26  ;;  %v6650_v18 = vmax.f32 %v6634_v25, %v6642_v58  ;;  %v6604_v17 = vmul.f32 0.2, %v6596_v55 }
 0xd63   : > { %v6624_v0 = vmax.f32 %v6284_v6, %v6616_v21  ;;  %v6638_v46 = vmul.f32 0.2, %v6630_v10  ;;  %v6648_v49 = vmax.f32 %v6632_v22, %v6640_v56  ;;  %v6694_v28 = vadd.f32 %v17467_v5, %v17483_v63 }
 0xd64   : > { %v6590_v23 = vpop.f32.mrf.mxu3  ;;  %v6657_v15 = vmax.f32 %v6625_v60, %v6649_v50  ;;  %v6658_v39 = vmax.f32 %v6626_v16, %v6650_v18  ;;  %v6704_v32 = vmul.f32 0.2, %v6696_v34  ;;  %v6681_v62 = vmax.f32 %v17537_v14, %v6673_v33 }
 0xd65   : > { %v6697_v19 = vadd.f32 %v6590_v23, %v17388_v9  ;;  %v6282_v9 = vmax.f32 %v6250_v11, %v6274_v59  ;;  %v6614_v23 = vmax.f32 %v6598_v20, %v6606_v24  ;;  %v6682_v54 = vmax.f32 %v6666_v2, %v6674_v31 }
 0xd66   : > { %v6636_v52 = vmul.f32 0.2, %v6628_v41  ;;  %v6280_v25 = vmax.f32 %v17524_v35, %v6272_v8  ;;  %v6656_v47 = vmax.f32 %v6624_v0, %v6648_v49  ;;  %v6612_v26 = vmax.f32 %v6596_v55, %v6604_v17  ;;  %v19595_v17 = vld [vmem:[#allocation5_spill] sm:$0xff]  ;;  %v19596_v0 = vld [vmem:[#allocation6_spill] sm:$0xff] }
 0xd67   : > { %v6705_v53 = vmul.f32 0.2, %v6697_v19  ;;  %v6622_v11 = vmax.f32 %v6282_v9, %v6614_v23  ;;  %v6646_v29 = vmax.f32 %v6630_v10, %v6638_v46  ;;  %v6689_v58 = vmax.f32 %v6657_v15, %v6681_v62 }
 0xd68   : > { %v6690_v22 = vmax.f32 %v6658_v39, %v6682_v54  ;;  %v6692_v5 = vadd.f32 %v17447_v30, %v17456_v44  ;;  %v6702_v63 = vmul.f32 0.2, %v6694_v28  ;;  %v6712_v59 = vmax.f32 %v6696_v34, %v6704_v32  ;;  %v19599_v39 = vld [vmem:[#allocation9_spill] sm:$0xff]  ;;  %v19601_v32 = vld [vmem:[#allocation11_spill] sm:$0xff]  ;;  %v19602_v54 = vld [vmem:[#allocation12_spill] sm:$0xff] }
 0xd69   : > { %v6713_v20 = vmax.f32 %v6697_v19, %v6705_v53  ;;  %v6620_v6 = vmax.f32 %v6280_v25, %v6612_v26  ;;  %v6654_v14 = vmax.f32 %v6622_v11, %v6646_v29  ;;  %v19592_v33 = vmax.f32 %v17513_v4, %v17529_v40  ;;  %v19597_v53 = vld [vmem:[#allocation7_spill] sm:$0xff] }
 0xd6a   : > { %v6668_v19 = vmul.f32 0.2, %v17510_v48  ;;  %v6678_v15 = vmax.f32 %v17522_v13, %v17534_v37  ;;  %v6644_v55 = vmax.f32 %v6628_v41, %v6636_v52  ;;  %v6700_v10 = vmul.f32 0.2, %v6692_v5  ;;  %v12787_v37 = vld [vmem:[%s19481_s4] sm:$0xff] }
 0xd6b   : > { %v6688_v35 = vmax.f32 %v6656_v47, %v19592_v33  ;;  %v6721_v2 = vmax.f32 %v6689_v58, %v6713_v20  ;;  %v6710_v60 = vmax.f32 %v6694_v28, %v6702_v63  ;;  %v19600_v28 = vld [vmem:[#allocation10_spill] sm:$0xff] }
 0xd6c   : > { %v6592_v38 = vpop.f32.mrf.mxu3  ;;  %v6652_v16 = vmax.f32 %v6620_v6, %v6644_v55  ;;  %v6686_v31 = vmax.f32 %v6654_v14, %v6678_v15  ;;  %v6676_v21 = vmax.f32 %v17510_v48, %v6668_v19  ;;  %v6708_v56 = vmax.f32 %v6692_v5, %v6700_v10  ;;  %v6856_v63 = vld [vmem:[%s19482_s5] sm:$0xff] }
 0xd6d   : > { %v6698_v36 = vadd.f32 %v6592_v38, %v17478_v43  ;;  %v6720_v30 = vmax.f32 %v6688_v35, %v6712_v59  ;;  %v19598_v38 = vld [vmem:[#allocation8_spill] sm:$0xff] }
 0xd6e   : > { %v6718_v4 = vmax.f32 %v6686_v31, %v6710_v60  ;;  %v6684_v34 = vmax.f32 %v6652_v16, %v6676_v21  ;;  %v6858_v60 = vld [vmem:[%s19482_s5 + $0x10] sm:$0xff] }
 0xd6f   : > { %v6706_v3 = vmul.f32 0.2, %v6698_v36  ;;  %v6741_v40 = vpack.c.bf16 %v6720_v30, %v17518_v45  ;;  %v12788_v45 = vld [vmem:[%s19481_s4 + $0x8] sm:$0xff] }
 0xd70   : > { %v6716_v8 = vmax.f32 %v6684_v34, %v6708_v56  ;;  %v6740_v50 = vpack.c.bf16 %v6718_v4, %v17460_v27  ;;  %v12794_v27 = vld [vmem:[%s19481_s4 + $0x38] sm:$0xff] }
 0xd71   : > { %v6714_v43 = vmax.f32 %v6698_v36, %v6706_v3 }
 0xd72   : > { %v6739_v13 = vpack.c.bf16 %v6716_v8, %v17445_v57  ;;  %v19593_v57 = vld [vmem:[#allocation3_spill] sm:$0xff] }
 0xd73   : > { %v6722_v24 = vmax.f32 %v6690_v22, %v6714_v43 }
 0xd75   : > { %v6742_v44 = vpack.c.bf16 %v6722_v24, %v6721_v2 }
 0xd77   : > { %6811 = vmatpush.bf16.msrb.mxu0 %v6742_v44 }
 0xd7b   : > { %6812 = vmatpush.bf16.msrb.mxu0 %v6741_v40 }
 0xd7f   : > { %6813 = vmatpush.bf16.msrb.mxu0 %v6740_v50 }
 0xd83   : > { %6814 = vmatpush.bf16.msrb.mxu0 %v6739_v13 }
 0xd86   : > { %11692 = vmatmul.msk.bf16.vlgmr.msrb.gmra.mxu0 %vm1064_vm0, %v12787_v37 }
 0xd87   : > { %7170 = vmatpush.bf16.msra.mxu0 %v16701_v1  ;;  %v19594_v1 = vld [vmem:[#allocation4_spill] sm:$0xff] }
 0xd8b   : > { %7171 = vmatpush.bf16.msra.mxu0 %v16728_v42  ;;  %v12789_v42 = vld [vmem:[%s19481_s4 + $0x10] sm:$0xff] }
 0xd8f   : > { %7172 = vmatpush.bf16.msra.mxu0 %v16770_v7  ;;  %v12790_v7 = vld [vmem:[%s19481_s4 + $0x18] sm:$0xff] }
 0xd93   : > { %7173 = vmatpush.bf16.msra.mxu0 %v16803_v51  ;;  %v12791_v51 = vld [vmem:[%s19481_s4 + $0x20] sm:$0xff] }
 0xd96   : > { %11693 = vmatmul.msk.bf16.gmra.mxu0 %vm1064_vm0, %v12788_v45 }
 0xd97   : > { %7174 = vmatpush.bf16.msra.mxu0 %v16840_v61  ;;  %v12792_v61 = vld [vmem:[%s19481_s4 + $0x28] sm:$0xff] }
 0xd9b   : > { %7175 = vmatpush.bf16.msra.mxu0 %v16881_v12  ;;  %v12793_v12 = vld [vmem:[%s19481_s4 + $0x30] sm:$0xff] }
 0xd9f   : > { %7176 = vmatpush.bf16.msra.mxu0 %v19593_v57 }
 0xda3   : > { %7177 = vmatpush.bf16.msra.mxu0 %v19594_v1 }
 0xda6   : > { %11694 = vmatmul.msk.bf16.gmra.mxu0 %vm1064_vm0, %v12789_v42 }
 0xdb6   : > { %11695 = vmatmul.msk.bf16.gmra.mxu0 %vm1064_vm0, %v12790_v7 }
 0xdc6   : > { %11696 = vmatmul.msk.bf16.gmra.mxu0 %vm1064_vm0, %v12791_v51  ;;  %v6860_v51 = vld [vmem:[%s19482_s5 + $0x20] sm:$0xff] }
 0xdd6   : > { %11697 = vmatmul.msk.bf16.gmra.mxu0 %vm1064_vm0, %v12792_v61 }
 0xde6   : > { %11698 = vmatmul.msk.bf16.gmra.mxu0 %vm1064_vm0, %v12793_v12 }
 0xdf6   : > { %11699 = vmatmul.msk.bf16.gmra.mxu0 %vm1064_vm0, %v12794_v27 }
 0xe03   : > { %v6816_v48 = vpop.f32.mrf.mxu0 }
 0xe0b   : > { %v6818_v41 = vpop.f32.mrf.mxu0 }
 0xe0c   : > { %v6872_v18 = vpack.c.bf16 %v6818_v41, %v6816_v48 }
 0xe0e   : > { %6884 = vmatmul.bf16.vlgmr.msrb.gmra.mxu1 %v6872_v18  ;;  %6913 = vmatmul.bf16.vlgmr.msra.gmra.mxu2 %v6872_v18 }
 0xe0f   : > { %6942 = vmatmul.bf16.vlgmr.msrb.gmra.mxu3 %v6872_v18  ;;  %7178 = vmatmul.bf16.vlgmr.msra.gmra.mxu0 %v6872_v18 }
 0xe10   : > { %7199 = vmatpush.bf16.msrb.mxu1 %v19595_v17 }
 0xe13   : > { %v6821_v9 = vpop.f32.mrf.mxu0 }
 0xe14   : > { %7200 = vmatpush.bf16.msrb.mxu1 %v19596_v0 }
 0xe18   : > { %7201 = vmatpush.bf16.msrb.mxu1 %v19597_v53 }
 0xe1b   : > { %v6823_v23 = vpop.f32.mrf.mxu0 }
 0xe1c   : > { %v17622_v46 = vpack.c.bf16 %v6823_v23, %v6821_v9  ;;  %7202 = vmatpush.bf16.msrb.mxu1 %v19598_v38 }
 0xe1e   : > { %6889 = vmatmul.bf16.gmra.mxu1 %v17622_v46  ;;  %6918 = vmatmul.bf16.gmra.mxu2 %v17622_v46 }
 0xe1f   : > { %6947 = vmatmul.bf16.gmra.mxu3 %v17622_v46  ;;  %7183 = vmatmul.bf16.gmra.mxu0 %v17622_v46 }
 0xe20   : > { %7203 = vmatpush.bf16.msrb.mxu1 %v19599_v39 }
 0xe23   : > { %v6826_v49 = vpop.f32.mrf.mxu0 }
 0xe24   : > { %7204 = vmatpush.bf16.msrb.mxu1 %v19600_v28 }
 0xe28   : > { %7205 = vmatpush.bf16.msrb.mxu1 %v19601_v32 }
 0xe2b   : > { %v6828_v36 = vpop.f32.mrf.mxu0 }
 0xe2c   : > { %v17632_v62 = vpack.c.bf16 %v6828_v36, %v6826_v49  ;;  %7206 = vmatpush.bf16.msrb.mxu1 %v19602_v54 }
 0xe2e   : > { %6894 = vmatmul.bf16.gmra.mxu1 %v17632_v62  ;;  %6923 = vmatmul.bf16.gmra.mxu2 %v17632_v62 }
 0xe2f   : > { %6952 = vmatmul.bf16.gmra.mxu3 %v17632_v62  ;;  %7188 = vmatmul.bf16.gmra.mxu0 %v17632_v62 }
 0xe33   : > { %v6831_v52 = vpop.f32.mrf.mxu0 }
 0xe3b   : > { %v6833_v25 = vpop.f32.mrf.mxu0 }
 0xe3c   : > { %v17639_v11 = vpack.c.bf16 %v6833_v25, %v6831_v52 }
 0xe3e   : > { %6899 = vmatmul.bf16.gmra.mxu1 %v17639_v11  ;;  %6928 = vmatmul.bf16.gmra.mxu2 %v17639_v11 }
 0xe3f   : > { %6957 = vmatmul.bf16.gmra.mxu3 %v17639_v11  ;;  %7193 = vmatmul.bf16.gmra.mxu0 %v17639_v11 }
 0xe43   : > { %v6836_v47 = vpop.f32.mrf.mxu0 }
 0xe44   : > { %v17667_v59 = vadd.f32 %v6856_v63, %v6836_v47  ;;  %v6862_v47 = vld [vmem:[%s19482_s5 + $0x30] sm:$0xff] }
 0xe4b   : > { %v17645_v20 = vpop.f32.mrf.mxu0 }
 0xe4e   : > { %6971 = vmatmul.bf16.vlgmr.msra.gmra.mxu1 %v6872_v18  ;;  %7120 = vmatmul.bf16.vlgmr.msrb.gmra.mxu2 %v6872_v18 }
 0xe4f   : > { %7149 = vmatmul.bf16.vlgmr.msra.gmra.mxu3 %v6872_v18 }
 0xe53   : > { %v6841_v3 = vpop.f32.mrf.mxu0 }
 0xe54   : > { %v17680_v31 = vadd.f32 %v6858_v60, %v6841_v3 }
 0xe5b   : > { %v17647_v26 = vpop.f32.mrf.mxu0 }
 0xe5e   : > { %6976 = vmatmul.bf16.gmra.mxu1 %v17622_v46  ;;  %7125 = vmatmul.bf16.gmra.mxu2 %v17622_v46 }
 0xe5f   : > { %7154 = vmatmul.bf16.gmra.mxu3 %v17622_v46 }
 0xe63   : > { %v6846_v29 = vpop.f32.mrf.mxu0 }
 0xe64   : > { %v17697_v48 = vadd.f32 %v6860_v51, %v6846_v29 }
 0xe6b   : > { %v17654_v58 = vpop.f32.mrf.mxu0 }
 0xe6e   : > { %6981 = vmatmul.bf16.gmra.mxu1 %v17632_v62  ;;  %7130 = vmatmul.bf16.gmra.mxu2 %v17632_v62 }
 0xe6f   : > { %7159 = vmatmul.bf16.gmra.mxu3 %v17632_v62 }
 0xe73   : > { %v17657_v22 = vpop.f32.mrf.mxu0 }
 0xe74   : > { %v17717_v63 = vadd.f32 %v6862_v47, %v17657_v22 }
 0xe7b   : > { %v17662_v5 = vpop.f32.mrf.mxu0 }
 0xe7e   : > { %6986 = vmatmul.bf16.gmra.mxu1 %v17639_v11  ;;  %7135 = vmatmul.bf16.gmra.mxu2 %v17639_v11 }
 0xe7f   : > { %7164 = vmatmul.bf16.gmra.mxu3 %v17639_v11 }
 0xe8b   : > { %v6885_v43 = vpop.f32.mrf.mxu1 }
 0xe8c   : > { %v6992_v6 = vadd.f32 %v6885_v43, %v17667_v59  ;;  %v7179_v14 = vpop.f32.mrf.mxu0 }
 0xe8d   : > { %v17671_v33 = vadd.f32 %v7179_v14, %v17667_v59 }
 0xe8e   : > { %7207 = vmatmul.bf16.vlgmr.msrb.gmra.mxu1 %v6872_v18  ;;  %v7000_v2 = vmul.f32 0.2, %v6992_v6 }
 0xe90   : > { %v7008_v44 = vmax.f32 %v6992_v6, %v7000_v2 }
 0xe91   : > { %v6914_v35 = vpop.f32.mrf.mxu2 }
 0xe92   : > { %v7016_v24 = vadd.f32 %v6914_v35, %v17667_v59  ;;  %v6943_v19 = vpop.f32.mrf.mxu3 }
 0xe93   : > { %v7048_v15 = vadd.f32 %v6943_v19, %v17667_v59  ;;  %v17675_v55 = vpop.f32.mrf.mxu1 }
 0xe94   : > { %v7024_v10 = vmul.f32 0.2, %v7016_v24 }
 0xe95   : > { %v7056_v30 = vmul.f32 0.2, %v7048_v15 }
 0xe96   : > { %v7032_v16 = vmax.f32 %v7016_v24, %v7024_v10 }
 0xe97   : > { %v7064_v56 = vmax.f32 %v7048_v15, %v7056_v30 }
 0xe98   : > { %v7040_v21 = vmax.f32 %v7008_v44, %v7032_v16 }
 0xe99   : > { %v17682_v4 = vpop.f32.mrf.mxu2 }
 0xe9a   : > { %v17684_v40 = vmax.f32 %v7040_v21, %v7064_v56  ;;  %v17686_v34 = vpop.f32.mrf.mxu3 }
 0xe9b   : > { %v6890_v8 = vpop.f32.mrf.mxu1 }
 0xe9c   : > { %v6994_v50 = vadd.f32 %v6890_v8, %v17680_v31 }
 0xe9e   : > { %7212 = vmatmul.bf16.gmra.mxu1 %v17622_v46  ;;  %v7002_v37 = vmul.f32 0.2, %v6994_v50 }
 0xea0   : > { %v7010_v12 = vmax.f32 %v6994_v50, %v7002_v37 }
 0xea1   : > { %v6919_v13 = vpop.f32.mrf.mxu2 }
 0xea2   : > { %v7018_v45 = vadd.f32 %v6919_v13, %v17680_v31  ;;  %v6948_v57 = vpop.f32.mrf.mxu3 }
 0xea3   : > { %v7050_v1 = vadd.f32 %v6948_v57, %v17680_v31  ;;  %v17692_v42 = vpop.f32.mrf.mxu1 }
 0xea4   : > { %v7026_v7 = vmul.f32 0.2, %v7018_v45 }
 0xea5   : > { %v7058_v61 = vmul.f32 0.2, %v7050_v1 }
 0xea6   : > { %v7034_v27 = vmax.f32 %v7018_v45, %v7026_v7 }
 0xea7   : > { %v7066_v18 = vmax.f32 %v7050_v1, %v7058_v61  ;;  %v17736_v1 = vpop.f32.mrf.mxu0 }
 0xea8   : > { %v7042_v41 = vmax.f32 %v7010_v12, %v7034_v27 }
 0xea9   : > { %v17699_v17 = vpop.f32.mrf.mxu2 }
 0xeaa   : > { %v17701_v9 = vmax.f32 %v7042_v41, %v7066_v18  ;;  %v17703_v0 = vpop.f32.mrf.mxu3 }
 0xeab   : > { %v6895_v53 = vpop.f32.mrf.mxu1 }
 0xeac   : > { %v6996_v23 = vadd.f32 %v6895_v53, %v17697_v48 }
 0xeae   : > { %7217 = vmatmul.bf16.gmra.mxu1 %v17632_v62  ;;  %v7004_v38 = vmul.f32 0.2, %v6996_v23 }
 0xeb0   : > { %v7012_v52 = vmax.f32 %v6996_v23, %v7004_v38  ;;  %v7300_v23 = vmul.f32 0.2, %v17671_v33 }
 0xeb1   : > { %v6924_v46 = vpop.f32.mrf.mxu2 }
 0xeb2   : > { %v7020_v39 = vadd.f32 %v6924_v46, %v17697_v48  ;;  %v6953_v49 = vpop.f32.mrf.mxu3 }
 0xeb3   : > { %v7052_v28 = vadd.f32 %v6953_v49, %v17697_v48  ;;  %v17709_v32 = vpop.f32.mrf.mxu1 }
 0xeb4   : > { %v7028_v36 = vmul.f32 0.2, %v7020_v39 }
 0xeb5   : > { %v7060_v54 = vmul.f32 0.2, %v7052_v28 }
 0xeb6   : > { %v7036_v25 = vmax.f32 %v7020_v39, %v7028_v36 }
 0xeb7   : > { %v7068_v29 = vmax.f32 %v7052_v28, %v7060_v54  ;;  %v7308_v28 = vmax.f32 %v17671_v33, %v7300_v23  ;;  %v7184_v54 = vpop.f32.mrf.mxu0 }
 0xeb8   : > { %v7044_v3 = vmax.f32 %v7012_v52, %v7036_v25 }
 0xeb9   : > { %v17714_v62 = vpop.f32.mrf.mxu2 }
 0xeba   : > { %v17719_v43 = vmax.f32 %v7044_v3, %v7068_v29  ;;  %v17721_v6 = vpop.f32.mrf.mxu3 }
 0xebb   : > { %v6900_v14 = vpop.f32.mrf.mxu1 }
 0xebc   : > { %v6998_v35 = vadd.f32 %v6900_v14, %v17717_v63 }
 0xebe   : > { %7222 = vmatmul.bf16.gmra.mxu1 %v17639_v11  ;;  %v7006_v24 = vmul.f32 0.2, %v6998_v35 }
 0xec0   : > { %v7014_v44 = vmax.f32 %v6998_v35, %v7006_v24  ;;  %v7294_v35 = vadd.f32 %v7184_v54, %v17680_v31 }
 0xec1   : > { %v6929_v2 = vpop.f32.mrf.mxu2 }
 0xec2   : > { %v7022_v19 = vadd.f32 %v6929_v2, %v17717_v63  ;;  %v6958_v15 = vpop.f32.mrf.mxu3 }
 0xec3   : > { %v7054_v10 = vadd.f32 %v6958_v15, %v17717_v63  ;;  %v17727_v60 = vpop.f32.mrf.mxu1 }
 0xec4   : > { %v7030_v22 = vmul.f32 0.2, %v7022_v19 }
 0xec5   : > { %v7062_v30 = vmul.f32 0.2, %v7054_v10 }
 0xec6   : > { %v7038_v16 = vmax.f32 %v7022_v19, %v7030_v22  ;;  %v17756_v22 = vpop.f32.mrf.mxu0 }
 0xec7   : > { %v7070_v56 = vmax.f32 %v7054_v10, %v7062_v30 }
 0xec8   : > { %v7046_v21 = vmax.f32 %v7014_v44, %v7038_v16  ;;  %v7302_v44 = vmul.f32 0.2, %v7294_v35 }
 0xec9   : > { %v17729_v8 = vpop.f32.mrf.mxu2 }
 0xeca   : > { %v17731_v50 = vmax.f32 %v7046_v21, %v7070_v56  ;;  %v17733_v11 = vpop.f32.mrf.mxu3 }
 0xecb   : > { %v6972_v13 = vpop.f32.mrf.mxu1 }
 0xecc   : > { %v7080_v37 = vadd.f32 %v6972_v13, %v17667_v59 }
 0xece   : > { %v7088_v45 = vmul.f32 0.2, %v7080_v37 }
 0xed0   : > { %v7096_v57 = vmax.f32 %v7080_v37, %v7088_v45  ;;  %v7310_v37 = vmax.f32 %v7294_v35, %v7302_v44 }
 0xed1   : > { %v7121_v7 = vpop.f32.mrf.mxu2 }
 0xed2   : > { %v7104_v51 = vmax.f32 %v17684_v40, %v7096_v57  ;;  %v7228_v61 = vadd.f32 %v7121_v7, %v17667_v59  ;;  %v7150_v12 = vpop.f32.mrf.mxu3 }
 0xed3   : > { %v7260_v27 = vadd.f32 %v7150_v12, %v17667_v59  ;;  %v17741_v41 = vpop.f32.mrf.mxu1  ;;  %v7189_v12 = vpop.f32.mrf.mxu0 }
 0xed4   : > { %v7236_v18 = vmul.f32 0.2, %v7228_v61 }
 0xed5   : > { %v7268_v53 = vmul.f32 0.2, %v7260_v27 }
 0xed6   : > { %v7244_v46 = vmax.f32 %v7228_v61, %v7236_v18 }
 0xed7   : > { %v7276_v39 = vmax.f32 %v7260_v27, %v7268_v53  ;;  %v7296_v53 = vadd.f32 %v7189_v12, %v17697_v48 }
 0xed8   : > { %v7252_v38 = vmax.f32 %v7104_v51, %v7244_v46 }
 0xed9   : > { %v17744_v49 = vpop.f32.mrf.mxu2 }
 0xeda   : > { %v7284_v36 = vmax.f32 %v7252_v38, %v7276_v39  ;;  %v17747_v40 = vpop.f32.mrf.mxu3 }
 0xedb   : > { %v6977_v52 = vpop.f32.mrf.mxu1 }
 0xedc   : > { %v7082_v25 = vadd.f32 %v6977_v52, %v17680_v31  ;;  %v7316_v47 = vmax.f32 %v7284_v36, %v7308_v28  ;;  %v7304_v52 = vmul.f32 0.2, %v7296_v53 }
 0xede   : > { %v7090_v3 = vmul.f32 0.2, %v7082_v25 }
 0xee0   : > { %v7098_v29 = vmax.f32 %v7082_v25, %v7090_v3 }
 0xee1   : > { %v7126_v14 = vpop.f32.mrf.mxu2 }
 0xee2   : > { %v7106_v2 = vmax.f32 %v17701_v9, %v7098_v29  ;;  %v7230_v24 = vadd.f32 %v7126_v14, %v17680_v31  ;;  %v7155_v19 = vpop.f32.mrf.mxu3  ;;  %v7312_v14 = vmax.f32 %v7296_v53, %v7304_v52 }
 0xee3   : > { %v7262_v33 = vadd.f32 %v7155_v19, %v17680_v31  ;;  %v17754_v15 = vpop.f32.mrf.mxu1 }
 0xee4   : > { %v7238_v10 = vmul.f32 0.2, %v7230_v24 }
 0xee5   : > { %v7270_v30 = vmul.f32 0.2, %v7262_v33 }
 0xee6   : > { %v7246_v16 = vmax.f32 %v7230_v24, %v7238_v10 }
 0xee7   : > { %v7278_v56 = vmax.f32 %v7262_v33, %v7270_v30 }
 0xee8   : > { %v7254_v21 = vmax.f32 %v7106_v2, %v7246_v16 }
 0xee9   : > { %v17758_v13 = vpop.f32.mrf.mxu2 }
 0xeea   : > { %v7286_v45 = vmax.f32 %v7254_v21, %v7278_v56  ;;  %v17760_v9 = vpop.f32.mrf.mxu3 }
 0xeeb   : > { %v6982_v57 = vpop.f32.mrf.mxu1 }
 0xeec   : > { %v7084_v7 = vadd.f32 %v6982_v57, %v17697_v48  ;;  %v7318_v51 = vmax.f32 %v7286_v45, %v7310_v37 }
 0xeee   : > { %v7092_v61 = vmul.f32 0.2, %v7084_v7 }
 0xef0   : > { %v7100_v27 = vmax.f32 %v7084_v7, %v7092_v61 }
 0xef1   : > { %v7131_v18 = vpop.f32.mrf.mxu2 }
 0xef2   : > { %v7108_v23 = vmax.f32 %v17719_v43, %v7100_v27  ;;  %v7232_v46 = vadd.f32 %v7131_v18, %v17697_v48  ;;  %v7160_v38 = vpop.f32.mrf.mxu3  ;;  %v7191_v18 = vpop.f32.mrf.mxu0 }
 0xef3   : > { %v7264_v39 = vadd.f32 %v7160_v38, %v17697_v48  ;;  %v17767_v28 = vpop.f32.mrf.mxu1  ;;  %v6861_v38 = vld [vmem:[%s19482_s5 + $0x28] sm:$0xff] }
 0xef4   : > { %v7240_v36 = vmul.f32 0.2, %v7232_v46 }
 0xef5   : > { %v7272_v54 = vmul.f32 0.2, %v7264_v39 }
 0xef6   : > { %v7248_v25 = vmax.f32 %v7232_v46, %v7240_v36 }
 0xef7   : > { %v7280_v29 = vmax.f32 %v7264_v39, %v7272_v54 }
 0xef8   : > { %v7256_v3 = vmax.f32 %v7108_v23, %v7248_v25 }
 0xef9   : > { %v17783_v61 = vpop.f32.mrf.mxu2 }
 0xefa   : > { %v7288_v35 = vmax.f32 %v7256_v3, %v7280_v29  ;;  %v17796_v23 = vpop.f32.mrf.mxu3 }
 0xefb   : > { %v6987_v2 = vpop.f32.mrf.mxu1 }
 0xefc   : > { %v7086_v24 = vadd.f32 %v6987_v2, %v17717_v63  ;;  %v17770_v19 = vmax.f32 %v7288_v35, %v7312_v14 }
 0xefe   : > { %v7094_v43 = vmul.f32 0.2, %v7086_v24 }
 0xf00   : > { %v7102_v33 = vmax.f32 %v7086_v24, %v7094_v43 }
 0xf01   : > { %v7136_v52 = vpop.f32.mrf.mxu2 }
 0xf02   : > { %v17773_v10 = vmax.f32 %v17731_v50, %v7102_v33  ;;  %v6857_v50 = vld [vmem:[%s19482_s5 + $0x8] sm:$0xff]  ;;  %v7194_v33 = vpop.f32.mrf.mxu0 }
 0xf03   : > { %v17775_v30 = vpop.f32.mrf.mxu1 }
 0xf0b   : > { %v7208_v44 = vpop.f32.mrf.mxu1 }
 0xf0c   : > { %v7324_v16 = vadd.f32 %v7208_v44, %v17667_v59  ;;  %v6859_v59 = vld [vmem:[%s19482_s5 + $0x18] sm:$0xff]  ;;  %v17840_v44 = vpop.f32.mrf.mxu3 }
 0xf0d   : > { %v17801_v46 = vadd.f32 %v6859_v59, %v17647_v26  ;;  %v17816_v26 = vadd.f32 %v6861_v38, %v17654_v58 }
 0xf0e   : > { %v7332_v21 = vmul.f32 0.2, %v7324_v16 }
 0xf0f   : > { %v7019_v36 = vadd.f32 %v17699_v17, %v17801_v46  ;;  %v7021_v58 = vadd.f32 %v17714_v62, %v17816_v26 }
 0xf10   : > { %v7340_v56 = vmax.f32 %v7324_v16, %v7332_v21 }
 0xf11   : > { %v7027_v14 = vmul.f32 0.2, %v7019_v36  ;;  %v7029_v21 = vmul.f32 0.2, %v7021_v58 }
 0xf12   : > { %v17778_v37 = vmax.f32 %v7316_v47, %v7340_v56  ;;  %v17792_v47 = vadd.f32 %v6857_v50, %v17645_v20  ;;  %v6863_v20 = vld [vmem:[%s19482_s5 + $0x38] sm:$0xff]  ;;  %v7053_v50 = vadd.f32 %v17721_v6, %v17816_v26 }
 0xf13   : > { %v17780_v45 = vpop.f32.mrf.mxu1  ;;  %v17823_v25 = vadd.f32 %v6863_v20, %v17662_v5  ;;  %v7035_v16 = vmax.f32 %v7019_v36, %v7027_v14  ;;  %v12802_v56 = vld [vmem:[%s13019_s15 + $0x338] sm:$0xff]  ;;  %v7037_v36 = vmax.f32 %v7021_v58, %v7029_v21 }
 0xf14   : > { %v7017_v39 = vadd.f32 %v17682_v4, %v17792_v47  ;;  %v7049_v54 = vadd.f32 %v17686_v34, %v17792_v47  ;;  %v6995_v4 = vadd.f32 %v17692_v42, %v17801_v46  ;;  %v6997_v34 = vadd.f32 %v17709_v32, %v17816_v26  ;;  %7829 = vmatpush.bf16.msrb.mxu3 %v12802_v56  ;;  %v7167_v56 = vpop.f32.mrf.mxu3 }
 0xf15   : > { %v7023_v42 = vadd.f32 %v17729_v8, %v17823_v25  ;;  %v6999_v62 = vadd.f32 %v17727_v60, %v17823_v25  ;;  %v17849_v60 = vadd.f32 %v7194_v33, %v17717_v63  ;;  %v7055_v20 = vadd.f32 %v17733_v11, %v17823_v25  ;;  %v12800_v33 = vld [vmem:[%s13019_s15 + $0x328] sm:$0xff] }
 0xf16   : > { %v7025_v3 = vmul.f32 0.2, %v7017_v39  ;;  %v7057_v17 = vmul.f32 0.2, %v7049_v54  ;;  %v7003_v5 = vmul.f32 0.2, %v6995_v4 }
 0xf17   : > { %v7061_v58 = vmul.f32 0.2, %v7053_v50 }
 0xf18   : > { %v7033_v24 = vmax.f32 %v7017_v39, %v7025_v3  ;;  %v7007_v39 = vmul.f32 0.2, %v6999_v62  ;;  %v12810_v3 = vld [vmem:[%s13019_s15 + $0x378] sm:$0xff] }
 0xf19   : > { %7878 = vmatpush.bf16.msrb.mxu0 %v12810_v3 }
 0xf1b   : > { %v7213_v57 = vpop.f32.mrf.mxu1 }
 0xf1c   : > { %v7326_v7 = vadd.f32 %v7213_v57, %v17680_v31  ;;  %v7065_v57 = vmax.f32 %v7049_v54, %v7057_v17  ;;  %v17855_v54 = vadd.f32 %v17775_v30, %v17823_v25  ;;  %v17866_v17 = vadd.f32 %v7136_v52, %v17717_v63 }
 0xf1d   : > { %v17871_v30 = vmul.f32 0.2, %v17849_v60 }
 0xf1e   : > { %v7334_v12 = vmul.f32 0.2, %v7326_v7 }
 0xf20   : > { %v7342_v27 = vmax.f32 %v7326_v7, %v7334_v12  ;;  %v7005_v7 = vmul.f32 0.2, %v6997_v34  ;;  %v7011_v12 = vmax.f32 %v6995_v4, %v7003_v5  ;;  %v12801_v4 = vld [vmem:[%s13019_s15 + $0x330] sm:$0xff]  ;;  %v7063_v5 = vmul.f32 0.2, %v7055_v20 }
 0xf21   : > { %7830 = vmatpush.bf16.msrb.mxu3 %v12801_v4 }
 0xf22   : > { %v17794_v53 = vmax.f32 %v7318_v51, %v7342_v27  ;;  %v6993_v51 = vadd.f32 %v17675_v55, %v17792_v47  ;;  %v7051_v55 = vadd.f32 %v17703_v0, %v17801_v46  ;;  %v17836_v0 = vadd.f32 %v17736_v1, %v17792_v47 }
 0xf23   : > { %v17798_v31 = vpop.f32.mrf.mxu1  ;;  %v7031_v1 = vmul.f32 0.2, %v7023_v42 }
 0xf24   : > { %v7001_v29 = vmul.f32 0.2, %v6993_v51  ;;  %v7059_v43 = vmul.f32 0.2, %v7051_v55 }
 0xf25   : > { %7831 = vmatpush.bf16.msrb.mxu3 %v12800_v33 }
 0xf26   : > { %v7009_v32 = vmax.f32 %v6993_v51, %v7001_v29  ;;  %v7067_v38 = vmax.f32 %v7051_v55, %v7059_v43  ;;  %v7043_v51 = vmax.f32 %v7011_v12, %v7035_v16  ;;  %v7013_v29 = vmax.f32 %v6997_v34, %v7005_v7  ;;  %v12809_v16 = vld [vmem:[%s13019_s15 + $0x370] sm:$0xff]  ;;  %v7196_v7 = vpop.f32.mrf.mxu0 }
 0xf27   : > { %v7039_v55 = vmax.f32 %v7023_v42, %v7031_v1  ;;  %v17884_v42 = vadd.f32 %v17756_v22, %v17801_v46  ;;  %v7095_v43 = vmul.f32 0.2, %v17855_v54  ;;  %v17900_v22 = vadd.f32 %v17754_v15, %v17801_v46  ;;  %7879 = vmatpush.bf16.msrb.mxu0 %v12809_v16 }
 0xf28   : > { %v7041_v59 = vmax.f32 %v7009_v32, %v7033_v24  ;;  %v7045_v24 = vmax.f32 %v7013_v29, %v7037_v36  ;;  %v12818_v32 = vld [vmem:[%s13019_s15 + $0x3b8] sm:$0xff]  ;;  %v17909_v15 = vadd.f32 %v17741_v41, %v17792_v47  ;;  %v12817_v41 = vld [vmem:[%s13019_s15 + $0x3b0] sm:$0xff]  ;;  %v17923_v36 = vadd.f32 %v7196_v7, %v17823_v25  ;;  %v12808_v29 = vld [vmem:[%s13019_s15 + $0x368] sm:$0xff] }
 0xf29   : > { %7927 = vmatpush.bf16.msra.mxu1 %v12818_v32  ;;  %v7091_v4 = vmul.f32 0.2, %v17900_v22 }
 0xf2a   : > { %v17880_v52 = vmax.f32 %v7041_v59, %v7065_v57  ;;  %v7069_v57 = vmax.f32 %v7053_v50, %v7061_v58  ;;  %v17913_v50 = vadd.f32 %v17758_v13, %v17801_v46  ;;  %v7266_v59 = vadd.f32 %v17840_v44, %v17717_v63 }
 0xf2b   : > { %v7218_v35 = vpop.f32.mrf.mxu1  ;;  %v7265_v58 = vadd.f32 %v17796_v23, %v17816_v26  ;;  %7880 = vmatpush.bf16.msrb.mxu0 %v12808_v29  ;;  %v12814_v29 = vld [vmem:[%s13019_s15 + $0x398] sm:$0xff] }
 0xf2c   : > { %v7328_v2 = vadd.f32 %v7218_v35, %v17697_v48  ;;  %v17844_v48 = vadd.f32 %v7191_v18, %v17816_v26  ;;  %v7138_v18 = vpop.f32.mrf.mxu2  ;;  %v7015_v35 = vmax.f32 %v6999_v62, %v7007_v39  ;;  %v7242_v62 = vmul.f32 0.2, %v17866_v17 }
 0xf2d   : > { %v17878_v34 = vadd.f32 %v7138_v18, %v17823_v25  ;;  %v7103_v18 = vmax.f32 %v17855_v54, %v7095_v43  ;;  %7928 = vmatpush.bf16.msra.mxu1 %v12817_v41  ;;  %v7089_v43 = vmul.f32 0.2, %v17909_v15  ;;  %v7239_v33 = vmul.f32 0.2, %v17913_v50 }
 0xf2e   : > { %v7336_v8 = vmul.f32 0.2, %v7328_v2  ;;  %v17863_v14 = vmul.f32 0.2, %v17844_v48  ;;  %v7250_v44 = vmax.f32 %v17866_v17, %v7242_v62  ;;  %v17940_v17 = vadd.f32 %v17744_v49, %v17792_v47 }
 0xf2f   : > { %v7243_v12 = vmul.f32 0.2, %v17878_v34  ;;  %v7274_v32 = vmul.f32 0.2, %v7266_v59  ;;  %v7099_v62 = vmax.f32 %v17900_v22, %v7091_v4  ;;  %v7263_v49 = vadd.f32 %v17760_v9, %v17801_v46 }
 0xf30   : > { %v7344_v27 = vmax.f32 %v7328_v2, %v7336_v8  ;;  %v17886_v2 = vmax.f32 %v7043_v51, %v7067_v38  ;;  %v7313_v21 = vmax.f32 %v17844_v48, %v17863_v14  ;;  %v7047_v8 = vmax.f32 %v7015_v35, %v7039_v55  ;;  %v12799_v51 = vld [vmem:[%s13019_s15 + $0x320] sm:$0xff]  ;;  %v12829_v48 = vld [vmem:[%s19478_s1 + $0xc] sm:$0xf0] }
 0xf31   : > { %v7077_v38 = vmax.f32 %v7045_v24, %v7069_v57  ;;  %v17929_v55 = vmul.f32 0.2, %v17884_v42  ;;  %v7251_v35 = vmax.f32 %v17878_v34, %v7243_v12  ;;  %7832 = vmatpush.bf16.msrb.mxu3 %v12799_v51  ;;  %v12816_v24 = vld [vmem:[%s13019_s15 + $0x3a8] sm:$0xff]  ;;  %v12807_v57 = vld [vmem:[%s13019_s15 + $0x360] sm:$0xff]  ;;  %v7097_v22 = vmax.f32 %v17909_v15, %v7089_v43 }
 0xf32   : > { %v17858_v6 = vmax.f32 %v17770_v19, %v7344_v27  ;;  %v17875_v19 = vadd.f32 %v17767_v28, %v17816_v26  ;;  %v17890_v28 = vadd.f32 %v17783_v61, %v17816_v26  ;;  %v7314_v61 = vmax.f32 %v17849_v60, %v17871_v30  ;;  %7929 = vmatpush.bf16.msra.mxu1 %v12816_v24 }
 0xf33   : > { %v17868_v11 = vpop.f32.mrf.mxu1  ;;  %v7071_v27 = vmax.f32 %v7055_v20, %v7063_v5  ;;  %v7267_v20 = vadd.f32 %v7167_v56, %v17823_v25  ;;  %v12798_v5 = vld [vmem:[%s13019_s15 + $0x318] sm:$0xff]  ;;  %v7258_v56 = vmax.f32 %v17773_v10, %v7250_v44  ;;  %v17963_v9 = vadd.f32 %v17747_v40, %v17792_v47  ;;  %7881 = vmatpush.bf16.msrb.mxu0 %v12807_v57  ;;  %v11768_v57 = vld [vmem:[%s19478_s1] sm:$0xf] }
 0xf34   : > { %v7093_v1 = vmul.f32 0.2, %v17875_v19  ;;  %v7241_v39 = vmul.f32 0.2, %v17890_v28  ;;  %v7282_v10 = vmax.f32 %v7266_v59, %v7274_v32  ;;  %v7107_v51 = vmax.f32 %v17886_v2, %v7099_v62  ;;  %v12806_v40 = vld [vmem:[%s13019_s15 + $0x358] sm:$0xff] }
 0xf35   : > { %v7079_v13 = vmax.f32 %v7047_v8, %v7071_v27  ;;  %v7275_v34 = vmul.f32 0.2, %v7267_v20  ;;  %v7307_v8 = vmul.f32 0.2, %v17923_v36  ;;  %7833 = vmatpush.bf16.msrb.mxu3 %v12798_v5  ;;  %v12815_v27 = vld [vmem:[%s13019_s15 + $0x3a0] sm:$0xff]  ;;  %v7325_v43 = vadd.f32 %v17780_v45, %v17792_v47 }
 0xf36   : > { %v7101_v54 = vmax.f32 %v17875_v19, %v7093_v1  ;;  %v7249_v23 = vmax.f32 %v17890_v28, %v7241_v39  ;;  %v7273_v1 = vmul.f32 0.2, %v7265_v58  ;;  %v17955_v28 = vadd.f32 %v17868_v11, %v17816_v26  ;;  %7930 = vmatpush.bf16.msra.mxu1 %v12815_v27 }
 0xf37   : > { %v7111_v19 = vmax.f32 %v7079_v13, %v7103_v18  ;;  %v7237_v39 = vmul.f32 0.2, %v17940_v17  ;;  %v7283_v11 = vmax.f32 %v7267_v20, %v7275_v34  ;;  %v7271_v41 = vmul.f32 0.2, %v7263_v49  ;;  %v12796_v20 = vld [vmem:[%s13019_s15 + $0x308] sm:$0xff]  ;;  %7882 = vmatpush.bf16.msrb.mxu0 %v12806_v40  ;;  %v12813_v34 = vld [vmem:[%s13019_s15 + $0x390] sm:$0xff] }
 0xf38   : > { %v7109_v7 = vmax.f32 %v7077_v38, %v7101_v54  ;;  %v7247_v38 = vmax.f32 %v17913_v50, %v7239_v33  ;;  %v7290_v15 = vmax.f32 %v7258_v56, %v7282_v10  ;;  %v7327_v13 = vadd.f32 %v17798_v31, %v17801_v46  ;;  %v12804_v56 = vld [vmem:[%s13019_s15 + $0x348] sm:$0xff]  ;;  %v11784_v40 = vld [vmem:[%s19478_s1 + $0x20] sm:$0xf] }
 0xf39   : > { %v7259_v12 = vmax.f32 %v7111_v19, %v7251_v35  ;;  %v7281_v44 = vmax.f32 %v7265_v58, %v7273_v1  ;;  %v7315_v2 = vmax.f32 %v17923_v36, %v7307_v8  ;;  %v7105_v54 = vmax.f32 %v17880_v52, %v7097_v22  ;;  %v12805_v36 = vld [vmem:[%s13019_s15 + $0x350] sm:$0xff]  ;;  %v12795_v19 = vld [vmem:[%s13019_s15 + $0x300] sm:$0xff] }
 0xf3a   : > { %v7257_v26 = vmax.f32 %v7109_v7, %v7249_v23  ;;  %v7245_v35 = vmax.f32 %v17940_v17, %v7237_v39  ;;  %v7269_v31 = vmul.f32 0.2, %v17963_v9  ;;  %v7255_v46 = vmax.f32 %v7107_v51, %v7247_v38  ;;  %7931 = vmatpush.bf16.msra.mxu1 %v12814_v29  ;;  %v12827_v38 = vld [vmem:[%s19478_s1 + $0x4] sm:$0xf]  ;;  %v12834_v29 = vld [vmem:[%s19478_s1 + $0x34] sm:$0xf0] }
 0xf3b   : > { %v7223_v3 = vpop.f32.mrf.mxu1  ;;  %v7291_v59 = vmax.f32 %v7259_v12, %v7283_v11  ;;  %v7279_v24 = vmax.f32 %v7263_v49, %v7271_v41  ;;  %v7335_v33 = vmul.f32 0.2, %v7327_v13  ;;  %v7322_v52 = vmax.f32 %v7290_v15, %v7314_v61  ;;  %7883 = vmatpush.bf16.msrb.mxu0 %v12805_v36  ;;  %v12826_v15 = vld [vmem:[%s13019_s15 + $0x3f8] sm:$0xff] }
 0xf3c   : > { %v17945_v16 = vadd.f32 %v7223_v3, %v17717_v63  ;;  %v12797_v63 = vld [vmem:[%s13019_s15 + $0x310] sm:$0xff]  ;;  %v7337_v3 = vmul.f32 0.2, %v17955_v28  ;;  %v7289_v58 = vmax.f32 %v7257_v26, %v7281_v44  ;;  %v7253_v8 = vmax.f32 %v7105_v54, %v7245_v35  ;;  %v12823_v54 = vld [vmem:[%s13019_s15 + $0x3e0] sm:$0xff]  ;;  %v12838_v36 = vld [vmem:[%s19478_s1 + $0x54] sm:$0xf0] }
 0xf3d   : > { %7834 = vmatpush.bf16.msrb.mxu3 %v12797_v63  ;;  %v7323_v32 = vmax.f32 %v7291_v59, %v7315_v2  ;;  %v7287_v45 = vmax.f32 %v7255_v46, %v7279_v24  ;;  %v7311_v61 = vmax.f32 %v17884_v42, %v17929_v55  ;;  %v7277_v62 = vmax.f32 %v17963_v9, %v7269_v31  ;;  %v12812_v55 = vld [vmem:[%s13019_s15 + $0x388] sm:$0xff]  ;;  %v12811_v9 = vld [vmem:[%s13019_s15 + $0x380] sm:$0xff]  ;;  %v11770_v26 = vld [vmem:[%s19478_s1 + $0x10] sm:$0xf0] }
 0xf3e   : > { %v7338_v18 = vmul.f32 0.2, %v17945_v16  ;;  %v7345_v17 = vmax.f32 %v17955_v28, %v7337_v3  ;;  %v7321_v47 = vmax.f32 %v7289_v58, %v7313_v21  ;;  %v7343_v49 = vmax.f32 %v7327_v13, %v7335_v33  ;;  %7932 = vmatpush.bf16.msra.mxu1 %v12813_v34  ;;  %v12803_v28 = vld [vmem:[%s13019_s15 + $0x340] sm:$0xff]  ;;  %v12825_v44 = vld [vmem:[%s13019_s15 + $0x3f0] sm:$0xff]  ;;  %v12822_v31 = vld [vmem:[%s13019_s15 + $0x3d8] sm:$0xff] }
 0xf3f   : > { %v7333_v14 = vmul.f32 0.2, %v7325_v43  ;;  %v11769_v42 = vor.u32 %v12829_v48, %v11768_v57  ;;  %7884 = vmatpush.bf16.msrb.mxu0 %v12804_v56  ;;  %v7285_v1 = vmax.f32 %v7253_v8, %v7277_v62  ;;  %v7319_v12 = vmax.f32 %v7287_v45, %v7311_v61  ;;  %v11786_v3 = vld [vmem:[%s19478_s1 + $0x30] sm:$0xf0]  ;;  %v11800_v46 = vld [vmem:[%s19478_s1 + $0x40] sm:$0xf] }
 0xf40   : > { %v7353_v21 = vmax.f32 %v7321_v47, %v7345_v17  ;;  %v11773_v11 = vor.u32 %v12827_v38, %v11770_v26  ;;  %v12837_v58 = vld [vmem:[%s19478_s1 + $0x4c] sm:$0xf0]  ;;  %v12835_v24 = vld [vmem:[%s19478_s1 + $0x44] sm:$0xf]  ;;  %v12820_v33 = vld [vmem:[%s13019_s15 + $0x3c8] sm:$0xff] }
 0xf41   : > { %7835 = vmatpush.bf16.msrb.mxu3 %v12796_v20  ;;  %v7341_v27 = vmax.f32 %v7325_v43, %v7333_v14  ;;  %v7351_v22 = vmax.f32 %v7319_v12, %v7343_v49  ;;  %v11792_v20 = vld [vmem:[%s19478_s1 + $0x28] sm:$0xf]  ;;  %v11802_v43 = vld [vmem:[%s19478_s1 + $0x50] sm:$0xf0]  ;;  %v11816_v8 = vld [vmem:[%s19478_s1 + $0x60] sm:$0xf] }
 0xf42   : > { %v7359_v39 = vpack.c.bf16 %v7353_v21, %v17858_v6  ;;  %7933 = vmatpush.bf16.msra.mxu1 %v12812_v55  ;;  %v12830_v6 = vld [vmem:[%s19478_s1 + $0x14] sm:$0xf0]  ;;  %v11793_v35 = vor.u32 %v12834_v29, %v11792_v20  ;;  %v11805_v17 = vor.u32 %v12835_v24, %v11802_v43  ;;  %v12841_v45 = vld [vmem:[%s19478_s1 + $0x6c] sm:$0xf0]  ;;  %v11824_v61 = vld [vmem:[%s19478_s1 + $0x68] sm:$0xf] }
 0xf43   : > { %v7225_v4 = vpop.f32.mrf.mxu1  ;;  %7885 = vmatpush.bf16.msrb.mxu0 %v12803_v28  ;;  %v7358_v51 = vpack.c.bf16 %v7351_v22, %v17794_v53  ;;  %v12833_v53 = vld [vmem:[%s19478_s1 + $0x2c] sm:$0xf0]  ;;  %v11817_v47 = vor.u32 %v12841_v45, %v11816_v8  ;;  %v12842_v62 = vld [vmem:[%s19478_s1 + $0x74] sm:$0xf0]  ;;  %v12832_v56 = vld [vmem:[%s19478_s1 + $0x2c] sm:$0xf] }
 0xf44   : > { %v7331_v50 = vadd.f32 %v7225_v4, %v17823_v25  ;;  %v7346_v25 = vmax.f32 %v17945_v16, %v7338_v18  ;;  %v7301_v16 = vmul.f32 0.2, %v17836_v0  ;;  %v7356_v4 = vld [vmem:[%s19484_s7] sm:$0xf]  ;;  %v11785_v59 = vor.u32 %v12833_v53, %v11784_v40  ;;  %v11794_v57 = vld [vmem:[%s19478_s1 + $0x38] sm:$0xf0] }
 0xf45   : > { %7836 = vmatpush.bf16.msrb.mxu3 %v12795_v19  ;;  %v11778_v19 = vld [vmem:[%s19478_s1 + $0x18] sm:$0xf0]  ;;  %v11825_v48 = vor.u32 %v12842_v62, %v11824_v61  ;;  %v11797_v14 = vor.u32 %v12832_v56, %v11794_v57  ;;  %v11832_v21 = vld [vmem:[%s19478_s1 + $0x80] sm:$0xf]  ;;  %v12843_v55 = vld [vmem:[%s19478_s1 + $0x84] sm:$0xf] }
 0xf46   : > { %v7339_v5 = vmul.f32 0.2, %v7331_v50  ;;  %v7354_v60 = vmax.f32 %v7322_v52, %v7346_v25  ;;  %v7309_v63 = vmax.f32 %v17836_v0, %v7301_v16  ;;  %v11776_v0 = vld [vmem:[%s19478_s1 + $0x8] sm:$0xf]  ;;  %7934 = vmatpush.bf16.msra.mxu1 %v12811_v9  ;;  %7886 = vmatmul.bf16.vlgmr.msrb.gmra.mxu0 %v11773_v11  ;;  %v12821_v25 = vld [vmem:[%s13019_s15 + $0x3d0] sm:$0xff] }
 0xf47   : > { %v11777_v41 = vor.u32 %v12830_v6, %v11776_v0  ;;  %v11808_v52 = vld [vmem:[%s19478_s1 + $0x48] sm:$0xf]  ;;  %v12846_v28 = vld [vmem:[%s19478_s1 + $0x94] sm:$0xf0]  ;;  %v11810_v22 = vld [vmem:[%s19478_s1 + $0x58] sm:$0xf0] }
 0xf48   : > { %v7347_v23 = vmax.f32 %v7331_v50, %v7339_v5  ;;  %7837 = vmatmul.bf16.vlgmr.msrb.gmra.mxu3 %v11769_v42  ;;  %v7317_v10 = vmax.f32 %v7285_v1, %v7309_v63  ;;  %v12824_v50 = vld [vmem:[%s13019_s15 + $0x3e8] sm:$0xff]  ;;  %v11801_v5 = vor.u32 %v12837_v58, %v11800_v46  ;;  %v11809_v34 = vor.u32 %v12838_v36, %v11808_v52  ;;  %v11834_v1 = vld [vmem:[%s19478_s1 + $0x90] sm:$0xf0]  ;;  %v12849_v38 = vld [vmem:[%s19478_s1 + $0xac] sm:$0xf0] }
 0xf49   : > { %7935 = vmatmul.bf16.vlgmr.msra.gmra.mxu1 %v11777_v41  ;;  %v11840_v12 = vld [vmem:[%s19478_s1 + $0x88] sm:$0xf]  ;;  %v11837_v63 = vor.u32 %v12843_v55, %v11834_v1  ;;  %v12847_v11 = vld [vmem:[%s19478_s1 + $0xa4] sm:$0xf]  ;;  %v11850_v0 = vld [vmem:[%s19478_s1 + $0xb0] sm:$0xf0] }
 0xf4a   : > { %v7355_v30 = vmax.f32 %v7323_v32, %v7347_v23  ;;  %v7349_v18 = vmax.f32 %v7317_v10, %v7341_v27  ;;  %v12819_v32 = vld [vmem:[%s13019_s15 + $0x3c0] sm:$0xff]  ;;  %v12828_v23 = vld [vmem:[%s19478_s1 + $0xc] sm:$0xf]  ;;  %v11856_v6 = vld [vmem:[%s19478_s1 + $0xa8] sm:$0xf] }
 0xf4b   : > { %v11781_v16 = vor.u32 %v12828_v23, %v11778_v19  ;;  %v12836_v27 = vld [vmem:[%s19478_s1 + $0x4c] sm:$0xf]  ;;  %v11848_v10 = vld [vmem:[%s19478_s1 + $0xa0] sm:$0xf]  ;;  %v12853_v53 = vld [vmem:[%s19478_s1 + $0xcc] sm:$0xf0] }
 0xf4c   : > { %v7360_v7 = vpack.c.bf16 %v7355_v30, %v7354_v60  ;;  %v7357_v13 = vpack.c.bf16 %v7349_v18, %v17778_v37  ;;  %v12831_v37 = vld [vmem:[%s19478_s1 + $0x24] sm:$0xf]  ;;  %v11818_v30 = vld [vmem:[%s19478_s1 + $0x70] sm:$0xf0]  ;;  %v11813_v9 = vor.u32 %v12836_v27, %v11810_v22  ;;  %v11849_v26 = vor.u32 %v12849_v38, %v11848_v10  ;;  %v12850_v18 = vld [vmem:[%s19478_s1 + $0xb4] sm:$0xf0] }
 0xf4d   : > { %v11789_v2 = vor.u32 %v12831_v37, %v11786_v3  ;;  %v12839_v60 = vld [vmem:[%s19478_s1 + $0x64] sm:$0xf]  ;;  %v12840_v41 = vld [vmem:[%s19478_s1 + $0x6c] sm:$0xf]  ;;  %v11864_v40 = vld [vmem:[%s19478_s1 + $0xc0] sm:$0xf] }
 0xf4e   : > { %7369 = vmatpush.bf16.msra.mxu2 %v7360_v7  ;;  %v11821_v49 = vor.u32 %v12839_v60, %v11818_v30  ;;  %v12845_v7 = vld [vmem:[%s19478_s1 + $0x8c] sm:$0xf0]  ;;  %v11866_v37 = vld [vmem:[%s19478_s1 + $0xd0] sm:$0xf0]  ;;  %v11872_v3 = vld [vmem:[%s19478_s1 + $0xc8] sm:$0xf] }
 0xf4f   : > { %v11833_v42 = vor.u32 %v12845_v7, %v11832_v21  ;;  %v12844_v29 = vld [vmem:[%s19478_s1 + $0x8c] sm:$0xf]  ;;  %v12857_v46 = vld [vmem:[%s19478_s1 + $0xec] sm:$0xf0]  ;;  %v11888_v52 = vld [vmem:[%s19478_s1 + $0xe8] sm:$0xf] }
 0xf50   : > { %v12848_v43 = vld [vmem:[%s19478_s1 + $0xac] sm:$0xf]  ;;  %v12858_v36 = vld [vmem:[%s19478_s1 + $0xf4] sm:$0xf0]  ;;  %v11890_v7 = vld [vmem:[%s19478_s1 + $0xf8] sm:$0xf0] }
 0xf51   : > { %v12856_v21 = vld [vmem:[%s19478_s1 + $0xec] sm:$0xf] }
 0xf52   : > { %7370 = vmatpush.bf16.msra.mxu2 %v7359_v39  ;;  %v11841_v39 = vor.u32 %v12846_v28, %v11840_v12  ;;  %v11893_v12 = vor.u32 %v12856_v21, %v11890_v7 }
 0xf56   : > { %7371 = vmatpush.bf16.msra.mxu2 %v7358_v51  ;;  %7891 = vmatmul.bf16.gmra.mxu0 %v11789_v2  ;;  %v11853_v51 = vor.u32 %v12847_v11, %v11850_v0  ;;  %v11842_v2 = vld [vmem:[%s19478_s1 + $0x98] sm:$0xf0] }
 0xf58   : > { %7842 = vmatmul.bf16.gmra.mxu3 %v11785_v59  ;;  %v12851_v59 = vld [vmem:[%s19478_s1 + $0xc4] sm:$0xf] }
 0xf59   : > { %7940 = vmatmul.bf16.gmra.mxu1 %v11793_v35  ;;  %v11869_v20 = vor.u32 %v12851_v59, %v11866_v37  ;;  %v11845_v35 = vor.u32 %v12844_v29, %v11842_v2 }
 0xf5a   : > { %7372 = vmatpush.bf16.msra.mxu2 %v7357_v13  ;;  %v11857_v13 = vor.u32 %v12850_v18, %v11856_v6 }
 0xf5d   : > { %11700 = vmatmul.msk.bf16.vlgmr.msra.gmra.mxu2 %vm1064_vm0, %v7356_v4 }
 0xf5e   : > { %7976 = vmatpush.bf16.msrb.mxu2 %v12826_v15  ;;  %v11826_v15 = vld [vmem:[%s19478_s1 + $0x78] sm:$0xf0] }
 0xf5f   : > { %v11829_v4 = vor.u32 %v12840_v41, %v11826_v15 }
 0xf62   : > { %7977 = vmatpush.bf16.msrb.mxu2 %v12825_v44  ;;  %v11865_v44 = vor.u32 %v12853_v53, %v11864_v40 }
 0xf66   : > { %7978 = vmatpush.bf16.msrb.mxu2 %v12824_v50  ;;  %7896 = vmatmul.bf16.gmra.mxu0 %v11805_v17  ;;  %v12854_v50 = vld [vmem:[%s19478_s1 + $0xd4] sm:$0xf0]  ;;  %v11889_v17 = vor.u32 %v12858_v36, %v11888_v52 }
 0xf68   : > { %7847 = vmatmul.bf16.gmra.mxu3 %v11801_v5  ;;  %v11882_v5 = vld [vmem:[%s19478_s1 + $0xf0] sm:$0xf0] }
 0xf69   : > { %7945 = vmatmul.bf16.gmra.mxu1 %v11809_v34  ;;  %v12852_v34 = vld [vmem:[%s19478_s1 + $0xcc] sm:$0xf] }
 0xf6a   : > { %7979 = vmatpush.bf16.msrb.mxu2 %v12823_v54  ;;  %v11873_v54 = vor.u32 %v12854_v50, %v11872_v3 }
 0xf6e   : > { %7980 = vmatpush.bf16.msrb.mxu2 %v12822_v31  ;;  %v11880_v31 = vld [vmem:[%s19478_s1 + $0xe0] sm:$0xf] }
 0xf6f   : > { %v11881_v58 = vor.u32 %v12857_v46, %v11880_v31 }
 0xf72   : > { %7981 = vmatpush.bf16.msrb.mxu2 %v12821_v25  ;;  %v12855_v25 = vld [vmem:[%s19478_s1 + $0xe4] sm:$0xf] }
 0xf73   : > { %v11885_v24 = vor.u32 %v12855_v25, %v11882_v5 }
 0xf76   : > { %7982 = vmatpush.bf16.msrb.mxu2 %v12820_v33  ;;  %7901 = vmatmul.bf16.gmra.mxu0 %v11821_v49  ;;  %v11858_v33 = vld [vmem:[%s19478_s1 + $0xb8] sm:$0xf0]  ;;  %v7361_v49 = vld [vmem:[%s19485_s8] sm:$0x7f] }
 0xf78   : > { %7852 = vmatmul.bf16.gmra.mxu3 %v11817_v47 }
 0xf79   : > { %7950 = vmatmul.bf16.gmra.mxu1 %v11825_v48 }
 0xf7a   : > { %7983 = vmatpush.bf16.msrb.mxu2 %v12819_v32  ;;  %v11861_v32 = vor.u32 %v12848_v43, %v11858_v33 }
 0xf7d   : > { %7984 = vmatmul.bf16.vlgmr.msrb.gmra.mxu2 %v11781_v16  ;;  %v11874_v16 = vld [vmem:[%s19478_s1 + $0xd8] sm:$0xf0] }
 0xf7e   : > { %v11877_v60 = vor.u32 %v12852_v34, %v11874_v16 }
 0xf86   : > { %7906 = vmatmul.bf16.gmra.mxu0 %v11837_v63 }
 0xf88   : > { %7857 = vmatmul.bf16.gmra.mxu3 %v11833_v42 }
 0xf89   : > { %7955 = vmatmul.bf16.gmra.mxu1 %v11841_v39 }
 0xf8d   : > { %7989 = vmatmul.bf16.gmra.mxu2 %v11797_v14 }
 0xf96   : > { %7911 = vmatmul.bf16.gmra.mxu0 %v11853_v51 }
 0xf98   : > { %7862 = vmatmul.bf16.gmra.mxu3 %v11849_v26 }
 0xf99   : > { %7960 = vmatmul.bf16.gmra.mxu1 %v11857_v13 }
 0xf9d   : > { %7994 = vmatmul.bf16.gmra.mxu2 %v11813_v9 }
 0xfa6   : > { %7916 = vmatmul.bf16.gmra.mxu0 %v11869_v20 }
 0xfa8   : > { %7867 = vmatmul.bf16.gmra.mxu3 %v11865_v44 }
 0xfa9   : > { %7965 = vmatmul.bf16.gmra.mxu1 %v11873_v54 }
 0xfad   : > { %7999 = vmatmul.bf16.gmra.mxu2 %v11829_v4 }
 0xfb6   : > { %7921 = vmatmul.bf16.gmra.mxu0 %v11885_v24 }
 0xfb8   : > { %7872 = vmatmul.bf16.gmra.mxu3 %v11881_v58 }
 0xfb9   : > { %7970 = vmatmul.bf16.gmra.mxu1 %v11889_v17 }
 0xfbd   : > { %8004 = vmatmul.bf16.gmra.mxu2 %v11845_v35 }
 0xfc3   : > { %v7887_v19 = vpop.f32.mrf.mxu0 }
 0xfc6   : > { %v7936_v45 = vpop.f32.mrf.mxu1 }
 0xfcb   : > { %v7838_v23 = vpop.f32.mrf.mxu3  ;;  %v18204_v61 = vpop.f32.mrf.mxu0 }
 0xfcc   : > { %v7888_v8 = vadd.f32 %v7887_v19, %v7838_v23 }
 0xfcd   : > { %8009 = vmatmul.bf16.gmra.mxu2 %v11861_v32 }
 0xfce   : > { %v7937_v47 = vadd.f32 %v7936_v45, %v7888_v8  ;;  %v18206_v62 = vpop.f32.mrf.mxu1 }
 0xfd3   : > { %v18202_v30 = vpop.f32.mrf.mxu3  ;;  %v7892_v14 = vpop.f32.mrf.mxu0 }
 0xfd6   : > { %v7941_v55 = vpop.f32.mrf.mxu1 }
 0xfdb   : > { %v7843_v48 = vpop.f32.mrf.mxu3  ;;  %v18220_v27 = vpop.f32.mrf.mxu0 }
 0xfdc   : > { %v7893_v42 = vadd.f32 %v7892_v14, %v7843_v48 }
 0xfdd   : > { %8014 = vmatmul.bf16.gmra.mxu2 %v11877_v60 }
 0xfde   : > { %v7942_v1 = vadd.f32 %v7941_v55, %v7893_v42  ;;  %v18222_v22 = vpop.f32.mrf.mxu1 }
 0xfe0   : > { %v7374_v56 = vpop.f32.mrf.mxu2 }
 0xfe1   : > { %v7375_v57 = vadd.f32 %v7374_v56, %v7361_v49 }
 0xfe3   : > { %11701 = vst [vmem:[%s14904_s17 + $0x10] sm:$0x7f] %v7375_v57  ;;  %v18218_v63 = vpop.f32.mrf.mxu3  ;;  %v7897_v9 = vpop.f32.mrf.mxu0 }
 0xfe6   : > { %v7946_v38 = vpop.f32.mrf.mxu1 }
 0xfe8   : > { %v7376_v28 = vpop.f32.mrf.mxu2 }
 0xfeb   : > { %v7848_v39 = vpop.f32.mrf.mxu3  ;;  %v18226_v0 = vpop.f32.mrf.mxu0 }
 0xfec   : > { %v7898_v10 = vadd.f32 %v7897_v9, %v7848_v39 }
 0xfed   : > { %8019 = vmatmul.bf16.gmra.mxu2 %v11893_v12 }
 0xfee   : > { %v7947_v26 = vadd.f32 %v7946_v38, %v7898_v10  ;;  %v18228_v6 = vpop.f32.mrf.mxu1 }
 0xff3   : > { %v18224_v11 = vpop.f32.mrf.mxu3  ;;  %v7902_v15 = vpop.f32.mrf.mxu0 }
 0xff6   : > { %v7951_v4 = vpop.f32.mrf.mxu1 }
 0xffb   : > { %v7853_v41 = vpop.f32.mrf.mxu3  ;;  %v18236_v59 = vpop.f32.mrf.mxu0 }
 0xffc   : > { %v7903_v13 = vadd.f32 %v7902_v15, %v7853_v41 }
 0xffe   : > { %v7952_v53 = vadd.f32 %v7951_v4, %v7903_v13  ;;  %v18238_v37 = vpop.f32.mrf.mxu1 }
0x1000   : > { %v7985_v18 = vpop.f32.mrf.mxu2 }
0x1001   : > { %v18230_v51 = vadd.f32 %v7985_v18, %v7937_v47 }
0x1003   : > { %19603 = vst [vmem:[#allocation13_spill] sm:$0xff] %v18230_v51  ;;  %v18234_v44 = vpop.f32.mrf.mxu3  ;;  %v7907_v29 = vpop.f32.mrf.mxu0 }
0x1006   : > { %v7956_v54 = vpop.f32.mrf.mxu1 }
0x1008   : > { %v18232_v40 = vpop.f32.mrf.mxu2 }
0x100b   : > { %v7858_v20 = vpop.f32.mrf.mxu3  ;;  %v7909_v33 = vpop.f32.mrf.mxu0 }
0x100c   : > { %v7908_v2 = vadd.f32 %v7907_v29, %v7858_v20 }
0x100e   : > { %v7957_v31 = vadd.f32 %v7956_v54, %v7908_v2  ;;  %v7958_v36 = vpop.f32.mrf.mxu1 }
0x1010   : > { %v7990_v3 = vpop.f32.mrf.mxu2 }
0x1011   : > { %v18240_v50 = vadd.f32 %v7990_v3, %v7942_v1 }
0x1013   : > { %v7860_v43 = vpop.f32.mrf.mxu3  ;;  %v7912_v32 = vpop.f32.mrf.mxu0 }
0x1016   : > { %v7961_v34 = vpop.f32.mrf.mxu1 }
0x1018   : > { %v18242_v35 = vpop.f32.mrf.mxu2 }
0x101b   : > { %v7863_v17 = vpop.f32.mrf.mxu3  ;;  %v7914_v45 = vpop.f32.mrf.mxu0 }
0x101e   : > { %v7963_v47 = vpop.f32.mrf.mxu1 }
0x1020   : > { %v7995_v46 = vpop.f32.mrf.mxu2 }
0x1021   : > { %v18244_v58 = vadd.f32 %v7995_v46, %v7947_v26 }
0x1023   : > { %v7865_v16 = vpop.f32.mrf.mxu3  ;;  %v7917_v56 = vpop.f32.mrf.mxu0 }
0x1026   : > { %v7966_v57 = vpop.f32.mrf.mxu1 }
0x1028   : > { %v18246_v25 = vpop.f32.mrf.mxu2 }
0x102b   : > { %v7868_v49 = vpop.f32.mrf.mxu3  ;;  %v7919_v21 = vpop.f32.mrf.mxu0 }
0x102c   : > { %v7918_v15 = vadd.f32 %v7917_v56, %v7868_v49  ;;  %v7910_v56 = vadd.f32 %v7909_v33, %v7860_v43  ;;  %v7900_v43 = vadd.f32 %v18226_v0, %v18224_v11  ;;  %v7890_v0 = vadd.f32 %v18204_v61, %v18202_v30  ;;  %v12860_v30 = vld [vmem:[%s19479_s2 + $0x8] sm:$0xff]  ;;  %v12861_v61 = vld [vmem:[%s19479_s2 + $0x10] sm:$0xff] }
0x102e   : > { %v7968_v7 = vpop.f32.mrf.mxu1  ;;  %v7967_v29 = vadd.f32 %v7966_v57, %v7918_v15  ;;  %v7959_v57 = vadd.f32 %v7958_v36, %v7910_v56  ;;  %v7949_v36 = vadd.f32 %v18228_v6, %v7900_v43  ;;  %v12898_v15 = vld [vmem:[%s19483_s6 + $0x1e4] sm:$0xf0] }
0x102f   : > { %v12890_v56 = vld [vmem:[%s19483_s6 + $0x164] sm:$0xf0] }
0x1030   : > { %v8000_v5 = vpop.f32.mrf.mxu2  ;;  %v12136_v43 = vld [vmem:[%s19483_s6 + $0x108] sm:$0xf] }
0x1031   : > { %v18248_v24 = vadd.f32 %v8000_v5, %v7952_v53  ;;  %v7913_v5 = vadd.f32 %v7912_v32, %v7863_v17  ;;  %v7905_v17 = vadd.f32 %v18236_v59, %v18234_v44  ;;  %v7895_v44 = vadd.f32 %v18220_v27, %v18218_v63  ;;  %v19604_v27 = vld [vmem:[#allocation13_spill] sm:$0xff] }
0x1033   : > { %v7870_v14 = vpop.f32.mrf.mxu3  ;;  %v7922_v1 = vpop.f32.mrf.mxu0 }
0x1034   : > { %v7920_v13 = vadd.f32 %v7919_v21, %v7870_v14 }
0x1036   : > { %v7971_v28 = vpop.f32.mrf.mxu1  ;;  %v7969_v2 = vadd.f32 %v7968_v7, %v7920_v13 }
0x1038   : > { %v8002_v52 = vpop.f32.mrf.mxu2 }
0x103b   : > { %v7873_v55 = vpop.f32.mrf.mxu3  ;;  %v7924_v9 = vpop.f32.mrf.mxu0 }
0x103c   : > { %v7923_v38 = vadd.f32 %v7922_v1, %v7873_v55  ;;  %v7962_v1 = vadd.f32 %v7961_v34, %v7913_v5 }
0x103e   : > { %v7973_v18 = vpop.f32.mrf.mxu1  ;;  %v7972_v41 = vadd.f32 %v7971_v28, %v7923_v38  ;;  %v12895_v38 = vld [vmem:[%s19483_s6 + $0x1c4] sm:$0xf] }
0x1040   : > { %v8005_v23 = vpop.f32.mrf.mxu2 }
0x1041   : > { %v8006_v19 = vadd.f32 %v8005_v23, %v7957_v31  ;;  %v7915_v23 = vadd.f32 %v7914_v45, %v7865_v16 }
0x1043   : > { %v7875_v39 = vpop.f32.mrf.mxu3 }
0x1044   : > { %v7925_v26 = vadd.f32 %v7924_v9, %v7875_v39  ;;  %v7964_v39 = vadd.f32 %v7963_v47, %v7915_v23  ;;  %v12160_v47 = vld [vmem:[%s19483_s6 + $0x180] sm:$0xf]  ;;  %v12296_v23 = vld [vmem:[%s19483_s6 + $0x198] sm:$0xf] }
0x1045   : > { %v12144_v9 = vld [vmem:[%s19483_s6 + $0x140] sm:$0xf] }
0x1046   : > { %v7974_v4 = vadd.f32 %v7973_v18, %v7925_v26  ;;  %v12178_v18 = vld [vmem:[%s19483_s6 + $0x1e0] sm:$0xf0] }
0x1047   : > { %v18335_v13 = vor.u32 %v12895_v38, %v12178_v18  ;;  %v12232_v18 = vld [vmem:[%s19483_s6 + $0x98] sm:$0xf] }
0x1048   : > { %v8007_v8 = vpop.f32.mrf.mxu2 }
0x1049   : > { %v8008_v7 = vadd.f32 %v8007_v8, %v7959_v57  ;;  %v7998_v8 = vadd.f32 %v18246_v25, %v7949_v36  ;;  %v7939_v25 = vadd.f32 %v18206_v62, %v7890_v0  ;;  %v12176_v62 = vld [vmem:[%s19483_s6 + $0x1c0] sm:$0xf]  ;;  %8427 = vmatpush.bf16.msrb.mxu1 %v18335_v13  ;;  %v12264_v36 = vld [vmem:[%s19483_s6 + $0x118] sm:$0xf]  ;;  %v12879_v0 = vld [vmem:[%s19483_s6 + $0xc4] sm:$0xf] }
0x104a   : > { %v12128_v57 = vld [vmem:[%s19483_s6 + $0x100] sm:$0xf] }
0x104b   : > { %v8029_v32 = vpack.c.bf16 %v8008_v7, %v8006_v19  ;;  %v8027_v59 = vpack.c.bf16 %v7998_v8, %v18244_v58  ;;  %v12862_v19 = vld [vmem:[%s19479_s2 + $0x18] sm:$0xff]  ;;  %v12885_v7 = vld [vmem:[%s19483_s6 + $0x11c] sm:$0xf0] }
0x104c   : > { %v12918_v8 = vld [vmem:[%s19483_s6 + $0x134] sm:$0xf0] }
0x104d   : > { %v8142_v16 = vsel %vm1064_vm0, %v8029_v32, 0  ;;  %v8136_v11 = vsel %vm1064_vm0, %v8027_v59, 0  ;;  %v18405_v32 = vor.u32 %v12885_v7, %v12128_v57  ;;  %v12869_v57 = vld [vmem:[%s19483_s6 + $0x1c] sm:$0xf0]  ;;  %v12867_v7 = vld [vmem:[%s19483_s6 + $0x4] sm:$0xf] }
0x1050   : > { %v8010_v60 = vpop.f32.mrf.mxu2 }
0x1051   : > { %v8011_v14 = vadd.f32 %v8010_v60, %v7962_v1  ;;  %v12893_v60 = vld [vmem:[%s19483_s6 + $0x19c] sm:$0xf0]  ;;  %v12887_v1 = vld [vmem:[%s19483_s6 + $0x144] sm:$0xf] }
0x1058   : > { %v8012_v48 = vpop.f32.mrf.mxu2 }
0x1059   : > { %v8013_v28 = vadd.f32 %v8012_v48, %v7964_v39  ;;  %v18308_v48 = vor.u32 %v12893_v60, %v12160_v47  ;;  %v12098_v60 = vld [vmem:[%s19483_s6 + $0xa0] sm:$0xf0] }
0x105b   : > { %v8030_v21 = vpack.c.bf16 %v8013_v28, %v8011_v14  ;;  %v12146_v28 = vld [vmem:[%s19483_s6 + $0x160] sm:$0xf0]  ;;  %v12280_v14 = vld [vmem:[%s19483_s6 + $0x158] sm:$0xf] }
0x1060   : > { %v8015_v42 = vpop.f32.mrf.mxu2 }
0x1061   : > { %v8016_v51 = vadd.f32 %v8015_v42, %v7967_v29  ;;  %v12863_v42 = vld [vmem:[%s19479_s2 + $0x20] sm:$0xff] }
0x1068   : > { %v8017_v12 = vpop.f32.mrf.mxu2 }
0x1069   : > { %v8018_v31 = vadd.f32 %v8017_v12, %v7969_v2  ;;  %v8145_v12 = vsel %vm1064_vm0, %v8030_v21, 0  ;;  %v12162_v2 = vld [vmem:[%s19483_s6 + $0x1a0] sm:$0xf0]  ;;  %v12922_v21 = vld [vmem:[%s19483_s6 + $0x174] sm:$0xf0] }
0x106b   : > { %v8031_v55 = vpack.c.bf16 %v8018_v31, %v8016_v51  ;;  %v7954_v51 = vadd.f32 %v18238_v37, %v7905_v17  ;;  %v7944_v37 = vadd.f32 %v18222_v22, %v7895_v44  ;;  %v12894_v31 = vld [vmem:[%s19483_s6 + $0x1a4] sm:$0xf0] }
0x106d   : > { %v8148_v49 = vsel %vm1064_vm0, %v8031_v55, 0  ;;  %v8003_v34 = vadd.f32 %v8002_v52, %v7954_v51  ;;  %v7993_v52 = vadd.f32 %v18242_v35, %v7944_v37  ;;  %v12859_v35 = vld [vmem:[%s19479_s2] sm:$0xff]  ;;  %v12926_v55 = vld [vmem:[%s19483_s6 + $0x1b4] sm:$0xf0]  ;;  %v18408_v51 = vor.u32 %v12922_v21, %v12280_v14 }
0x106e   : > { %v18376_v39 = vor.u32 %v12926_v55, %v12296_v23  ;;  %v18439_v37 = vor.u32 %v12918_v8, %v12264_v36  ;;  %v12088_v23 = vld [vmem:[%s19483_s6 + $0x48] sm:$0xf]  ;;  %v12866_v14 = vld [vmem:[%s19479_s2 + $0x38] sm:$0xff]  ;;  %v12064_v21 = vld [vmem:[%s19483_s6] sm:$0xf] }
0x106f   : > { %v8028_v33 = vpack.c.bf16 %v8003_v34, %v18248_v24  ;;  %v8026_v6 = vpack.c.bf16 %v7993_v52, %v18240_v50  ;;  %v7988_v24 = vadd.f32 %v18232_v40, %v7939_v25  ;;  %v12897_v40 = vld [vmem:[%s19483_s6 + $0x1dc] sm:$0xf0]  ;;  %v12883_v34 = vld [vmem:[%s19483_s6 + $0x104] sm:$0xf]  ;;  %v12874_v55 = vld [vmem:[%s19483_s6 + $0x64] sm:$0xf0] }
0x1070   : > { %v8020_v10 = vpop.f32.mrf.mxu2  ;;  %v18295_v50 = vor.u32 %v12897_v40, %v12176_v62  ;;  %v12112_v52 = vld [vmem:[%s19483_s6 + $0xc0] sm:$0xf]  ;;  %v12114_v25 = vld [vmem:[%s19483_s6 + $0xe0] sm:$0xf0] }
0x1071   : > { %v8021_v3 = vadd.f32 %v8020_v10, %v7972_v41  ;;  %v8139_v45 = vsel %vm1064_vm0, %v8028_v33, 0  ;;  %v8133_v63 = vsel %vm1064_vm0, %v8026_v6, 0  ;;  %v8025_v58 = vpack.c.bf16 %v7988_v24, %v19604_v27  ;;  %v12889_v10 = vld [vmem:[%s19483_s6 + $0x15c] sm:$0xf0]  ;;  %v12184_v41 = vld [vmem:[%s19483_s6 + $0x1c8] sm:$0xf] }
0x1072   : > { %8398 = vmatpush.bf16.msra.mxu0 %v18295_v50  ;;  %v18324_v26 = vor.u32 %v12889_v10, %v12144_v9  ;;  %v12886_v33 = vld [vmem:[%s19483_s6 + $0x124] sm:$0xf0]  ;;  %v18465_v27 = vor.u32 %v12879_v0, %v12114_v25  ;;  %v12096_v62 = vld [vmem:[%s19483_s6 + $0x80] sm:$0xf] }
0x1073   : > { %v8130_v22 = vsel %vm1064_vm0, %v8025_v58, 0  ;;  %v18437_v59 = vor.u32 %v12886_v33, %v12136_v43  ;;  %v12120_v24 = vld [vmem:[%s19483_s6 + $0xc8] sm:$0xf]  ;;  %v12877_v40 = vld [vmem:[%s19483_s6 + $0x9c] sm:$0xf0] }
0x1074   : > { %v18494_v47 = vor.u32 %v12877_v40, %v12096_v62  ;;  %v12878_v9 = vld [vmem:[%s19483_s6 + $0xa4] sm:$0xf0]  ;;  %v8049_v25 = vld [vmem:[%s19480_s3] sm:$0xff]  ;;  %v12927_v62 = vld [vmem:[%s19483_s6 + $0x1d4] sm:$0xf] }
0x1075   : > { %v12072_v43 = vld [vmem:[%s19483_s6 + $0x8] sm:$0xf]  ;;  %v12306_v40 = vld [vmem:[%s19483_s6 + $0x1f0] sm:$0xf0] }
0x1076   : > { %8399 = vmatpush.bf16.msra.mxu0 %v18308_v48  ;;  %v12870_v33 = vld [vmem:[%s19483_s6 + $0x24] sm:$0xf0] }
0x1077   : > { %v18574_v8 = vor.u32 %v12870_v33, %v12072_v43  ;;  %v8051_v43 = vld [vmem:[%s19480_s3 + $0x10] sm:$0xff]  ;;  %v8052_v33 = vld [vmem:[%s19480_s3 + $0x18] sm:$0xff] }
0x1078   : > { %v8022_v53 = vpop.f32.mrf.mxu2 }
0x1079   : > { %v8023_v20 = vadd.f32 %v8022_v53, %v7974_v4  ;;  %v18337_v4 = vor.u32 %v12898_v15, %v12184_v41  ;;  %v12312_v53 = vld [vmem:[%s19483_s6 + $0x1d8] sm:$0xf]  ;;  %v12080_v15 = vld [vmem:[%s19483_s6 + $0x40] sm:$0xf] }
0x107a   : > { %8400 = vmatpush.bf16.msra.mxu0 %v18324_v26  ;;  %v12910_v41 = vld [vmem:[%s19483_s6 + $0xb4] sm:$0xf0] }
0x107b   : > { %v8032_v54 = vpack.c.bf16 %v8023_v20, %v8021_v3  ;;  %v12930_v3 = vld [vmem:[%s19483_s6 + $0x1f4] sm:$0xf0]  ;;  %v12891_v20 = vld [vmem:[%s19483_s6 + $0x184] sm:$0xf]  ;;  %8456 = vmatpush.bf16.msra.mxu2 %v18337_v4 }
0x107c   : > { %v18349_v29 = vor.u32 %v12930_v3, %v12312_v53  ;;  %v18517_v53 = vor.u32 %v12910_v41, %v12232_v18  ;;  %v12873_v3 = vld [vmem:[%s19483_s6 + $0x5c] sm:$0xf0]  ;;  %v12288_v18 = vld [vmem:[%s19483_s6 + $0x190] sm:$0xf] }
0x107d   : > { %v8151_v46 = vsel %vm1064_vm0, %v8032_v54, 0  ;;  %v12168_v54 = vld [vmem:[%s19483_s6 + $0x188] sm:$0xf] }
0x107e   : > { %8153 = vmatpush.bf16.xpose.msra.mxu3 %v8151_v46  ;;  %v18362_v46 = vor.u32 %v12891_v20, %v12162_v2  ;;  %v18364_v5 = vor.u32 %v12894_v31, %v12168_v54  ;;  %8401 = vmatpush.bf16.msra.mxu0 %v18405_v32  ;;  %19605 = vst [vmem:[#allocation2_spill] sm:$0xff] %v18517_v53  ;;  %v12871_v20 = vld [vmem:[%s19483_s6 + $0x44] sm:$0xf] }
0x107f   : > { %v12082_v2 = vld [vmem:[%s19483_s6 + $0x60] sm:$0xf0]  ;;  %v18529_v54 = vor.u32 %v12873_v3, %v12080_v15  ;;  %v12925_v15 = vld [vmem:[%s19483_s6 + $0x1ac] sm:$0xf0]  ;;  %v12923_v3 = vld [vmem:[%s19483_s6 + $0x194] sm:$0xf] }
0x1080   : > { %8428 = vmatpush.bf16.msrb.mxu1 %v18362_v46  ;;  %8457 = vmatpush.bf16.msra.mxu2 %v18364_v5  ;;  %v12085_v31 = vor.u32 %v12871_v20, %v12082_v2  ;;  %v12290_v20 = vld [vmem:[%s19483_s6 + $0x1b0] sm:$0xf0]  ;;  %v12289_v2 = vor.u32 %v12925_v15, %v12288_v18 }
0x1081   : > { %v12242_v18 = vld [vmem:[%s19483_s6 + $0xf0] sm:$0xf0] }
0x1086   : > { %8154 = vmatpush.bf16.xpose.msra.mxu3 %v8148_v49  ;;  %v12152_v49 = vld [vmem:[%s19483_s6 + $0x148] sm:$0xf] }
0x1087   : > { %v18403_v17 = vor.u32 %v12890_v56, %v12152_v49  ;;  %v12906_v49 = vld [vmem:[%s19483_s6 + $0x74] sm:$0xf0] }
0x1089   : > { %8458 = vmatpush.bf16.msra.mxu2 %v18403_v17 }
0x108d   : > { %8459 = vmatpush.bf16.msra.mxu2 %v18437_v59 }
0x108e   : > { %8155 = vmatpush.bf16.xpose.msra.mxu3 %v8145_v12  ;;  %v18401_v12 = vor.u32 %v12887_v1, %v12146_v28  ;;  %v12216_v1 = vld [vmem:[%s19483_s6 + $0x58] sm:$0xf]  ;;  %v18541_v28 = vor.u32 %v12874_v55, %v12088_v23  ;;  %v12888_v23 = vld [vmem:[%s19483_s6 + $0x14c] sm:$0xf] }
0x108f   : > { %v18546_v56 = vor.u32 %v12906_v49, %v12216_v1  ;;  %v12154_v55 = vld [vmem:[%s19483_s6 + $0x168] sm:$0xf0]  ;;  %v12272_v1 = vld [vmem:[%s19483_s6 + $0x150] sm:$0xf] }
0x1090   : > { %8429 = vmatpush.bf16.msrb.mxu1 %v18401_v12  ;;  %v18661_v49 = vor.u32 %v12888_v23, %v12154_v55  ;;  %v12224_v23 = vld [vmem:[%s19483_s6 + $0x90] sm:$0xf] }
0x1091   : > { %19606 = vst [vmem:[#allocation3_spill] sm:$0xff] %v18546_v56 }
0x1096   : > { %8156 = vmatpush.bf16.xpose.msra.mxu3 %v8142_v16  ;;  %v12130_v16 = vld [vmem:[%s19483_s6 + $0x120] sm:$0xf0] }
0x1097   : > { %v18434_v44 = vor.u32 %v12883_v34, %v12130_v16  ;;  %v18563_v34 = vor.u32 %v12869_v57, %v12064_v21  ;;  %v12066_v16 = vld [vmem:[%s19483_s6 + $0x20] sm:$0xf0]  ;;  %v12919_v21 = vld [vmem:[%s19483_s6 + $0x154] sm:$0xf] }
0x1098   : > { %v12069_v36 = vor.u32 %v12867_v7, %v12066_v16  ;;  %v12274_v57 = vld [vmem:[%s19483_s6 + $0x170] sm:$0xf0] }
0x1099   : > { %8430 = vmatpush.bf16.msrb.mxu1 %v18434_v44  ;;  %v18673_v16 = vor.u32 %v12919_v21, %v12274_v57  ;;  %v12226_v21 = vld [vmem:[%s19483_s6 + $0xb0] sm:$0xf0] }
0x109d   : > { %8431 = vmatpush.bf16.msrb.mxu1 %v18465_v27 }
0x109e   : > { %8157 = vmatpush.bf16.xpose.msra.mxu3 %v8139_v45  ;;  %v12864_v45 = vld [vmem:[%s19479_s2 + $0x28] sm:$0xff] }
0x10a6   : > { %8158 = vmatpush.bf16.xpose.msra.mxu3 %v8136_v11  ;;  %v12881_v11 = vld [vmem:[%s19483_s6 + $0xdc] sm:$0xf0] }
0x10a7   : > { %v18454_v6 = vor.u32 %v12881_v11, %v12112_v52  ;;  %v12902_v52 = vld [vmem:[%s19483_s6 + $0x34] sm:$0xf0] }
0x10a9   : > { %8402 = vmatpush.bf16.msra.mxu0 %v18454_v6 }
0x10ad   : > { %8403 = vmatpush.bf16.msra.mxu0 %v18494_v47 }
0x10ae   : > { %8159 = vmatpush.bf16.xpose.msra.mxu3 %v8133_v63  ;;  %v12882_v63 = vld [vmem:[%s19483_s6 + $0xe4] sm:$0xf0] }
0x10af   : > { %v18467_v58 = vor.u32 %v12882_v63, %v12120_v24  ;;  %v8050_v24 = vld [vmem:[%s19480_s3 + $0x8] sm:$0xff] }
0x10b1   : > { %8460 = vmatpush.bf16.msra.mxu2 %v18467_v58  ;;  %8404 = vmatpush.bf16.msra.mxu0 %v18529_v54 }
0x10b5   : > { %8405 = vmatpush.bf16.msra.mxu0 %v18563_v34 }
0x10b6   : > { %8160 = vmatpush.bf16.xpose.msra.mxu3 %v8130_v22  ;;  %v12248_v22 = vld [vmem:[%s19483_s6 + $0xd8] sm:$0xf] }
0x10bd   : > { %12054 = vmatmul.msk.bf16.vlgmr.msra.gmra.mxu3 %vm1064_vm0, %v12859_v35  ;;  %v12914_v35 = vld [vmem:[%s19483_s6 + $0xf4] sm:$0xf0] }
0x10be   : > { %8884 = vmatpush.bf16.msrb.mxu3 %v18349_v29 }
0x10c2   : > { %8885 = vmatpush.bf16.msrb.mxu3 %v18376_v39 }
0x10c6   : > { %8886 = vmatpush.bf16.msrb.mxu3 %v18408_v51 }
0x10ca   : > { %8887 = vmatpush.bf16.msrb.mxu3 %v18439_v37 }
0x10cd   : > { %12055 = vmatmul.msk.bf16.gmra.mxu3 %vm1064_vm0, %v12860_v30  ;;  %v18476_v30 = vor.u32 %v12914_v35, %v12248_v22 }
0x10cf   : > { %8888 = vmatpush.bf16.msrb.mxu3 %v18476_v30 }
0x10d3   : > { %8889 = vmatpush.bf16.msrb.mxu3 %v18517_v53 }
0x10d7   : > { %8890 = vmatpush.bf16.msrb.mxu3 %v18546_v56 }
0x10dd   : > { %12056 = vmatmul.msk.bf16.gmra.mxu3 %vm1064_vm0, %v12861_v61  ;;  %v12865_v61 = vld [vmem:[%s19479_s2 + $0x30] sm:$0xff] }
0x10ed   : > { %12057 = vmatmul.msk.bf16.gmra.mxu3 %vm1064_vm0, %v12862_v19  ;;  %v12875_v19 = vld [vmem:[%s19483_s6 + $0x84] sm:$0xf] }
0x10ee   : > { %v12101_v10 = vor.u32 %v12875_v19, %v12098_v60  ;;  %v18625_v60 = vor.u32 %v12927_v62, %v12306_v40  ;;  %v12880_v62 = vld [vmem:[%s19483_s6 + $0xcc] sm:$0xf] }
0x10ef   : > { %v12122_v40 = vld [vmem:[%s19483_s6 + $0xe8] sm:$0xf0] }
0x10f0   : > { %8432 = vmatpush.bf16.msrb.mxu1 %v12101_v10 }
0x10f4   : > { %8433 = vmatpush.bf16.msrb.mxu1 %v12085_v31 }
0x10f8   : > { %8434 = vmatpush.bf16.msrb.mxu1 %v12069_v36 }
0x10fd   : > { %12058 = vmatmul.msk.bf16.gmra.mxu3 %vm1064_vm0, %v12863_v42  ;;  %v12104_v42 = vld [vmem:[%s19483_s6 + $0x88] sm:$0xf] }
0x10fe   : > { %v18505_v38 = vor.u32 %v12878_v9, %v12104_v42  ;;  %v12892_v9 = vld [vmem:[%s19483_s6 + $0x18c] sm:$0xf] }
0x1100   : > { %8461 = vmatpush.bf16.msra.mxu2 %v18505_v38 }
0x1104   : > { %8462 = vmatpush.bf16.msra.mxu2 %v18541_v28 }
0x1108   : > { %8463 = vmatpush.bf16.msra.mxu2 %v18574_v8 }
0x110c   : > { %8855 = vmatpush.bf16.msrb.mxu2 %v18625_v60 }
0x110d   : > { %12059 = vmatmul.msk.bf16.gmra.mxu3 %vm1064_vm0, %v12864_v45  ;;  %v12200_v45 = vld [vmem:[%s19483_s6 + $0x18] sm:$0xf] }
0x110e   : > { %v18583_v11 = vor.u32 %v12902_v52, %v12200_v45  ;;  %v12884_v45 = vld [vmem:[%s19483_s6 + $0x10c] sm:$0xf] }
0x110f   : > { %v12138_v52 = vld [vmem:[%s19483_s6 + $0x128] sm:$0xf0] }
0x1110   : > { %19607 = vst [vmem:[#allocation4_spill] sm:$0xff] %v18583_v11  ;;  %8891 = vmatpush.bf16.msrb.mxu3 %v18583_v11 }
0x1114   : > { %9252 = vmatpush.bf16.msra.mxu3 %v18335_v13 }
0x1118   : > { %9253 = vmatpush.bf16.msra.mxu3 %v18362_v46 }
0x111c   : > { %9254 = vmatpush.bf16.msra.mxu3 %v18401_v12  ;;  %v12896_v12 = vld [vmem:[%s19483_s6 + $0x1cc] sm:$0xf] }
0x111d   : > { %12060 = vmatmul.msk.bf16.gmra.mxu3 %vm1064_vm0, %v12865_v61  ;;  %v12929_v61 = vld [vmem:[%s19483_s6 + $0x1ec] sm:$0xf0] }
0x1120   : > { %9255 = vmatpush.bf16.msra.mxu3 %v18434_v44  ;;  %v12186_v44 = vld [vmem:[%s19483_s6 + $0x1e8] sm:$0xf0] }
0x1121   : > { %v18612_v35 = vor.u32 %v12896_v12, %v12186_v44  ;;  %v12258_v12 = vld [vmem:[%s19483_s6 + $0x130] sm:$0xf0] }
0x1123   : > { %8485 = vmatpush.bf16.msrb.mxu0 %v18612_v35 }
0x1124   : > { %9256 = vmatpush.bf16.msra.mxu3 %v18465_v27  ;;  %v12304_v27 = vld [vmem:[%s19483_s6 + $0x1d0] sm:$0xf] }
0x1125   : > { %v12305_v19 = vor.u32 %v12929_v61, %v12304_v27 }
0x1127   : > { %8826 = vmatpush.bf16.msra.mxu1 %v12305_v19 }
0x1128   : > { %9257 = vmatpush.bf16.msra.mxu3 %v12101_v10  ;;  %v12170_v10 = vld [vmem:[%s19483_s6 + $0x1a8] sm:$0xf0] }
0x1129   : > { %v18638_v41 = vor.u32 %v12892_v9, %v12170_v10  ;;  %v12913_v9 = vld [vmem:[%s19483_s6 + $0xec] sm:$0xf0]  ;;  %v12911_v10 = vld [vmem:[%s19483_s6 + $0xd4] sm:$0xf] }
0x112b   : > { %8486 = vmatpush.bf16.msrb.mxu0 %v18638_v41  ;;  %8827 = vmatpush.bf16.msra.mxu1 %v12289_v2 }
0x112c   : > { %9258 = vmatpush.bf16.msra.mxu3 %v12085_v31  ;;  %v18649_v31 = vor.u32 %v12923_v3, %v12290_v20  ;;  %v18733_v3 = vor.u32 %v12911_v10, %v12242_v18  ;;  %v12876_v20 = vld [vmem:[%s19483_s6 + $0x8c] sm:$0xf]  ;;  %v8053_v10 = vld [vmem:[%s19480_s3 + $0x20] sm:$0xff] }
0x112d   : > { %12061 = vmatmul.msk.bf16.gmra.mxu3 %vm1064_vm0, %v12866_v14  ;;  %v12921_v14 = vld [vmem:[%s19483_s6 + $0x16c] sm:$0xf0]  ;;  %v8054_v18 = vld [vmem:[%s19480_s3 + $0x28] sm:$0xff] }
0x112e   : > { %8856 = vmatpush.bf16.msrb.mxu2 %v18649_v31  ;;  %v12273_v7 = vor.u32 %v12921_v14, %v12272_v1  ;;  %v12909_v1 = vld [vmem:[%s19483_s6 + $0xac] sm:$0xf0]  ;;  %v12907_v14 = vld [vmem:[%s19483_s6 + $0x94] sm:$0xf] }
0x112f   : > { %8487 = vmatpush.bf16.msrb.mxu0 %v18661_v49 }
0x1130   : > { %9259 = vmatpush.bf16.msra.mxu3 %v12069_v36  ;;  %8828 = vmatpush.bf16.msra.mxu1 %v12273_v7 }
0x1132   : > { %8857 = vmatpush.bf16.msrb.mxu2 %v18673_v16 }
0x1140   : > { %v8162_v0 = vpop.f32.mrf.mxu3 }
0x1141   : > { %v8163_v63 = vadd.f32 %v8162_v0, %v8049_v25  ;;  %v12256_v0 = vld [vmem:[%s19483_s6 + $0x110] sm:$0xf] }
0x1148   : > { %v8164_v13 = vpop.f32.mrf.mxu3 }
0x1149   : > { %v8165_v46 = vadd.f32 %v8164_v13, %v8050_v24  ;;  %v18692_v13 = vor.u32 %v12884_v45, %v12138_v52  ;;  %v12208_v45 = vld [vmem:[%s19483_s6 + $0x50] sm:$0xf] }
0x114a   : > { %v12905_v52 = vld [vmem:[%s19483_s6 + $0x6c] sm:$0xf0] }
0x114b   : > { %v18599_v22 = vpack.c.bf16 %v8165_v46, %v8163_v63  ;;  %v12917_v63 = vld [vmem:[%s19483_s6 + $0x12c] sm:$0xf0]  ;;  %v12915_v46 = vld [vmem:[%s19483_s6 + $0x114] sm:$0xf]  ;;  %8488 = vmatpush.bf16.msrb.mxu0 %v18692_v13 }
0x114c   : > { %v12257_v44 = vor.u32 %v12917_v63, %v12256_v0  ;;  %v18703_v27 = vor.u32 %v12915_v46, %v12258_v12  ;;  %v12903_v0 = vld [vmem:[%s19483_s6 + $0x54] sm:$0xf]  ;;  %v12209_v63 = vor.u32 %v12905_v52, %v12208_v45  ;;  %v12868_v12 = vld [vmem:[%s19483_s6 + $0xc] sm:$0xf] }
0x114d   : > { %8406 = vmatmul.bf16.vlgmr.msra.gmra.mxu0 %v18599_v22  ;;  %8435 = vmatmul.bf16.vlgmr.msrb.gmra.mxu1 %v18599_v22 }
0x114e   : > { %8464 = vmatmul.bf16.vlgmr.msra.gmra.mxu2 %v18599_v22  ;;  %8892 = vmatmul.bf16.vlgmr.msrb.gmra.mxu3 %v18599_v22 }
0x114f   : > { %9459 = vmatpush.bf16.msrb.mxu3 %v12305_v19  ;;  %8829 = vmatpush.bf16.msra.mxu1 %v12257_v44  ;;  %v12240_v19 = vld [vmem:[%s19483_s6 + $0xd0] sm:$0xf] }
0x1150   : > { %v8167_v42 = vpop.f32.mrf.mxu3  ;;  %8858 = vmatpush.bf16.msrb.mxu2 %v18703_v27  ;;  %v12241_v15 = vor.u32 %v12913_v9, %v12240_v19  ;;  %v12899_v19 = vld [vmem:[%s19483_s6 + $0x14] sm:$0xf] }
0x1151   : > { %v8168_v25 = vadd.f32 %v8167_v42, %v8051_v43  ;;  %v18720_v42 = vor.u32 %v12880_v62, %v12122_v40  ;;  %v18757_v43 = vor.u32 %v12907_v14, %v12226_v21  ;;  %v12192_v62 = vld [vmem:[%s19483_s6 + $0x10] sm:$0xf]  ;;  %v12194_v9 = vld [vmem:[%s19483_s6 + $0x30] sm:$0xf0] }
0x1152   : > { %v12901_v40 = vld [vmem:[%s19483_s6 + $0x2c] sm:$0xf0] }
0x1153   : > { %9460 = vmatpush.bf16.msrb.mxu3 %v12289_v2  ;;  %v12106_v2 = vld [vmem:[%s19483_s6 + $0xa8] sm:$0xf0]  ;;  %8489 = vmatpush.bf16.msrb.mxu0 %v18720_v42 }
0x1154   : > { %v18745_v55 = vor.u32 %v12876_v20, %v12106_v2  ;;  %8830 = vmatpush.bf16.msra.mxu1 %v12241_v15  ;;  %8859 = vmatpush.bf16.msrb.mxu2 %v18733_v3  ;;  %v12193_v2 = vor.u32 %v12901_v40, %v12192_v62 }
0x1157   : > { %9461 = vmatpush.bf16.msrb.mxu3 %v12273_v7  ;;  %v12225_v7 = vor.u32 %v12909_v1, %v12224_v23  ;;  %8490 = vmatpush.bf16.msrb.mxu0 %v18745_v55  ;;  %v18811_v23 = vor.u32 %v12899_v19, %v12194_v9  ;;  %v12250_v19 = vld [vmem:[%s19483_s6 + $0xf8] sm:$0xf0] }
0x1158   : > { %v8169_v36 = vpop.f32.mrf.mxu3  ;;  %8860 = vmatpush.bf16.msrb.mxu2 %v18757_v43 }
0x1159   : > { %v8170_v24 = vadd.f32 %v8169_v36, %v8052_v33  ;;  %v12872_v33 = vld [vmem:[%s19483_s6 + $0x4c] sm:$0xf]  ;;  %8831 = vmatpush.bf16.msra.mxu1 %v12225_v7 }
0x115a   : > { %v12090_v36 = vld [vmem:[%s19483_s6 + $0x68] sm:$0xf0] }
0x115b   : > { %v18705_v61 = vpack.c.bf16 %v8170_v24, %v8168_v25  ;;  %9462 = vmatpush.bf16.msrb.mxu3 %v12257_v44  ;;  %v12210_v25 = vld [vmem:[%s19483_s6 + $0x70] sm:$0xf0]  ;;  %v18778_v24 = vor.u32 %v12872_v33, %v12090_v36  ;;  %v12074_v44 = vld [vmem:[%s19483_s6 + $0x28] sm:$0xf0]  ;;  %v8056_v33 = vld [vmem:[%s19480_s3 + $0x38] sm:$0xff] }
0x115c   : > { %v18781_v46 = vor.u32 %v12903_v0, %v12210_v25  ;;  %v12920_v25 = vld [vmem:[%s19483_s6 + $0x15c] sm:$0xf] }
0x115d   : > { %8411 = vmatmul.bf16.gmra.mxu0 %v18705_v61  ;;  %8440 = vmatmul.bf16.gmra.mxu1 %v18705_v61 }
0x115e   : > { %8469 = vmatmul.bf16.gmra.mxu2 %v18705_v61  ;;  %8897 = vmatmul.bf16.gmra.mxu3 %v18705_v61 }
0x115f   : > { %9463 = vmatpush.bf16.msrb.mxu3 %v12241_v15  ;;  %8491 = vmatpush.bf16.msrb.mxu0 %v18778_v24  ;;  %v18808_v15 = vor.u32 %v12868_v12, %v12074_v44  ;;  %v12916_v44 = vld [vmem:[%s19483_s6 + $0x11c] sm:$0xf] }
0x1160   : > { %v8172_v57 = vpop.f32.mrf.mxu3  ;;  %8832 = vmatpush.bf16.msra.mxu1 %v12209_v63  ;;  %8861 = vmatpush.bf16.msrb.mxu2 %v18781_v46 }
0x1161   : > { %v8173_v1 = vadd.f32 %v8172_v57, %v8053_v10 }
0x1163   : > { %9464 = vmatpush.bf16.msrb.mxu3 %v12225_v7  ;;  %8492 = vmatpush.bf16.msrb.mxu0 %v18808_v15  ;;  %v8055_v7 = vld [vmem:[%s19480_s3 + $0x30] sm:$0xff] }
0x1164   : > { %8833 = vmatpush.bf16.msra.mxu1 %v12193_v2  ;;  %8862 = vmatpush.bf16.msrb.mxu2 %v18811_v23 }
0x1167   : > { %9465 = vmatpush.bf16.msrb.mxu3 %v12209_v63  ;;  %v12282_v63 = vld [vmem:[%s19483_s6 + $0x178] sm:$0xf0] }
0x1168   : > { %v8174_v20 = vpop.f32.mrf.mxu3  ;;  %9223 = vmatpush.bf16.msra.mxu2 %v18295_v50  ;;  %v18873_v12 = vor.u32 %v12920_v25, %v12282_v63 }
0x1169   : > { %v8175_v14 = vadd.f32 %v8174_v20, %v8054_v18  ;;  %v12904_v20 = vld [vmem:[%s19483_s6 + $0x5c] sm:$0xf] }
0x116a   : > { %19610 = vst [vmem:[#allocation7_spill] sm:$0xff] %v18873_v12 }
0x116b   : > { %v18813_v21 = vpack.c.bf16 %v8175_v14, %v8173_v1  ;;  %9466 = vmatpush.bf16.msrb.mxu3 %v12193_v2  ;;  %v12218_v2 = vld [vmem:[%s19483_s6 + $0x78] sm:$0xf0] }
0x116c   : > { %9224 = vmatpush.bf16.msra.mxu2 %v18308_v48  ;;  %v18920_v1 = vor.u32 %v12904_v20, %v12218_v2  ;;  %v12202_v14 = vld [vmem:[%s19483_s6 + $0x38] sm:$0xf0] }
0x116d   : > { %8416 = vmatmul.bf16.gmra.mxu0 %v18813_v21  ;;  %8445 = vmatmul.bf16.gmra.mxu1 %v18813_v21 }
0x116e   : > { %8474 = vmatmul.bf16.gmra.mxu2 %v18813_v21  ;;  %8902 = vmatmul.bf16.gmra.mxu3 %v18813_v21  ;;  %19614 = vst [vmem:[#allocation11_spill] sm:$0xff] %v18920_v1 }
0x1170   : > { %v8177_v57 = vpop.f32.mrf.mxu3  ;;  %9225 = vmatpush.bf16.msra.mxu2 %v18324_v26  ;;  %v12928_v26 = vld [vmem:[%s19483_s6 + $0x1dc] sm:$0xf] }
0x1171   : > { %v8178_v45 = vadd.f32 %v8177_v57, %v8055_v7 }
0x1174   : > { %9226 = vmatpush.bf16.msra.mxu2 %v18405_v32  ;;  %v12314_v32 = vld [vmem:[%s19483_s6 + $0x1f8] sm:$0xf0] }
0x1178   : > { %v8179_v36 = vpop.f32.mrf.mxu3  ;;  %9227 = vmatpush.bf16.msra.mxu2 %v18454_v6  ;;  %v18853_v6 = vor.u32 %v12928_v26, %v12314_v32 }
0x1179   : > { %v8180_v52 = vadd.f32 %v8179_v36, %v8056_v33 }
0x117a   : > { %19608 = vst [vmem:[#allocation5_spill] sm:$0xff] %v18853_v6  ;;  %8913 = vmatpush.bf16.msra.mxu0 %v18853_v6 }
0x117b   : > { %v18830_v0 = vpack.c.bf16 %v8180_v52, %v8178_v45 }
0x117c   : > { %9228 = vmatpush.bf16.msra.mxu2 %v18494_v47  ;;  %v12924_v47 = vld [vmem:[%s19483_s6 + $0x19c] sm:$0xf] }
0x117d   : > { %8421 = vmatmul.bf16.gmra.mxu0 %v18830_v0  ;;  %8450 = vmatmul.bf16.gmra.mxu1 %v18830_v0 }
0x117e   : > { %8479 = vmatmul.bf16.gmra.mxu2 %v18830_v0  ;;  %8907 = vmatmul.bf16.gmra.mxu3 %v18830_v0 }
0x1180   : > { %v18838_v50 = vpop.f32.mrf.mxu3  ;;  %9229 = vmatpush.bf16.msra.mxu2 %v18529_v54  ;;  %v12298_v54 = vld [vmem:[%s19483_s6 + $0x1b8] sm:$0xf0] }
0x1184   : > { %9230 = vmatpush.bf16.msra.mxu2 %v18563_v34  ;;  %v18863_v34 = vor.u32 %v12924_v47, %v12298_v54 }
0x1186   : > { %19609 = vst [vmem:[#allocation6_spill] sm:$0xff] %v18863_v34  ;;  %8914 = vmatpush.bf16.msra.mxu0 %v18863_v34 }
0x1188   : > { %v18842_v48 = vpop.f32.mrf.mxu3 }
0x118a   : > { %8915 = vmatpush.bf16.msra.mxu0 %v18873_v12 }
0x118d   : > { %8493 = vmatmul.bf16.vlgmr.msrb.gmra.mxu0 %v18599_v22  ;;  %8834 = vmatmul.bf16.vlgmr.msra.gmra.mxu1 %v18599_v22 }
0x118e   : > { %8863 = vmatmul.bf16.vlgmr.msrb.gmra.mxu2 %v18599_v22 }
0x118f   : > { %9310 = vmatpush.bf16.msrb.mxu2 %v18612_v35  ;;  %v12266_v35 = vld [vmem:[%s19483_s6 + $0x138] sm:$0xf0] }
0x1190   : > { %v18882_v62 = vpop.f32.mrf.mxu3  ;;  %v18885_v40 = vor.u32 %v12916_v44, %v12266_v35 }
0x1192   : > { %19611 = vst [vmem:[#allocation8_spill] sm:$0xff] %v18885_v40  ;;  %8916 = vmatpush.bf16.msra.mxu0 %v18885_v40 }
0x1193   : > { %9311 = vmatpush.bf16.msrb.mxu2 %v18638_v41  ;;  %v12912_v41 = vld [vmem:[%s19483_s6 + $0xdc] sm:$0xf] }
0x1194   : > { %v18898_v9 = vor.u32 %v12912_v41, %v12250_v19 }
0x1196   : > { %19612 = vst [vmem:[#allocation9_spill] sm:$0xff] %v18898_v9  ;;  %8917 = vmatpush.bf16.msra.mxu0 %v18898_v9 }
0x1197   : > { %9312 = vmatpush.bf16.msrb.mxu2 %v18661_v49  ;;  %v12908_v49 = vld [vmem:[%s19483_s6 + $0x9c] sm:$0xf] }
0x1198   : > { %v18907_v10 = vpop.f32.mrf.mxu3 }
0x119b   : > { %9313 = vmatpush.bf16.msrb.mxu2 %v18692_v13  ;;  %v12234_v13 = vld [vmem:[%s19483_s6 + $0xb8] sm:$0xf0] }
0x119c   : > { %v18910_v18 = vor.u32 %v12908_v49, %v12234_v13 }
0x119d   : > { %8498 = vmatmul.bf16.gmra.mxu0 %v18705_v61  ;;  %8839 = vmatmul.bf16.gmra.mxu1 %v18705_v61 }
0x119e   : > { %8868 = vmatmul.bf16.gmra.mxu2 %v18705_v61  ;;  %19613 = vst [vmem:[#allocation10_spill] sm:$0xff] %v18910_v18  ;;  %8918 = vmatpush.bf16.msra.mxu0 %v18910_v18 }
0x119f   : > { %9314 = vmatpush.bf16.msrb.mxu2 %v18720_v42  ;;  %v12900_v42 = vld [vmem:[%s19483_s6 + $0x1c] sm:$0xf] }
0x11a0   : > { %v18931_v57 = vpop.f32.mrf.mxu3  ;;  %v18933_v7 = vor.u32 %v12900_v42, %v12202_v14 }
0x11a2   : > { %8919 = vmatpush.bf16.msra.mxu0 %v18920_v1  ;;  %19615 = vst [vmem:[#allocation12_spill] sm:$0xff] %v18933_v7 }
0x11a3   : > { %9315 = vmatpush.bf16.msrb.mxu2 %v18745_v55 }
0x11a6   : > { %8920 = vmatpush.bf16.msra.mxu0 %v18933_v7 }
0x11a7   : > { %9316 = vmatpush.bf16.msrb.mxu2 %v18778_v24 }
0x11a8   : > { %v18942_v55 = vpop.f32.mrf.mxu3 }
0x11aa   : > { %9281 = vmatpush.bf16.msrb.mxu0 %v18337_v4 }
0x11ab   : > { %9317 = vmatpush.bf16.msrb.mxu2 %v18808_v15 }
0x11ad   : > { %8503 = vmatmul.bf16.gmra.mxu0 %v18813_v21  ;;  %8844 = vmatmul.bf16.gmra.mxu1 %v18813_v21 }
0x11ae   : > { %8873 = vmatmul.bf16.gmra.mxu2 %v18813_v21  ;;  %9282 = vmatpush.bf16.msrb.mxu0 %v18364_v5  ;;  %v8057_v5 = vld [vmem:[%s19480_s3 + $0x40] sm:$0xff] }
0x11b0   : > { %v18949_v4 = vpop.f32.mrf.mxu3 }
0x11b2   : > { %9283 = vmatpush.bf16.msrb.mxu0 %v18403_v17  ;;  %v18958_v17 = vadd.f32 %v18838_v50, %v8057_v5 }
0x11b6   : > { %9284 = vmatpush.bf16.msrb.mxu0 %v18437_v59 }
0x11b8   : > { %v18960_v59 = vpop.f32.mrf.mxu3 }
0x11ba   : > { %9285 = vmatpush.bf16.msrb.mxu0 %v18467_v58 }
0x11bd   : > { %8508 = vmatmul.bf16.gmra.mxu0 %v18830_v0  ;;  %8849 = vmatmul.bf16.gmra.mxu1 %v18830_v0 }
0x11be   : > { %8878 = vmatmul.bf16.gmra.mxu2 %v18830_v0  ;;  %9286 = vmatpush.bf16.msrb.mxu0 %v18505_v38 }
0x11c2   : > { %9287 = vmatpush.bf16.msrb.mxu0 %v18541_v28 }
0x11c6   : > { %9288 = vmatpush.bf16.msrb.mxu0 %v18574_v8 }
0x11ca   : > { %v8407_v58 = vpop.f32.mrf.mxu0  ;;  %v8436_v24 = vpop.f32.mrf.mxu1 }
0x11cb   : > { %v8514_v15 = vadd.f32 %v8407_v58, %v18958_v17  ;;  %v8538_v33 = vadd.f32 %v8436_v24, %v18958_v17 }
0x11cd   : > { %v8522_v38 = vmul.f32 0.2, %v8514_v15  ;;  %v8546_v36 = vmul.f32 0.2, %v8538_v33  ;;  %8921 = vmatmul.bf16.vlgmr.msra.gmra.mxu0 %v18599_v22  ;;  %v8059_v22 = vld [vmem:[%s19480_s3 + $0x50] sm:$0xff] }
0x11ce   : > { %9488 = vmatpush.bf16.msra.mxu0 %v18625_v60  ;;  %v18981_v63 = vadd.f32 %v18882_v62, %v8059_v22 }
0x11cf   : > { %v8530_v28 = vmax.f32 %v8514_v15, %v8522_v38  ;;  %v8554_v45 = vmax.f32 %v8538_v33, %v8546_v36 }
0x11d1   : > { %v8562_v52 = vmax.f32 %v8530_v28, %v8554_v45  ;;  %v8465_v50 = vpop.f32.mrf.mxu2  ;;  %v8893_v26 = vpop.f32.mrf.mxu3 }
0x11d2   : > { %v8570_v32 = vadd.f32 %v8465_v50, %v18958_v17  ;;  %v18969_v8 = vadd.f32 %v8893_v26, %v18958_v17  ;;  %v18971_v47 = vpop.f32.mrf.mxu0  ;;  %v18973_v54 = vpop.f32.mrf.mxu1  ;;  %9489 = vmatpush.bf16.msra.mxu0 %v18649_v31 }
0x11d4   : > { %v8578_v60 = vmul.f32 0.2, %v8570_v32 }
0x11d6   : > { %v8586_v25 = vmax.f32 %v8570_v32, %v8578_v60  ;;  %9490 = vmatpush.bf16.msra.mxu0 %v18673_v16 }
0x11d8   : > { %v18983_v44 = vmax.f32 %v8562_v52, %v8586_v25 }
0x11d9   : > { %v18985_v35 = vpop.f32.mrf.mxu2 }
0x11da   : > { %v8412_v41 = vpop.f32.mrf.mxu0  ;;  %v8441_v19 = vpop.f32.mrf.mxu1  ;;  %9491 = vmatpush.bf16.msra.mxu0 %v18703_v27  ;;  %v8061_v27 = vld [vmem:[%s19480_s3 + $0x60] sm:$0xff] }
0x11db   : > { %v8516_v31 = vadd.f32 %v8412_v41, %v18981_v63  ;;  %v8540_v49 = vadd.f32 %v8441_v19, %v18981_v63 }
0x11dd   : > { %v8524_v13 = vmul.f32 0.2, %v8516_v31  ;;  %v8548_v20 = vmul.f32 0.2, %v8540_v49  ;;  %8926 = vmatmul.bf16.gmra.mxu0 %v18705_v61 }
0x11de   : > { %9492 = vmatpush.bf16.msra.mxu0 %v18733_v3  ;;  %v19003_v3 = vadd.f32 %v18931_v57, %v8061_v27 }
0x11df   : > { %v8532_v16 = vmax.f32 %v8516_v31, %v8524_v13  ;;  %v8556_v62 = vmax.f32 %v8540_v49, %v8548_v20 }
0x11e1   : > { %v8564_v2 = vmax.f32 %v8532_v16, %v8556_v62  ;;  %v8470_v42 = vpop.f32.mrf.mxu2 }
0x11e2   : > { %v8572_v14 = vadd.f32 %v8470_v42, %v18981_v63  ;;  %v18993_v5 = vpop.f32.mrf.mxu0  ;;  %v18995_v58 = vpop.f32.mrf.mxu1  ;;  %9493 = vmatpush.bf16.msra.mxu0 %v18757_v43 }
0x11e4   : > { %v8580_v24 = vmul.f32 0.2, %v8572_v14 }
0x11e6   : > { %v8588_v61 = vmax.f32 %v8572_v14, %v8580_v24  ;;  %9494 = vmatpush.bf16.msra.mxu0 %v18781_v46 }
0x11e8   : > { %v19005_v15 = vmax.f32 %v8564_v2, %v8588_v61 }
0x11e9   : > { %v19007_v33 = vpop.f32.mrf.mxu2 }
0x11ea   : > { %v8417_v38 = vpop.f32.mrf.mxu0  ;;  %v8446_v36 = vpop.f32.mrf.mxu1  ;;  %9495 = vmatpush.bf16.msra.mxu0 %v18811_v23  ;;  %v8063_v23 = vld [vmem:[%s19480_s3 + $0x70] sm:$0xff] }
0x11eb   : > { %v8518_v43 = vadd.f32 %v8417_v38, %v19003_v3  ;;  %v8542_v28 = vadd.f32 %v8446_v36, %v19003_v3  ;;  %v19022_v19 = vadd.f32 %v18949_v4, %v8063_v23 }
0x11ed   : > { %v8526_v45 = vmul.f32 0.2, %v8518_v43  ;;  %v8550_v52 = vmul.f32 0.2, %v8542_v28  ;;  %8931 = vmatmul.bf16.gmra.mxu0 %v18813_v21 }
0x11ef   : > { %v8534_v46 = vmax.f32 %v8518_v43, %v8526_v45  ;;  %v8558_v50 = vmax.f32 %v8542_v28, %v8550_v52 }
0x11f1   : > { %v8566_v57 = vmax.f32 %v8534_v46, %v8558_v50  ;;  %v8475_v26 = vpop.f32.mrf.mxu2 }
0x11f2   : > { %v8574_v32 = vadd.f32 %v8475_v26, %v19003_v3  ;;  %v19014_v22 = vpop.f32.mrf.mxu0  ;;  %v19016_v60 = vpop.f32.mrf.mxu1 }
0x11f4   : > { %v8582_v25 = vmul.f32 0.2, %v8574_v32 }
0x11f6   : > { %v8590_v41 = vmax.f32 %v8574_v32, %v8582_v25  ;;  %v19042_v32 = vpop.f32.mrf.mxu3 }
0x11f8   : > { %v19024_v21 = vmax.f32 %v8566_v57, %v8590_v41 }
0x11f9   : > { %v19026_v31 = vpop.f32.mrf.mxu2 }
0x11fa   : > { %v8422_v49 = vpop.f32.mrf.mxu0  ;;  %v8451_v13 = vpop.f32.mrf.mxu1 }
0x11fb   : > { %v8520_v20 = vadd.f32 %v8422_v49, %v19022_v19  ;;  %v8544_v16 = vadd.f32 %v8451_v13, %v19022_v19 }
0x11fd   : > { %v8528_v62 = vmul.f32 0.2, %v8520_v20  ;;  %v8552_v2 = vmul.f32 0.2, %v8544_v16  ;;  %8936 = vmatmul.bf16.gmra.mxu0 %v18830_v0 }
0x11ff   : > { %v8536_v42 = vmax.f32 %v8520_v20, %v8528_v62  ;;  %v8560_v14 = vmax.f32 %v8544_v16, %v8552_v2  ;;  %v9014_v2 = vmul.f32 0.2, %v18969_v8 }
0x1201   : > { %v8568_v27 = vmax.f32 %v8536_v42, %v8560_v14  ;;  %v8480_v24 = vpop.f32.mrf.mxu2 }
0x1202   : > { %v8576_v4 = vadd.f32 %v8480_v24, %v19022_v19  ;;  %v19032_v61 = vpop.f32.mrf.mxu0  ;;  %v19034_v38 = vpop.f32.mrf.mxu1 }
0x1204   : > { %v8584_v36 = vmul.f32 0.2, %v8576_v4 }
0x1206   : > { %v8592_v43 = vmax.f32 %v8576_v4, %v8584_v36  ;;  %v8898_v4 = vpop.f32.mrf.mxu3 }
0x1208   : > { %v19036_v28 = vmax.f32 %v8568_v27, %v8592_v43  ;;  %v9022_v27 = vmax.f32 %v18969_v8, %v9014_v2 }
0x1209   : > { %v19038_v45 = vpop.f32.mrf.mxu2 }
0x120a   : > { %v8494_v52 = vpop.f32.mrf.mxu0  ;;  %v8835_v46 = vpop.f32.mrf.mxu1 }
0x120b   : > { %v8602_v0 = vadd.f32 %v8494_v52, %v18958_v17  ;;  %v8942_v50 = vadd.f32 %v8835_v46, %v18958_v17 }
0x120d   : > { %v8610_v57 = vmul.f32 0.2, %v8602_v0  ;;  %v8950_v26 = vmul.f32 0.2, %v8942_v50 }
0x120e   : > { %v19063_v2 = vpop.f32.mrf.mxu3 }
0x120f   : > { %v8618_v23 = vmax.f32 %v8602_v0, %v8610_v57  ;;  %v8958_v41 = vmax.f32 %v8942_v50, %v8950_v26 }
0x1211   : > { %v8626_v25 = vmax.f32 %v18983_v44, %v8618_v23  ;;  %v8864_v49 = vpop.f32.mrf.mxu2  ;;  %v9008_v23 = vadd.f32 %v8898_v4, %v18981_v63 }
0x1212   : > { %v8974_v13 = vadd.f32 %v8864_v49, %v18958_v17  ;;  %v19046_v20 = vpop.f32.mrf.mxu0  ;;  %v19048_v16 = vpop.f32.mrf.mxu1 }
0x1213   : > { %v8966_v62 = vmax.f32 %v8626_v25, %v8958_v41 }
0x1214   : > { %v8982_v42 = vmul.f32 0.2, %v8974_v13 }
0x1216   : > { %v8990_v14 = vmax.f32 %v8974_v13, %v8982_v42 }
0x1218   : > { %v8998_v24 = vmax.f32 %v8966_v62, %v8990_v14  ;;  %v9016_v14 = vmul.f32 0.2, %v9008_v23 }
0x1219   : > { %v19052_v36 = vpop.f32.mrf.mxu2 }
0x121a   : > { %v8499_v44 = vpop.f32.mrf.mxu0  ;;  %v8840_v43 = vpop.f32.mrf.mxu1  ;;  %v9030_v52 = vmax.f32 %v8998_v24, %v9022_v27 }
0x121b   : > { %v8604_v46 = vadd.f32 %v8499_v44, %v18981_v63  ;;  %v8944_v0 = vadd.f32 %v8840_v43, %v18981_v63  ;;  %v9024_v44 = vmax.f32 %v9008_v23, %v9016_v14 }
0x121d   : > { %v8612_v50 = vmul.f32 0.2, %v8604_v46  ;;  %v8952_v57 = vmul.f32 0.2, %v8944_v0 }
0x121f   : > { %v8620_v26 = vmax.f32 %v8604_v46, %v8612_v50  ;;  %v8960_v41 = vmax.f32 %v8944_v0, %v8952_v57 }
0x1221   : > { %v8628_v25 = vmax.f32 %v19005_v15, %v8620_v26  ;;  %v8869_v8 = vpop.f32.mrf.mxu2  ;;  %v8903_v26 = vpop.f32.mrf.mxu3 }
0x1222   : > { %v8976_v49 = vadd.f32 %v8869_v8, %v18981_v63  ;;  %v19059_v13 = vpop.f32.mrf.mxu0  ;;  %v19061_v62 = vpop.f32.mrf.mxu1 }
0x1223   : > { %v8968_v42 = vmax.f32 %v8628_v25, %v8960_v41  ;;  %v9010_v25 = vadd.f32 %v8903_v26, %v19003_v3 }
0x1224   : > { %v8984_v27 = vmul.f32 0.2, %v8976_v49 }
0x1226   : > { %v8992_v24 = vmax.f32 %v8976_v49, %v8984_v27 }
0x1228   : > { %v9000_v43 = vmax.f32 %v8968_v42, %v8992_v24  ;;  %v9018_v24 = vmul.f32 0.2, %v9010_v25 }
0x1229   : > { %v19065_v46 = vpop.f32.mrf.mxu2 }
0x122a   : > { %v8504_v4 = vpop.f32.mrf.mxu0  ;;  %v8845_v15 = vpop.f32.mrf.mxu1  ;;  %v9032_v0 = vmax.f32 %v9000_v43, %v9024_v44 }
0x122b   : > { %v8606_v50 = vadd.f32 %v8504_v4, %v19003_v3  ;;  %v8946_v57 = vadd.f32 %v8845_v15, %v19003_v3  ;;  %v9026_v4 = vmax.f32 %v9010_v25, %v9018_v24 }
0x122d   : > { %v8614_v8 = vmul.f32 0.2, %v8606_v50  ;;  %v8954_v7 = vmul.f32 0.2, %v8946_v57 }
0x122f   : > { %v8622_v1 = vmax.f32 %v8606_v50, %v8614_v8  ;;  %v8962_v49 = vmax.f32 %v8946_v57, %v8954_v7 }
0x1231   : > { %v8630_v41 = vmax.f32 %v19024_v21, %v8622_v1  ;;  %v8874_v23 = vpop.f32.mrf.mxu2 }
0x1232   : > { %v8978_v42 = vadd.f32 %v8874_v23, %v19003_v3  ;;  %v19072_v14 = vpop.f32.mrf.mxu0 }
0x1233   : > { %v8970_v27 = vmax.f32 %v8630_v41, %v8962_v49 }
0x1234   : > { %v8986_v44 = vmul.f32 0.2, %v8978_v42 }
0x1236   : > { %v8994_v43 = vmax.f32 %v8978_v42, %v8986_v44  ;;  %v19095_v44 = vpop.f32.mrf.mxu1 }
0x1238   : > { %v9002_v15 = vmax.f32 %v8970_v27, %v8994_v43 }
0x123a   : > { %v8509_v18 = vpop.f32.mrf.mxu0  ;;  %v19074_v9 = vmax.f32 %v9002_v15, %v9026_v4 }
0x123b   : > { %v8608_v50 = vadd.f32 %v8509_v18, %v19022_v19  ;;  %v8058_v18 = vld [vmem:[%s19480_s3 + $0x48] sm:$0xff] }
0x123d   : > { %v8616_v26 = vmul.f32 0.2, %v8608_v50 }
0x123f   : > { %v8624_v8 = vmax.f32 %v8608_v50, %v8616_v26 }
0x1241   : > { %v19078_v1 = vmax.f32 %v19036_v28, %v8624_v8  ;;  %v19090_v28 = vadd.f32 %v18842_v48, %v8058_v18  ;;  %v8062_v48 = vld [vmem:[%s19480_s3 + $0x68] sm:$0xff]  ;;  %v8905_v8 = vpop.f32.mrf.mxu3  ;;  %v8850_v18 = vpop.f32.mrf.mxu1 }
0x1242   : > { %v8511_v7 = vpop.f32.mrf.mxu0 }
0x1243   : > { %v8515_v50 = vadd.f32 %v18971_v47, %v19090_v28  ;;  %v8539_v26 = vadd.f32 %v18973_v54, %v19090_v28 }
0x1249   : > { %v8908_v56 = vpop.f32.mrf.mxu3 }
0x124a   : > { %v8922_v21 = vpop.f32.mrf.mxu0 }
0x124b   : > { %v9038_v57 = vadd.f32 %v8922_v21, %v18958_v17  ;;  %v8060_v17 = vld [vmem:[%s19480_s3 + $0x58] sm:$0xff]  ;;  %v19119_v21 = vadd.f32 %v18942_v55, %v8062_v48 }
0x124d   : > { %v9046_v41 = vmul.f32 0.2, %v9038_v57 }
0x124f   : > { %v9054_v49 = vmax.f32 %v9038_v57, %v9046_v41  ;;  %v8523_v41 = vmul.f32 0.2, %v8515_v50 }
0x1251   : > { %v19081_v23 = vmax.f32 %v9030_v52, %v9054_v49  ;;  %v19097_v52 = vpop.f32.mrf.mxu2  ;;  %v8547_v49 = vmul.f32 0.2, %v8539_v26 }
0x1252   : > { %v19083_v25 = vpop.f32.mrf.mxu0 }
0x1253   : > { %v8555_v48 = vmax.f32 %v8539_v26, %v8547_v49 }
0x125a   : > { %v8927_v42 = vpop.f32.mrf.mxu0 }
0x125b   : > { %v9040_v27 = vadd.f32 %v8927_v42, %v18981_v63  ;;  %v19102_v63 = vadd.f32 %v18907_v10, %v8060_v17  ;;  %v8571_v10 = vadd.f32 %v18985_v35, %v19090_v28  ;;  %v8879_v35 = vpop.f32.mrf.mxu2  ;;  %v8519_v17 = vadd.f32 %v19014_v22, %v19119_v21 }
0x125d   : > { %v9048_v24 = vmul.f32 0.2, %v9040_v27  ;;  %v8517_v57 = vadd.f32 %v18993_v5, %v19102_v63  ;;  %v8541_v47 = vadd.f32 %v18995_v58, %v19102_v63  ;;  %v8579_v42 = vmul.f32 0.2, %v8571_v10 }
0x125e   : > { %v8543_v58 = vadd.f32 %v19016_v60, %v19119_v21  ;;  %v8527_v22 = vmul.f32 0.2, %v8519_v17  ;;  %v19150_v49 = vadd.f32 %v19063_v2, %v19102_v63  ;;  %v8607_v2 = vadd.f32 %v19072_v14, %v19119_v21 }
0x125f   : > { %v9056_v43 = vmax.f32 %v9040_v27, %v9048_v24  ;;  %v8573_v27 = vadd.f32 %v19007_v33, %v19102_v63  ;;  %v8525_v24 = vmul.f32 0.2, %v8517_v57  ;;  %v8549_v55 = vmul.f32 0.2, %v8541_v47 }
0x1260   : > { %v8587_v40 = vmax.f32 %v8571_v10, %v8579_v42  ;;  %v8551_v60 = vmul.f32 0.2, %v8543_v58  ;;  %v8980_v14 = vadd.f32 %v8879_v35, %v19022_v19 }
0x1261   : > { %v19099_v4 = vmax.f32 %v9032_v0, %v9056_v43  ;;  %v8064_v0 = vld [vmem:[%s19480_s3 + $0x78] sm:$0xff]  ;;  %v8531_v43 = vmax.f32 %v8515_v50, %v8523_v41  ;;  %v8581_v12 = vmul.f32 0.2, %v8573_v27  ;;  %v8533_v6 = vmax.f32 %v8517_v57, %v8525_v24 }
0x1262   : > { %v19104_v15 = vpop.f32.mrf.mxu0  ;;  %v19126_v54 = vadd.f32 %v18960_v59, %v8064_v0  ;;  %v8557_v11 = vmax.f32 %v8541_v47, %v8549_v55 }
0x1263   : > { %v8563_v26 = vmax.f32 %v8531_v43, %v8555_v48  ;;  %v8589_v47 = vmax.f32 %v8573_v27, %v8581_v12  ;;  %v19161_v12 = vadd.f32 %v8908_v56, %v19022_v19  ;;  %v8948_v56 = vadd.f32 %v8850_v18, %v19022_v19 }
0x1264   : > { %v8521_v0 = vadd.f32 %v19032_v61, %v19126_v54  ;;  %v8545_v33 = vadd.f32 %v19034_v38, %v19126_v54  ;;  %v8577_v50 = vadd.f32 %v19038_v45, %v19126_v54  ;;  %v19145_v61 = vadd.f32 %v19042_v32, %v19090_v28 }
0x1265   : > { %v8609_v57 = vadd.f32 %v8511_v7, %v19126_v54  ;;  %v19153_v45 = vadd.f32 %v8905_v8, %v19119_v21  ;;  %v8535_v32 = vmax.f32 %v8519_v17, %v8527_v22  ;;  %v8852_v7 = vpop.f32.mrf.mxu1  ;;  %v8881_v8 = vpop.f32.mrf.mxu2 }
0x1266   : > { %v8529_v38 = vmul.f32 0.2, %v8521_v0  ;;  %v8553_v10 = vmul.f32 0.2, %v8545_v33  ;;  %v8585_v24 = vmul.f32 0.2, %v8577_v50 }
0x1267   : > { %v19171_v17 = vmul.f32 0.2, %v19153_v45 }
0x1268   : > { %v8537_v27 = vmax.f32 %v8521_v0, %v8529_v38  ;;  %v8561_v48 = vmax.f32 %v8545_v33, %v8553_v10  ;;  %v8981_v0 = vadd.f32 %v8881_v8, %v19126_v54  ;;  %v8603_v38 = vadd.f32 %v19046_v20, %v19090_v28 }
0x126a   : > { %v8932_v5 = vpop.f32.mrf.mxu0 }
0x126b   : > { %v9042_v59 = vadd.f32 %v8932_v5, %v19003_v3  ;;  %v8575_v3 = vadd.f32 %v19026_v31, %v19119_v21  ;;  %v8565_v31 = vmax.f32 %v8533_v6, %v8557_v11  ;;  %v8559_v5 = vmax.f32 %v8543_v58, %v8551_v60 }
0x126c   : > { %v19168_v6 = vmul.f32 0.2, %v19150_v49  ;;  %v8593_v58 = vmax.f32 %v8577_v50, %v8585_v24  ;;  %v8569_v60 = vmax.f32 %v8537_v27, %v8561_v48  ;;  %v8947_v50 = vadd.f32 %v19095_v44, %v19119_v21 }
0x126d   : > { %v9050_v34 = vmul.f32 0.2, %v9042_v59  ;;  %v8583_v43 = vmul.f32 0.2, %v8575_v3  ;;  %v8597_v11 = vmax.f32 %v8565_v31, %v8589_v47  ;;  %v8567_v33 = vmax.f32 %v8535_v32, %v8559_v5 }
0x126e   : > { %v8956_v47 = vmul.f32 0.2, %v8948_v56  ;;  %v8601_v31 = vmax.f32 %v8569_v60, %v8593_v58  ;;  %v8988_v32 = vmul.f32 0.2, %v8980_v14  ;;  %v8989_v5 = vmul.f32 0.2, %v8981_v0 }
0x126f   : > { %v9058_v41 = vmax.f32 %v9042_v59, %v9050_v34  ;;  %v19158_v34 = vmax.f32 %v8563_v26, %v8587_v40  ;;  %v8605_v40 = vadd.f32 %v19059_v13, %v19102_v63  ;;  %v8949_v59 = vadd.f32 %v8852_v7, %v19126_v54 }
0x1270   : > { %v8591_v22 = vmax.f32 %v8575_v3, %v8583_v43  ;;  %v19178_v13 = vmul.f32 0.2, %v19161_v12  ;;  %v8615_v26 = vmul.f32 0.2, %v8607_v2  ;;  %v8979_v3 = vadd.f32 %v19097_v52, %v19119_v21 }
0x1271   : > { %v19156_v42 = vmax.f32 %v19074_v9, %v9058_v41  ;;  %v8617_v9 = vmul.f32 0.2, %v8609_v57  ;;  %v8910_v41 = vpop.f32.mrf.mxu3  ;;  %v8613_v10 = vmul.f32 0.2, %v8605_v40  ;;  %v8957_v24 = vmul.f32 0.2, %v8949_v59 }
0x1272   : > { %v8934_v55 = vpop.f32.mrf.mxu0  ;;  %v8599_v7 = vmax.f32 %v8567_v33, %v8591_v22  ;;  %v9028_v20 = vmax.f32 %v19161_v12, %v19178_v13  ;;  %v8623_v8 = vmax.f32 %v8607_v2, %v8615_v26  ;;  %v8611_v27 = vmul.f32 0.2, %v8603_v38 }
0x1273   : > { %v8625_v18 = vmax.f32 %v8609_v57, %v8617_v9  ;;  %v9013_v57 = vadd.f32 %v8910_v41, %v19126_v54  ;;  %v8621_v48 = vmax.f32 %v8605_v40, %v8613_v10  ;;  %v8945_v44 = vadd.f32 %v19061_v62, %v19102_v63 }
0x1274   : > { %v8977_v52 = vadd.f32 %v19065_v46, %v19102_v63  ;;  %v8955_v58 = vmul.f32 0.2, %v8947_v50  ;;  %v8987_v60 = vmul.f32 0.2, %v8979_v3  ;;  %v8964_v33 = vmax.f32 %v8948_v56, %v8956_v47 }
0x1275   : > { %v8633_v9 = vmax.f32 %v8601_v31, %v8625_v18  ;;  %v8996_v22 = vmax.f32 %v8980_v14, %v8988_v32  ;;  %v8965_v53 = vmax.f32 %v8949_v59, %v8957_v24  ;;  %v8997_v12 = vmax.f32 %v8981_v0, %v8989_v5 }
0x1276   : > { %v9021_v13 = vmul.f32 0.2, %v9013_v57  ;;  %v8943_v2 = vadd.f32 %v19048_v16, %v19090_v28  ;;  %v8631_v40 = vmax.f32 %v8599_v7, %v8623_v8  ;;  %v9043_v26 = vadd.f32 %v8934_v55, %v19119_v21 }
0x1277   : > { %v8975_v62 = vadd.f32 %v19052_v36, %v19090_v28  ;;  %v8953_v41 = vmul.f32 0.2, %v8945_v44  ;;  %v8972_v46 = vmax.f32 %v19078_v1, %v8964_v33  ;;  %v8973_v10 = vmax.f32 %v8633_v9, %v8965_v53 }
0x1278   : > { %v8985_v18 = vmul.f32 0.2, %v8977_v52  ;;  %v8995_v56 = vmax.f32 %v8979_v3, %v8987_v60  ;;  %v8619_v59 = vmax.f32 %v8603_v38, %v8611_v27  ;;  %v8629_v0 = vmax.f32 %v8597_v11, %v8621_v48 }
0x1279   : > { %v9004_v47 = vmax.f32 %v8972_v46, %v8996_v22  ;;  %v9005_v31 = vmax.f32 %v8973_v10, %v8997_v12  ;;  %v9041_v21 = vadd.f32 %v19104_v15, %v19102_v63  ;;  %v9051_v55 = vmul.f32 0.2, %v9043_v26  ;;  %v12938_v10 = vld [vmem:[%s19481_s4 + $0x38] sm:$0xff] }
0x127a   : > { %v8937_v43 = vpop.f32.mrf.mxu0  ;;  %v9029_v24 = vmax.f32 %v9013_v57, %v9021_v13  ;;  %v8951_v5 = vmul.f32 0.2, %v8943_v2  ;;  %v8983_v1 = vmul.f32 0.2, %v8975_v62  ;;  %v8961_v53 = vmax.f32 %v8945_v44, %v8953_v41 }
0x127b   : > { %v9044_v35 = vadd.f32 %v8937_v43, %v19022_v19  ;;  %v8963_v19 = vmax.f32 %v8947_v50, %v8955_v58  ;;  %v8993_v43 = vmax.f32 %v8977_v52, %v8985_v18  ;;  %v8627_v11 = vmax.f32 %v19158_v34, %v8619_v59 }
0x127c   : > { %v8969_v38 = vmax.f32 %v8629_v0, %v8961_v53  ;;  %v9036_v8 = vmax.f32 %v9004_v47, %v9028_v20  ;;  %v9037_v27 = vmax.f32 %v9005_v31, %v9029_v24  ;;  %v9039_v48 = vadd.f32 %v19083_v25, %v19090_v28  ;;  %v19621_v0 = vld [vmem:[#allocation6_spill] sm:$0xff]  ;;  %v19622_v47 = vld [vmem:[#allocation7_spill] sm:$0xff]  ;;  %v19627_v53 = vld [vmem:[#allocation12_spill] sm:$0xff] }
0x127d   : > { %v9052_v14 = vmul.f32 0.2, %v9044_v35  ;;  %v8971_v16 = vmax.f32 %v8631_v40, %v8963_v19  ;;  %v9049_v63 = vmul.f32 0.2, %v9041_v21  ;;  %v9059_v15 = vmax.f32 %v9043_v26, %v9051_v55  ;;  %v19626_v24 = vld [vmem:[#allocation11_spill] sm:$0xff] }
0x127e   : > { %v8991_v57 = vmax.f32 %v8975_v62, %v8983_v1  ;;  %v9001_v58 = vmax.f32 %v8969_v38, %v8993_v43  ;;  %v19616_v44 = vmax.f32 %v19153_v45, %v19171_v17  ;;  %v9015_v34 = vmul.f32 0.2, %v19145_v61 }
0x127f   : > { %v9003_v50 = vmax.f32 %v8971_v16, %v8995_v56  ;;  %v9060_v3 = vmax.f32 %v9044_v35, %v9052_v14  ;;  %v9025_v20 = vmax.f32 %v19150_v49, %v19168_v6  ;;  %v9047_v22 = vmul.f32 0.2, %v9039_v48  ;;  %v12931_v6 = vld [vmem:[%s19481_s4] sm:$0xff]  ;;  %v19620_v14 = vld [vmem:[#allocation5_spill] sm:$0xff]  ;;  %v19623_v16 = vld [vmem:[#allocation8_spill] sm:$0xff] }
0x1280   : > { %v9057_v25 = vmax.f32 %v9041_v21, %v9049_v63  ;;  %v9023_v40 = vmax.f32 %v19145_v61, %v9015_v34  ;;  %v19618_v61 = vld [vmem:[#allocation3_spill] sm:$0xff]  ;;  %v19624_v21 = vld [vmem:[#allocation9_spill] sm:$0xff] }
0x1281   : > { %v9035_v52 = vmax.f32 %v9003_v50, %v19616_v44  ;;  %v9068_v35 = vmax.f32 %v9036_v8, %v9060_v3  ;;  %v9055_v26 = vmax.f32 %v9039_v48, %v9047_v22 }
0x1282   : > { %v8939_v32 = vpop.f32.mrf.mxu0 }
0x1283   : > { %v9045_v36 = vadd.f32 %v8939_v32, %v19126_v54  ;;  %v8959_v54 = vmax.f32 %v8943_v2, %v8951_v5  ;;  %v9067_v28 = vmax.f32 %v9035_v52, %v9059_v15  ;;  %v9033_v2 = vmax.f32 %v9001_v58, %v9025_v20 }
0x1285   : > { %v9053_v7 = vmul.f32 0.2, %v9045_v36  ;;  %v8967_v33 = vmax.f32 %v8627_v11, %v8959_v54  ;;  %v9065_v45 = vmax.f32 %v9033_v2, %v9057_v25  ;;  %v9088_v17 = vpack.c.bf16 %v9067_v28, %v19156_v42  ;;  %v12937_v42 = vld [vmem:[%s19481_s4 + $0x30] sm:$0xff] }
0x1287   : > { %v9061_v9 = vmax.f32 %v9045_v36, %v9053_v7  ;;  %v8999_v13 = vmax.f32 %v8967_v33, %v8991_v57  ;;  %v9087_v46 = vpack.c.bf16 %v9065_v45, %v19099_v4  ;;  %v12932_v4 = vld [vmem:[%s19481_s4 + $0x8] sm:$0xff]  ;;  %v19625_v36 = vld [vmem:[#allocation10_spill] sm:$0xff] }
0x1289   : > { %v9069_v60 = vmax.f32 %v9037_v27, %v9061_v9  ;;  %v9031_v62 = vmax.f32 %v8999_v13, %v9023_v40  ;;  %v9203_v9 = vld [vmem:[%s19482_s5] sm:$0xff]  ;;  %v9205_v40 = vld [vmem:[%s19482_s5 + $0x10] sm:$0xff] }
0x128b   : > { %v9089_v12 = vpack.c.bf16 %v9069_v60, %v9068_v35  ;;  %v9063_v41 = vmax.f32 %v9031_v62, %v9055_v26  ;;  %v9204_v35 = vld [vmem:[%s19482_s5 + $0x8] sm:$0xff] }
0x128d   : > { %9158 = vmatpush.bf16.msrb.mxu1 %v9089_v12  ;;  %v9086_v49 = vpack.c.bf16 %v9063_v41, %v19081_v23  ;;  %v19617_v23 = vld [vmem:[#allocation2_spill] sm:$0xff] }
0x1291   : > { %9159 = vmatpush.bf16.msrb.mxu1 %v9088_v17 }
0x1295   : > { %9160 = vmatpush.bf16.msrb.mxu1 %v9087_v46 }
0x1299   : > { %9161 = vmatpush.bf16.msrb.mxu1 %v9086_v49 }
0x129c   : > { %12350 = vmatmul.msk.bf16.vlgmr.msrb.gmra.mxu1 %vm1064_vm0, %v12931_v6 }
0x129d   : > { %9517 = vmatpush.bf16.msra.mxu1 %v18349_v29  ;;  %v19619_v29 = vld [vmem:[#allocation4_spill] sm:$0xff] }
0x12a1   : > { %9518 = vmatpush.bf16.msra.mxu1 %v18376_v39  ;;  %v12933_v39 = vld [vmem:[%s19481_s4 + $0x10] sm:$0xff] }
0x12a5   : > { %9519 = vmatpush.bf16.msra.mxu1 %v18408_v51  ;;  %v12934_v51 = vld [vmem:[%s19481_s4 + $0x18] sm:$0xff] }
0x12a9   : > { %9520 = vmatpush.bf16.msra.mxu1 %v18439_v37  ;;  %v12935_v37 = vld [vmem:[%s19481_s4 + $0x20] sm:$0xff] }
0x12ac   : > { %12351 = vmatmul.msk.bf16.gmra.mxu1 %vm1064_vm0, %v12932_v4 }
0x12ad   : > { %9521 = vmatpush.bf16.msra.mxu1 %v18476_v30  ;;  %v12936_v30 = vld [vmem:[%s19481_s4 + $0x28] sm:$0xff] }
0x12b1   : > { %9522 = vmatpush.bf16.msra.mxu1 %v19617_v23 }
0x12b5   : > { %9523 = vmatpush.bf16.msra.mxu1 %v19618_v61 }
0x12b9   : > { %9524 = vmatpush.bf16.msra.mxu1 %v19619_v29 }
0x12bc   : > { %12352 = vmatmul.msk.bf16.gmra.mxu1 %vm1064_vm0, %v12933_v39 }
0x12cc   : > { %12353 = vmatmul.msk.bf16.gmra.mxu1 %vm1064_vm0, %v12934_v51 }
0x12dc   : > { %12354 = vmatmul.msk.bf16.gmra.mxu1 %vm1064_vm0, %v12935_v37 }
0x12ec   : > { %12355 = vmatmul.msk.bf16.gmra.mxu1 %vm1064_vm0, %v12936_v30  ;;  %v9206_v30 = vld [vmem:[%s19482_s5 + $0x18] sm:$0xff] }
0x12fc   : > { %12356 = vmatmul.msk.bf16.gmra.mxu1 %vm1064_vm0, %v12937_v42 }
0x130c   : > { %12357 = vmatmul.msk.bf16.gmra.mxu1 %vm1064_vm0, %v12938_v10 }
0x1319   : > { %v9163_v18 = vpop.f32.mrf.mxu1 }
0x1321   : > { %v9165_v19 = vpop.f32.mrf.mxu1 }
0x1322   : > { %v9219_v56 = vpack.c.bf16 %v9165_v19, %v9163_v18 }
0x1324   : > { %9231 = vmatmul.bf16.vlgmr.msra.gmra.mxu2 %v9219_v56  ;;  %9260 = vmatmul.bf16.vlgmr.msra.gmra.mxu3 %v9219_v56 }
0x1325   : > { %9289 = vmatmul.bf16.vlgmr.msrb.gmra.mxu0 %v9219_v56  ;;  %9525 = vmatmul.bf16.vlgmr.msra.gmra.mxu1 %v9219_v56 }
0x1326   : > { %9546 = vmatpush.bf16.msra.mxu2 %v19620_v14 }
0x1329   : > { %v9168_v59 = vpop.f32.mrf.mxu1 }
0x132a   : > { %9547 = vmatpush.bf16.msra.mxu2 %v19621_v0 }
0x132e   : > { %9548 = vmatpush.bf16.msra.mxu2 %v19622_v47 }
0x1331   : > { %v9170_v31 = vpop.f32.mrf.mxu1 }
0x1332   : > { %v19261_v32 = vpack.c.bf16 %v9170_v31, %v9168_v59  ;;  %9549 = vmatpush.bf16.msra.mxu2 %v19623_v16 }
0x1334   : > { %9236 = vmatmul.bf16.gmra.mxu2 %v19261_v32  ;;  %9265 = vmatmul.bf16.gmra.mxu3 %v19261_v32 }
0x1335   : > { %9294 = vmatmul.bf16.gmra.mxu0 %v19261_v32  ;;  %9530 = vmatmul.bf16.gmra.mxu1 %v19261_v32 }
0x1336   : > { %9550 = vmatpush.bf16.msra.mxu2 %v19624_v21 }
0x1339   : > { %v9173_v55 = vpop.f32.mrf.mxu1 }
0x133a   : > { %9551 = vmatpush.bf16.msra.mxu2 %v19625_v36 }
0x133e   : > { %9552 = vmatpush.bf16.msra.mxu2 %v19626_v24 }
0x1341   : > { %v9175_v5 = vpop.f32.mrf.mxu1 }
0x1342   : > { %v19271_v1 = vpack.c.bf16 %v9175_v5, %v9173_v55  ;;  %9553 = vmatpush.bf16.msra.mxu2 %v19627_v53 }
0x1344   : > { %9241 = vmatmul.bf16.gmra.mxu2 %v19271_v1  ;;  %9270 = vmatmul.bf16.gmra.mxu3 %v19271_v1 }
0x1345   : > { %9299 = vmatmul.bf16.gmra.mxu0 %v19271_v1  ;;  %9535 = vmatmul.bf16.gmra.mxu1 %v19271_v1 }
0x1349   : > { %v9178_v43 = vpop.f32.mrf.mxu1 }
0x1351   : > { %v9180_v50 = vpop.f32.mrf.mxu1 }
0x1352   : > { %v19278_v3 = vpack.c.bf16 %v9180_v50, %v9178_v43 }
0x1354   : > { %9246 = vmatmul.bf16.gmra.mxu2 %v19278_v3  ;;  %9275 = vmatmul.bf16.gmra.mxu3 %v19278_v3 }
0x1355   : > { %9304 = vmatmul.bf16.gmra.mxu0 %v19278_v3  ;;  %9540 = vmatmul.bf16.gmra.mxu1 %v19278_v3 }
0x1359   : > { %v9183_v7 = vpop.f32.mrf.mxu1 }
0x135a   : > { %v19304_v54 = vadd.f32 %v9203_v9, %v9183_v7 }
0x1361   : > { %v9185_v11 = vpop.f32.mrf.mxu1 }
0x1362   : > { %v19313_v60 = vadd.f32 %v9204_v35, %v9185_v11 }
0x1364   : > { %9318 = vmatmul.bf16.vlgmr.msrb.gmra.mxu2 %v9219_v56  ;;  %9467 = vmatmul.bf16.vlgmr.msrb.gmra.mxu3 %v9219_v56 }
0x1365   : > { %9496 = vmatmul.bf16.vlgmr.msra.gmra.mxu0 %v9219_v56 }
0x1369   : > { %v9188_v38 = vpop.f32.mrf.mxu1 }
0x136a   : > { %v19321_v41 = vadd.f32 %v9205_v40, %v9188_v38 }
0x1371   : > { %v9190_v8 = vpop.f32.mrf.mxu1 }
0x1374   : > { %9323 = vmatmul.bf16.gmra.mxu2 %v19261_v32  ;;  %9472 = vmatmul.bf16.gmra.mxu3 %v19261_v32 }
0x1375   : > { %9501 = vmatmul.bf16.gmra.mxu0 %v19261_v32 }
0x1379   : > { %v19287_v27 = vpop.f32.mrf.mxu1 }
0x1381   : > { %v19291_v48 = vpop.f32.mrf.mxu1 }
0x1384   : > { %9328 = vmatmul.bf16.gmra.mxu2 %v19271_v1  ;;  %9477 = vmatmul.bf16.gmra.mxu3 %v19271_v1 }
0x1385   : > { %9506 = vmatmul.bf16.gmra.mxu0 %v19271_v1 }
0x1389   : > { %v19294_v63 = vpop.f32.mrf.mxu1 }
0x1391   : > { %v19299_v15 = vpop.f32.mrf.mxu1 }
0x1394   : > { %9333 = vmatmul.bf16.gmra.mxu2 %v19278_v3  ;;  %9482 = vmatmul.bf16.gmra.mxu3 %v19278_v3 }
0x1395   : > { %9511 = vmatmul.bf16.gmra.mxu0 %v19278_v3 }
0x13a2   : > { %v9290_v57 = vpop.f32.mrf.mxu0  ;;  %v9526_v58 = vpop.f32.mrf.mxu1 }
0x13a3   : > { %v9395_v44 = vadd.f32 %v9290_v57, %v19304_v54  ;;  %v19308_v52 = vadd.f32 %v9526_v58, %v19304_v54 }
0x13a4   : > { %9554 = vmatmul.bf16.vlgmr.msra.gmra.mxu2 %v9219_v56  ;;  %v19332_v56 = vadd.f32 %v9206_v30, %v9190_v8 }
0x13a5   : > { %v9403_v25 = vmul.f32 0.2, %v9395_v44 }
0x13a7   : > { %v9232_v34 = vpop.f32.mrf.mxu2  ;;  %v9261_v20 = vpop.f32.mrf.mxu3  ;;  %v9411_v17 = vmax.f32 %v9395_v44, %v9403_v25 }
0x13a8   : > { %v9339_v33 = vadd.f32 %v9232_v34, %v19304_v54  ;;  %v9363_v22 = vadd.f32 %v9261_v20, %v19304_v54 }
0x13aa   : > { %v9347_v28 = vmul.f32 0.2, %v9339_v33  ;;  %v9371_v12 = vmul.f32 0.2, %v9363_v22  ;;  %v9292_v13 = vpop.f32.mrf.mxu0 }
0x13ab   : > { %v9396_v2 = vadd.f32 %v9292_v13, %v19313_v60 }
0x13ac   : > { %v9355_v26 = vmax.f32 %v9339_v33, %v9347_v28  ;;  %v9379_v45 = vmax.f32 %v9363_v22, %v9371_v12  ;;  %v9208_v33 = vld [vmem:[%s19482_s5 + $0x28] sm:$0xff] }
0x13ad   : > { %v9404_v61 = vmul.f32 0.2, %v9396_v2  ;;  %v19355_v12 = vadd.f32 %v9208_v33, %v19291_v48  ;;  %v9209_v48 = vld [vmem:[%s19482_s5 + $0x30] sm:$0xff]  ;;  %v9528_v33 = vpop.f32.mrf.mxu1 }
0x13ae   : > { %v9387_v62 = vmax.f32 %v9355_v26, %v9379_v45 }
0x13af   : > { %v9234_v46 = vpop.f32.mrf.mxu2  ;;  %v9263_v49 = vpop.f32.mrf.mxu3  ;;  %v9412_v18 = vmax.f32 %v9396_v2, %v9404_v61 }
0x13b0   : > { %v9340_v6 = vadd.f32 %v9234_v46, %v19313_v60  ;;  %v9364_v4 = vadd.f32 %v9263_v49, %v19313_v60  ;;  %v19325_v23 = vmax.f32 %v9387_v62, %v9411_v17 }
0x13b2   : > { %v9348_v29 = vmul.f32 0.2, %v9340_v6  ;;  %v9372_v39 = vmul.f32 0.2, %v9364_v4  ;;  %v9295_v51 = vpop.f32.mrf.mxu0 }
0x13b3   : > { %v9397_v37 = vadd.f32 %v9295_v51, %v19321_v41 }
0x13b4   : > { %v9356_v42 = vmax.f32 %v9340_v6, %v9348_v29  ;;  %v9380_v10 = vmax.f32 %v9364_v4, %v9372_v39  ;;  %9559 = vmatmul.bf16.gmra.mxu2 %v19261_v32  ;;  %v9207_v32 = vld [vmem:[%s19482_s5 + $0x20] sm:$0xff] }
0x13b5   : > { %v9405_v16 = vmul.f32 0.2, %v9397_v37  ;;  %v19343_v7 = vadd.f32 %v9207_v32, %v19287_v27 }
0x13b6   : > { %v9388_v19 = vmax.f32 %v9356_v42, %v9380_v10  ;;  %v19370_v10 = vadd.f32 %v9209_v48, %v19294_v63 }
0x13b7   : > { %v9237_v14 = vpop.f32.mrf.mxu2  ;;  %v9266_v59 = vpop.f32.mrf.mxu3  ;;  %v9413_v43 = vmax.f32 %v9397_v37, %v9405_v16 }
0x13b8   : > { %v9341_v0 = vadd.f32 %v9237_v14, %v19321_v41  ;;  %v9365_v47 = vadd.f32 %v9266_v59, %v19321_v41  ;;  %v19336_v31 = vmax.f32 %v9388_v19, %v9412_v18 }
0x13ba   : > { %v9349_v21 = vmul.f32 0.2, %v9341_v0  ;;  %v9373_v55 = vmul.f32 0.2, %v9365_v47  ;;  %v9297_v36 = vpop.f32.mrf.mxu0 }
0x13bb   : > { %v9398_v24 = vadd.f32 %v9297_v36, %v19332_v56 }
0x13bc   : > { %v9357_v5 = vmax.f32 %v9341_v0, %v9349_v21  ;;  %v9381_v53 = vmax.f32 %v9365_v47, %v9373_v55 }
0x13bd   : > { %v9406_v58 = vmul.f32 0.2, %v9398_v24 }
0x13be   : > { %v9389_v50 = vmax.f32 %v9357_v5, %v9381_v53 }
0x13bf   : > { %v9239_v11 = vpop.f32.mrf.mxu2  ;;  %v9268_v38 = vpop.f32.mrf.mxu3  ;;  %v9414_v25 = vmax.f32 %v9398_v24, %v9406_v58 }
0x13c0   : > { %v9342_v8 = vadd.f32 %v9239_v11, %v19332_v56  ;;  %v9366_v9 = vadd.f32 %v9268_v38, %v19332_v56  ;;  %v19347_v57 = vmax.f32 %v9389_v50, %v9413_v43 }
0x13c2   : > { %v9350_v44 = vmul.f32 0.2, %v9342_v8  ;;  %v9374_v35 = vmul.f32 0.2, %v9366_v9  ;;  %v9300_v34 = vpop.f32.mrf.mxu0 }
0x13c3   : > { %v9399_v20 = vadd.f32 %v9300_v34, %v19343_v7 }
0x13c4   : > { %v9358_v27 = vmax.f32 %v9342_v8, %v9350_v44  ;;  %v9382_v22 = vmax.f32 %v9366_v9, %v9374_v35  ;;  %9564 = vmatmul.bf16.gmra.mxu2 %v19271_v1 }
0x13c5   : > { %v9407_v17 = vmul.f32 0.2, %v9399_v20 }
0x13c6   : > { %v9390_v28 = vmax.f32 %v9358_v27, %v9382_v22 }
0x13c7   : > { %v9242_v13 = vpop.f32.mrf.mxu2  ;;  %v9271_v2 = vpop.f32.mrf.mxu3  ;;  %v9415_v61 = vmax.f32 %v9399_v20, %v9407_v17 }
0x13c8   : > { %v9343_v40 = vadd.f32 %v9242_v13, %v19343_v7  ;;  %v9367_v26 = vadd.f32 %v9271_v2, %v19343_v7  ;;  %v19359_v45 = vmax.f32 %v9390_v28, %v9414_v25 }
0x13ca   : > { %v9351_v62 = vmul.f32 0.2, %v9343_v40  ;;  %v9375_v46 = vmul.f32 0.2, %v9367_v26  ;;  %v9302_v49 = vpop.f32.mrf.mxu0 }
0x13cb   : > { %v9400_v6 = vadd.f32 %v9302_v49, %v19355_v12 }
0x13cc   : > { %v9359_v1 = vmax.f32 %v9343_v40, %v9351_v62  ;;  %v9383_v4 = vmax.f32 %v9367_v26, %v9375_v46  ;;  %v9647_v62 = vmul.f32 0.2, %v19308_v52 }
0x13cd   : > { %v9408_v18 = vmul.f32 0.2, %v9400_v6 }
0x13ce   : > { %v9391_v29 = vmax.f32 %v9359_v1, %v9383_v4 }
0x13cf   : > { %v9244_v39 = vpop.f32.mrf.mxu2  ;;  %v9273_v51 = vpop.f32.mrf.mxu3  ;;  %v9416_v16 = vmax.f32 %v9400_v6, %v9408_v18 }
0x13d0   : > { %v9344_v37 = vadd.f32 %v9244_v39, %v19355_v12  ;;  %v9368_v30 = vadd.f32 %v9273_v51, %v19355_v12  ;;  %v19367_v42 = vmax.f32 %v9391_v29, %v9415_v61  ;;  %v9531_v61 = vpop.f32.mrf.mxu1 }
0x13d2   : > { %v9352_v19 = vmul.f32 0.2, %v9344_v37  ;;  %v9376_v14 = vmul.f32 0.2, %v9368_v30  ;;  %v9305_v59 = vpop.f32.mrf.mxu0 }
0x13d3   : > { %v9401_v55 = vadd.f32 %v9305_v59, %v19370_v10 }
0x13d4   : > { %v9360_v0 = vmax.f32 %v9344_v37, %v9352_v19  ;;  %v9384_v47 = vmax.f32 %v9368_v30, %v9376_v14  ;;  %9569 = vmatmul.bf16.gmra.mxu2 %v19278_v3  ;;  %v9655_v37 = vmax.f32 %v19308_v52, %v9647_v62  ;;  %v9640_v30 = vadd.f32 %v9528_v33, %v19313_v60 }
0x13d5   : > { %v9409_v53 = vmul.f32 0.2, %v9401_v55 }
0x13d6   : > { %v9392_v21 = vmax.f32 %v9360_v0, %v9384_v47 }
0x13d7   : > { %v9247_v36 = vpop.f32.mrf.mxu2  ;;  %v9276_v24 = vpop.f32.mrf.mxu3  ;;  %v9417_v3 = vmax.f32 %v9401_v55, %v9409_v53 }
0x13d8   : > { %v9345_v32 = vadd.f32 %v9247_v36, %v19370_v10  ;;  %v9369_v5 = vadd.f32 %v9276_v24, %v19370_v10  ;;  %v19376_v63 = vmax.f32 %v9392_v21, %v9416_v16  ;;  %v9648_v16 = vmul.f32 0.2, %v9640_v30 }
0x13da   : > { %v9353_v43 = vmul.f32 0.2, %v9345_v32  ;;  %v9377_v50 = vmul.f32 0.2, %v9369_v5  ;;  %v19378_v11 = vpop.f32.mrf.mxu0 }
0x13dc   : > { %v9361_v38 = vmax.f32 %v9345_v32, %v9353_v43  ;;  %v9385_v8 = vmax.f32 %v9369_v5, %v9377_v50  ;;  %v9641_v50 = vadd.f32 %v9531_v61, %v19321_v41 }
0x13de   : > { %v9393_v9 = vmax.f32 %v9361_v38, %v9385_v8  ;;  %v9656_v38 = vmax.f32 %v9640_v30, %v9648_v16  ;;  %v9533_v8 = vpop.f32.mrf.mxu1 }
0x13df   : > { %v19380_v58 = vpop.f32.mrf.mxu2  ;;  %v19382_v44 = vpop.f32.mrf.mxu3 }
0x13e0   : > { %v19384_v35 = vmax.f32 %v9393_v9, %v9417_v3 }
0x13e2   : > { %v9497_v34 = vpop.f32.mrf.mxu0 }
0x13e3   : > { %v9607_v20 = vadd.f32 %v9497_v34, %v19304_v54 }
0x13e5   : > { %v9615_v26 = vmul.f32 0.2, %v9607_v20 }
0x13e7   : > { %v9319_v27 = vpop.f32.mrf.mxu2  ;;  %v9468_v22 = vpop.f32.mrf.mxu3  ;;  %v9623_v6 = vmax.f32 %v9607_v20, %v9615_v26 }
0x13e8   : > { %v9427_v25 = vadd.f32 %v9319_v27, %v19304_v54  ;;  %v9575_v28 = vadd.f32 %v9468_v22, %v19304_v54  ;;  %v9649_v22 = vmul.f32 0.2, %v9641_v50 }
0x13ea   : > { %v9435_v13 = vmul.f32 0.2, %v9427_v25  ;;  %v9583_v2 = vmul.f32 0.2, %v9575_v28  ;;  %v9499_v40 = vpop.f32.mrf.mxu0 }
0x13eb   : > { %v9608_v48 = vadd.f32 %v9499_v40, %v19313_v60 }
0x13ec   : > { %v9443_v17 = vmax.f32 %v9427_v25, %v9435_v13  ;;  %v9591_v49 = vmax.f32 %v9575_v28, %v9583_v2 }
0x13ed   : > { %v9616_v59 = vmul.f32 0.2, %v9608_v48 }
0x13ee   : > { %v9451_v46 = vmax.f32 %v19325_v23, %v9443_v17 }
0x13ef   : > { %v9321_v1 = vpop.f32.mrf.mxu2  ;;  %v9470_v4 = vpop.f32.mrf.mxu3  ;;  %v9624_v5 = vmax.f32 %v9608_v48, %v9616_v59 }
0x13f0   : > { %v9599_v29 = vmax.f32 %v9451_v46, %v9591_v49  ;;  %v9428_v39 = vadd.f32 %v9321_v1, %v19313_v60  ;;  %v9576_v51 = vadd.f32 %v9470_v4, %v19313_v60  ;;  %v9657_v49 = vmax.f32 %v9641_v50, %v9649_v22  ;;  %v9536_v48 = vpop.f32.mrf.mxu1 }
0x13f2   : > { %v9631_v18 = vmax.f32 %v9599_v29, %v9623_v6  ;;  %v9436_v19 = vmul.f32 0.2, %v9428_v39  ;;  %v9584_v14 = vmul.f32 0.2, %v9576_v51  ;;  %v9502_v23 = vpop.f32.mrf.mxu0  ;;  %v9642_v6 = vadd.f32 %v9533_v8, %v19332_v56 }
0x13f3   : > { %v9609_v36 = vadd.f32 %v9502_v23, %v19321_v41 }
0x13f4   : > { %v9444_v0 = vmax.f32 %v9428_v39, %v9436_v19  ;;  %v19396_v47 = vmax.f32 %v9631_v18, %v9655_v37  ;;  %v9592_v55 = vmax.f32 %v9576_v51, %v9584_v14  ;;  %v9650_v37 = vmul.f32 0.2, %v9642_v6 }
0x13f6   : > { %v9452_v21 = vmax.f32 %v19336_v31, %v9444_v0  ;;  %v9617_v31 = vmul.f32 0.2, %v9609_v36 }
0x13f7   : > { %v9324_v24 = vpop.f32.mrf.mxu2  ;;  %v9473_v32 = vpop.f32.mrf.mxu3 }
0x13f8   : > { %v9600_v52 = vmax.f32 %v9452_v21, %v9592_v55  ;;  %v9429_v53 = vadd.f32 %v9324_v24, %v19321_v41  ;;  %v9577_v43 = vadd.f32 %v9473_v32, %v19321_v41  ;;  %v9625_v13 = vmax.f32 %v9609_v36, %v9617_v31 }
0x13f9   : > { %v9643_v55 = vadd.f32 %v9536_v48, %v19343_v7  ;;  %v9658_v36 = vmax.f32 %v9642_v6, %v9650_v37 }
0x13fa   : > { %v9632_v3 = vmax.f32 %v9600_v52, %v9624_v5  ;;  %v9437_v9 = vmul.f32 0.2, %v9429_v53  ;;  %v9585_v34 = vmul.f32 0.2, %v9577_v43  ;;  %v9504_v20 = vpop.f32.mrf.mxu0 }
0x13fb   : > { %v9610_v17 = vadd.f32 %v9504_v20, %v19332_v56 }
0x13fc   : > { %v9445_v33 = vmax.f32 %v9429_v53, %v9437_v9  ;;  %v19403_v27 = vmax.f32 %v9632_v3, %v9656_v38  ;;  %v9593_v28 = vmax.f32 %v9577_v43, %v9585_v34  ;;  %v9651_v43 = vmul.f32 0.2, %v9643_v55  ;;  %v9538_v38 = vpop.f32.mrf.mxu1 }
0x13fe   : > { %v9453_v25 = vmax.f32 %v19347_v57, %v9445_v33  ;;  %v9618_v57 = vmul.f32 0.2, %v9610_v17 }
0x13ff   : > { %v9326_v2 = vpop.f32.mrf.mxu2  ;;  %v9475_v40 = vpop.f32.mrf.mxu3 }
0x1400   : > { %v9601_v26 = vmax.f32 %v9453_v25, %v9593_v28  ;;  %v9430_v62 = vadd.f32 %v9326_v2, %v19332_v56  ;;  %v9578_v46 = vadd.f32 %v9475_v40, %v19332_v56  ;;  %v9626_v59 = vmax.f32 %v9610_v17, %v9618_v57 }
0x1401   : > { %v9659_v28 = vmax.f32 %v9643_v55, %v9651_v43 }
0x1402   : > { %v9633_v1 = vmax.f32 %v9601_v26, %v9625_v13  ;;  %v9438_v4 = vmul.f32 0.2, %v9430_v62  ;;  %v9586_v61 = vmul.f32 0.2, %v9578_v46  ;;  %v9507_v29 = vpop.f32.mrf.mxu0  ;;  %v9644_v13 = vadd.f32 %v9538_v38, %v19355_v12 }
0x1403   : > { %v9611_v19 = vadd.f32 %v9507_v29, %v19343_v7 }
0x1404   : > { %v9446_v39 = vmax.f32 %v9430_v62, %v9438_v4  ;;  %v19410_v51 = vmax.f32 %v9633_v1, %v9657_v49  ;;  %v9594_v18 = vmax.f32 %v9578_v46, %v9586_v61  ;;  %v9652_v46 = vmul.f32 0.2, %v9644_v13 }
0x1405   : > { %v9619_v52 = vmul.f32 0.2, %v9611_v19 }
0x1406   : > { %v9454_v30 = vmax.f32 %v19359_v45, %v9446_v39  ;;  %v9660_v48 = vmax.f32 %v9644_v13, %v9652_v46 }
0x1407   : > { %v9329_v14 = vpop.f32.mrf.mxu2  ;;  %v9478_v23 = vpop.f32.mrf.mxu3  ;;  %v9627_v9 = vmax.f32 %v9611_v19, %v9619_v52 }
0x1408   : > { %v9602_v0 = vmax.f32 %v9454_v30, %v9594_v18  ;;  %v9431_v16 = vadd.f32 %v9329_v14, %v19343_v7  ;;  %v9579_v21 = vadd.f32 %v9478_v23, %v19343_v7 }
0x140a   : > { %v9634_v24 = vmax.f32 %v9602_v0, %v9626_v59  ;;  %v9439_v32 = vmul.f32 0.2, %v9431_v16  ;;  %v9587_v5 = vmul.f32 0.2, %v9579_v21  ;;  %v9509_v50 = vpop.f32.mrf.mxu0 }
0x140b   : > { %v9612_v33 = vadd.f32 %v9509_v50, %v19355_v12 }
0x140c   : > { %v9447_v53 = vmax.f32 %v9431_v16, %v9439_v32  ;;  %v9666_v45 = vmax.f32 %v9634_v24, %v9658_v36  ;;  %v9595_v3 = vmax.f32 %v9579_v21, %v9587_v5 }
0x140d   : > { %v9620_v17 = vmul.f32 0.2, %v9612_v33 }
0x140e   : > { %v9455_v8 = vmax.f32 %v19367_v42, %v9447_v53 }
0x140f   : > { %v9331_v34 = vpop.f32.mrf.mxu2  ;;  %v9480_v20 = vpop.f32.mrf.mxu3  ;;  %v9628_v4 = vmax.f32 %v9612_v33, %v9620_v17 }
0x1410   : > { %v9603_v31 = vmax.f32 %v9455_v8, %v9595_v3  ;;  %v9432_v22 = vadd.f32 %v9331_v34, %v19355_v12  ;;  %v9580_v25 = vadd.f32 %v9480_v20, %v19355_v12 }
0x1412   : > { %v9635_v2 = vmax.f32 %v9603_v31, %v9627_v9  ;;  %v9440_v40 = vmul.f32 0.2, %v9432_v22  ;;  %v9588_v26 = vmul.f32 0.2, %v9580_v25 }
0x1414   : > { %v9448_v62 = vmax.f32 %v9432_v22, %v9440_v40  ;;  %v9667_v42 = vmax.f32 %v9635_v2, %v9659_v28  ;;  %v9596_v6 = vmax.f32 %v9580_v25, %v9588_v26  ;;  %v9541_v25 = vpop.f32.mrf.mxu1 }
0x1416   : > { %v9456_v49 = vmax.f32 %v19376_v63, %v9448_v62 }
0x1417   : > { %v9334_v1 = vpop.f32.mrf.mxu2  ;;  %v9483_v3 = vpop.f32.mrf.mxu3 }
0x1418   : > { %v9604_v61 = vmax.f32 %v9456_v49, %v9596_v6  ;;  %v9433_v29 = vadd.f32 %v9334_v1, %v19370_v10  ;;  %v9581_v46 = vadd.f32 %v9483_v3, %v19370_v10 }
0x141a   : > { %v9636_v57 = vmax.f32 %v9604_v61, %v9628_v4  ;;  %v9441_v39 = vmul.f32 0.2, %v9433_v29 }
0x141c   : > { %v9449_v37 = vmax.f32 %v9433_v29, %v9441_v39  ;;  %v9668_v30 = vmax.f32 %v9636_v57, %v9660_v48  ;;  %v9543_v57 = vpop.f32.mrf.mxu1 }
0x141e   : > { %v19425_v18 = vmax.f32 %v19384_v35, %v9449_v37 }
0x141f   : > { %v9336_v19 = vpop.f32.mrf.mxu2  ;;  %v9485_v40 = vpop.f32.mrf.mxu3 }
0x1427   : > { %v9555_v14 = vpop.f32.mrf.mxu2 }
0x1428   : > { %v9671_v23 = vadd.f32 %v9555_v14, %v19304_v54 }
0x142a   : > { %v9679_v59 = vmul.f32 0.2, %v9671_v23 }
0x142c   : > { %v9687_v63 = vmax.f32 %v9671_v23, %v9679_v59  ;;  %v9645_v59 = vadd.f32 %v9541_v25, %v19370_v10  ;;  %v9708_v25 = vld [vmem:[%s19485_s8] sm:$0x7f] }
0x142e   : > { %v19429_v0 = vmax.f32 %v19396_v47, %v9687_v63 }
0x142f   : > { %v9557_v16 = vpop.f32.mrf.mxu2 }
0x1430   : > { %v9672_v21 = vadd.f32 %v9557_v16, %v19313_v60  ;;  %v9210_v60 = vld [vmem:[%s19482_s5 + $0x38] sm:$0xff] }
0x1431   : > { %v9218_v50 = vadd.f32 %v9210_v60, %v19299_v15 }
0x1432   : > { %v9680_v55 = vmul.f32 0.2, %v9672_v21 }
0x1433   : > { %v9370_v8 = vadd.f32 %v19382_v44, %v9218_v50  ;;  %v9402_v15 = vadd.f32 %v19378_v11, %v9218_v50  ;;  %v9434_v28 = vadd.f32 %v9336_v19, %v9218_v50  ;;  %v9582_v49 = vadd.f32 %v9485_v40, %v9218_v50 }
0x1434   : > { %v9688_v36 = vmax.f32 %v9672_v21, %v9680_v55  ;;  %v9646_v63 = vadd.f32 %v9543_v57, %v9218_v50 }
0x1435   : > { %v9378_v33 = vmul.f32 0.2, %v9370_v8  ;;  %v9442_v17 = vmul.f32 0.2, %v9434_v28  ;;  %v9590_v37 = vmul.f32 0.2, %v9582_v49 }
0x1436   : > { %v19433_v24 = vmax.f32 %v19403_v27, %v9688_v36 }
0x1437   : > { %v9560_v32 = vpop.f32.mrf.mxu2  ;;  %v9386_v44 = vmax.f32 %v9370_v8, %v9378_v33  ;;  %v9450_v11 = vmax.f32 %v9434_v28, %v9442_v17  ;;  %v9598_v36 = vmax.f32 %v9582_v49, %v9590_v37 }
0x1438   : > { %v9673_v35 = vadd.f32 %v9560_v32, %v19321_v41  ;;  %v9704_v5 = vpack.c.bf16 %v19433_v24, %v19429_v0  ;;  %v9346_v41 = vadd.f32 %v19380_v58, %v9218_v50 }
0x143a   : > { %v9681_v54 = vmul.f32 0.2, %v9673_v35  ;;  %v9354_v31 = vmul.f32 0.2, %v9346_v41 }
0x143c   : > { %v9689_v52 = vmax.f32 %v9673_v35, %v9681_v54  ;;  %v9362_v13 = vmax.f32 %v9346_v41, %v9354_v31 }
0x143e   : > { %v19439_v53 = vmax.f32 %v19410_v51, %v9689_v52  ;;  %v9394_v62 = vmax.f32 %v9362_v13, %v9386_v44  ;;  %v9653_v52 = vmul.f32 0.2, %v9645_v59 }
0x143f   : > { %v9562_v47 = vpop.f32.mrf.mxu2 }
0x1440   : > { %v9674_v43 = vadd.f32 %v9562_v47, %v19332_v56  ;;  %v9512_v56 = vpop.f32.mrf.mxu0  ;;  %v9654_v47 = vmul.f32 0.2, %v9646_v63  ;;  %v9661_v3 = vmax.f32 %v9645_v59, %v9653_v52 }
0x1441   : > { %v9613_v29 = vadd.f32 %v9512_v56, %v19370_v10 }
0x1442   : > { %v9682_v27 = vmul.f32 0.2, %v9674_v43 }
0x1443   : > { %v9621_v16 = vmul.f32 0.2, %v9613_v29 }
0x1444   : > { %v9690_v38 = vmax.f32 %v9674_v43, %v9682_v27 }
0x1445   : > { %v9629_v60 = vmax.f32 %v9613_v29, %v9621_v16 }
0x1446   : > { %v19448_v9 = vmax.f32 %v9666_v45, %v9690_v38  ;;  %v9410_v45 = vmul.f32 0.2, %v9402_v15 }
0x1447   : > { %v9565_v51 = vpop.f32.mrf.mxu2 }
0x1448   : > { %v9675_v34 = vadd.f32 %v9565_v51, %v19343_v7  ;;  %v9705_v20 = vpack.c.bf16 %v19448_v9, %v19439_v53  ;;  %v9418_v1 = vmax.f32 %v9402_v15, %v9410_v45  ;;  %v9514_v4 = vpop.f32.mrf.mxu0  ;;  %v9662_v51 = vmax.f32 %v9646_v63, %v9654_v47 }
0x1449   : > { %v9614_v39 = vadd.f32 %v9514_v4, %v9218_v50 }
0x144a   : > { %v9683_v22 = vmul.f32 0.2, %v9675_v34  ;;  %v9426_v48 = vmax.f32 %v9394_v62, %v9418_v1 }
0x144b   : > { %v9622_v55 = vmul.f32 0.2, %v9614_v39 }
0x144c   : > { %v9691_v58 = vmax.f32 %v9675_v34, %v9683_v22  ;;  %v9458_v23 = vmax.f32 %v9426_v48, %v9450_v11 }
0x144d   : > { %v9630_v43 = vmax.f32 %v9614_v39, %v9622_v55 }
0x144e   : > { %v9699_v2 = vmax.f32 %v9667_v42, %v9691_v58  ;;  %v9589_v42 = vmul.f32 0.2, %v9581_v46  ;;  %v9606_v54 = vmax.f32 %v9458_v23, %v9598_v36 }
0x144f   : > { %v9567_v26 = vpop.f32.mrf.mxu2 }
0x1450   : > { %v9676_v7 = vadd.f32 %v9567_v26, %v19355_v12  ;;  %v9597_v21 = vmax.f32 %v9581_v46, %v9589_v42  ;;  %v9638_v41 = vmax.f32 %v9606_v54, %v9630_v43 }
0x1452   : > { %v9684_v6 = vmul.f32 0.2, %v9676_v7  ;;  %v9605_v35 = vmax.f32 %v19425_v18, %v9597_v21  ;;  %v9670_v56 = vmax.f32 %v9638_v41, %v9662_v51 }
0x1454   : > { %v9692_v61 = vmax.f32 %v9676_v7, %v9684_v6  ;;  %v9637_v38 = vmax.f32 %v9605_v35, %v9629_v60 }
0x1456   : > { %v9700_v19 = vmax.f32 %v9668_v30, %v9692_v61  ;;  %v9669_v33 = vmax.f32 %v9637_v38, %v9661_v3 }
0x1457   : > { %v9570_v14 = vpop.f32.mrf.mxu2 }
0x1458   : > { %v9706_v12 = vpack.c.bf16 %v9700_v19, %v9699_v2  ;;  %v9677_v32 = vadd.f32 %v9570_v14, %v19370_v10 }
0x145a   : > { %v9685_v30 = vmul.f32 0.2, %v9677_v32 }
0x145c   : > { %v9693_v34 = vmax.f32 %v9677_v32, %v9685_v30 }
0x145e   : > { %v9701_v22 = vmax.f32 %v9669_v33, %v9693_v34 }
0x145f   : > { %v9572_v27 = vpop.f32.mrf.mxu2 }
0x1460   : > { %v9678_v8 = vadd.f32 %v9572_v27, %v9218_v50  ;;  %v9703_v50 = vld [vmem:[%s19484_s7] sm:$0xf] }
0x1462   : > { %v9686_v31 = vmul.f32 0.2, %v9678_v8 }
0x1464   : > { %v9694_v10 = vmax.f32 %v9678_v8, %v9686_v31 }
0x1466   : > { %v9702_v18 = vmax.f32 %v9670_v56, %v9694_v10 }
0x1468   : > { %v9707_v15 = vpack.c.bf16 %v9702_v18, %v9701_v22 }
0x146a   : > { %9716 = vmatpush.bf16.msra.mxu3 %v9707_v15 }
0x146e   : > { %9717 = vmatpush.bf16.msra.mxu3 %v9706_v12 }
0x1472   : > { %9718 = vmatpush.bf16.msra.mxu3 %v9705_v20 }
0x1476   : > { %9719 = vmatpush.bf16.msra.mxu3 %v9704_v5 }
0x1479   : > { %12358 = vmatmul.msk.bf16.vlgmr.msra.gmra.mxu3 %vm1064_vm0, %v9703_v50 }
0x14fc   : > { %v9721_v28 = vpop.f32.mrf.mxu3 }
0x14fd   : > { %v9722_v58 = vadd.f32 %v9721_v28, %v9708_v25 }
0x14ff   : > { %12359 = vst [vmem:[%s14904_s17 + $0x18] sm:$0x7f] %v9722_v58 }
0x1504   : > { %v9723_v13 = vpop.f32.mrf.mxu3 }
0x1505 PF: > { %s19_s30 = sadd.s32 1, %s12953_s30  }
0x1506   : > { %p16_p4 = scmp.ge.s32.totalorder %s19_s30, 4  }
0x1508   :  { %18 = sbr.rel (!%p16_p4) target bundleno = 1 (0x1), region = 92 }

</bundles_post_ra>
